<compile_context>
chip_gen: v7x
topology: tpu7x:2x2x1
jax: 0.10.0
libtpu: 0.0.40
codegen_flags: <defaults>
</compile_context>

<pallas_src>
import functools

import jax
import jax.numpy as jnp
from jax.experimental import pallas as pl
from jax.experimental.pallas import tpu as pltpu

EPS = 1e-5


def _round_up(v, m):
    return (v + m - 1) // m * m


def _pad_axis(a, axis, target):
    if a.shape[axis] == target:
        return a
    pad = [(0, 0)] * a.ndim
    pad[axis] = (0, target - a.shape[axis])
    return jnp.pad(a, pad)


# ----------------------------------------------------------------------------
# Kernel 1: direct 3x3 conv, one image per grid step, unpadded NHWC in / out.
#   Halo is built in VMEM from zero strips (no HBM pad pass).
#   Optional fused input affine (BN scale/shift) + ReLU.
#   Optional per-image channel sum / sum-of-squares partials for the next BN.
# ----------------------------------------------------------------------------
def _conv_taps(x, H, W):
    """x: (H, W, C) -> (H+2, W, 3C) tap tensor.

    Channel block dx of row r holds x_zeropad[r, j+dx, :] where x_zeropad is
    the 1-pixel zero-bordered image, so the 3x3 conv reduces to three long-K
    matmuls: out_rows(dy) = taps[dy:dy+H] @ w[dy]  with K = 3*C.
    """
    C = x.shape[-1]
    zrow = jnp.zeros((1, W, C), x.dtype)
    xr = jnp.concatenate([zrow, x, zrow], axis=0)          # (H+2, W, C)
    zcol = jnp.zeros((H + 2, 1, C), x.dtype)
    xp = jnp.concatenate([zcol, xr, zcol], axis=1)         # (H+2, W+2, C)
    return jnp.concatenate(
        [xp[:, 0:W, :], xp[:, 1:W + 1, :], xp[:, 2:W + 2, :]], axis=-1)


def conv3x3_kernel(*refs, H, W, apply_affine, emit_stats):
    # refs: x, [scale, shift], w, y, [stats], acc_scratch
    it = iter(refs)
    x_ref = next(it)
    if apply_affine:
        scale_ref = next(it)
        shift_ref = next(it)
    w_ref = next(it)
    y_ref = next(it)
    stats_ref = next(it) if emit_stats else None
    acc_ref = next(it)

    cout = w_ref.shape[-1]
    x = x_ref[0]                                           # (H, W, Ci) bf16
    if apply_affine:
        # Fused BN-apply + ReLU on the unpadded interior (f32 epilogue math);
        # the halo zeros are added afterwards, so no border re-zero is needed.
        xf = x.astype(jnp.float32) * scale_ref[...] + shift_ref[...]
        x = jnp.maximum(xf, 0.0).astype(jnp.bfloat16)

    taps = _conv_taps(x, H, W)                             # (H+2, W, 3Ci)
    k3 = taps.shape[-1]
    for dy in range(3):                                    # 3 long-K MXU dots
        t = taps[dy:dy + H].reshape(H * W, k3)             # aligned, free reshape
        d = jnp.dot(t, w_ref[dy], preferred_element_type=jnp.float32)
        if dy == 0:
            acc_ref[...] = d                               # f32 VMEM accumulator
        else:
            acc_ref[...] += d

    acc = acc_ref[...]
    y_ref[0] = acc.reshape(H, W, cout).astype(y_ref.dtype)

    if emit_stats:
        s1 = jnp.sum(acc, axis=0, keepdims=True)           # (1, Co)
        s2 = jnp.sum(acc * acc, axis=0, keepdims=True)     # (1, Co)
        stats_ref[0] = jnp.concatenate([s1, s2], axis=0)   # (2, Co), no dead rows


def conv3x3_call(x, wmat, scale=None, shift=None, *, emit_stats):
    N, H, W, Ci = x.shape
    Co = wmat.shape[-1]
    apply_affine = scale is not None

    inputs = [x]
    in_specs = [pl.BlockSpec((1, H, W, Ci), lambda n: (n, 0, 0, 0))]
    if apply_affine:
        inputs += [scale, shift]
        in_specs += [pl.BlockSpec((1, Co), lambda n: (0, 0)),
                     pl.BlockSpec((1, Co), lambda n: (0, 0))]
    inputs.append(wmat)
    in_specs.append(pl.BlockSpec((3, 3 * Ci, Co), lambda n: (0, 0, 0)))

    out_shapes = [jax.ShapeDtypeStruct((N, H, W, Co), jnp.bfloat16)]
    out_specs = [pl.BlockSpec((1, H, W, Co), lambda n: (n, 0, 0, 0))]
    if emit_stats:
        out_shapes.append(jax.ShapeDtypeStruct((N, 2, Co), jnp.float32))
        out_specs.append(pl.BlockSpec((1, 2, Co), lambda n: (n, 0, 0)))

    kern = functools.partial(conv3x3_kernel, H=H, W=W,
                             apply_affine=apply_affine, emit_stats=emit_stats)
    return pl.pallas_call(
        kern,
        grid=(N,),
        out_shape=tuple(out_shapes) if emit_stats else out_shapes[0],
        in_specs=in_specs,
        out_specs=tuple(out_specs) if emit_stats else out_specs[0],
        scratch_shapes=[pltpu.VMEM((H * W, Co), jnp.float32)],
        compiler_params=pltpu.CompilerParams(dimension_semantics=("parallel",)),
    )(*inputs)


# ----------------------------------------------------------------------------
# Kernel 2: fused BN2-apply + SE + residual add + ReLU + 2x2 maxpool.
#   One image per grid step; outputs are channel-major (C, H*W) so the final
#   NCHW view is a free reshape (no post-kernel transpose pass).
# ----------------------------------------------------------------------------
def se_res_pool_kernel(y_ref, init_ref, scale_ref, shift_ref, fc1_ref, fc2_ref,
                       up_ref, down_ref, *, H, W):
    C = y_ref.shape[-1]
    y = y_ref[0].astype(jnp.float32).reshape(H * W, C)
    y = y * scale_ref[...] + shift_ref[...]                 # BN2 apply (no ReLU)

    se = jnp.mean(y, axis=0, keepdims=True)                 # AdaptiveAvgPool2d(1)
    h = jnp.maximum(jnp.dot(se, fc1_ref[...],
                            preferred_element_type=jnp.float32), 0.0)
    logits = jnp.dot(h, fc2_ref[...], preferred_element_type=jnp.float32)
    s = 1.0 / (1.0 + jnp.exp(-logits))                      # Sigmoid, (1, C)

    out = y * s + init_ref[0].astype(jnp.float32).reshape(H * W, C)
    up = jnp.maximum(out, 0.0)                              # for_up = ReLU(x + init)
    up_ref[0] = up.T.astype(up_ref.dtype)                   # (C, H*W) channel-major

    # 2x2 / stride-2 maxpool, fused (no extra HBM round trip).
    u = up.reshape(H // 2, 2, W, C)
    rmax = jnp.maximum(u[:, 0, :, :], u[:, 1, :, :])        # (H/2, W, C)
    r = rmax.reshape(H // 2, W // 2, 2, C)
    down = jnp.maximum(r[:, :, 0, :], r[:, :, 1, :])        # (H/2, W/2, C)
    down_ref[0] = down.reshape((H // 2) * (W // 2), C).T.astype(down_ref.dtype)


def se_res_pool_call(y3, init, scale2, shift2, fc1m, fc2m, *, out_dtype):
    N, H, W, C = y3.shape
    Ip = fc1m.shape[1]
    kern = functools.partial(se_res_pool_kernel, H=H, W=W)
    return pl.pallas_call(
        kern,
        grid=(N,),
        out_shape=(jax.ShapeDtypeStruct((N, C, H * W), out_dtype),
                   jax.ShapeDtypeStruct((N, C, (H // 2) * (W // 2)), out_dtype)),
        in_specs=[pl.BlockSpec((1, H, W, C), lambda n: (n, 0, 0, 0)),
                  pl.BlockSpec((1, H, W, C), lambda n: (n, 0, 0, 0)),
                  pl.BlockSpec((1, C), lambda n: (0, 0)),
                  pl.BlockSpec((1, C), lambda n: (0, 0)),
                  pl.BlockSpec((C, Ip), lambda n: (0, 0)),
                  pl.BlockSpec((Ip, C), lambda n: (0, 0))],
        out_specs=(pl.BlockSpec((1, C, H * W), lambda n: (n, 0, 0)),
                   pl.BlockSpec((1, C, (H // 2) * (W // 2)), lambda n: (n, 0, 0))),
        compiler_params=pltpu.CompilerParams(dimension_semantics=("parallel",)),
    )(y3, init, scale2, shift2, fc1m, fc2m)


# ----------------------------------------------------------------------------
# Plain-JAX glue: weight reshaping and the tiny O(C) BN-statistics combine.
# ----------------------------------------------------------------------------
def conv_w_to_mat(w):
    # torch conv weight (Co, Ci, 3, 3) -> (3, 3*Ci, Co) bf16, row index = kx*Ci + ci.
    Co, Ci = w.shape[0], w.shape[1]
    return jnp.transpose(w, (2, 3, 1, 0)).reshape(3, 3 * Ci, Co).astype(jnp.bfloat16)


def bn_scale_shift(stats, gamma, beta, count):
    # stats: (N, 2, C) with row0 = per-image channel sum, row1 = sum of squares.
    s = jnp.sum(stats[:, 0, :], axis=0)
    ss = jnp.sum(stats[:, 1, :], axis=0)
    mean = s / count
    var = jnp.maximum(ss / count - mean * mean, 0.0)        # biased var, clamped
    scale = gamma * jax.lax.rsqrt(var + EPS)
    shift = beta - mean * scale
    return (scale.reshape(1, -1).astype(jnp.float32),
            shift.reshape(1, -1).astype(jnp.float32))


def resedown_forward(x_nchw, params, out_dtype=jnp.bfloat16):
    N, Ci, H, W = x_nchw.shape
    Co = params['w1'].shape[0]
    inter = params['fc1'].shape[0]
    Ip = _round_up(inter, 128)          # only the tiny SE hidden dim is padded
    count = N * H * W

    # NCHW -> NHWC, bf16 activations (one small one-time prep op; no spatial pad).
    x = jnp.transpose(x_nchw, (0, 2, 3, 1)).astype(jnp.bfloat16)

    w1m = conv_w_to_mat(params['w1'])                        # (3, 3*Ci, Co)
    w2m = conv_w_to_mat(params['w2'])                        # (3, 3*Co, Co)
    w3m = conv_w_to_mat(params['w3'])                        # (3, 3*Co, Co)

    g1 = params['bn1_gamma'].astype(jnp.float32)
    b1 = params['bn1_beta'].astype(jnp.float32)
    g2 = params['bn2_gamma'].astype(jnp.float32)
    b2 = params['bn2_beta'].astype(jnp.float32)

    # torch Linear weights (out, in) -> matmul layout; SE hidden dim zero-padded.
    fc1m = _pad_axis(jnp.transpose(params['fc1']).astype(jnp.float32), 1, Ip)  # (Co, Ip)
    fc2m = _pad_axis(jnp.transpose(params['fc2']).astype(jnp.float32), 0, Ip)  # (Ip, Co)

    # conv1(x): used both as `init` (residual) and as the ConvConvSE input.
    init = conv3x3_call(x, w1m, emit_stats=False)                      # (N,H,W,Co) bf16

    # conv2 (raw, pre-BN1) + per-image BN1 statistics.
    y2, st2 = conv3x3_call(init, w2m, emit_stats=True)
    scale1, shift1 = bn_scale_shift(st2, g1, b1, count)

    # conv3 with fused BN1-apply + ReLU on its input, + BN2 statistics.
    y3, st3 = conv3x3_call(y2, w3m, scale1, shift1, emit_stats=True)
    scale2, shift2 = bn_scale_shift(st3, g2, b2, count)

    # fused BN2-apply + SE + residual + ReLU + 2x2 maxpool, channel-major outputs.
    up_cf, down_cf = se_res_pool_call(y3, init, scale2, shift2, fc1m, fc2m,
                                      out_dtype=out_dtype)

    # Free trailing-dim splits (no relayout / extra HBM pass), NCHW like PyTorch.
    for_up = up_cf.reshape(N, Co, H, W)
    for_down = down_cf.reshape(N, Co, H // 2, W // 2)
    return for_down, for_up


# ----------------------------------------------------------------------------
# Deterministic parameter construction (shapes from ReSEDownPart.__init__)
# ----------------------------------------------------------------------------
def make_params(key, in_ch, out_ch, reduction=16):
    inter = out_ch // reduction
    ks = jax.random.split(key, 9)
    f32 = jnp.float32
    return {
        'w1': 0.1 * jax.random.normal(ks[0], (out_ch, in_ch, 3, 3), f32),
        'w2': 0.1 * jax.random.normal(ks[1], (out_ch, out_ch, 3, 3), f32),
        'w3': 0.1 * jax.random.normal(ks[2], (out_ch, out_ch, 3, 3), f32),
        'bn1_gamma': 1.0 + 0.1 * jax.random.normal(ks[3], (out_ch,), f32),
        'bn1_beta': 0.1 * jax.random.normal(ks[4], (out_ch,), f32),
        'bn2_gamma': 1.0 + 0.1 * jax.random.normal(ks[5], (out_ch,), f32),
        'bn2_beta': 0.1 * jax.random.normal(ks[6], (out_ch,), f32),
        # PyTorch nn.Linear weight layouts: (out_features, in_features)
        'fc1': 0.1 * jax.random.normal(ks[7], (inter, out_ch), f32),
        'fc2': 0.1 * jax.random.normal(ks[8], (out_ch, inter), f32),
    }


if __name__ == "__main__":
    N, IN_CH, OUT_CH, H, W = 2, 4, 32, 16, 16    # reduction=16 -> inter_ch=2
    key = jax.random.PRNGKey(0)
    kx, kp = jax.random.split(key)
    x = jax.random.normal(kx, (N, IN_CH, H, W), jnp.float32)
    params = make_params(kp, IN_CH, OUT_CH, reduction=16)

    fwd = jax.jit(resedown_forward)
    for_down, for_up = fwd(x, params)
    jax.block_until_ready(for_down)
    jax.block_until_ready(for_up)

    assert for_down.shape == (N, OUT_CH, H // 2, W // 2), for_down.shape
    assert for_up.shape == (N, OUT_CH, H, W), for_up.shape
    assert bool(jnp.all(jnp.isfinite(for_down.astype(jnp.float32))))
    assert bool(jnp.all(jnp.isfinite(for_up.astype(jnp.float32))))
    print("KERNEL_OK")
</pallas_src>

<mosaic_0001>
module attributes {stable_mosaic.version = 11 : i64} {
  func.func @conv3x3_kernel(%arg0: i32, %arg1: memref<1x16x16x32xbf16, #tpu.memory_space<vmem>>, %arg2: memref<3x96x32xbf16, #tpu.memory_space<vmem>>, %arg3: memref<1x16x16x32xbf16, #tpu.memory_space<vmem>>, %arg4: memref<1x2x32xf32, #tpu.memory_space<vmem>>, %arg5: memref<256x32xf32, #tpu.memory_space<vmem>>) attributes {dimension_semantics = [#tpu.dimension_semantics<parallel>], iteration_bounds = array<i64: 2>, scalar_prefetch = 0 : i64, scratch_operands = 1 : i64, tpu.core_type = #tpu.core_type<tc>, window_params = [{transform_indices = @transform_0, window_bounds = array<i64: 1, 16, 16, 32>}, {pipeline_mode = #tpu.pipeline_mode<synchronous>, transform_indices = @transform_1, window_bounds = array<i64: 3, 96, 32>}, {transform_indices = @transform_2, window_bounds = array<i64: 1, 16, 16, 32>}, {transform_indices = @transform_3, window_bounds = array<i64: 1, 2, 32>}]} {
    %c0 = arith.constant 0 : index
    %c0_0 = arith.constant 0 : index
    %c0_1 = arith.constant 0 : index
    %c0_2 = arith.constant 0 : index
    %0 = vector.load %arg1[%c0, %c0_0, %c0_1, %c0_2] : memref<1x16x16x32xbf16, #tpu.memory_space<vmem>>, vector<1x16x16x32xbf16>
    %1 = vector.shape_cast %0 : vector<1x16x16x32xbf16> to vector<16x16x32xbf16>
    %cst = arith.constant 0.000000e+00 : bf16
    %2 = vector.broadcast %cst : bf16 to vector<1x16x32xbf16>
    %3 = tpu.concatenate %2, %1, %2 in 0 : vector<1x16x32xbf16>, vector<16x16x32xbf16>, vector<1x16x32xbf16> -> vector<18x16x32xbf16>
    %cst_3 = arith.constant 0.000000e+00 : bf16
    %4 = vector.broadcast %cst_3 : bf16 to vector<18x1x32xbf16>
    %5 = tpu.concatenate %4, %3, %4 in 1 : vector<18x1x32xbf16>, vector<18x16x32xbf16>, vector<18x1x32xbf16> -> vector<18x18x32xbf16>
    %6 = vector.extract_strided_slice %5 {offsets = [0, 0, 0], sizes = [18, 16, 32], strides = [1, 1, 1]} : vector<18x18x32xbf16> to vector<18x16x32xbf16>
    %7 = vector.extract_strided_slice %5 {offsets = [0, 1, 0], sizes = [18, 16, 32], strides = [1, 1, 1]} : vector<18x18x32xbf16> to vector<18x16x32xbf16>
    %8 = vector.extract_strided_slice %5 {offsets = [0, 2, 0], sizes = [18, 16, 32], strides = [1, 1, 1]} : vector<18x18x32xbf16> to vector<18x16x32xbf16>
    %9 = tpu.concatenate %6, %7, %8 in 2 : vector<18x16x32xbf16>, vector<18x16x32xbf16>, vector<18x16x32xbf16> -> vector<18x16x96xbf16>
    %10 = vector.extract_strided_slice %9 {offsets = [0, 0, 0], sizes = [16, 16, 96], strides = [1, 1, 1]} : vector<18x16x96xbf16> to vector<16x16x96xbf16>
    %11 = vector.shape_cast %10 : vector<16x16x96xbf16> to vector<256x96xbf16>
    %c0_4 = arith.constant 0 : index
    %c0_5 = arith.constant 0 : index
    %c0_6 = arith.constant 0 : index
    %12 = vector.load %arg2[%c0_4, %c0_5, %c0_6] : memref<3x96x32xbf16, #tpu.memory_space<vmem>>, vector<1x96x32xbf16>
    %13 = vector.shape_cast %12 : vector<1x96x32xbf16> to vector<96x32xbf16>
    %cst_7 = arith.constant dense<0.000000e+00> : vector<256x32xf32>
    %14 = tpu.matmul %11, %13, %cst_7 {dimension_numbers = #tpu.dot_dimension_numbers<[1], [0], [0], [1], [0, 0, 1, 1], [], []>} : vector<256x96xbf16>, vector<96x32xbf16>, vector<256x32xf32> -> vector<256x32xf32>
    %c0_8 = arith.constant 0 : index
    %c0_9 = arith.constant 0 : index
    %15 = vector.load %arg5[%c0_8, %c0_9] : memref<256x32xf32, #tpu.memory_space<vmem>>, vector<256x32xf32>
    tpu.vector_store %arg5[%c0_8, %c0_9], %14 {strides = array<i32>} : memref<256x32xf32, #tpu.memory_space<vmem>>, vector<256x32xf32>,
    %16 = vector.extract_strided_slice %9 {offsets = [1, 0, 0], sizes = [16, 16, 96], strides = [1, 1, 1]} : vector<18x16x96xbf16> to vector<16x16x96xbf16>
    %17 = vector.shape_cast %16 : vector<16x16x96xbf16> to vector<256x96xbf16>
    %c1 = arith.constant 1 : index
    %c0_10 = arith.constant 0 : index
    %c0_11 = arith.constant 0 : index
    %18 = vector.load %arg2[%c1, %c0_10, %c0_11] : memref<3x96x32xbf16, #tpu.memory_space<vmem>>, vector<1x96x32xbf16>
    %19 = vector.shape_cast %18 : vector<1x96x32xbf16> to vector<96x32xbf16>
    %cst_12 = arith.constant dense<0.000000e+00> : vector<256x32xf32>
    %20 = tpu.matmul %17, %19, %cst_12 {dimension_numbers = #tpu.dot_dimension_numbers<[1], [0], [0], [1], [0, 0, 1, 1], [], []>} : vector<256x96xbf16>, vector<96x32xbf16>, vector<256x32xf32> -> vector<256x32xf32>
    %c0_13 = arith.constant 0 : index
    %c0_14 = arith.constant 0 : index
    %21 = vector.load %arg5[%c0_13, %c0_14] : memref<256x32xf32, #tpu.memory_space<vmem>>, vector<256x32xf32>
    %22 = arith.addf %21, %20 : vector<256x32xf32>
    %c0_15 = arith.constant 0 : index
    %c0_16 = arith.constant 0 : index
    %23 = vector.load %arg5[%c0_15, %c0_16] : memref<256x32xf32, #tpu.memory_space<vmem>>, vector<256x32xf32>
    tpu.vector_store %arg5[%c0_15, %c0_16], %22 {strides = array<i32>} : memref<256x32xf32, #tpu.memory_space<vmem>>, vector<256x32xf32>,
    %24 = vector.extract_strided_slice %9 {offsets = [2, 0, 0], sizes = [16, 16, 96], strides = [1, 1, 1]} : vector<18x16x96xbf16> to vector<16x16x96xbf16>
    %25 = vector.shape_cast %24 : vector<16x16x96xbf16> to vector<256x96xbf16>
    %c2 = arith.constant 2 : index
    %c0_17 = arith.constant 0 : index
    %c0_18 = arith.constant 0 : index
    %26 = vector.load %arg2[%c2, %c0_17, %c0_18] : memref<3x96x32xbf16, #tpu.memory_space<vmem>>, vector<1x96x32xbf16>
    %27 = vector.shape_cast %26 : vector<1x96x32xbf16> to vector<96x32xbf16>
    %cst_19 = arith.constant dense<0.000000e+00> : vector<256x32xf32>
    %28 = tpu.matmul %25, %27, %cst_19 {dimension_numbers = #tpu.dot_dimension_numbers<[1], [0], [0], [1], [0, 0, 1, 1], [], []>} : vector<256x96xbf16>, vector<96x32xbf16>, vector<256x32xf32> -> vector<256x32xf32>
    %c0_20 = arith.constant 0 : index
    %c0_21 = arith.constant 0 : index
    %29 = vector.load %arg5[%c0_20, %c0_21] : memref<256x32xf32, #tpu.memory_space<vmem>>, vector<256x32xf32>
    %30 = arith.addf %29, %28 : vector<256x32xf32>
    %c0_22 = arith.constant 0 : index
    %c0_23 = arith.constant 0 : index
    %31 = vector.load %arg5[%c0_22, %c0_23] : memref<256x32xf32, #tpu.memory_space<vmem>>, vector<256x32xf32>
    tpu.vector_store %arg5[%c0_22, %c0_23], %30 {strides = array<i32>} : memref<256x32xf32, #tpu.memory_space<vmem>>, vector<256x32xf32>,
    %c0_24 = arith.constant 0 : index
    %c0_25 = arith.constant 0 : index
    %32 = vector.load %arg5[%c0_24, %c0_25] : memref<256x32xf32, #tpu.memory_space<vmem>>, vector<256x32xf32>
    %33 = vector.shape_cast %32 : vector<256x32xf32> to vector<16x16x32xf32>
    %34 = arith.truncf %33 : vector<16x16x32xf32> to vector<16x16x32xbf16>
    %c0_26 = arith.constant 0 : index
    %c0_27 = arith.constant 0 : index
    %c0_28 = arith.constant 0 : index
    %c0_29 = arith.constant 0 : index
    %35 = vector.load %arg3[%c0_26, %c0_27, %c0_28, %c0_29] : memref<1x16x16x32xbf16, #tpu.memory_space<vmem>>, vector<1x16x16x32xbf16>
    %36 = vector.shape_cast %35 : vector<1x16x16x32xbf16> to vector<16x16x32xbf16>
    %37 = vector.shape_cast %34 : vector<16x16x32xbf16> to vector<1x16x16x32xbf16>
    tpu.vector_store %arg3[%c0_26, %c0_27, %c0_28, %c0_29], %37 {strides = array<i32>} : memref<1x16x16x32xbf16, #tpu.memory_space<vmem>>, vector<1x16x16x32xbf16>,
    %cst_30 = arith.constant dense<0.000000e+00> : vector<32xf32>
    %38 = vector.multi_reduction <add>, %32, %cst_30 [0] : vector<256x32xf32> to vector<32xf32>
    %39 = vector.shape_cast %38 : vector<32xf32> to vector<1x32xf32>
    %40 = arith.mulf %32, %32 : vector<256x32xf32>
    %cst_31 = arith.constant dense<0.000000e+00> : vector<32xf32>
    %41 = vector.multi_reduction <add>, %40, %cst_31 [0] : vector<256x32xf32> to vector<32xf32>
    %42 = vector.shape_cast %41 : vector<32xf32> to vector<1x32xf32>
    %43 = tpu.concatenate %39, %42 in 0 : vector<1x32xf32>, vector<1x32xf32> -> vector<2x32xf32>
    %c0_32 = arith.constant 0 : index
    %c0_33 = arith.constant 0 : index
    %c0_34 = arith.constant 0 : index
    %44 = vector.load %arg4[%c0_32, %c0_33, %c0_34] : memref<1x2x32xf32, #tpu.memory_space<vmem>>, vector<1x2x32xf32>
    %45 = vector.shape_cast %44 : vector<1x2x32xf32> to vector<2x32xf32>
    %46 = vector.shape_cast %43 : vector<2x32xf32> to vector<1x2x32xf32>
    tpu.vector_store %arg4[%c0_32, %c0_33, %c0_34], %46 {strides = array<i32>} : memref<1x2x32xf32, #tpu.memory_space<vmem>>, vector<1x2x32xf32>,
    return
  }
  func.func @transform_0(%arg0: i32) -> (i32, i32, i32, i32) {
    %c0_i32 = arith.constant 0 : i32
    %c0_i32_0 = arith.constant 0 : i32
    %c0_i32_1 = arith.constant 0 : i32
    %c0_i32_2 = arith.constant 0 : i32
    return %arg0, %c0_i32, %c0_i32_0, %c0_i32_1 : i32, i32, i32, i32
  }
  func.func @transform_1(%arg0: i32) -> (i32, i32, i32) {
    %c0_i32 = arith.constant 0 : i32
    %c0_i32_0 = arith.constant 0 : i32
    %c0_i32_1 = arith.constant 0 : i32
    %c0_i32_2 = arith.constant 0 : i32
    return %c0_i32, %c0_i32_0, %c0_i32_1 : i32, i32, i32
  }
  func.func @transform_2(%arg0: i32) -> (i32, i32, i32, i32) {
    %c0_i32 = arith.constant 0 : i32
    %c0_i32_0 = arith.constant 0 : i32
    %c0_i32_1 = arith.constant 0 : i32
    %c0_i32_2 = arith.constant 0 : i32
    return %arg0, %c0_i32, %c0_i32_0, %c0_i32_1 : i32, i32, i32, i32
  }
  func.func @transform_3(%arg0: i32) -> (i32, i32, i32) {
    %c0_i32 = arith.constant 0 : i32
    %c0_i32_0 = arith.constant 0 : i32
    %c0_i32_1 = arith.constant 0 : i32
    return %arg0, %c0_i32, %c0_i32_0 : i32, i32, i32
  }
}

module attributes {stable_mosaic.version = 11 : i64} {
  func.func @conv3x3_kernel(%arg0: i32, %arg1: memref<1x16x16x4xbf16, #tpu.memory_space<vmem>>, %arg2: memref<3x12x32xbf16, #tpu.memory_space<vmem>>, %arg3: memref<1x16x16x32xbf16, #tpu.memory_space<vmem>>, %arg4: memref<256x32xf32, #tpu.memory_space<vmem>>) attributes {dimension_semantics = [#tpu.dimension_semantics<parallel>], iteration_bounds = array<i64: 2>, scalar_prefetch = 0 : i64, scratch_operands = 1 : i64, tpu.core_type = #tpu.core_type<tc>, window_params = [{transform_indices = @transform_0, window_bounds = array<i64: 1, 16, 16, 4>}, {pipeline_mode = #tpu.pipeline_mode<synchronous>, transform_indices = @transform_1, window_bounds = array<i64: 3, 12, 32>}, {transform_indices = @transform_2, window_bounds = array<i64: 1, 16, 16, 32>}]} {
    %c0 = arith.constant 0 : index
    %c0_0 = arith.constant 0 : index
    %c0_1 = arith.constant 0 : index
    %c0_2 = arith.constant 0 : index
    %0 = vector.load %arg1[%c0, %c0_0, %c0_1, %c0_2] : memref<1x16x16x4xbf16, #tpu.memory_space<vmem>>, vector<1x16x16x4xbf16>
    %1 = vector.shape_cast %0 : vector<1x16x16x4xbf16> to vector<16x16x4xbf16>
    %cst = arith.constant 0.000000e+00 : bf16
    %2 = vector.broadcast %cst : bf16 to vector<1x16x4xbf16>
    %3 = tpu.concatenate %2, %1, %2 in 0 : vector<1x16x4xbf16>, vector<16x16x4xbf16>, vector<1x16x4xbf16> -> vector<18x16x4xbf16>
    %cst_3 = arith.constant 0.000000e+00 : bf16
    %4 = vector.broadcast %cst_3 : bf16 to vector<18x1x4xbf16>
    %5 = tpu.concatenate %4, %3, %4 in 1 : vector<18x1x4xbf16>, vector<18x16x4xbf16>, vector<18x1x4xbf16> -> vector<18x18x4xbf16>
    %6 = vector.extract_strided_slice %5 {offsets = [0, 0, 0], sizes = [18, 16, 4], strides = [1, 1, 1]} : vector<18x18x4xbf16> to vector<18x16x4xbf16>
    %7 = vector.extract_strided_slice %5 {offsets = [0, 1, 0], sizes = [18, 16, 4], strides = [1, 1, 1]} : vector<18x18x4xbf16> to vector<18x16x4xbf16>
    %8 = vector.extract_strided_slice %5 {offsets = [0, 2, 0], sizes = [18, 16, 4], strides = [1, 1, 1]} : vector<18x18x4xbf16> to vector<18x16x4xbf16>
    %9 = tpu.concatenate %6, %7, %8 in 2 : vector<18x16x4xbf16>, vector<18x16x4xbf16>, vector<18x16x4xbf16> -> vector<18x16x12xbf16>
    %10 = vector.extract_strided_slice %9 {offsets = [0, 0, 0], sizes = [16, 16, 12], strides = [1, 1, 1]} : vector<18x16x12xbf16> to vector<16x16x12xbf16>
    %11 = vector.shape_cast %10 : vector<16x16x12xbf16> to vector<256x12xbf16>
    %c0_4 = arith.constant 0 : index
    %c0_5 = arith.constant 0 : index
    %c0_6 = arith.constant 0 : index
    %12 = vector.load %arg2[%c0_4, %c0_5, %c0_6] : memref<3x12x32xbf16, #tpu.memory_space<vmem>>, vector<1x12x32xbf16>
    %13 = vector.shape_cast %12 : vector<1x12x32xbf16> to vector<12x32xbf16>
    %cst_7 = arith.constant dense<0.000000e+00> : vector<256x32xf32>
    %14 = tpu.matmul %11, %13, %cst_7 {dimension_numbers = #tpu.dot_dimension_numbers<[1], [0], [0], [1], [0, 0, 1, 1], [], []>} : vector<256x12xbf16>, vector<12x32xbf16>, vector<256x32xf32> -> vector<256x32xf32>
    %c0_8 = arith.constant 0 : index
    %c0_9 = arith.constant 0 : index
    %15 = vector.load %arg4[%c0_8, %c0_9] : memref<256x32xf32, #tpu.memory_space<vmem>>, vector<256x32xf32>
    tpu.vector_store %arg4[%c0_8, %c0_9], %14 {strides = array<i32>} : memref<256x32xf32, #tpu.memory_space<vmem>>, vector<256x32xf32>,
    %16 = vector.extract_strided_slice %9 {offsets = [1, 0, 0], sizes = [16, 16, 12], strides = [1, 1, 1]} : vector<18x16x12xbf16> to vector<16x16x12xbf16>
    %17 = vector.shape_cast %16 : vector<16x16x12xbf16> to vector<256x12xbf16>
    %c1 = arith.constant 1 : index
    %c0_10 = arith.constant 0 : index
    %c0_11 = arith.constant 0 : index
    %18 = vector.load %arg2[%c1, %c0_10, %c0_11] : memref<3x12x32xbf16, #tpu.memory_space<vmem>>, vector<1x12x32xbf16>
    %19 = vector.shape_cast %18 : vector<1x12x32xbf16> to vector<12x32xbf16>
    %cst_12 = arith.constant dense<0.000000e+00> : vector<256x32xf32>
    %20 = tpu.matmul %17, %19, %cst_12 {dimension_numbers = #tpu.dot_dimension_numbers<[1], [0], [0], [1], [0, 0, 1, 1], [], []>} : vector<256x12xbf16>, vector<12x32xbf16>, vector<256x32xf32> -> vector<256x32xf32>
    %c0_13 = arith.constant 0 : index
    %c0_14 = arith.constant 0 : index
    %21 = vector.load %arg4[%c0_13, %c0_14] : memref<256x32xf32, #tpu.memory_space<vmem>>, vector<256x32xf32>
    %22 = arith.addf %21, %20 : vector<256x32xf32>
    %c0_15 = arith.constant 0 : index
    %c0_16 = arith.constant 0 : index
    %23 = vector.load %arg4[%c0_15, %c0_16] : memref<256x32xf32, #tpu.memory_space<vmem>>, vector<256x32xf32>
    tpu.vector_store %arg4[%c0_15, %c0_16], %22 {strides = array<i32>} : memref<256x32xf32, #tpu.memory_space<vmem>>, vector<256x32xf32>,
    %24 = vector.extract_strided_slice %9 {offsets = [2, 0, 0], sizes = [16, 16, 12], strides = [1, 1, 1]} : vector<18x16x12xbf16> to vector<16x16x12xbf16>
    %25 = vector.shape_cast %24 : vector<16x16x12xbf16> to vector<256x12xbf16>
    %c2 = arith.constant 2 : index
    %c0_17 = arith.constant 0 : index
    %c0_18 = arith.constant 0 : index
    %26 = vector.load %arg2[%c2, %c0_17, %c0_18] : memref<3x12x32xbf16, #tpu.memory_space<vmem>>, vector<1x12x32xbf16>
    %27 = vector.shape_cast %26 : vector<1x12x32xbf16> to vector<12x32xbf16>
    %cst_19 = arith.constant dense<0.000000e+00> : vector<256x32xf32>
    %28 = tpu.matmul %25, %27, %cst_19 {dimension_numbers = #tpu.dot_dimension_numbers<[1], [0], [0], [1], [0, 0, 1, 1], [], []>} : vector<256x12xbf16>, vector<12x32xbf16>, vector<256x32xf32> -> vector<256x32xf32>
    %c0_20 = arith.constant 0 : index
    %c0_21 = arith.constant 0 : index
    %29 = vector.load %arg4[%c0_20, %c0_21] : memref<256x32xf32, #tpu.memory_space<vmem>>, vector<256x32xf32>
    %30 = arith.addf %29, %28 : vector<256x32xf32>
    %c0_22 = arith.constant 0 : index
    %c0_23 = arith.constant 0 : index
    %31 = vector.load %arg4[%c0_22, %c0_23] : memref<256x32xf32, #tpu.memory_space<vmem>>, vector<256x32xf32>
    tpu.vector_store %arg4[%c0_22, %c0_23], %30 {strides = array<i32>} : memref<256x32xf32, #tpu.memory_space<vmem>>, vector<256x32xf32>,
    %c0_24 = arith.constant 0 : index
    %c0_25 = arith.constant 0 : index
    %32 = vector.load %arg4[%c0_24, %c0_25] : memref<256x32xf32, #tpu.memory_space<vmem>>, vector<256x32xf32>
    %33 = vector.shape_cast %32 : vector<256x32xf32> to vector<16x16x32xf32>
    %34 = arith.truncf %33 : vector<16x16x32xf32> to vector<16x16x32xbf16>
    %c0_26 = arith.constant 0 : index
    %c0_27 = arith.constant 0 : index
    %c0_28 = arith.constant 0 : index
    %c0_29 = arith.constant 0 : index
    %35 = vector.load %arg3[%c0_26, %c0_27, %c0_28, %c0_29] : memref<1x16x16x32xbf16, #tpu.memory_space<vmem>>, vector<1x16x16x32xbf16>
    %36 = vector.shape_cast %35 : vector<1x16x16x32xbf16> to vector<16x16x32xbf16>
    %37 = vector.shape_cast %34 : vector<16x16x32xbf16> to vector<1x16x16x32xbf16>
    tpu.vector_store %arg3[%c0_26, %c0_27, %c0_28, %c0_29], %37 {strides = array<i32>} : memref<1x16x16x32xbf16, #tpu.memory_space<vmem>>, vector<1x16x16x32xbf16>,
    return
  }
  func.func @transform_0(%arg0: i32) -> (i32, i32, i32, i32) {
    %c0_i32 = arith.constant 0 : i32
    %c0_i32_0 = arith.constant 0 : i32
    %c0_i32_1 = arith.constant 0 : i32
    %c0_i32_2 = arith.constant 0 : i32
    return %arg0, %c0_i32, %c0_i32_0, %c0_i32_1 : i32, i32, i32, i32
  }
  func.func @transform_1(%arg0: i32) -> (i32, i32, i32) {
    %c0_i32 = arith.constant 0 : i32
    %c0_i32_0 = arith.constant 0 : i32
    %c0_i32_1 = arith.constant 0 : i32
    %c0_i32_2 = arith.constant 0 : i32
    return %c0_i32, %c0_i32_0, %c0_i32_1 : i32, i32, i32
  }
  func.func @transform_2(%arg0: i32) -> (i32, i32, i32, i32) {
    %c0_i32 = arith.constant 0 : i32
    %c0_i32_0 = arith.constant 0 : i32
    %c0_i32_1 = arith.constant 0 : i32
    %c0_i32_2 = arith.constant 0 : i32
    return %arg0, %c0_i32, %c0_i32_0, %c0_i32_1 : i32, i32, i32, i32
  }
}

module attributes {stable_mosaic.version = 11 : i64} {
  func.func @se_res_pool_kernel(%arg0: i32, %arg1: memref<1x16x16x32xbf16, #tpu.memory_space<vmem>>, %arg2: memref<1x16x16x32xbf16, #tpu.memory_space<vmem>>, %arg3: memref<1x32xf32, #tpu.memory_space<vmem>>, %arg4: memref<1x32xf32, #tpu.memory_space<vmem>>, %arg5: memref<32x128xf32, #tpu.memory_space<vmem>>, %arg6: memref<128x32xf32, #tpu.memory_space<vmem>>, %arg7: memref<1x32x256xbf16, #tpu.memory_space<vmem>>, %arg8: memref<1x32x64xbf16, #tpu.memory_space<vmem>>) attributes {dimension_semantics = [#tpu.dimension_semantics<parallel>], iteration_bounds = array<i64: 2>, scalar_prefetch = 0 : i64, scratch_operands = 0 : i64, tpu.core_type = #tpu.core_type<tc>, window_params = [{transform_indices = @transform_0, window_bounds = array<i64: 1, 16, 16, 32>}, {transform_indices = @transform_1, window_bounds = array<i64: 1, 16, 16, 32>}, {pipeline_mode = #tpu.pipeline_mode<synchronous>, transform_indices = @transform_2, window_bounds = array<i64: 1, 32>}, {pipeline_mode = #tpu.pipeline_mode<synchronous>, transform_indices = @transform_3, window_bounds = array<i64: 1, 32>}, {pipeline_mode = #tpu.pipeline_mode<synchronous>, transform_indices = @transform_4, window_bounds = array<i64: 32, 128>}, {pipeline_mode = #tpu.pipeline_mode<synchronous>, transform_indices = @transform_5, window_bounds = array<i64: 128, 32>}, {transform_indices = @transform_6, window_bounds = array<i64: 1, 32, 256>}, {transform_indices = @transform_7, window_bounds = array<i64: 1, 32, 64>}]} {
    %c0 = arith.constant 0 : index
    %c0_0 = arith.constant 0 : index
    %c0_1 = arith.constant 0 : index
    %c0_2 = arith.constant 0 : index
    %0 = vector.load %arg1[%c0, %c0_0, %c0_1, %c0_2] : memref<1x16x16x32xbf16, #tpu.memory_space<vmem>>, vector<1x16x16x32xbf16>
    %1 = vector.shape_cast %0 : vector<1x16x16x32xbf16> to vector<16x16x32xbf16>
    %2 = arith.extf %1 : vector<16x16x32xbf16> to vector<16x16x32xf32>
    %3 = vector.shape_cast %2 : vector<16x16x32xf32> to vector<256x32xf32>
    %c0_3 = arith.constant 0 : index
    %c0_4 = arith.constant 0 : index
    %4 = vector.load %arg3[%c0_3, %c0_4] : memref<1x32xf32, #tpu.memory_space<vmem>>, vector<1x32xf32>
    %5 = vector.broadcast %4 : vector<1x32xf32> to vector<256x32xf32>
    %6 = arith.mulf %3, %5 : vector<256x32xf32>
    %c0_5 = arith.constant 0 : index
    %c0_6 = arith.constant 0 : index
    %7 = vector.load %arg4[%c0_5, %c0_6] : memref<1x32xf32, #tpu.memory_space<vmem>>, vector<1x32xf32>
    %8 = vector.broadcast %7 : vector<1x32xf32> to vector<256x32xf32>
    %9 = arith.addf %6, %8 : vector<256x32xf32>
    %cst = arith.constant dense<0.000000e+00> : vector<32xf32>
    %10 = vector.multi_reduction <add>, %9, %cst [0] : vector<256x32xf32> to vector<32xf32>
    %11 = vector.shape_cast %10 : vector<32xf32> to vector<1x32xf32>
    %cst_7 = arith.constant 2.560000e+02 : f32
    %12 = vector.broadcast %cst_7 : f32 to vector<1x32xf32>
    %13 = arith.divf %11, %12 : vector<1x32xf32>
    %c0_8 = arith.constant 0 : index
    %c0_9 = arith.constant 0 : index
    %14 = vector.load %arg5[%c0_8, %c0_9] : memref<32x128xf32, #tpu.memory_space<vmem>>, vector<32x128xf32>
    %cst_10 = arith.constant dense<0.000000e+00> : vector<1x128xf32>
    %15 = tpu.matmul %13, %14, %cst_10 {dimension_numbers = #tpu.dot_dimension_numbers<[1], [0], [0], [1], [0, 0, 1, 1], [], []>} : vector<1x32xf32>, vector<32x128xf32>, vector<1x128xf32> -> vector<1x128xf32>
    %cst_11 = arith.constant 0.000000e+00 : f32
    %16 = vector.broadcast %cst_11 : f32 to vector<1x128xf32>
    %17 = arith.maximumf %15, %16 : vector<1x128xf32>
    %c0_12 = arith.constant 0 : index
    %c0_13 = arith.constant 0 : index
    %18 = vector.load %arg6[%c0_12, %c0_13] : memref<128x32xf32, #tpu.memory_space<vmem>>, vector<128x32xf32>
    %cst_14 = arith.constant dense<0.000000e+00> : vector<1x32xf32>
    %19 = tpu.matmul %17, %18, %cst_14 {dimension_numbers = #tpu.dot_dimension_numbers<[1], [0], [0], [1], [0, 0, 1, 1], [], []>} : vector<1x128xf32>, vector<128x32xf32>, vector<1x32xf32> -> vector<1x32xf32>
    %cst_15 = arith.constant 0.000000e+00 : f32
    %20 = vector.broadcast %cst_15 : f32 to vector<1x32xf32>
    %21 = arith.subf %20, %19 : vector<1x32xf32>
    %22 = math.exp %21 : vector<1x32xf32>
    %cst_16 = arith.constant 1.000000e+00 : f32
    %23 = vector.broadcast %cst_16 : f32 to vector<1x32xf32>
    %24 = arith.addf %23, %22 : vector<1x32xf32>
    %cst_17 = arith.constant 1.000000e+00 : f32
    %25 = vector.broadcast %cst_17 : f32 to vector<1x32xf32>
    %26 = arith.divf %25, %24 : vector<1x32xf32>
    %27 = vector.broadcast %26 : vector<1x32xf32> to vector<256x32xf32>
    %28 = arith.mulf %9, %27 : vector<256x32xf32>
    %c0_18 = arith.constant 0 : index
    %c0_19 = arith.constant 0 : index
    %c0_20 = arith.constant 0 : index
    %c0_21 = arith.constant 0 : index
    %29 = vector.load %arg2[%c0_18, %c0_19, %c0_20, %c0_21] : memref<1x16x16x32xbf16, #tpu.memory_space<vmem>>, vector<1x16x16x32xbf16>
    %30 = vector.shape_cast %29 : vector<1x16x16x32xbf16> to vector<16x16x32xbf16>
    %31 = arith.extf %30 : vector<16x16x32xbf16> to vector<16x16x32xf32>
    %32 = vector.shape_cast %31 : vector<16x16x32xf32> to vector<256x32xf32>
    %33 = arith.addf %28, %32 : vector<256x32xf32>
    %cst_22 = arith.constant 0.000000e+00 : f32
    %34 = vector.broadcast %cst_22 : f32 to vector<256x32xf32>
    %35 = arith.maximumf %33, %34 : vector<256x32xf32>
    %36 = tpu.transpose %35, [1, 0] : vector<256x32xf32> -> vector<32x256xf32>
    %37 = arith.truncf %36 : vector<32x256xf32> to vector<32x256xbf16>
    %c0_23 = arith.constant 0 : index
    %c0_24 = arith.constant 0 : index
    %c0_25 = arith.constant 0 : index
    %38 = vector.load %arg7[%c0_23, %c0_24, %c0_25] : memref<1x32x256xbf16, #tpu.memory_space<vmem>>, vector<1x32x256xbf16>
    %39 = vector.shape_cast %38 : vector<1x32x256xbf16> to vector<32x256xbf16>
    %40 = vector.shape_cast %37 : vector<32x256xbf16> to vector<1x32x256xbf16>
    tpu.vector_store %arg7[%c0_23, %c0_24, %c0_25], %40 {strides = array<i32>} : memref<1x32x256xbf16, #tpu.memory_space<vmem>>, vector<1x32x256xbf16>,
    %41 = vector.shape_cast %35 : vector<256x32xf32> to vector<8x2x16x32xf32>
    %42 = vector.extract_strided_slice %41 {offsets = [0, 0, 0, 0], sizes = [8, 1, 16, 32], strides = [1, 1, 1, 1]} : vector<8x2x16x32xf32> to vector<8x1x16x32xf32>
    %43 = vector.shape_cast %42 : vector<8x1x16x32xf32> to vector<8x16x32xf32>
    %44 = vector.extract_strided_slice %41 {offsets = [0, 1, 0, 0], sizes = [8, 1, 16, 32], strides = [1, 1, 1, 1]} : vector<8x2x16x32xf32> to vector<8x1x16x32xf32>
    %45 = vector.shape_cast %44 : vector<8x1x16x32xf32> to vector<8x16x32xf32>
    %46 = arith.maximumf %43, %45 : vector<8x16x32xf32>
    %47 = vector.shape_cast %46 : vector<8x16x32xf32> to vector<8x8x2x32xf32>
    %48 = vector.extract_strided_slice %47 {offsets = [0, 0, 0, 0], sizes = [8, 8, 1, 32], strides = [1, 1, 1, 1]} : vector<8x8x2x32xf32> to vector<8x8x1x32xf32>
    %49 = vector.shape_cast %48 : vector<8x8x1x32xf32> to vector<8x8x32xf32>
    %50 = vector.extract_strided_slice %47 {offsets = [0, 0, 1, 0], sizes = [8, 8, 1, 32], strides = [1, 1, 1, 1]} : vector<8x8x2x32xf32> to vector<8x8x1x32xf32>
    %51 = vector.shape_cast %50 : vector<8x8x1x32xf32> to vector<8x8x32xf32>
    %52 = arith.maximumf %49, %51 : vector<8x8x32xf32>
    %53 = vector.shape_cast %52 : vector<8x8x32xf32> to vector<64x32xf32>
    %54 = tpu.transpose %53, [1, 0] : vector<64x32xf32> -> vector<32x64xf32>
    %55 = arith.truncf %54 : vector<32x64xf32> to vector<32x64xbf16>
    %c0_26 = arith.constant 0 : index
    %c0_27 = arith.constant 0 : index
    %c0_28 = arith.constant 0 : index
    %56 = vector.load %arg8[%c0_26, %c0_27, %c0_28] : memref<1x32x64xbf16, #tpu.memory_space<vmem>>, vector<1x32x64xbf16>
    %57 = vector.shape_cast %56 : vector<1x32x64xbf16> to vector<32x64xbf16>
    %58 = vector.shape_cast %55 : vector<32x64xbf16> to vector<1x32x64xbf16>
    tpu.vector_store %arg8[%c0_26, %c0_27, %c0_28], %58 {strides = array<i32>} : memref<1x32x64xbf16, #tpu.memory_space<vmem>>, vector<1x32x64xbf16>,
    return
  }
  func.func @transform_0(%arg0: i32) -> (i32, i32, i32, i32) {
    %c0_i32 = arith.constant 0 : i32
    %c0_i32_0 = arith.constant 0 : i32
    %c0_i32_1 = arith.constant 0 : i32
    %c0_i32_2 = arith.constant 0 : i32
    return %arg0, %c0_i32, %c0_i32_0, %c0_i32_1 : i32, i32, i32, i32
  }
  func.func @transform_1(%arg0: i32) -> (i32, i32, i32, i32) {
    %c0_i32 = arith.constant 0 : i32
    %c0_i32_0 = arith.constant 0 : i32
    %c0_i32_1 = arith.constant 0 : i32
    %c0_i32_2 = arith.constant 0 : i32
    return %arg0, %c0_i32, %c0_i32_0, %c0_i32_1 : i32, i32, i32, i32
  }
  func.func @transform_2(%arg0: i32) -> (i32, i32) {
    %c0_i32 = arith.constant 0 : i32
    %c0_i32_0 = arith.constant 0 : i32
    %c0_i32_1 = arith.constant 0 : i32
    return %c0_i32, %c0_i32_0 : i32, i32
  }
  func.func @transform_3(%arg0: i32) -> (i32, i32) {
    %c0_i32 = arith.constant 0 : i32
    %c0_i32_0 = arith.constant 0 : i32
    %c0_i32_1 = arith.constant 0 : i32
    return %c0_i32, %c0_i32_0 : i32, i32
  }
  func.func @transform_4(%arg0: i32) -> (i32, i32) {
    %c0_i32 = arith.constant 0 : i32
    %c0_i32_0 = arith.constant 0 : i32
    %c0_i32_1 = arith.constant 0 : i32
    return %c0_i32, %c0_i32_0 : i32, i32
  }
  func.func @transform_5(%arg0: i32) -> (i32, i32) {
    %c0_i32 = arith.constant 0 : i32
    %c0_i32_0 = arith.constant 0 : i32
    %c0_i32_1 = arith.constant 0 : i32
    return %c0_i32, %c0_i32_0 : i32, i32
  }
  func.func @transform_6(%arg0: i32) -> (i32, i32, i32) {
    %c0_i32 = arith.constant 0 : i32
    %c0_i32_0 = arith.constant 0 : i32
    %c0_i32_1 = arith.constant 0 : i32
    return %arg0, %c0_i32, %c0_i32_0 : i32, i32, i32
  }
  func.func @transform_7(%arg0: i32) -> (i32, i32, i32) {
    %c0_i32 = arith.constant 0 : i32
    %c0_i32_0 = arith.constant 0 : i32
    %c0_i32_1 = arith.constant 0 : i32
    return %arg0, %c0_i32, %c0_i32_0 : i32, i32, i32
  }
}

module attributes {stable_mosaic.version = 11 : i64} {
  func.func @conv3x3_kernel(%arg0: i32, %arg1: memref<1x16x16x32xbf16, #tpu.memory_space<vmem>>, %arg2: memref<1x32xf32, #tpu.memory_space<vmem>>, %arg3: memref<1x32xf32, #tpu.memory_space<vmem>>, %arg4: memref<3x96x32xbf16, #tpu.memory_space<vmem>>, %arg5: memref<1x16x16x32xbf16, #tpu.memory_space<vmem>>, %arg6: memref<1x2x32xf32, #tpu.memory_space<vmem>>, %arg7: memref<256x32xf32, #tpu.memory_space<vmem>>) attributes {dimension_semantics = [#tpu.dimension_semantics<parallel>], iteration_bounds = array<i64: 2>, scalar_prefetch = 0 : i64, scratch_operands = 1 : i64, tpu.core_type = #tpu.core_type<tc>, window_params = [{transform_indices = @transform_0, window_bounds = array<i64: 1, 16, 16, 32>}, {pipeline_mode = #tpu.pipeline_mode<synchronous>, transform_indices = @transform_1, window_bounds = array<i64: 1, 32>}, {pipeline_mode = #tpu.pipeline_mode<synchronous>, transform_indices = @transform_2, window_bounds = array<i64: 1, 32>}, {pipeline_mode = #tpu.pipeline_mode<synchronous>, transform_indices = @transform_3, window_bounds = array<i64: 3, 96, 32>}, {transform_indices = @transform_4, window_bounds = array<i64: 1, 16, 16, 32>}, {transform_indices = @transform_5, window_bounds = array<i64: 1, 2, 32>}]} {
    %c0 = arith.constant 0 : index
    %c0_0 = arith.constant 0 : index
    %c0_1 = arith.constant 0 : index
    %c0_2 = arith.constant 0 : index
    %0 = vector.load %arg1[%c0, %c0_0, %c0_1, %c0_2] : memref<1x16x16x32xbf16, #tpu.memory_space<vmem>>, vector<1x16x16x32xbf16>
    %1 = vector.shape_cast %0 : vector<1x16x16x32xbf16> to vector<16x16x32xbf16>
    %2 = arith.extf %1 : vector<16x16x32xbf16> to vector<16x16x32xf32>
    %c0_3 = arith.constant 0 : index
    %c0_4 = arith.constant 0 : index
    %3 = vector.load %arg2[%c0_3, %c0_4] : memref<1x32xf32, #tpu.memory_space<vmem>>, vector<1x32xf32>
    %4 = vector.shape_cast %3 : vector<1x32xf32> to vector<1x1x32xf32>
    %5 = vector.broadcast %4 : vector<1x1x32xf32> to vector<16x16x32xf32>
    %6 = arith.mulf %2, %5 : vector<16x16x32xf32>
    %c0_5 = arith.constant 0 : index
    %c0_6 = arith.constant 0 : index
    %7 = vector.load %arg3[%c0_5, %c0_6] : memref<1x32xf32, #tpu.memory_space<vmem>>, vector<1x32xf32>
    %8 = vector.shape_cast %7 : vector<1x32xf32> to vector<1x1x32xf32>
    %9 = vector.broadcast %8 : vector<1x1x32xf32> to vector<16x16x32xf32>
    %10 = arith.addf %6, %9 : vector<16x16x32xf32>
    %cst = arith.constant 0.000000e+00 : f32
    %11 = vector.broadcast %cst : f32 to vector<16x16x32xf32>
    %12 = arith.maximumf %10, %11 : vector<16x16x32xf32>
    %13 = arith.truncf %12 : vector<16x16x32xf32> to vector<16x16x32xbf16>
    %cst_7 = arith.constant 0.000000e+00 : bf16
    %14 = vector.broadcast %cst_7 : bf16 to vector<1x16x32xbf16>
    %15 = tpu.concatenate %14, %13, %14 in 0 : vector<1x16x32xbf16>, vector<16x16x32xbf16>, vector<1x16x32xbf16> -> vector<18x16x32xbf16>
    %cst_8 = arith.constant 0.000000e+00 : bf16
    %16 = vector.broadcast %cst_8 : bf16 to vector<18x1x32xbf16>
    %17 = tpu.concatenate %16, %15, %16 in 1 : vector<18x1x32xbf16>, vector<18x16x32xbf16>, vector<18x1x32xbf16> -> vector<18x18x32xbf16>
    %18 = vector.extract_strided_slice %17 {offsets = [0, 0, 0], sizes = [18, 16, 32], strides = [1, 1, 1]} : vector<18x18x32xbf16> to vector<18x16x32xbf16>
    %19 = vector.extract_strided_slice %17 {offsets = [0, 1, 0], sizes = [18, 16, 32], strides = [1, 1, 1]} : vector<18x18x32xbf16> to vector<18x16x32xbf16>
    %20 = vector.extract_strided_slice %17 {offsets = [0, 2, 0], sizes = [18, 16, 32], strides = [1, 1, 1]} : vector<18x18x32xbf16> to vector<18x16x32xbf16>
    %21 = tpu.concatenate %18, %19, %20 in 2 : vector<18x16x32xbf16>, vector<18x16x32xbf16>, vector<18x16x32xbf16> -> vector<18x16x96xbf16>
    %22 = vector.extract_strided_slice %21 {offsets = [0, 0, 0], sizes = [16, 16, 96], strides = [1, 1, 1]} : vector<18x16x96xbf16> to vector<16x16x96xbf16>
    %23 = vector.shape_cast %22 : vector<16x16x96xbf16> to vector<256x96xbf16>
    %c0_9 = arith.constant 0 : index
    %c0_10 = arith.constant 0 : index
    %c0_11 = arith.constant 0 : index
    %24 = vector.load %arg4[%c0_9, %c0_10, %c0_11] : memref<3x96x32xbf16, #tpu.memory_space<vmem>>, vector<1x96x32xbf16>
    %25 = vector.shape_cast %24 : vector<1x96x32xbf16> to vector<96x32xbf16>
    %cst_12 = arith.constant dense<0.000000e+00> : vector<256x32xf32>
    %26 = tpu.matmul %23, %25, %cst_12 {dimension_numbers = #tpu.dot_dimension_numbers<[1], [0], [0], [1], [0, 0, 1, 1], [], []>} : vector<256x96xbf16>, vector<96x32xbf16>, vector<256x32xf32> -> vector<256x32xf32>
    %c0_13 = arith.constant 0 : index
    %c0_14 = arith.constant 0 : index
    %27 = vector.load %arg7[%c0_13, %c0_14] : memref<256x32xf32, #tpu.memory_space<vmem>>, vector<256x32xf32>
    tpu.vector_store %arg7[%c0_13, %c0_14], %26 {strides = array<i32>} : memref<256x32xf32, #tpu.memory_space<vmem>>, vector<256x32xf32>,
    %28 = vector.extract_strided_slice %21 {offsets = [1, 0, 0], sizes = [16, 16, 96], strides = [1, 1, 1]} : vector<18x16x96xbf16> to vector<16x16x96xbf16>
    %29 = vector.shape_cast %28 : vector<16x16x96xbf16> to vector<256x96xbf16>
    %c1 = arith.constant 1 : index
    %c0_15 = arith.constant 0 : index
    %c0_16 = arith.constant 0 : index
    %30 = vector.load %arg4[%c1, %c0_15, %c0_16] : memref<3x96x32xbf16, #tpu.memory_space<vmem>>, vector<1x96x32xbf16>
    %31 = vector.shape_cast %30 : vector<1x96x32xbf16> to vector<96x32xbf16>
    %cst_17 = arith.constant dense<0.000000e+00> : vector<256x32xf32>
    %32 = tpu.matmul %29, %31, %cst_17 {dimension_numbers = #tpu.dot_dimension_numbers<[1], [0], [0], [1], [0, 0, 1, 1], [], []>} : vector<256x96xbf16>, vector<96x32xbf16>, vector<256x32xf32> -> vector<256x32xf32>
    %c0_18 = arith.constant 0 : index
    %c0_19 = arith.constant 0 : index
    %33 = vector.load %arg7[%c0_18, %c0_19] : memref<256x32xf32, #tpu.memory_space<vmem>>, vector<256x32xf32>
    %34 = arith.addf %33, %32 : vector<256x32xf32>
    %c0_20 = arith.constant 0 : index
    %c0_21 = arith.constant 0 : index
    %35 = vector.load %arg7[%c0_20, %c0_21] : memref<256x32xf32, #tpu.memory_space<vmem>>, vector<256x32xf32>
    tpu.vector_store %arg7[%c0_20, %c0_21], %34 {strides = array<i32>} : memref<256x32xf32, #tpu.memory_space<vmem>>, vector<256x32xf32>,
    %36 = vector.extract_strided_slice %21 {offsets = [2, 0, 0], sizes = [16, 16, 96], strides = [1, 1, 1]} : vector<18x16x96xbf16> to vector<16x16x96xbf16>
    %37 = vector.shape_cast %36 : vector<16x16x96xbf16> to vector<256x96xbf16>
    %c2 = arith.constant 2 : index
    %c0_22 = arith.constant 0 : index
    %c0_23 = arith.constant 0 : index
    %38 = vector.load %arg4[%c2, %c0_22, %c0_23] : memref<3x96x32xbf16, #tpu.memory_space<vmem>>, vector<1x96x32xbf16>
    %39 = vector.shape_cast %38 : vector<1x96x32xbf16> to vector<96x32xbf16>
    %cst_24 = arith.constant dense<0.000000e+00> : vector<256x32xf32>
    %40 = tpu.matmul %37, %39, %cst_24 {dimension_numbers = #tpu.dot_dimension_numbers<[1], [0], [0], [1], [0, 0, 1, 1], [], []>} : vector<256x96xbf16>, vector<96x32xbf16>, vector<256x32xf32> -> vector<256x32xf32>
    %c0_25 = arith.constant 0 : index
    %c0_26 = arith.constant 0 : index
    %41 = vector.load %arg7[%c0_25, %c0_26] : memref<256x32xf32, #tpu.memory_space<vmem>>, vector<256x32xf32>
    %42 = arith.addf %41, %40 : vector<256x32xf32>
    %c0_27 = arith.constant 0 : index
    %c0_28 = arith.constant 0 : index
    %43 = vector.load %arg7[%c0_27, %c0_28] : memref<256x32xf32, #tpu.memory_space<vmem>>, vector<256x32xf32>
    tpu.vector_store %arg7[%c0_27, %c0_28], %42 {strides = array<i32>} : memref<256x32xf32, #tpu.memory_space<vmem>>, vector<256x32xf32>,
    %c0_29 = arith.constant 0 : index
    %c0_30 = arith.constant 0 : index
    %44 = vector.load %arg7[%c0_29, %c0_30] : memref<256x32xf32, #tpu.memory_space<vmem>>, vector<256x32xf32>
    %45 = vector.shape_cast %44 : vector<256x32xf32> to vector<16x16x32xf32>
    %46 = arith.truncf %45 : vector<16x16x32xf32> to vector<16x16x32xbf16>
    %c0_31 = arith.constant 0 : index
    %c0_32 = arith.constant 0 : index
    %c0_33 = arith.constant 0 : index
    %c0_34 = arith.constant 0 : index
    %47 = vector.load %arg5[%c0_31, %c0_32, %c0_33, %c0_34] : memref<1x16x16x32xbf16, #tpu.memory_space<vmem>>, vector<1x16x16x32xbf16>
    %48 = vector.shape_cast %47 : vector<1x16x16x32xbf16> to vector<16x16x32xbf16>
    %49 = vector.shape_cast %46 : vector<16x16x32xbf16> to vector<1x16x16x32xbf16>
    tpu.vector_store %arg5[%c0_31, %c0_32, %c0_33, %c0_34], %49 {strides = array<i32>} : memref<1x16x16x32xbf16, #tpu.memory_space<vmem>>, vector<1x16x16x32xbf16>,
    %cst_35 = arith.constant dense<0.000000e+00> : vector<32xf32>
    %50 = vector.multi_reduction <add>, %44, %cst_35 [0] : vector<256x32xf32> to vector<32xf32>
    %51 = vector.shape_cast %50 : vector<32xf32> to vector<1x32xf32>
    %52 = arith.mulf %44, %44 : vector<256x32xf32>
    %cst_36 = arith.constant dense<0.000000e+00> : vector<32xf32>
    %53 = vector.multi_reduction <add>, %52, %cst_36 [0] : vector<256x32xf32> to vector<32xf32>
    %54 = vector.shape_cast %53 : vector<32xf32> to vector<1x32xf32>
    %55 = tpu.concatenate %51, %54 in 0 : vector<1x32xf32>, vector<1x32xf32> -> vector<2x32xf32>
    %c0_37 = arith.constant 0 : index
    %c0_38 = arith.constant 0 : index
    %c0_39 = arith.constant 0 : index
    %56 = vector.load %arg6[%c0_37, %c0_38, %c0_39] : memref<1x2x32xf32, #tpu.memory_space<vmem>>, vector<1x2x32xf32>
    %57 = vector.shape_cast %56 : vector<1x2x32xf32> to vector<2x32xf32>
    %58 = vector.shape_cast %55 : vector<2x32xf32> to vector<1x2x32xf32>
    tpu.vector_store %arg6[%c0_37, %c0_38, %c0_39], %58 {strides = array<i32>} : memref<1x2x32xf32, #tpu.memory_space<vmem>>, vector<1x2x32xf32>,
    return
  }
  func.func @transform_0(%arg0: i32) -> (i32, i32, i32, i32) {
    %c0_i32 = arith.constant 0 : i32
    %c0_i32_0 = arith.constant 0 : i32
    %c0_i32_1 = arith.constant 0 : i32
    %c0_i32_2 = arith.constant 0 : i32
    return %arg0, %c0_i32, %c0_i32_0, %c0_i32_1 : i32, i32, i32, i32
  }
  func.func @transform_1(%arg0: i32) -> (i32, i32) {
    %c0_i32 = arith.constant 0 : i32
    %c0_i32_0 = arith.constant 0 : i32
    %c0_i32_1 = arith.constant 0 : i32
    return %c0_i32, %c0_i32_0 : i32, i32
  }
  func.func @transform_2(%arg0: i32) -> (i32, i32) {
    %c0_i32 = arith.constant 0 : i32
    %c0_i32_0 = arith.constant 0 : i32
    %c0_i32_1 = arith.constant 0 : i32
    return %c0_i32, %c0_i32_0 : i32, i32
  }
  func.func @transform_3(%arg0: i32) -> (i32, i32, i32) {
    %c0_i32 = arith.constant 0 : i32
    %c0_i32_0 = arith.constant 0 : i32
    %c0_i32_1 = arith.constant 0 : i32
    %c0_i32_2 = arith.constant 0 : i32
    return %c0_i32, %c0_i32_0, %c0_i32_1 : i32, i32, i32
  }
  func.func @transform_4(%arg0: i32) -> (i32, i32, i32, i32) {
    %c0_i32 = arith.constant 0 : i32
    %c0_i32_0 = arith.constant 0 : i32
    %c0_i32_1 = arith.constant 0 : i32
    %c0_i32_2 = arith.constant 0 : i32
    return %arg0, %c0_i32, %c0_i32_0, %c0_i32_1 : i32, i32, i32, i32
  }
  func.func @transform_5(%arg0: i32) -> (i32, i32, i32) {
    %c0_i32 = arith.constant 0 : i32
    %c0_i32_0 = arith.constant 0 : i32
    %c0_i32_1 = arith.constant 0 : i32
    return %arg0, %c0_i32, %c0_i32_0 : i32, i32, i32
  }
}

</mosaic_0001>

<bundles_post_ra>
// kernel: resedown_forward.7
= control target key start
LH: loop header
LB: loop body
LE: loop exit
PB: predicated region body
PF: predicated region fallthrough
CT: control target
= control target key end

     0   :  { %s2598_s24 = smov 0   ;;  %s3473_s0 = inlined_call_operand.vmem [shape: bf16[2,16,16,32], index: 0, kind: input, shape index: {}]   ;;  %s3474_s1 = inlined_call_operand.vmem [shape: bf16[2,16,16,32], index: 1, kind: input, shape index: {}]   ;;  %s3475_s2 = inlined_call_operand.vmem [shape: f32[1,32], index: 2, kind: input, shape index: {}]   ;;  %s3476_s3 = inlined_call_operand.vmem [shape: f32[1,32], index: 3, kind: input, shape index: {}]   ;;  %s3477_s4 = inlined_call_operand.vmem [shape: f32[32,128], index: 4, kind: input, shape index: {}]   ;;  %s3478_s5 = inlined_call_operand.vmem [shape: f32[128,32], index: 5, kind: input, shape index: {}]   ;;  %s3479_s6 = inlined_call_operand.vmem [shape: bf16[2,32,256], index: 6, kind: output, shape index: {0}]   ;;  %s3480_s7 = inlined_call_operand.vmem [shape: bf16[2,32,64], index: 7, kind: output, shape index: {1}]  }
   0x1 LB: > { %s2120_s25 = sadd.s32 4294967295, %s2552_s24   ;;  %p2124_p0 = scmp.ge.s32.totalorder %s2552_s24, 1  ;;  %s2552_s24 = sphi %s2598_s24, %s18_s24  }
   0x2   : > { %p250_p1 = scmp.lt.s32.totalorder %s2552_s24, 3 }
   0x4   : > { %p251_p2 = pnand %p2124_p0, %p250_p1 }
   0x6   : > { %254 = sbr.rel (%p251_p2) target bundleno = 804 (0x324), region = 44 }
   0xd   : > { %v526_v0 = vld [vmem:[%s3477_s4] sm:$0xff]  ;;  %v527_v1 = vld [vmem:[%s3477_s4 + $0x8] sm:$0xff]  ;;  %v528_v2 = vld [vmem:[%s3477_s4 + $0x10] sm:$0xff]  ;;  %v2554_v3 = vmov 0.0|0.0   ;;  %vm2555_vm0 = vmmov 0   ;;  %v2556_v6 = vmov 0.0  }
   0xe   : > { %2448 = vmatprep.subr.bf16.mxu0 %v2554_v3  ;;  %v2449_v4 = vpack.c.bf16 %v527_v1, %v526_v0  ;;  %v529_v5 = vld [vmem:[%s3477_s4 + $0x18] sm:$0xff]  ;;  %2410 = vmatprep.mubr.msk.f32.mxu0 %vm2555_vm0, %v2556_v6  ;;  %v604_v7 = vld [vmem:[%s3478_s5] sm:$0xff]  ;;  %v605_v8 = vld [vmem:[%s3478_s5 + $0x8] sm:$0xff]  ;;  %p292_p3 = scmp.lt.s32.totalorder %s2120_s25, 1  ;;  %vm454_vm1 = vcmask 261120   ;;  %vm1896_vm2 = vcmask 1041409  }
   0xf   : > { %2454 = vmatprep.subr.bf16.mxu1 %v2554_v3  ;;  %v606_v9 = vld [vmem:[%s3478_s5 + $0x10] sm:$0xff]  ;;  %2445 = vmatprep.mubr.msk.f32.mxu1 %vm2555_vm0, %v2556_v6  ;;  %v2452_v10 = vpack.c.bf16 %v529_v5, %v528_v2  ;;  %v2455_v11 = vpack.c.bf16 %v605_v8, %v604_v7  ;;  %v607_v12 = vld [vmem:[%s3478_s5 + $0x18] sm:$0xff]  ;;  %v608_v14 = vld [vmem:[%s3478_s5 + $0x20] sm:$0xff]  ;;  %vm1898_vm3 = vcmask 1042434   ;;  %vm1900_vm4 = vcmask 1043459  }
  0x10   : > { %2450 = vmatpush3.bf16.msra.mxu0 %v2449_v4  ;;  %v2458_v13 = vpack.c.bf16 %v607_v12, %v606_v9  ;;  %v609_v15 = vld [vmem:[%s3478_s5 + $0x28] sm:$0xff]  ;;  %s3540_s25 = smov (!%p292_p3, %s2120_s25), 1  ;;  %v610_v17 = vld [vmem:[%s3478_s5 + $0x30] sm:$0xff]  ;;  %v611_v18 = vld [vmem:[%s3478_s5 + $0x38] sm:$0xff]  ;;  %vm1902_vm5 = vcmask 1044484   ;;  %vm1904_vm6 = vcmask 1045509  }
  0x11   : > { %2451 = vmatprep.subr.bf16.mxu0 %v2554_v3  ;;  %2456 = vmatpush3.bf16.msra.mxu1 %v2455_v11  ;;  %v2461_v16 = vpack.c.bf16 %v609_v15, %v608_v14  ;;  %s2210_s29 = sshll.u32 %s3540_s25, 7  ;;  %v2464_v19 = vpack.c.bf16 %v611_v18, %v610_v17  ;;  %v612_v20 = vld [vmem:[%s3478_s5 + $0x40] sm:$0xff]  ;;  %v613_v21 = vld [vmem:[%s3478_s5 + $0x48] sm:$0xff]  ;;  %v614_v25 = vld [vmem:[%s3478_s5 + $0x50] sm:$0xff]  ;;  %vm1906_vm7 = vcmask 1046534   ;;  %vm1908_vm8 = vcmask 1047559  }
  0x12   : > { %2457 = vmatprep.subr.bf16.mxu1 %v2554_v3  ;;  %s2659_s9 = scalar_lea.vmem %s3473_s0, %s2210_s29  ;;  %v2467_v24 = vpack.c.bf16 %v613_v21, %v612_v20  ;;  %v615_v26 = vld [vmem:[%s3478_s5 + $0x58] sm:$0xff]  ;;  %v2681_v31 = vld [vmem:[%s3475_s2] ss:$0 sm:$0xff]  ;;  %v617_v35 = vld [vmem:[%s3478_s5 + $0x68] sm:$0xff]  ;;  %s2914_s12 = scalar_lea.vmem %s3474_s1, %s2210_s29  ;;  %vm2015_vm9 = vcmask 519168  }
  0x13   : > { %v2223_v22 = vld [vmem:[%s2659_s9] sm:$0xff]   ;;  %v2350_v23 = vld [vmem:[%s2659_s9 + $0x8] sm:$0xff]   ;;  %v2351_v30 = vld [vmem:[%s2659_s9 + $0x10] sm:$0xff]   ;;  %v2470_v32 = vpack.c.bf16 %v615_v26, %v614_v25  ;;  %s2212_s29 = sshll.u32 %s3540_s25, 5  ;;  %s2213_s16 = sshll.u32 %s3540_s25, 4 }
  0x14   : > { %2453 = vmatpush3.bf16.msra.mxu0 %v2452_v10  ;;  %v2224_v27 = vunpack.c.l.bf16 %v2223_v22  ;;  %v2225_v28 = vunpack.c.h.bf16 %v2223_v22  ;;  %v2228_v29 = vunpack.c.l.bf16 %v2350_v23  ;;  %v2229_v33 = vunpack.c.h.bf16 %v2350_v23  ;;  %v616_v34 = vld [vmem:[%s3478_s5 + $0x60] sm:$0xff]  ;;  %v2352_v37 = vld [vmem:[%s2659_s9 + $0x18] sm:$0xff]   ;;  %v2354_v60 = vld [vmem:[%s2659_s9 + $0x28] sm:$0xff]   ;;  %s306_s15 = scalar_lea.vmem %s3479_s6, %s2212_s29  ;;  %s311_s19 = scalar_lea.vmem %s3480_s7, %s2213_s16 }
  0x15   : > { %2459 = vmatpush3.bf16.msra.mxu1 %v2458_v13  ;;  %v2232_v36 = vunpack.c.l.bf16 %v2351_v30  ;;  %v2697_v41 = vld [vmem:[%s3476_s3] ss:$0 sm:$0xff]  ;;  %v2473_v42 = vpack.c.bf16 %v617_v35, %v616_v34  ;;  %v2233_v43 = vunpack.c.h.bf16 %v2351_v30  ;;  %v2236_v45 = vunpack.c.l.bf16 %v2352_v37  ;;  %v2355_v7 = vld [vmem:[%s2659_s9 + $0x30] sm:$0xff]   ;;  %v2356_v18 = vld [vmem:[%s2659_s9 + $0x38] sm:$0xff]  }
  0x16   : > { %2460 = vmatprep.subr.bf16.mxu1 %v2554_v3  ;;  %v383_v38 = vmul.f32 %v2224_v27, %v2681_v31  ;;  %v384_v39 = vmul.f32 %v2225_v28, %v2681_v31  ;;  %v385_v40 = vmul.f32 %v2228_v29, %v2681_v31  ;;  %v386_v44 = vmul.f32 %v2229_v33, %v2681_v31  ;;  %v2353_v46 = vld [vmem:[%s2659_s9 + $0x20] sm:$0xff]  }
  0x17   : > { %v387_v47 = vmul.f32 %v2232_v36, %v2681_v31  ;;  %v2237_v51 = vunpack.c.h.bf16 %v2352_v37  ;;  %v388_v52 = vmul.f32 %v2233_v43, %v2681_v31  ;;  %v2240_v54 = vunpack.c.l.bf16 %v2353_v46  ;;  %v2357_v29 = vld [vmem:[%s2659_s9 + $0x40] sm:$0xff]  }
  0x18   : > { %v2704_v48 = vadd.f32 %v2697_v41, %v383_v38  ;;  %v2707_v49 = vadd.f32 %v2697_v41, %v384_v39  ;;  %v2710_v50 = vadd.f32 %v2697_v41, %v385_v40  ;;  %v2714_v53 = vadd.f32 %v2697_v41, %v386_v44 }
  0x19   : > { %2462 = vmatpush3.bf16.msra.mxu1 %v2461_v16  ;;  %v389_v55 = vmul.f32 %v2236_v45, %v2681_v31  ;;  %v2719_v56 = vadd.f32 %v2697_v41, %v387_v47  ;;  %v2241_v62 = vunpack.c.h.bf16 %v2353_v46  ;;  %v390_v63 = vmul.f32 %v2237_v51, %v2681_v31 }
  0x1a   : > { %2463 = vmatprep.subr.bf16.mxu1 %v2554_v3  ;;  %v455_v57 = vsel %vm454_vm1, %v2704_v48, 0.0  ;;  %v456_v58 = vsel %vm454_vm1, %v2707_v49, 0.0  ;;  %v458_v59 = vsel %vm454_vm1, %v2710_v50, 0.0  ;;  %v2730_v0 = vadd.f32 %v2697_v41, %v388_v52 }
  0x1b   : > { %v457_v61 = vadd.f32 %v456_v58, %v455_v57  ;;  %v460_v1 = vsel %vm454_vm1, %v2714_v53, 0.0  ;;  %v391_v4 = vmul.f32 %v2240_v54, %v2681_v31  ;;  %v2736_v5 = vadd.f32 %v2697_v41, %v389_v55  ;;  %v2359_v58 = vld [vmem:[%s2659_s9 + $0x50] sm:$0xff]  }
  0x1c   : > { %v462_v6 = vsel %vm454_vm1, %v2719_v56, 0.0  ;;  %v2245_v9 = vunpack.c.h.bf16 %v2354_v60  ;;  %v392_v10 = vmul.f32 %v2241_v62, %v2681_v31  ;;  %v2743_v11 = vadd.f32 %v2697_v41, %v390_v63 }
  0x1d   : > { %2465 = vmatpush3.bf16.msra.mxu1 %v2464_v19  ;;  %v459_v2 = vadd.f32 %v458_v59, %v457_v61  ;;  %v464_v12 = vsel %vm454_vm1, %v2730_v0, 0.0  ;;  %v2248_v14 = vunpack.c.l.bf16 %v2355_v7  ;;  %v2749_v16 = vadd.f32 %v2697_v41, %v391_v4 }
  0x1e   : > { %2466 = vmatprep.subr.bf16.mxu1 %v2554_v3  ;;  %v466_v17 = vsel %vm454_vm1, %v2736_v5, 0.0  ;;  %v2249_v20 = vunpack.c.h.bf16 %v2355_v7  ;;  %v394_v21 = vmul.f32 %v2245_v9, %v2681_v31  ;;  %v2756_v22 = vadd.f32 %v2697_v41, %v392_v10  ;;  %v2360_v7 = vld [vmem:[%s2659_s9 + $0x58] sm:$0xff]  }
  0x1f   : > { %v461_v8 = vadd.f32 %v460_v1, %v459_v2  ;;  %v468_v23 = vsel %vm454_vm1, %v2743_v11, 0.0  ;;  %v2252_v25 = vunpack.c.l.bf16 %v2356_v18  ;;  %v395_v26 = vmul.f32 %v2248_v14, %v2681_v31 }
  0x20   : > { %v470_v28 = vsel %vm454_vm1, %v2749_v16, 0.0  ;;  %v396_v33 = vmul.f32 %v2249_v20, %v2681_v31  ;;  %v2769_v34 = vadd.f32 %v2697_v41, %v394_v21  ;;  %v472_v35 = vsel %vm454_vm1, %v2756_v22, 0.0  ;;  %v2361_v20 = vld [vmem:[%s2659_s9 + $0x60] sm:$0xff]  }
  0x21   : > { %2468 = vmatpush3.bf16.msra.mxu1 %v2467_v24  ;;  %v463_v13 = vadd.f32 %v462_v6, %v461_v8  ;;  %v2256_v37 = vunpack.c.l.bf16 %v2357_v29  ;;  %v397_v38 = vmul.f32 %v2252_v25, %v2681_v31  ;;  %v2775_v39 = vadd.f32 %v2697_v41, %v395_v26 }
  0x22   : > { %2469 = vmatprep.subr.bf16.mxu1 %v2554_v3  ;;  %v2257_v44 = vunpack.c.h.bf16 %v2357_v29  ;;  %v2782_v46 = vadd.f32 %v2697_v41, %v396_v33  ;;  %v476_v47 = vsel %vm454_vm1, %v2769_v34, 0.0  ;;  %v2264_v2 = vunpack.c.l.bf16 %v2359_v58 }
  0x23   : > { %v465_v19 = vadd.f32 %v464_v12, %v463_v13  ;;  %v399_v54 = vmul.f32 %v2256_v37, %v2681_v31  ;;  %v2788_v55 = vadd.f32 %v2697_v41, %v397_v38  ;;  %v478_v57 = vsel %vm454_vm1, %v2775_v39, 0.0 }
  0x24   : > { %v400_v61 = vmul.f32 %v2257_v44, %v2681_v31  ;;  %v480_v63 = vsel %vm454_vm1, %v2782_v46, 0.0  ;;  %v2265_v9 = vunpack.c.h.bf16 %v2359_v58  ;;  %v2272_v29 = vunpack.c.l.bf16 %v2361_v20 }
  0x25   : > { %2471 = vmatpush3.bf16.msra.mxu1 %v2470_v32  ;;  %v467_v24 = vadd.f32 %v466_v17, %v465_v19  ;;  %v2253_v32 = vunpack.c.h.bf16 %v2356_v18  ;;  %v2801_v4 = vadd.f32 %v2697_v41, %v399_v54  ;;  %v482_v6 = vsel %vm454_vm1, %v2788_v55, 0.0 }
  0x26   : > { %2472 = vmatprep.subr.bf16.mxu1 %v2554_v3  ;;  %v2808_v12 = vadd.f32 %v2697_v41, %v400_v61  ;;  %v403_v17 = vmul.f32 %v2264_v2, %v2681_v31  ;;  %v2273_v37 = vunpack.c.h.bf16 %v2361_v20 }
  0x27   : > { %v469_v30 = vadd.f32 %v468_v23, %v467_v24  ;;  %v398_v45 = vmul.f32 %v2253_v32, %v2681_v31  ;;  %v486_v19 = vsel %vm454_vm1, %v2801_v4, 0.0  ;;  %v2269_v23 = vunpack.c.h.bf16 %v2360_v7 }
  0x28   : > { %v404_v24 = vmul.f32 %v2265_v9, %v2681_v31  ;;  %v488_v26 = vsel %vm454_vm1, %v2808_v12, 0.0  ;;  %v2827_v32 = vadd.f32 %v2697_v41, %v403_v17  ;;  %v408_v58 = vmul.f32 %v2273_v37, %v2681_v31 }
  0x29   : > { %2474 = vmatpush3.bf16.msra.mxu1 %v2473_v42  ;;  %v471_v36 = vadd.f32 %v470_v28, %v469_v30  ;;  %v2358_v42 = vld [vmem:[%s2659_s9 + $0x48] sm:$0xff]   ;;  %v2795_v62 = vadd.f32 %v2697_v41, %v398_v45  ;;  %v406_v38 = vmul.f32 %v2269_v23, %v2681_v31  ;;  %v407_v45 = vmul.f32 %v2272_v29, %v2681_v31 }
  0x2a   : > { %2475 = vmatprep.subr.bf16.mxu1 %v2554_v3  ;;  %v2244_v3 = vunpack.c.l.bf16 %v2354_v60  ;;  %v2260_v52 = vunpack.c.l.bf16 %v2358_v42  ;;  %v2261_v60 = vunpack.c.h.bf16 %v2358_v42 }
  0x2b   : > { %v473_v43 = vadd.f32 %v472_v35, %v471_v36  ;;  %v484_v13 = vsel %vm454_vm1, %v2795_v62, 0.0  ;;  %v2362_v35 = vld [vmem:[%s2659_s9 + $0x68] sm:$0xff]   ;;  %v2853_v2 = vadd.f32 %v2697_v41, %v407_v45 }
  0x2c   : > { %v393_v15 = vmul.f32 %v2244_v3, %v2681_v31  ;;  %v401_v3 = vmul.f32 %v2260_v52, %v2681_v31  ;;  %v402_v10 = vmul.f32 %v2261_v60, %v2681_v31  ;;  %v2276_v44 = vunpack.c.l.bf16 %v2362_v35  ;;  %v2363_v52 = vld [vmem:[%s2659_s9 + $0x70] sm:$0xff]  }
  0x2d   : > { %v502_v20 = vsel %vm454_vm1, %v2853_v2, 0.0 }
  0x2e   : > { %v2762_v27 = vadd.f32 %v2697_v41, %v393_v15  ;;  %v2268_v15 = vunpack.c.l.bf16 %v2360_v7  ;;  %v2814_v18 = vadd.f32 %v2697_v41, %v401_v3  ;;  %v2821_v25 = vadd.f32 %v2697_v41, %v402_v10 }
  0x2f   : > { %v2860_v10 = vadd.f32 %v2697_v41, %v408_v58 }
  0x30   : > { %v474_v40 = vsel %vm454_vm1, %v2762_v27, 0.0  ;;  %v405_v30 = vmul.f32 %v2268_v15, %v2681_v31  ;;  %v490_v33 = vsel %vm454_vm1, %v2814_v18, 0.0  ;;  %v492_v42 = vsel %vm454_vm1, %v2821_v25, 0.0 }
  0x31   : > { %v475_v51 = vadd.f32 %v474_v40, %v473_v43  ;;  %v2834_v40 = vadd.f32 %v2697_v41, %v404_v24 }
  0x33   : > { %v477_v59 = vadd.f32 %v476_v47, %v475_v51  ;;  %v2840_v47 = vadd.f32 %v2697_v41, %v405_v30  ;;  %v494_v51 = vsel %vm454_vm1, %v2827_v32, 0.0  ;;  %v496_v60 = vsel %vm454_vm1, %v2834_v40, 0.0 }
  0x35   : > { %v479_v1 = vadd.f32 %v478_v57, %v477_v59  ;;  %v2277_v57 = vunpack.c.h.bf16 %v2362_v35  ;;  %v2847_v59 = vadd.f32 %v2697_v41, %v406_v38  ;;  %v498_v3 = vsel %vm454_vm1, %v2840_v47, 0.0 }
  0x37   : > { %v481_v8 = vadd.f32 %v480_v63, %v479_v1  ;;  %v2280_v63 = vunpack.c.l.bf16 %v2363_v52  ;;  %v409_v1 = vmul.f32 %v2276_v44, %v2681_v31  ;;  %v410_v9 = vmul.f32 %v2277_v57, %v2681_v31 }
  0x39   : > { %v483_v14 = vadd.f32 %v482_v6, %v481_v8  ;;  %v2364_v6 = vld [vmem:[%s2659_s9 + $0x78] sm:$0xff]   ;;  %v2281_v8 = vunpack.c.h.bf16 %v2363_v52  ;;  %v411_v17 = vmul.f32 %v2280_v63, %v2681_v31 }
  0x3a   : > { %v2284_v15 = vunpack.c.l.bf16 %v2364_v6  ;;  %v2285_v23 = vunpack.c.h.bf16 %v2364_v6 }
  0x3b   : > { %v485_v21 = vadd.f32 %v484_v13, %v483_v14  ;;  %v500_v13 = vsel %vm454_vm1, %v2847_v59, 0.0  ;;  %v412_v24 = vmul.f32 %v2281_v8, %v2681_v31 }
  0x3c   : > { %v413_v30 = vmul.f32 %v2284_v15, %v2681_v31  ;;  %v414_v37 = vmul.f32 %v2285_v23, %v2681_v31 }
  0x3d   : > { %v487_v28 = vadd.f32 %v486_v19, %v485_v21  ;;  %v2866_v19 = vadd.f32 %v2697_v41, %v409_v1  ;;  %v2884_v38 = vadd.f32 %v2697_v41, %v412_v24 }
  0x3e   : > { %v2889_v44 = vadd.f32 %v2697_v41, %v413_v30  ;;  %v2894_v52 = vadd.f32 %v2697_v41, %v414_v37  ;;  %v696_v30 = vlaneseq  ;;  %v2557_v37 = vmov 1983009808  }
  0x3f   : > { %v489_v36 = vadd.f32 %v488_v26, %v487_v28  ;;  %3491 = vst [vmem:[#allocation2_spill] sm:$0xff] %v2866_v19  ;;  %v2872_v26 = vadd.f32 %v2697_v41, %v410_v9  ;;  %v504_v28 = vsel %vm454_vm1, %v2860_v10, 0.0  ;;  %v506_v35 = vsel %vm454_vm1, %v2866_v19, 0.0  ;;  %3492 = vst [vmem:[#allocation3_spill] sm:$0xff] %v2884_v38 }
  0x40   : > { %v512_v31 = vsel %vm454_vm1, %v2884_v38, 0.0  ;;  %v514_v57 = vsel %vm454_vm1, %v2889_v44, 0.0 }
  0x41   : > { %v491_v43 = vadd.f32 %v490_v33, %v489_v36  ;;  %v2878_v33 = vadd.f32 %v2697_v41, %v411_v17 }
  0x43   : > { %v493_v54 = vadd.f32 %v492_v42, %v491_v43  ;;  %v508_v42 = vsel %vm454_vm1, %v2872_v26, 0.0  ;;  %v510_v45 = vsel %vm454_vm1, %v2878_v33, 0.0 }
  0x45   : > { %v495_v61 = vadd.f32 %v494_v51, %v493_v54 }
  0x47   : > { %v497_v7 = vadd.f32 %v496_v60, %v495_v61  ;;  %v516_v60 = vsel %vm454_vm1, %v2894_v52, 0.0 }
  0x49   : > { %v499_v14 = vadd.f32 %v498_v3, %v497_v7 }
  0x4b   : > { %v501_v21 = vadd.f32 %v500_v13, %v499_v14  ;;  %v618_v13 = vld [vmem:[%s3478_s5 + $0x70] sm:$0xff]  ;;  %v619_v14 = vld [vmem:[%s3478_s5 + $0x78] sm:$0xff] }
  0x4c   : > { %v2476_v15 = vpack.c.bf16 %v619_v14, %v618_v13 }
  0x4d   : > { %v503_v29 = vadd.f32 %v502_v20, %v501_v21 }
  0x4e   : > { %2477 = vmatpush3.bf16.msra.mxu1 %v2476_v15 }
  0x4f   : > { %v505_v36 = vadd.f32 %v504_v28, %v503_v29 }
  0x51   : > { %v507_v43 = vadd.f32 %v506_v35, %v505_v36 }
  0x53   : > { %v509_v51 = vadd.f32 %v508_v42, %v507_v43  ;;  %v986_v42 = vunpack.c.l.s4 %v2557_v37  ;;  %v697_v43 = vshrl.u32 %v696_v30, 7  ;;  %v2966_v30 = vld [vmem:[%s2914_s12 + $0x30] sm:$0xff]  }
  0x55   : > { %v511_v54 = vadd.f32 %v510_v45, %v509_v51  ;;  %v2917_v45 = vld [vmem:[%s2914_s12 + $0x78] sm:$0xff]   ;;  %v2920_v51 = vld [vmem:[%s2914_s12] sm:$0xff]  }
  0x56   : > { %3493 = vst [vmem:[#allocation4_spill] sm:$0xff] %v2917_v45 }
  0x57   : > { %v513_v58 = vadd.f32 %v512_v31, %v511_v54  ;;  %v2923_v31 = vld [vmem:[%s2914_s12 + $0x40] sm:$0xff]   ;;  %v2926_v54 = vld [vmem:[%s2914_s12 + $0x8] sm:$0xff]  }
  0x58   : > { %v2292_v13 = vunpack.c.l.bf16 %v2926_v54  ;;  %v2293_v15 = vunpack.c.h.bf16 %v2926_v54 }
  0x59   : > { %v515_v61 = vadd.f32 %v514_v57, %v513_v58  ;;  %v2929_v57 = vld [vmem:[%s2914_s12 + $0x48] sm:$0xff]   ;;  %v987_v58 = vunpack.c.0.s8 %v986_v42 }
  0x5a   : > { %v2324_v14 = vunpack.c.l.bf16 %v2929_v57 }
  0x5b   : > { %v517_v63 = vadd.f32 %v516_v60, %v515_v61  ;;  %v2348_v60 = vunpack.c.l.bf16 %v2917_v45  ;;  %v2932_v61 = vsub.s32 0, %v697_v43 }
  0x5d   : > { %v518_v1 = vrot.slane %v517_v63, 4 }
  0x5f   : > { %v519_v3 = vadd.f32 %v518_v1, %v517_v63  ;;  %v2935_v63 = vld [vmem:[%s2914_s12 + $0x10] sm:$0xff]   ;;  %v2938_v1 = vld [vmem:[%s2914_s12 + $0x18] sm:$0xff]  }
  0x61   : > { %v520_v6 = vrot.slane %v519_v3, 2 }
  0x63   : > { %v521_v7 = vadd.f32 %v520_v6, %v519_v3  ;;  %v2941_v3 = vld [vmem:[%s2914_s12 + $0x50] sm:$0xff]   ;;  %v2288_v6 = vunpack.c.l.bf16 %v2920_v51 }
  0x65   : > { %v522_v8 = vrot.slane %v521_v7, 1 }
  0x67   : > { %v523_v41 = vadd.f32 %v522_v8, %v521_v7  ;;  %v2320_v7 = vunpack.c.l.bf16 %v2923_v31  ;;  %v2289_v8 = vunpack.c.h.bf16 %v2920_v51  ;;  %v2976_v51 = vld [vmem:[%s2914_s12 + $0x60] sm:$0xff]  }
  0x69   : > { %v525_v9 = vmul.f32 0.00390625, %v523_v41  ;;  %v2321_v41 = vunpack.c.h.bf16 %v2923_v31 }
  0x6b   : > { %2411 = vmatmul.mubr.msk.f32.vlgmr.msra.gmra.mrb[0].mxu0 %vm454_vm1, %v525_v9  ;;  %v2948_v9 = vld [vmem:[%s2914_s12 + $0x58] sm:$0xff]  }
 0x13e   : > { %v599_v17 = vpop.f32.mrb[0].mxu0 }
 0x13f   : > { %v603_v20 = vmax.f32 %v599_v17, 0.0  ;;  %v2412_v21 = vpop.f32.mrb[1].mxu0  ;;  %v2325_v17 = vunpack.c.h.bf16 %v2929_v57 }
 0x140   : > { %v2958_v21 = vld [vmem:[%s2914_s12 + $0x28] sm:$0xff]  }
 0x141   : > { %2446 = vmatmul.mubr.f32.vlgmr.msra.gmra.mrb[0].mxu1 %v603_v20  ;;  %v2955_v20 = vld [vmem:[%s2914_s12 + $0x20] sm:$0xff]  }
 0x214   : > { %v686_v23 = vpop.f32.mrb[0].mxu1 }
 0x215   : > { %v690_v24 = vsub.f32 0.0, %v686_v23  ;;  %v2447_v28 = vpop.f32.mrb[1].mxu1  ;;  %v2960_v23 = vsub.s32 %v987_v58, %v697_v43 }
 0x216   : > { %v2986_v28 = vld [vmem:[%s2914_s12 + $0x70] sm:$0xff]  }
 0x217   : > { %v691_v29 = vmul.f32 1.442695, %v690_v24  ;;  %3495 = vst [vmem:[#allocation6_spill] sm:$0xff] %v2986_v28 }
 0x219   : > { %2542 = vpow2.f32 %v691_v29  ;;  %v2983_v29 = vld [vmem:[%s2914_s12 + $0x68] sm:$0xff]  }
 0x21a   : > { %3494 = vst [vmem:[#allocation5_spill] sm:$0xff] %v2983_v29 }
 0x223   : > { %v2543_v35 = vpop.eup %2542 }
 0x224   : > { %v693_v36 = vadd.f32 1.0, %v2543_v35  ;;  %v2969_v35 = vld [vmem:[%s2914_s12 + $0x38] sm:$0xff]  }
 0x226   : > { %2544 = vrcp.f32 %v693_v36 }
 0x230   : > { %v2545_v36 = vpop.eup %2544 }
 0x231   : > { %v2993_v31 = vrot.slane %v2545_v36, %v2932_v61 }
 0x233   : > { %v3004_v24 = vmul.f32 %v2993_v31, %v2878_v33  ;;  %v730_v36 = vmul.f32 %v2993_v31, %v2889_v44  ;;  %v700_v58 = vmul.f32 %v2993_v31, %v2704_v48  ;;  %v716_v38 = vmul.f32 %v2993_v31, %v2801_v4 }
 0x234   : > { %v701_v37 = vmul.f32 %v2993_v31, %v2707_v49  ;;  %v717_v42 = vmul.f32 %v2993_v31, %v2808_v12  ;;  %v702_v33 = vmul.f32 %v2993_v31, %v2710_v50  ;;  %v3021_v44 = vmul.f32 %v2993_v31, %v2894_v52 }
 0x235   : > { %3496 = vst [vmem:[#allocation7_spill] sm:$0xff] %v3004_v24  ;;  %v796_v19 = vadd.f32 %v2288_v6, %v700_v58  ;;  %v718_v48 = vmul.f32 %v2993_v31, %v2814_v18  ;;  %v703_v4 = vmul.f32 %v2993_v31, %v2714_v53  ;;  %v812_v54 = vadd.f32 %v2320_v7, %v716_v38 }
 0x236   : > { %3497 = vst [vmem:[#allocation8_spill] sm:$0xff] %v3021_v44  ;;  %v797_v57 = vadd.f32 %v2289_v8, %v701_v37  ;;  %v813_v49 = vadd.f32 %v2321_v41, %v717_v42  ;;  %v798_v43 = vadd.f32 %v2292_v13, %v702_v33  ;;  %v3027_v45 = vadd.f32 %v2348_v60, %v730_v36 }
 0x237   : > { %v828_v12 = vmax.f32 %v796_v19, 0.0  ;;  %v814_v28 = vadd.f32 %v2324_v14, %v718_v48  ;;  %v719_v50 = vmul.f32 %v2993_v31, %v2821_v25  ;;  %v844_v52 = vmax.f32 %v812_v54, 0.0 }
 0x238   : > { %v829_v44 = vmax.f32 %v797_v57, 0.0  ;;  %v845_v6 = vmax.f32 %v813_v49, 0.0  ;;  %v830_v58 = vmax.f32 %v798_v43, 0.0  ;;  %v799_v18 = vadd.f32 %v2293_v15, %v703_v4 }
 0x239   : > { %v846_v24 = vmax.f32 %v814_v28, 0.0  ;;  %v815_v29 = vadd.f32 %v2325_v17, %v719_v50  ;;  %v704_v53 = vmul.f32 %v2993_v31, %v2719_v56  ;;  %v2490_v38 = vpack.i.bf16 %v844_v52, %v828_v12 }
 0x23a   : > { %v2492_v7 = vpack.i.bf16 %v845_v6, %v829_v44  ;;  %v952_v8 = vmax.f32 %v828_v12, %v830_v58  ;;  %v706_v19 = vmul.f32 %v2993_v31, %v2736_v5  ;;  %v831_v13 = vmax.f32 %v799_v18, 0.0 }
 0x23b   : > { %v960_v60 = vmax.f32 %v844_v52, %v846_v24  ;;  %v2494_v41 = vpack.i.bf16 %v846_v24, %v830_v58  ;;  %v847_v25 = vmax.f32 %v815_v29, 0.0  ;;  %2491 = vxpose.xlu0.b32.start [1/16] (narrow) %v2490_v38, 32  ;;  %v720_v15 = vmul.f32 %v2993_v31, %v2827_v32 }
 0x23c   : > { %v984_v14 = vcombine.high %v952_v8, %v952_v8  ;;  %v991_v37 = vrot.slane %v952_v8, %v2960_v23  ;;  %v3498_v17 = vunpack.c.l.bf16 %v2935_v63  ;;  %v953_v57 = vmax.f32 %v829_v44, %v831_v13 }
 0x23d   : > { %v1120_v28 = vcombine.high %v960_v60, %v960_v60  ;;  %v1127_v42 = vrot.slane %v960_v60, %v2960_v23  ;;  %v961_v43 = vmax.f32 %v845_v6, %v847_v25  ;;  %v2496_v5 = vpack.i.bf16 %v847_v25, %v831_v13 }
 0x23e   : > { %v3040_v56 = vadd.f32 %v3498_v17, %v704_v53  ;;  %v998_v24 = vrot.slane %v984_v14, %v2960_v23  ;;  %v999_v54 = vcombine.high %v991_v37, %v991_v37  ;;  %v2140_v29 = vrot.slane %v991_v37, 9 }
 0x23f   : > { %v1134_v36 = vrot.slane %v1120_v28, %v2960_v23  ;;  %v1135_v33 = vcombine.high %v1127_v42, %v1127_v42  ;;  %v2172_v48 = vrot.slane %v1127_v42, 9  ;;  %v1137_v4 = vcombine.high %v961_v43, %v961_v43  ;;  %2493 = vxpose.xlu0.b32.cont [2/16] (narrow) %v2492_v7, 32 }
 0x240   : > { %v1000_v32 = vcombine.high %v998_v24, %v998_v24  ;;  %v2141_v49 = vrot.slane %v999_v54, 9  ;;  %v2142_v12 = vrot.slane %v998_v24, 9  ;;  %v1512_v50 = vmax.f32 %v991_v37, %v2140_v29 }
 0x241   : > { %v3045_v52 = vcombine.high %v1134_v36, %v1134_v36  ;;  %v2173_v58 = vrot.slane %v1135_v33, 9  ;;  %v2174_v6 = vrot.slane %v1134_v36, 9  ;;  %v3047_v18 = vmax.f32 %v1127_v42, %v2172_v48 }
 0x242   : > { %v2143_v53 = vrot.slane %v1000_v32, 9  ;;  %v1513_v38 = vmax.f32 %v999_v54, %v2141_v49  ;;  %v1514_v44 = vmax.f32 %v998_v24, %v2142_v12  ;;  %v1643_v8 = vrot.slane %v1512_v50, %v2932_v61 }
 0x243   : > { %v3051_v13 = vmax.f32 %v1135_v33, %v2173_v58  ;;  %v3053_v7 = vmax.f32 %v1134_v36, %v2174_v6  ;;  %2495 = vxpose.xlu0.b32.cont [3/16] (narrow) %v2494_v41, 32  ;;  %v1144_v37 = vrot.slane %v961_v43, %v2960_v23  ;;  %v3060_v17 = vrot.slane %v1137_v4, %v2960_v23 }
 0x244   : > { %v1647_v14 = vrot.slane %v1513_v38, %v2932_v61  ;;  %v1001_v28 = vcombine.high %v953_v57, %v953_v57  ;;  %v1008_v54 = vrot.slane %v953_v57, %v2960_v23  ;;  %v3499_v29 = vunpack.c.l.bf16 %v2938_v1 }
 0x245   : > { %v3071_v41 = vcombine.high %v1144_v37, %v1144_v37  ;;  %v2176_v43 = vrot.slane %v1144_v37, 9  ;;  %v3500_v48 = vunpack.c.l.bf16 %v2941_v3  ;;  %v832_v50 = vmax.f32 %v3040_v56, 0.0 }
 0x246   : > { %v3069_v36 = vadd.f32 %v3499_v29, %v706_v19  ;;  %v1015_v33 = vrot.slane %v1001_v28, %v2960_v23  ;;  %v1016_v49 = vcombine.high %v1008_v54, %v1008_v54  ;;  %v2144_v12 = vrot.slane %v1008_v54, 9 }
 0x247   : > { %v3076_v4 = vadd.f32 %v3500_v48, %v720_v15  ;;  %v3080_v58 = vmax.f32 %v1144_v37, %v2176_v43  ;;  %2497 = vxpose.xlu0.b32.cont [4/16] (narrow) %v2496_v5, 32  ;;  %v1515_v48 = vmax.f32 %v1000_v32, %v2143_v53  ;;  %v1651_v37 = vrot.slane %v1514_v44, %v2932_v61 }
 0x248   : > { %v3488_v57 = vmax.f32 %v3069_v36, 0.0  ;;  %v1017_v6 = vcombine.high %v1015_v33, %v1015_v33  ;;  %v2146_v38 = vrot.slane %v1015_v33, 9  ;;  %v1516_v28 = vmax.f32 %v1008_v54, %v2144_v12 }
 0x249   : > { %v848_v19 = vmax.f32 %v3076_v4, 0.0  ;;  %v2145_v29 = vrot.slane %v1016_v49, 9  ;;  %v1655_v54 = vrot.slane %v1515_v48, %v2932_v61  ;;  %v1897_v53 = vsel %vm1896_vm2, %v1647_v14, %v1643_v8 }
 0x24a   : > { %v954_v15 = vmax.f32 %v832_v50, %v3488_v57  ;;  %v2147_v24 = vrot.slane %v1017_v6, 9  ;;  %v1518_v42 = vmax.f32 %v1015_v33, %v2146_v38  ;;  %v1659_v60 = vrot.slane %v1516_v28, %v2932_v61 }
 0x24b   : > { %v2498_v56 = vpack.i.bf16 %v848_v19, %v832_v50  ;;  %v1517_v25 = vmax.f32 %v1016_v49, %v2145_v29  ;;  %v1899_v49 = vsel %vm1898_vm3, %v1651_v37, %v1897_v53  ;;  %v721_v29 = vmul.f32 %v2993_v31, %v2834_v40 }
 0x24c   : > { %v1018_v5 = vcombine.high %v954_v15, %v954_v15  ;;  %v1025_v43 = vrot.slane %v954_v15, %v2960_v23  ;;  %v1519_v12 = vmax.f32 %v1017_v6, %v2147_v24  ;;  %v1667_v32 = vrot.slane %v1518_v42, %v2932_v61 }
 0x24d   : > { %2499 = vxpose.xlu0.b32.cont [5/16] (narrow) %v2498_v56, 32  ;;  %v1663_v44 = vrot.slane %v1517_v25, %v2932_v61  ;;  %v705_v15 = vmul.f32 %v2993_v31, %v2730_v0  ;;  %v707_v24 = vmul.f32 %v2993_v31, %v2743_v11  ;;  %v1901_v14 = vsel %vm1900_vm4, %v1655_v54, %v1899_v49 }
 0x24e   : > { %v1032_v50 = vrot.slane %v1018_v5, %v2960_v23  ;;  %v1033_v33 = vcombine.high %v1025_v43, %v1025_v43  ;;  %v2148_v38 = vrot.slane %v1025_v43, 9  ;;  %v1671_v57 = vrot.slane %v1519_v12, %v2932_v61 }
 0x24f   : > { %v3501_v25 = vunpack.c.h.bf16 %v2935_v63  ;;  %v3502_v56 = vunpack.c.h.bf16 %v2938_v1  ;;  %v1903_v53 = vsel %vm1902_vm5, %v1659_v60, %v1901_v14 }
 0x250   : > { %v1034_v6 = vcombine.high %v1032_v50, %v1032_v50  ;;  %v2149_v42 = vrot.slane %v1033_v33, 9  ;;  %v2150_v28 = vrot.slane %v1032_v50, 9  ;;  %v1520_v8 = vmax.f32 %v1025_v43, %v2148_v38 }
 0x251   : > { %v801_v48 = vadd.f32 %v3501_v25, %v705_v15  ;;  %v3108_v37 = vadd.f32 %v3502_v56, %v707_v24  ;;  %v3503_v43 = vunpack.c.h.bf16 %v2941_v3  ;;  %v1905_v49 = vsel %vm1904_vm6, %v1663_v44, %v1903_v53 }
 0x252   : > { %v2151_v0 = vrot.slane %v1034_v6, 9  ;;  %v1521_v5 = vmax.f32 %v1033_v33, %v2149_v42  ;;  %v1522_v12 = vmax.f32 %v1032_v50, %v2150_v28  ;;  %v1675_v11 = vrot.slane %v1520_v8, %v2932_v61 }
 0x253   : > { %v3114_v54 = vadd.f32 %v3503_v43, %v721_v29  ;;  %v833_v38 = vmax.f32 %v801_v48, 0.0  ;;  %v835_v40 = vmax.f32 %v3108_v37, 0.0  ;;  %v1907_v50 = vsel %vm1906_vm7, %v1667_v32, %v1905_v49 }
 0x254   : > { %v1679_v63 = vrot.slane %v1521_v5, %v2932_v61  ;;  %v1683_v1 = vrot.slane %v1522_v12, %v2932_v61  ;;  %v1523_v15 = vmax.f32 %v1034_v6, %v2151_v0  ;;  %v722_v3 = vmul.f32 %v2993_v31, %v2840_v47 }
 0x255   : > { %v849_v33 = vmax.f32 %v3114_v54, 0.0  ;;  %v955_v60 = vmax.f32 %v833_v38, %v835_v40  ;;  %v1909_v24 = vsel %vm1908_vm8, %v1671_v57, %v1907_v50  ;;  %v708_v44 = vmul.f32 %v2993_v31, %v2749_v16 }
 0x256   : > { %v1687_v42 = vrot.slane %v1523_v15, %v2932_v61  ;;  %v1910_v28 = vsel %vm1896_vm2, %v1679_v63, %v1675_v11  ;;  %1967 = vxpose.xlu1.b32.start [1/8] (short) (narrow) %v1909_v24, 32  ;;  %v3504_v57 = vunpack.c.l.bf16 %v2948_v9  ;;  %v709_v25 = vmul.f32 %v2993_v31, %v2756_v22 }
 0x257   : > { %v2500_v32 = vpack.i.bf16 %v849_v33, %v833_v38  ;;  %v1035_v6 = vcombine.high %v955_v60, %v955_v60  ;;  %v1042_v8 = vrot.slane %v955_v60, %v2960_v23  ;;  %v1911_v14 = vsel %vm1898_vm3, %v1683_v1, %v1910_v28 }
 0x258   : > { %v1912_v47 = vsel %vm1900_vm4, %v1687_v42, %v1911_v14  ;;  %v818_v29 = vadd.f32 %v3504_v57, %v722_v3  ;;  %v710_v16 = vmul.f32 %v2993_v31, %v2762_v27  ;;  %v711_v5 = vmul.f32 %v2993_v31, %v2769_v34 }
 0x259   : > { %v1049_v48 = vrot.slane %v1035_v6, %v2960_v23  ;;  %v1050_v56 = vcombine.high %v1042_v8, %v1042_v8  ;;  %v2152_v0 = vrot.slane %v1042_v8, 9  ;;  %2501 = vxpose.xlu0.b32.cont [6/16] (narrow) %v2500_v32, 32  ;;  %v3505_v11 = vunpack.c.l.bf16 %v2955_v20 }
 0x25a   : > { %v850_v12 = vmax.f32 %v818_v29, 0.0  ;;  %v3506_v43 = vunpack.c.h.bf16 %v2955_v20  ;;  %v3507_v22 = vunpack.c.l.bf16 %v2958_v21  ;;  %v3508_v50 = vmax.f32 %v3069_v36, 0.0 }
 0x25b   : > { %v3147_v53 = vadd.f32 %v3505_v11, %v708_v44  ;;  %v1524_v63 = vmax.f32 %v1042_v8, %v2152_v0  ;;  %v1051_v1 = vcombine.high %v1049_v48, %v1049_v48  ;;  %v2153_v49 = vrot.slane %v1050_v56, 9 }
 0x25c   : > { %v3151_v38 = vadd.f32 %v3506_v43, %v709_v25  ;;  %v3155_v27 = vadd.f32 %v3507_v22, %v710_v16  ;;  %v2154_v15 = vrot.slane %v1049_v48, 9  ;;  %v962_v34 = vmax.f32 %v848_v19, %v850_v12 }
 0x25d   : > { %v2502_v60 = vpack.i.bf16 %v850_v12, %v3508_v50  ;;  %v3509_v3 = vunpack.c.h.bf16 %v2958_v21  ;;  %v836_v20 = vmax.f32 %v3147_v53, 0.0  ;;  %v2155_v42 = vrot.slane %v1051_v1, 9 }
 0x25e   : > { %v1525_v28 = vmax.f32 %v1050_v56, %v2153_v49  ;;  %v1526_v44 = vmax.f32 %v1049_v48, %v2154_v15  ;;  %v1691_v32 = vrot.slane %v1524_v63, %v2932_v61  ;;  %v1154_v6 = vcombine.high %v962_v34, %v962_v34 }
 0x25f   : > { %v3163_v24 = vadd.f32 %v3509_v3, %v711_v5  ;;  %v1161_v8 = vrot.slane %v962_v34, %v2960_v23  ;;  %2503 = vxpose.xlu0.b32.cont [7/16] (narrow) %v2502_v60, 32  ;;  %v837_v4 = vmax.f32 %v3151_v38, 0.0  ;;  %v3490_v36 = vmax.f32 %v3155_v27, 0.0 }
 0x260   : > { %v1527_v19 = vmax.f32 %v1051_v1, %v2155_v42  ;;  %v1695_v21 = vrot.slane %v1525_v28, %v2932_v61  ;;  %v1699_v14 = vrot.slane %v1526_v44, %v2932_v61  ;;  %v1913_v57 = vsel %vm1902_vm5, %v1691_v32, %v1912_v47 }
 0x261   : > { %v1168_v29 = vrot.slane %v1154_v6, %v2960_v23  ;;  %v1169_v25 = vcombine.high %v1161_v8, %v1161_v8  ;;  %v2180_v16 = vrot.slane %v1161_v8, 9  ;;  %v3489_v48 = vmax.f32 %v3163_v24, 0.0 }
 0x262   : > { %v1703_v56 = vrot.slane %v1527_v19, %v2932_v61  ;;  %v1914_v0 = vsel %vm1904_vm6, %v1695_v21, %v1913_v57  ;;  %v956_v5 = vmax.f32 %v836_v20, %v3490_v36  ;;  %v723_v12 = vmul.f32 %v2993_v31, %v2847_v59 }
 0x263   : > { %v1915_v47 = vsel %vm1906_vm7, %v1699_v14, %v1914_v0  ;;  %v3184_v11 = vcombine.high %v1168_v29, %v1168_v29  ;;  %v2181_v43 = vrot.slane %v1169_v25, 9  ;;  %v2182_v22 = vrot.slane %v1168_v29, 9 }
 0x264   : > { %v1916_v63 = vsel %vm1908_vm8, %v1703_v56, %v1915_v47  ;;  %v3187_v1 = vmax.f32 %v1161_v8, %v2180_v16  ;;  %v957_v49 = vmax.f32 %v837_v4, %v3489_v48  ;;  %v1052_v15 = vcombine.high %v956_v5, %v956_v5 }
 0x265   : > { %1968 = vxpose.xlu1.b32.cont [2/8] (short) (narrow) %v1916_v63, 32  ;;  %v3194_v59 = vmax.f32 %v1169_v25, %v2181_v43  ;;  %v3196_v50 = vmax.f32 %v1168_v29, %v2182_v22  ;;  %v1059_v60 = vrot.slane %v956_v5, %v2960_v23  ;;  %v3510_v0 = vunpack.c.h.bf16 %v2948_v9 }
 0x266   : > { %v1066_v42 = vrot.slane %v1052_v15, %v2960_v23  ;;  %v1069_v28 = vcombine.high %v957_v49, %v957_v49  ;;  %v1076_v44 = vrot.slane %v957_v49, %v2960_v23  ;;  %v715_v37 = vmul.f32 %v2993_v31, %v2795_v62 }
 0x267   : > { %v1067_v8 = vcombine.high %v1059_v60, %v1059_v60  ;;  %v2156_v19 = vrot.slane %v1059_v60, 9  ;;  %v819_v5 = vadd.f32 %v3510_v0, %v723_v12 }
 0x268   : > { %v1068_v21 = vcombine.high %v1066_v42, %v1066_v42  ;;  %v1083_v14 = vrot.slane %v1069_v28, %v2960_v23  ;;  %v1084_v57 = vcombine.high %v1076_v44, %v1076_v44  ;;  %v2158_v29 = vrot.slane %v1066_v42, 9 }
 0x269   : > { %v2157_v25 = vrot.slane %v1067_v8, 9  ;;  %v2160_v16 = vrot.slane %v1076_v44, 9  ;;  %v1528_v56 = vmax.f32 %v1059_v60, %v2156_v19  ;;  %v851_v12 = vmax.f32 %v819_v5, 0.0 }
 0x26a   : > { %v1085_v47 = vcombine.high %v1083_v14, %v1083_v14  ;;  %v2159_v43 = vrot.slane %v1068_v21, 9  ;;  %v2161_v22 = vrot.slane %v1084_v57, 9  ;;  %v2162_v63 = vrot.slane %v1083_v14, 9 }
 0x26b   : > { %v1529_v49 = vmax.f32 %v1067_v8, %v2157_v25  ;;  %v1530_v15 = vmax.f32 %v1066_v42, %v2158_v29  ;;  %v1532_v48 = vmax.f32 %v1076_v44, %v2160_v16  ;;  %v1707_v36 = vrot.slane %v1528_v56, %v2932_v61 }
 0x26c   : > { %v2163_v6 = vrot.slane %v1085_v47, 9  ;;  %v1531_v32 = vmax.f32 %v1068_v21, %v2159_v43  ;;  %v1533_v28 = vmax.f32 %v1084_v57, %v2161_v22  ;;  %v1534_v3 = vmax.f32 %v1083_v14, %v2162_v63 }
 0x26d   : > { %v1711_v34 = vrot.slane %v1529_v49, %v2932_v61  ;;  %v1715_v60 = vrot.slane %v1530_v15, %v2932_v61  ;;  %v1723_v9 = vrot.slane %v1532_v48, %v2932_v61  ;;  %v963_v21 = vmax.f32 %v849_v33, %v851_v12 }
 0x26e   : > { %v1535_v19 = vmax.f32 %v1085_v47, %v2163_v6  ;;  %v1719_v0 = vrot.slane %v1531_v32, %v2932_v61  ;;  %v1727_v8 = vrot.slane %v1533_v28, %v2932_v61  ;;  %v1731_v42 = vrot.slane %v1534_v3, %v2932_v61 }
 0x26f   : > { %v1917_v44 = vsel %vm1896_vm2, %v1711_v34, %v1707_v36  ;;  %v2504_v14 = vpack.i.bf16 %v851_v12, %v835_v40  ;;  %v712_v57 = vmul.f32 %v2993_v31, %v2775_v39  ;;  %v713_v32 = vmul.f32 %v2993_v31, %v2782_v46 }
 0x270   : > { %v1735_v48 = vrot.slane %v1535_v19, %v2932_v61  ;;  %v1918_v6 = vsel %vm1898_vm3, %v1715_v60, %v1917_v44  ;;  %v714_v3 = vmul.f32 %v2993_v31, %v2788_v55  ;;  %v1171_v54 = vcombine.high %v963_v21, %v963_v21 }
 0x271   : > { %v1919_v36 = vsel %vm1900_vm4, %v1719_v0, %v1918_v6  ;;  %v1178_v33 = vrot.slane %v963_v21, %v2960_v23  ;;  %2505 = vxpose.xlu0.b32.cont [8/16] (narrow) %v2504_v14, 32  ;;  %v3511_v40 = vunpack.c.l.bf16 %v2966_v30  ;;  %v3512_v46 = vunpack.c.h.bf16 %v2966_v30 }
 0x272   : > { %v1920_v39 = vsel %vm1902_vm5, %v1723_v9, %v1919_v36  ;;  %v3513_v55 = vunpack.c.l.bf16 %v2969_v35  ;;  %v3249_v56 = vrot.slane %v1171_v54, %v2960_v23  ;;  %v3514_v43 = vunpack.c.h.bf16 %v2969_v35 }
 0x273   : > { %v3237_v34 = vadd.f32 %v3511_v40, %v712_v57  ;;  %v3241_v29 = vadd.f32 %v3512_v46, %v713_v32  ;;  %v1921_v16 = vsel %vm1904_vm6, %v1727_v8, %v1920_v39  ;;  %v3251_v62 = vcombine.high %v1178_v33, %v1178_v33 }
 0x274   : > { %v3245_v25 = vadd.f32 %v3513_v55, %v714_v3  ;;  %v2184_v5 = vrot.slane %v1178_v33, 9  ;;  %v1922_v47 = vsel %vm1906_vm7, %v1731_v42, %v1921_v16  ;;  %v3256_v22 = vadd.f32 %v3514_v43, %v715_v37 }
 0x275   : > { %v840_v30 = vmax.f32 %v3237_v34, 0.0  ;;  %v841_v63 = vmax.f32 %v3241_v29, 0.0  ;;  %v1923_v49 = vsel %vm1908_vm8, %v1735_v48, %v1922_v47  ;;  %v724_v60 = vmul.f32 %v2993_v31, %v2853_v2 }
 0x276   : > { %v3261_v15 = vmax.f32 %v1178_v33, %v2184_v5  ;;  %v842_v28 = vmax.f32 %v3245_v25, 0.0  ;;  %1969 = vxpose.xlu1.b32.cont [3/8] (short) (narrow) %v1923_v49, 32  ;;  %v843_v9 = vmax.f32 %v3256_v22, 0.0  ;;  %v1153_v35 = vcombine.high %v3060_v17, %v3060_v17 }
 0x277   : > { %v2177_v12 = vrot.slane %v3071_v41, 9  ;;  %v2178_v19 = vrot.slane %v3060_v17, 9  ;;  %v3515_v8 = vunpack.c.l.bf16 %v2976_v51  ;;  %v3516_v2 = vrot.slane %v3045_v52, 9 }
 0x278   : > { %v958_v0 = vmax.f32 %v840_v30, %v842_v28  ;;  %v1787_v21 = vrot.slane %v3080_v58, %v2932_v61  ;;  %v959_v14 = vmax.f32 %v841_v63, %v843_v9  ;;  %v2179_v57 = vrot.slane %v1153_v35, 9 }
 0x279   : > { %v3277_v42 = vadd.f32 %v3515_v8, %v724_v60  ;;  %v1547_v44 = vmax.f32 %v3045_v52, %v3516_v2  ;;  %v1549_v48 = vmax.f32 %v3071_v41, %v2177_v12  ;;  %v1550_v6 = vmax.f32 %v3060_v17, %v2178_v19 }
 0x27a   : > { %v1086_v32 = vcombine.high %v958_v0, %v958_v0  ;;  %v1093_v3 = vrot.slane %v958_v0, %v2960_v23  ;;  %v1103_v54 = vcombine.high %v959_v14, %v959_v14  ;;  %v1110_v58 = vrot.slane %v959_v14, %v2960_v23 }
 0x27b   : > { %v852_v36 = vmax.f32 %v3277_v42, 0.0  ;;  %v1783_v52 = vrot.slane %v1547_v44, %v2932_v61  ;;  %v1551_v33 = vmax.f32 %v1153_v35, %v2179_v57  ;;  %v1791_v37 = vrot.slane %v1549_v48, %v2932_v61 }
 0x27c   : > { %v1100_v39 = vrot.slane %v1086_v32, %v2960_v23  ;;  %v1101_v40 = vcombine.high %v1093_v3, %v1093_v3  ;;  %v2164_v46 = vrot.slane %v1093_v3, 9  ;;  %v1117_v41 = vrot.slane %v1103_v54, %v2960_v23 }
 0x27d   : > { %v2506_v17 = vpack.i.bf16 %v852_v36, %v836_v20  ;;  %v1118_v55 = vcombine.high %v1110_v58, %v1110_v58  ;;  %v2168_v16 = vrot.slane %v1110_v58, 9  ;;  %v1795_v5 = vrot.slane %v1550_v6, %v2932_v61 }
 0x27e   : > { %v1102_v47 = vcombine.high %v1100_v39, %v1100_v39  ;;  %v2165_v43 = vrot.slane %v1101_v40, 9  ;;  %v2166_v49 = vrot.slane %v1100_v39, 9  ;;  %v1536_v60 = vmax.f32 %v1093_v3, %v2164_v46 }
 0x27f   : > { %2507 = vxpose.xlu0.b32.cont [9/16] (narrow) %v2506_v17, 32  ;;  %v1119_v35 = vcombine.high %v1117_v41, %v1117_v41  ;;  %v2169_v12 = vrot.slane %v1118_v55, 9  ;;  %v2170_v19 = vrot.slane %v1117_v41, 9  ;;  %v1540_v0 = vmax.f32 %v1110_v58, %v2168_v16 }
 0x280   : > { %v2167_v8 = vrot.slane %v1102_v47, 9  ;;  %v1537_v53 = vmax.f32 %v1101_v40, %v2165_v43  ;;  %v1538_v2 = vmax.f32 %v1100_v39, %v2166_v49  ;;  %v1739_v20 = vrot.slane %v1536_v60, %v2932_v61 }
 0x281   : > { %v2171_v44 = vrot.slane %v1119_v35, 9  ;;  %v1541_v14 = vmax.f32 %v1118_v55, %v2169_v12  ;;  %v1542_v57 = vmax.f32 %v1117_v41, %v2170_v19  ;;  %v1755_v48 = vrot.slane %v1540_v0, %v2932_v61 }
 0x282   : > { %v1539_v6 = vmax.f32 %v1102_v47, %v2167_v8  ;;  %v1743_v32 = vrot.slane %v1537_v53, %v2932_v61  ;;  %v1747_v3 = vrot.slane %v1538_v2, %v2932_v61  ;;  %v1799_v54 = vrot.slane %v1551_v33, %v2932_v61  ;;  %v3521_v53 = vld [vmem:[#allocation5_spill] sm:$0xff] }
 0x283   : > { %v1543_v46 = vmax.f32 %v1119_v35, %v2171_v44  ;;  %v1759_v58 = vrot.slane %v1541_v14, %v2932_v61  ;;  %v1763_v40 = vrot.slane %v1542_v57, %v2932_v61  ;;  %v3517_v39 = vrot.slane %v3047_v18, %v2932_v61 }
 0x284   : > { %v3518_v17 = vrot.slane %v3051_v13, %v2932_v61  ;;  %v1751_v55 = vrot.slane %v1539_v6, %v2932_v61  ;;  %v1924_v16 = vsel %vm1896_vm2, %v1743_v32, %v1739_v20  ;;  %v3519_v33 = vrot.slane %v3053_v7, %v2932_v61 }
 0x285   : > { %v725_v43 = vmul.f32 %v2993_v31, %v2860_v10  ;;  %v1767_v49 = vrot.slane %v1543_v46, %v2932_v61  ;;  %v1925_v18 = vsel %vm1898_vm3, %v1747_v3, %v1924_v16  ;;  %v727_v60 = vmul.f32 %v2993_v31, %v2872_v26 }
 0x286   : > { %v1931_v41 = vsel %vm1896_vm2, %v3518_v17, %v3517_v39  ;;  %v1926_v35 = vsel %vm1900_vm4, %v1751_v55, %v1925_v18  ;;  %v3520_v7 = vunpack.c.h.bf16 %v2976_v51  ;;  %v1187_v0 = vcombine.high %v3249_v56, %v3249_v56  ;;  %v3529_v18 = vld [vmem:[#allocation3_spill] sm:$0xff] }
 0x287   : > { %v1932_v47 = vsel %vm1898_vm3, %v3519_v33, %v1931_v41  ;;  %v1927_v10 = vsel %vm1902_vm5, %v1755_v48, %v1926_v35  ;;  %v3522_v2 = vunpack.c.h.bf16 %v3521_v53  ;;  %v2185_v20 = vrot.slane %v3251_v62, 9  ;;  %v3526_v41 = vld [vmem:[#allocation2_spill] sm:$0xff] }
 0x288   : > { %v1933_v13 = vsel %vm1900_vm4, %v1783_v52, %v1932_v47  ;;  %v821_v19 = vadd.f32 %v3520_v7, %v725_v43  ;;  %v1928_v26 = vsel %vm1904_vm6, %v1759_v58, %v1927_v10  ;;  %v2186_v51 = vrot.slane %v3249_v56, 9  ;;  %v3530_v10 = vld [vmem:[#allocation7_spill] sm:$0xff] }
 0x289   : > { %v1934_v12 = vsel %vm1902_vm5, %v1787_v21, %v1933_v13  ;;  %v823_v52 = vadd.f32 %v3522_v2, %v727_v60  ;;  %v1929_v14 = vsel %vm1906_vm7, %v1763_v40, %v1928_v26  ;;  %v2187_v48 = vrot.slane %v1187_v0, 9 }
 0x28a   : > { %v1935_v8 = vsel %vm1904_vm6, %v1791_v37, %v1934_v12  ;;  %v853_v21 = vmax.f32 %v821_v19, 0.0  ;;  %v1930_v37 = vsel %vm1908_vm8, %v1767_v49, %v1929_v14  ;;  %v3523_v3 = vrot.slane %v3184_v11, 9 }
 0x28b   : > { %v1936_v44 = vsel %vm1906_vm7, %v1795_v5, %v1935_v8  ;;  %v855_v6 = vmax.f32 %v823_v52, 0.0  ;;  %v1557_v5 = vmax.f32 %v3251_v62, %v2185_v20  ;;  %v858_v58 = vmax.f32 %v3027_v45, 0.0  ;;  %1970 = vxpose.xlu1.b32.cont [4/8] (short) (narrow) %v1930_v37, 32 }
 0x28c   : > { %v1937_v57 = vsel %vm1908_vm8, %v1799_v54, %v1936_v44  ;;  %v2508_v32 = vpack.i.bf16 %v853_v21, %v837_v4  ;;  %v1555_v46 = vmax.f32 %v3184_v11, %v3523_v3  ;;  %v1558_v40 = vmax.f32 %v3249_v56, %v2186_v51 }
 0x28d   : > { %v965_v39 = vmax.f32 %v853_v21, %v855_v6  ;;  %v1559_v54 = vmax.f32 %v1187_v0, %v2187_v48  ;;  %v1819_v38 = vrot.slane %v3261_v15, %v2932_v61  ;;  %v3524_v4 = vrot.slane %v3187_v1, %v2932_v61 }
 0x28e   : > { %2509 = vxpose.xlu0.b32.cont [10/16] (narrow) %v2508_v32, 32  ;;  %v1815_v17 = vrot.slane %v1555_v46, %v2932_v61  ;;  %v3525_v11 = vrot.slane %v3194_v59, %v2932_v61  ;;  %v726_v55 = vmul.f32 %v2993_v31, %v3526_v41  ;;  %v1823_v33 = vrot.slane %v1557_v5, %v2932_v61 }
 0x28f   : > { %v1205_v16 = vcombine.high %v965_v39, %v965_v39  ;;  %v1212_v56 = vrot.slane %v965_v39, %v2960_v23  ;;  %v1827_v47 = vrot.slane %v1558_v40, %v2932_v61  ;;  %v1831_v15 = vrot.slane %v1559_v54, %v2932_v61  ;;  %1971 = vxpose.xlu1.b32.cont [5/8] (short) (narrow) %v1937_v57, 32 }
 0x290   : > { %v1938_v62 = vsel %vm1896_vm2, %v3525_v11, %v3524_v4  ;;  %v3527_v1 = vrot.slane %v3196_v50, %v2932_v61  ;;  %v3528_v59 = vunpack.c.l.bf16 %v3521_v53  ;;  %v729_v13 = vmul.f32 %v2993_v31, %v3529_v18  ;;  %v3531_v50 = vld [vmem:[#allocation6_spill] sm:$0xff] }
 0x291   : > { %v1219_v60 = vrot.slane %v1205_v16, %v2960_v23  ;;  %v1220_v35 = vcombine.high %v1212_v56, %v1212_v56  ;;  %v2192_v12 = vrot.slane %v1212_v56, 9  ;;  %v3532_v8 = vunpack.c.l.bf16 %v3531_v50 }
 0x292   : > { %v1939_v43 = vsel %vm1898_vm3, %v3527_v1, %v1938_v62  ;;  %v822_v49 = vadd.f32 %v3528_v59, %v726_v55  ;;  %v3533_v53 = vunpack.c.h.bf16 %v3531_v50  ;;  %v3534_v14 = vmax.f32 %v3155_v27, 0.0 }
 0x293   : > { %v1940_v7 = vsel %vm1900_vm4, %v1815_v17, %v1939_v43  ;;  %v824_v2 = vadd.f32 %v3532_v8, %v3530_v10  ;;  %v3386_v20 = vmax.f32 %v1212_v56, %v2192_v12  ;;  %v1221_v26 = vcombine.high %v1219_v60, %v1219_v60  ;;  %v3536_v17 = vld [vmem:[#allocation8_spill] sm:$0xff] }
 0x294   : > { %v1941_v19 = vsel %vm1902_vm5, %v1819_v38, %v1940_v7  ;;  %v854_v0 = vmax.f32 %v822_v49, 0.0  ;;  %v825_v52 = vadd.f32 %v3533_v53, %v729_v13  ;;  %v2193_v44 = vrot.slane %v1220_v35, 9  ;;  %v3537_v38 = vld [vmem:[#allocation4_spill] sm:$0xff] }
 0x295   : > { %v1942_v31 = vsel %vm1904_vm6, %v1823_v33, %v1941_v19  ;;  %v2194_v48 = vrot.slane %v1219_v60, 9  ;;  %v2195_v32 = vrot.slane %v1221_v26, 9  ;;  %v3535_v46 = vmax.f32 %v3163_v24, 0.0 }
 0x296   : > { %v1943_v21 = vsel %vm1906_vm7, %v1827_v47, %v1942_v31  ;;  %v964_v51 = vmax.f32 %v852_v36, %v854_v0  ;;  %v2510_v57 = vpack.i.bf16 %v854_v0, %v3534_v14  ;;  %v3395_v3 = vmax.f32 %v1220_v35, %v2193_v44 }
 0x297   : > { %v1944_v37 = vsel %vm1908_vm8, %v1831_v15, %v1943_v21  ;;  %v2512_v5 = vpack.i.bf16 %v855_v6, %v3535_v46  ;;  %v1566_v54 = vmax.f32 %v1219_v60, %v2194_v48  ;;  %v856_v42 = vmax.f32 %v824_v2, 0.0 }
 0x298   : > { %1972 = vxpose.xlu1.b32.cont [6/8] (short) (narrow) %v1944_v37, 32  ;;  %v1188_v39 = vcombine.high %v964_v51, %v964_v51  ;;  %v1195_v40 = vrot.slane %v964_v51, %v2960_v23  ;;  %2511 = vxpose.xlu0.b32.cont [11/16] (narrow) %v2510_v57, 32  ;;  %v3400_v36 = vmax.f32 %v1221_v26, %v2195_v32  ;;  %v3538_v4 = vunpack.c.h.bf16 %v3537_v38 }
 0x299   : > { %v1851_v27 = vrot.slane %v3386_v20, %v2932_v61  ;;  %v857_v62 = vmax.f32 %v825_v52, 0.0  ;;  %v1855_v55 = vrot.slane %v3395_v3, %v2932_v61  ;;  %v1859_v16 = vrot.slane %v1566_v54, %v2932_v61 }
 0x29a   : > { %v3407_v11 = vadd.f32 %v3538_v4, %v3536_v17  ;;  %v1202_v24 = vrot.slane %v1188_v39, %v2960_v23  ;;  %v1203_v6 = vcombine.high %v1195_v40, %v1195_v40  ;;  %v2188_v41 = vrot.slane %v1195_v40, 9 }
 0x29b   : > { %v966_v33 = vmax.f32 %v856_v42, %v858_v58  ;;  %v2514_v47 = vpack.i.bf16 %v856_v42, %v840_v30  ;;  %v2516_v60 = vpack.i.bf16 %v857_v62, %v841_v63  ;;  %v1863_v54 = vrot.slane %v3400_v36, %v2932_v61 }
 0x29c   : > { %v859_v56 = vmax.f32 %v3407_v11, 0.0  ;;  %v1204_v15 = vcombine.high %v1202_v24, %v1202_v24  ;;  %v2189_v1 = vrot.slane %v1203_v6, 9  ;;  %v2190_v43 = vrot.slane %v1202_v24, 9  ;;  %2513 = vxpose.xlu0.b32.cont [12/16] (narrow) %v2512_v5, 32 }
 0x29d   : > { %v1560_v59 = vmax.f32 %v1195_v40, %v2188_v41  ;;  %v1222_v18 = vcombine.high %v966_v33, %v966_v33  ;;  %v1229_v13 = vrot.slane %v966_v33, %v2960_v23 }
 0x29e   : > { %v967_v49 = vmax.f32 %v857_v62, %v859_v56  ;;  %v2191_v35 = vrot.slane %v1204_v15, 9  ;;  %v1561_v12 = vmax.f32 %v1203_v6, %v2189_v1  ;;  %v1562_v7 = vmax.f32 %v1202_v24, %v2190_v43 }
 0x29f   : > { %v1835_v34 = vrot.slane %v1560_v59, %v2932_v61  ;;  %v1236_v30 = vrot.slane %v1222_v18, %v2960_v23  ;;  %v1237_v19 = vcombine.high %v1229_v13, %v1229_v13  ;;  %v2196_v53 = vrot.slane %v1229_v13, 9 }
 0x2a0   : > { %v1239_v0 = vcombine.high %v967_v49, %v967_v49  ;;  %v1246_v10 = vrot.slane %v967_v49, %v2960_v23  ;;  %v1839_v50 = vrot.slane %v1561_v12, %v2932_v61  ;;  %v1843_v8 = vrot.slane %v1562_v7, %v2932_v61  ;;  %2515 = vxpose.xlu0.b32.cont [13/16] (narrow) %v2514_v47, 32 }
 0x2a1   : > { %v1563_v2 = vmax.f32 %v1204_v15, %v2191_v35  ;;  %v1238_v29 = vcombine.high %v1236_v30, %v1236_v30  ;;  %v2197_v20 = vrot.slane %v1237_v19, 9  ;;  %v2198_v44 = vrot.slane %v1236_v30, 9 }
 0x2a2   : > { %v1253_v63 = vrot.slane %v1239_v0, %v2960_v23  ;;  %v1254_v52 = vcombine.high %v1246_v10, %v1246_v10  ;;  %v1945_v26 = vsel %vm1896_vm2, %v1839_v50, %v1835_v34  ;;  %v2200_v21 = vrot.slane %v1246_v10, 9 }
 0x2a3   : > { %v1847_v31 = vrot.slane %v1563_v2, %v2932_v61  ;;  %v1946_v51 = vsel %vm1898_vm3, %v1843_v8, %v1945_v26  ;;  %v2199_v57 = vrot.slane %v1238_v29, 9  ;;  %v1568_v3 = vmax.f32 %v1229_v13, %v2196_v53 }
 0x2a4   : > { %v1255_v14 = vcombine.high %v1253_v63, %v1253_v63  ;;  %v2201_v48 = vrot.slane %v1254_v52, 9  ;;  %v2202_v32 = vrot.slane %v1253_v63, 9  ;;  %v1569_v46 = vmax.f32 %v1237_v19, %v2197_v20  ;;  %2517 = vxpose.xlu0.b32.cont [14/16] (narrow) %v2516_v60, 32 }
 0x2a5   : > { %v1947_v37 = vsel %vm1900_vm4, %v1847_v31, %v1946_v51  ;;  %v1570_v39 = vmax.f32 %v1236_v30, %v2198_v44  ;;  %v1571_v40 = vmax.f32 %v1238_v29, %v2199_v57  ;;  %v1572_v17 = vmax.f32 %v1246_v10, %v2200_v21 }
 0x2a6   : > { %v1948_v23 = vsel %vm1902_vm5, %v1851_v27, %v1947_v37  ;;  %v2203_v5 = vrot.slane %v1255_v14, 9  ;;  %v1573_v4 = vmax.f32 %v1254_v52, %v2201_v48  ;;  %v1867_v62 = vrot.slane %v1568_v3, %v2932_v61 }
 0x2a7   : > { %v1949_v42 = vsel %vm1904_vm6, %v1855_v55, %v1948_v23  ;;  %v1871_v24 = vrot.slane %v1569_v46, %v2932_v61  ;;  %v1574_v41 = vmax.f32 %v1253_v63, %v2202_v32  ;;  %v1875_v27 = vrot.slane %v1570_v39, %v2932_v61 }
 0x2a8   : > { %v1950_v38 = vsel %vm1906_vm7, %v1859_v16, %v1949_v42  ;;  %v1879_v33 = vrot.slane %v1571_v40, %v2932_v61  ;;  %v1575_v47 = vmax.f32 %v1255_v14, %v2203_v5  ;;  %v1883_v55 = vrot.slane %v1572_v17, %v2932_v61 }
 0x2a9   : > { %v1951_v6 = vsel %vm1908_vm8, %v1863_v54, %v1950_v38  ;;  %v1952_v36 = vsel %vm1896_vm2, %v1871_v24, %v1867_v62  ;;  %v2518_v15 = vpack.i.bf16 %v858_v58, %v842_v28  ;;  %v1887_v1 = vrot.slane %v1573_v4, %v2932_v61 }
 0x2aa   : > { %1973 = vxpose.xlu1.b32.cont [7/8] (short) (narrow) %v1951_v6, 32  ;;  %v1953_v16 = vsel %vm1898_vm3, %v1875_v27, %v1952_v36  ;;  %v1891_v59 = vrot.slane %v1574_v41, %v2932_v61  ;;  %v1895_v18 = vrot.slane %v1575_v47, %v2932_v61  ;;  %v2520_v45 = vpack.i.bf16 %v859_v56, %v843_v9 }
 0x2ab   : > { %v1954_v43 = vsel %vm1900_vm4, %v1879_v33, %v1953_v16  ;;  %2519 = vxpose.xlu0.b32.cont [15/16] (narrow) %v2518_v15, 32 }
 0x2ac   : > { %v1955_v49 = vsel %vm1902_vm5, %v1883_v55, %v1954_v43 }
 0x2ad   : > { %v1956_v13 = vsel %vm1904_vm6, %v1887_v1, %v1955_v49 }
 0x2ae   : > { %v1957_v60 = vsel %vm1906_vm7, %v1891_v59, %v1956_v13 }
 0x2af   : > { %v1958_v25 = vsel %vm1908_vm8, %v1895_v18, %v1957_v60  ;;  %2521 = vxpose.xlu0.b32.end [16/16] (narrow) %v2520_v45, 32 }
 0x2b0   : > { %1974 = vxpose.xlu1.b32.end [8/8] (short) (narrow) %v1958_v25, 32 }
 0x2f3   : > { %v2522_v28 = vpop.trf.xlu0 }
 0x2f4   : > { %v2526_v58 = vunpack.i.h.bf16 %v2522_v28  ;;  %v2523_v35 = vunpack.i.l.bf16 %v2522_v28 }
 0x2f6   : > { %v2214_v61 = vpack.c.bf16 %v2526_v58, %v2523_v35 }
 0x2f7   : > { %v2527_v12 = vpop.trf.xlu0 }
 0x2f8   : > { %948 = vst [vmem:[%s306_s15] sm:$0xff] %v2214_v61  ;;  %v2531_v22 = vunpack.i.h.bf16 %v2527_v12  ;;  %v2528_v7 = vunpack.i.l.bf16 %v2527_v12 }
 0x2fa   : > { %v2215_v11 = vpack.c.bf16 %v2531_v22, %v2528_v7 }
 0x2fb   : > { %v2532_v9 = vpop.trf.xlu0 }
 0x2fc   : > { %949 = vst [vmem:[%s306_s15 + $0x8] sm:$0xff] %v2215_v11  ;;  %v2536_v56 = vunpack.i.h.bf16 %v2532_v9  ;;  %v2533_v34 = vunpack.i.l.bf16 %v2532_v9 }
 0x2fe   : > { %v2216_v30 = vpack.c.bf16 %v2536_v56, %v2533_v34 }
 0x2ff   : > { %v2537_v19 = vpop.trf.xlu0 }
 0x300   : > { %950 = vst [vmem:[%s306_s15 + $0x10] sm:$0xff] %v2216_v30  ;;  %v2541_v0 = vunpack.i.h.bf16 %v2537_v19  ;;  %v2538_v10 = vunpack.i.l.bf16 %v2537_v19 }
 0x302   : > { %v2217_v50 = vpack.c.bf16 %v2541_v0, %v2538_v10 }
 0x304   : > { %951 = vst [vmem:[%s306_s15 + $0x18] sm:$0xff] %v2217_v50 }
 0x314   : > { %v1983_v8 = vpop.trf.xlu1 }
 0x315   : > { %v2218_v2 = vpack.c.bf16 %v1983_v8, %v1983_v8 }
 0x317   : > { %2016 = vst.msk [vmem:[%s311_s19] sm:$0xf] %vm2015_vm9, %v2218_v2 }
 0x318   : > { %v1984_v53 = vpop.trf.xlu1 }
 0x319   : > { %v2219_v29 = vpack.c.bf16 %v1984_v53, %v1984_v53 }
 0x31b   : > { %2017 = vst.msk [vmem:[%s311_s19 + $0x4] sm:$0xf] %vm2015_vm9, %v2219_v29 }
 0x31c   : > { %v1985_v63 = vpop.trf.xlu1 }
 0x31d   : > { %v2220_v52 = vpack.c.bf16 %v1985_v63, %v1985_v63 }
 0x31f   : > { %2018 = vst.msk [vmem:[%s311_s19 + $0x8] sm:$0xf] %vm2015_vm9, %v2220_v52 }
 0x320   : > { %v1986_v20 = vpop.trf.xlu1 }
 0x321   : > { %v2221_v31 = vpack.c.bf16 %v1986_v20, %v1986_v20 }
 0x323   : > { %2019 = vst.msk [vmem:[%s311_s19 + $0xc] sm:$0xf] %vm2015_vm9, %v2221_v31 }
 0x324 PF: > { %s18_s24 = sadd.s32 1, %s2552_s24  }
 0x325   : > { %p15_p4 = scmp.ge.s32.totalorder %s18_s24, 4  }
 0x327   :  { %17 = sbr.rel (!%p15_p4) target bundleno = 1 (0x1), region = 89 }

// kernel: resedown_forward.4
= control target key start
LH: loop header
LB: loop body
LE: loop exit
PB: predicated region body
PF: predicated region fallthrough
CT: control target
= control target key end

     0   :  { %s2263_s9 = smov 0   ;;  %s2857_s0 = inlined_call_operand.vmem [shape: bf16[2,16,16,4], index: 0, kind: input, shape index: {}]   ;;  %s2858_s1 = inlined_call_operand.vmem [shape: bf16[3,12,32], index: 1, kind: input, shape index: {}]   ;;  %s2859_s2 = inlined_call_operand.vmem [shape: bf16[2,16,16,32], index: 2, kind: output, shape index: {}]  }
   0x1 LB: > { %s1900_s10 = sadd.s32 4294967295, %s2243_s9   ;;  %p1904_p0 = scmp.ge.s32.totalorder %s2243_s9, 1  ;;  %s2243_s9 = sphi %s2263_s9, %s12_s9  }
   0x2   : > { %p112_p1 = scmp.lt.s32.totalorder %s2243_s9, 3 }
   0x4   : > { %p113_p2 = pnand %p1904_p0, %p112_p1 }
   0x5   : > { %vm410_vm0 = vcmask (!%p113_p2), 1040384   ;;  %vm411_vm1 = vsmask.f32 (!%p113_p2), 256  ;;  %v2245_v0 = vmov (!%p113_p2), 0   ;;  %vm720_vm3 = vcmask (!%p113_p2), 1046528   ;;  %p134_p3 = scmp.lt.s32.totalorder (!%p113_p2), %s1900_s10, 1 }
   0x6   : > { %116 = sbr.rel (%p113_p2) target bundleno = 494 (0x1ee), region = 28  ;;  %v260_v1 = vrot.slane (!%p113_p2), %v2245_v0, 7  ;;  %vm2271_vm2 = vmand (!%p113_p2), %vm410_vm0, %vm411_vm1  ;;  %vm447_vm4 = vsmask.f32 (!%p113_p2), 7424  ;;  %s2246_s15 = smov (!%p113_p2), 8   ;;  %vm916_vm5 = vcmask (!%p113_p2), 1045504  }
   0x7   : > { %s2247_s16 = smov (!%p113_p2), 4   ;;  %vm806_vm6 = vcmask (!%p113_p2), 31744   ;;  %vm841_vm7 = vcmask (!%p113_p2), 64512   ;;  %vm883_vm8 = vcmask (!%p113_p2), 97280   ;;  %vm1081_vm9 = vcmask (!%p113_p2), 261120  }
   0x8   : > { %v2277_v3 = vsel (!%p113_p2), %vm2271_vm2, 0, %v260_v1  ;;  %v430_v4 = vsel (!%p113_p2), %vm2271_vm2, %v260_v1, 0  ;;  %vm1812_vm10 = vcmask (!%p113_p2), 257024  }
   0x9   : > { %v449_v5 = vshrl.u32 (!%p113_p2), %v2277_v3, 16  ;;  %v451_v6 = vshll.u32 (!%p113_p2), %v2277_v3, 16  ;;  %v456_v7 = vshll.u32 (!%p113_p2), %v430_v4, 16  ;;  %v721_v8 = vrot.slane (!%p113_p2), %v2277_v3, 1 }
   0xa   : > { %v722_v9 = vrot.slane (!%p113_p2), %v430_v4, 1 }
   0xb   : > { %v453_v10 = vrot.slane (!%p113_p2), %v451_v6, 1  ;;  %v458_v11 = vrot.slane (!%p113_p2), %v456_v7, 1 }
   0xc   : > { %v723_v12 = vsel (!%p113_p2), %vm720_vm3, %v721_v8, %v722_v9 }
   0xd   : > { %s2863_s10 = smov (!%p134_p3, %s1900_s10), 1  ;;  %v454_v13 = vor.u32 %v453_v10, %v449_v5  ;;  %772 = vrot.lane.b32.xlu0 %v723_v12, %s2246_s15 }
   0xe   : > { %s2014_s11 = sshll.u32 %s2863_s10, 7 }
   0xf   : > { %s2293_s14 = scalar_lea.vmem %s2857_s0, %s2014_s11  ;;  %v459_v16 = vsel %vm447_vm4, %v454_v13, %v458_v11  ;;  %s2740_s25 = scalar_lea.vmem %s2859_s2, %s2014_s11 }
  0x10   : > { %v2218_v14 = vld [vmem:[%s2293_s14 + $0x48] sm:$0xff]   ;;  %v2219_v15 = vld [vmem:[%s2293_s14 + $0x38] sm:$0xff]   ;;  %652 = vrot.lane.b32.xlu1 %v459_v16, %s2247_s16  ;;  %v2220_v21 = vld [vmem:[%s2293_s14 + $0x50] sm:$0xff]  }
  0x11   : > { %v328_v17 = vshrl.u32 %v2218_v14, 16  ;;  %v331_v18 = vshll.u32 %v2218_v14, 16  ;;  %v314_v19 = vshrl.u32 %v2219_v15, 16  ;;  %v317_v20 = vshll.u32 %v2219_v15, 16  ;;  %v2221_v22 = vld [vmem:[%s2293_s14 + $0x40] sm:$0xff]   ;;  %v2223_v11 = vld [vmem:[%s2293_s14 + $0x58] sm:$0xff]  }
  0x12   : > { %v2222_v24 = vld [vmem:[%s2293_s14] sm:$0xff]   ;;  %v335_v26 = vshrl.u32 %v2220_v21, 16  ;;  %v338_v27 = vshll.u32 %v2220_v21, 16  ;;  %v321_v28 = vshrl.u32 %v2221_v22, 16  ;;  %v324_v31 = vshll.u32 %v2221_v22, 16  ;;  %v2225_v21 = vld [vmem:[%s2293_s14 + $0x8] sm:$0xff]  }
  0x13   : > { %v330_v23 = vrot.slane %v328_v17, 7  ;;  %v316_v25 = vrot.slane %v314_v19, 7  ;;  %v265_v32 = vshrl.u32 %v2222_v24, 16  ;;  %v268_v60 = vshll.u32 %v2222_v24, 16  ;;  %v2224_v12 = vld [vmem:[%s2293_s14 + $0x60] sm:$0xff]  }
  0x14   : > { %v337_v36 = vrot.slane %v335_v26, 7  ;;  %v323_v39 = vrot.slane %v321_v28, 7 }
  0x15   : > { %v333_v29 = vor.u32 %v331_v18, %v330_v23  ;;  %v2305_v30 = vsel %vm2271_vm2, %v330_v23, 0  ;;  %v319_v34 = vor.u32 %v317_v20, %v316_v25  ;;  %v438_v35 = vsel %vm2271_vm2, %v316_v25, 0 }
  0x16   : > { %v752_v33 = vrot.slane %v2305_v30, 1  ;;  %v746_v38 = vrot.slane %v438_v35, 1  ;;  %v552_v40 = vshll.u32 %v438_v35, 16  ;;  %v340_v43 = vor.u32 %v338_v27, %v337_v36 }
  0x17   : > { %v2312_v37 = vsel %vm2271_vm2, 0, %v333_v29  ;;  %v2317_v42 = vsel %vm2271_vm2, 0, %v319_v34  ;;  %v441_v44 = vsel %vm2271_vm2, %v337_v36, 0  ;;  %v326_v47 = vor.u32 %v324_v31, %v323_v39 }
  0x18   : > { %v751_v41 = vrot.slane %v2312_v37, 1  ;;  %v745_v45 = vrot.slane %v2317_v42, 1  ;;  %v755_v46 = vrot.slane %v441_v44, 1  ;;  %v439_v48 = vsel %vm2271_vm2, %v323_v39, 0 }
  0x19   : > { %v2327_v50 = vsel %vm2271_vm2, 0, %v340_v43  ;;  %v749_v51 = vrot.slane %v439_v48, 1  ;;  %v545_v52 = vshrl.u32 %v2317_v42, 16  ;;  %v2335_v55 = vsel %vm2271_vm2, 0, %v326_v47 }
  0x1a   : > { %v753_v49 = vsel %vm720_vm3, %v751_v41, %v752_v33  ;;  %v747_v53 = vsel %vm720_vm3, %v745_v45, %v746_v38  ;;  %v754_v54 = vrot.slane %v2327_v50, 1  ;;  %v547_v56 = vshll.u32 %v2317_v42, 16 }
  0x1b   : > { %792 = vrot.lane.b32.xlu0 %v753_v49, %s2246_s15  ;;  %788 = vrot.lane.b32.xlu1 %v747_v53, %s2246_s15  ;;  %v748_v57 = vrot.slane %v2335_v55, 1  ;;  %v554_v58 = vrot.slane %v552_v40, 1  ;;  %v267_v59 = vrot.slane %v265_v32, 7  ;;  %v557_v63 = vshrl.u32 %v2335_v55, 16 }
  0x1c   : > { %v756_v61 = vsel %vm720_vm3, %v754_v54, %v755_v46  ;;  %v549_v62 = vrot.slane %v547_v56, 1  ;;  %v559_v0 = vshll.u32 %v2335_v55, 16  ;;  %v564_v6 = vshll.u32 %v439_v48, 16 }
  0x1d   : > { %v750_v1 = vsel %vm720_vm3, %v748_v57, %v749_v51  ;;  %v270_v4 = vor.u32 %v268_v60, %v267_v59  ;;  %v431_v5 = vsel %vm2271_vm2, %v267_v59, 0  ;;  %v581_v10 = vshrl.u32 %v2327_v50, 16 }
  0x1e   : > { %v550_v7 = vor.u32 %v549_v62, %v545_v52  ;;  %v725_v8 = vrot.slane %v431_v5, 1  ;;  %v561_v9 = vrot.slane %v559_v0, 1  ;;  %v566_v14 = vrot.slane %v564_v6, 1 }
  0x1f   : > { %794 = vrot.lane.b32.xlu0 %v756_v61, %s2246_s15  ;;  %790 = vrot.lane.b32.xlu1 %v750_v1, %s2246_s15  ;;  %v2353_v13 = vsel %vm2271_vm2, 0, %v270_v4  ;;  %v583_v15 = vshll.u32 %v2327_v50, 16  ;;  %v588_v16 = vshll.u32 %v441_v44, 16  ;;  %v569_v20 = vshrl.u32 %v2312_v37, 16  ;;  %v2226_v44 = vld [vmem:[%s2293_s14 + $0x10] sm:$0xff]  }
  0x20   : > { %v555_v17 = vsel %vm447_vm4, %v550_v7, %v554_v58  ;;  %v724_v18 = vrot.slane %v2353_v13, 1  ;;  %v562_v19 = vor.u32 %v561_v9, %v557_v63  ;;  %v571_v24 = vshll.u32 %v2312_v37, 16 }
  0x21   : > { %v585_v22 = vrot.slane %v583_v15, 1  ;;  %v590_v23 = vrot.slane %v588_v16, 1  ;;  %v576_v25 = vshll.u32 %v2305_v30, 16  ;;  %v461_v28 = vshrl.u32 %v2353_v13, 16 }
  0x22   : > { %v726_v26 = vsel %vm720_vm3, %v724_v18, %v725_v8  ;;  %v567_v27 = vsel %vm447_vm4, %v562_v19, %v566_v14  ;;  %v463_v29 = vshll.u32 %v2353_v13, 16  ;;  %v573_v32 = vrot.slane %v571_v24, 1 }
  0x23   : > { %668 = vrot.lane.b32.xlu0 %v555_v17, %s2247_s16  ;;  %774 = vrot.lane.b32.xlu1 %v726_v26, %s2246_s15  ;;  %v586_v31 = vor.u32 %v585_v22, %v581_v10  ;;  %v578_v33 = vrot.slane %v576_v25, 1  ;;  %v468_v34 = vshll.u32 %v431_v5, 16  ;;  %v342_v36 = vshrl.u32 %v2223_v11, 16 }
  0x24   : > { %v465_v35 = vrot.slane %v463_v29, 1  ;;  %v345_v30 = vshll.u32 %v2223_v11, 16  ;;  %v349_v38 = vshrl.u32 %v2224_v12, 16  ;;  %v574_v40 = vor.u32 %v573_v32, %v569_v20 }
  0x25   : > { %v591_v39 = vsel %vm447_vm4, %v586_v31, %v590_v23  ;;  %v470_v41 = vrot.slane %v468_v34, 1  ;;  %v352_v43 = vshll.u32 %v2224_v12, 16  ;;  %v344_v46 = vrot.slane %v342_v36, 7  ;;  %v2228_v34 = vld [vmem:[%s2293_s14 + $0x70] sm:$0xff]  }
  0x26   : > { %v466_v45 = vor.u32 %v465_v35, %v461_v28  ;;  %v351_v47 = vrot.slane %v349_v38, 7  ;;  %v272_v48 = vshrl.u32 %v2225_v21, 16  ;;  %v579_v49 = vsel %vm447_vm4, %v574_v40, %v578_v33  ;;  %v2227_v28 = vld [vmem:[%s2293_s14 + $0x68] sm:$0xff]  }
  0x27   : > { %670 = vrot.lane.b32.xlu0 %v567_v27, %s2247_s16  ;;  %674 = vrot.lane.b32.xlu1 %v591_v39, %s2247_s16  ;;  %v275_v51 = vshll.u32 %v2225_v21, 16  ;;  %v347_v53 = vor.u32 %v345_v30, %v344_v46  ;;  %v442_v54 = vsel %vm2271_vm2, %v344_v46, 0  ;;  %v279_v60 = vshrl.u32 %v2226_v44, 16  ;;  %v2229_v39 = vld [vmem:[%s2293_s14 + $0x18] sm:$0xff]  }
  0x28   : > { %v471_v52 = vsel %vm447_vm4, %v466_v45, %v470_v41  ;;  %v354_v56 = vor.u32 %v352_v43, %v351_v47  ;;  %v600_v57 = vshll.u32 %v442_v54, 16  ;;  %v2378_v58 = vsel %vm2271_vm2, %v351_v47, 0 }
  0x29   : > { %v274_v59 = vrot.slane %v272_v48, 7  ;;  %v2383_v61 = vsel %vm2271_vm2, 0, %v347_v53  ;;  %v612_v63 = vshll.u32 %v2378_v58, 16  ;;  %v282_v0 = vshll.u32 %v2226_v44, 16 }
  0x2a   : > { %v2387_v62 = vsel %vm2271_vm2, 0, %v354_v56  ;;  %v593_v1 = vshrl.u32 %v2383_v61, 16  ;;  %v595_v4 = vshll.u32 %v2383_v61, 16  ;;  %v758_v5 = vrot.slane %v442_v54, 1 }
  0x2b   : > { %672 = vrot.lane.b32.xlu0 %v579_v49, %s2247_s16  ;;  %654 = vrot.lane.b32.xlu1 %v471_v52, %s2247_s16  ;;  %v761_v6 = vrot.slane %v2378_v58, 1  ;;  %v605_v7 = vshrl.u32 %v2387_v62, 16  ;;  %v607_v8 = vshll.u32 %v2387_v62, 16  ;;  %v757_v9 = vrot.slane %v2383_v61, 1  ;;  %v2230_v58 = vld [vmem:[%s2293_s14 + $0x20] sm:$0xff]  }
  0x2c   : > { %v277_v10 = vor.u32 %v275_v51, %v274_v59  ;;  %v597_v11 = vrot.slane %v595_v4, 1  ;;  %v602_v12 = vrot.slane %v600_v57, 1  ;;  %v432_v14 = vsel %vm2271_vm2, %v274_v59, 0 }
  0x2d   : > { %v281_v15 = vrot.slane %v279_v60, 7  ;;  %v609_v16 = vrot.slane %v607_v8, 1  ;;  %v614_v17 = vrot.slane %v612_v63, 1  ;;  %v480_v19 = vshll.u32 %v432_v14, 16 }
  0x2e   : > { %v2401_v18 = vsel %vm2271_vm2, 0, %v277_v10  ;;  %v598_v20 = vor.u32 %v597_v11, %v593_v1  ;;  %v760_v23 = vrot.slane %v2387_v62, 1  ;;  %v759_v25 = vsel %vm720_vm3, %v757_v9, %v758_v5 }
  0x2f   : > { %v473_v21 = vshrl.u32 %v2401_v18, 16  ;;  %v475_v22 = vshll.u32 %v2401_v18, 16  ;;  %v610_v24 = vor.u32 %v609_v16, %v605_v7  ;;  %v284_v26 = vor.u32 %v282_v0, %v281_v15 }
  0x30   : > { %v433_v27 = vsel %vm2271_vm2, %v281_v15, 0  ;;  %v603_v29 = vsel %vm447_vm4, %v598_v20, %v602_v12  ;;  %v482_v32 = vrot.slane %v480_v19, 1  ;;  %v727_v30 = vrot.slane %v2401_v18, 1 }
  0x31   : > { %v477_v31 = vrot.slane %v475_v22, 1  ;;  %v492_v33 = vshll.u32 %v433_v27, 16  ;;  %676 = vrot.lane.b32.xlu0 %v603_v29, %s2247_s16  ;;  %v615_v35 = vsel %vm447_vm4, %v610_v24, %v614_v17  ;;  %v2416_v36 = vsel %vm2271_vm2, 0, %v284_v26 }
  0x32   : > { %v728_v38 = vrot.slane %v432_v14, 1  ;;  %678 = vrot.lane.b32.xlu1 %v615_v35, %s2247_s16  ;;  %v485_v41 = vshrl.u32 %v2416_v36, 16  ;;  %v487_v43 = vshll.u32 %v2416_v36, 16  ;;  %v731_v44 = vrot.slane %v433_v27, 1 }
  0x33   : > { %v478_v40 = vor.u32 %v477_v31, %v473_v21  ;;  %v494_v45 = vrot.slane %v492_v33, 1  ;;  %v730_v46 = vrot.slane %v2416_v36, 1  ;;  %v356_v47 = vshrl.u32 %v2227_v28, 16  ;;  %v2231_v21 = vld [vmem:[%s2293_s14 + $0x28] sm:$0xff]  }
  0x34   : > { %v359_v48 = vshll.u32 %v2227_v28, 16  ;;  %v489_v51 = vrot.slane %v487_v43, 1  ;;  %v363_v52 = vshrl.u32 %v2228_v34, 16  ;;  %v366_v53 = vshll.u32 %v2228_v34, 16 }
  0x35   : > { %v483_v49 = vsel %vm447_vm4, %v478_v40, %v482_v32  ;;  %796 = vrot.lane.b32.xlu0 %v759_v25, %s2246_s15  ;;  %v358_v54 = vrot.slane %v356_v47, 7  ;;  %v286_v56 = vshrl.u32 %v2229_v39, 16  ;;  %v289_v57 = vshll.u32 %v2229_v39, 16 }
  0x36   : > { %656 = vrot.lane.b32.xlu1 %v483_v49, %s2247_s16  ;;  %v762_v59 = vsel %vm720_vm3, %v760_v23, %v761_v6  ;;  %v490_v60 = vor.u32 %v489_v51, %v485_v41  ;;  %v729_v63 = vsel %vm720_vm3, %v727_v30, %v728_v38  ;;  %v365_v0 = vrot.slane %v363_v52, 7 }
  0x37   : > { %v732_v1 = vsel %vm720_vm3, %v730_v46, %v731_v44  ;;  %v361_v4 = vor.u32 %v359_v48, %v358_v54  ;;  %v444_v5 = vsel %vm2271_vm2, %v358_v54, 0  ;;  %v288_v7 = vrot.slane %v286_v56, 7  ;;  %v2232_v48 = vld [vmem:[%s2293_s14 + $0x30] sm:$0xff]  }
  0x38   : > { %v495_v8 = vsel %vm447_vm4, %v490_v60, %v494_v45  ;;  %v624_v9 = vshll.u32 %v444_v5, 16  ;;  %v368_v10 = vor.u32 %v366_v53, %v365_v0  ;;  %v445_v11 = vsel %vm2271_vm2, %v365_v0, 0 }
  0x39   : > { %798 = vrot.lane.b32.xlu0 %v762_v59, %s2246_s15  ;;  %v2439_v6 = vsel %vm2271_vm2, 0, %v361_v4  ;;  %v636_v12 = vshll.u32 %v445_v11, 16  ;;  %v291_v14 = vor.u32 %v289_v57, %v288_v7  ;;  %v293_v15 = vshrl.u32 %v2230_v58, 16  ;;  %v2233_v59 = vld [vmem:[%s2293_s14 + $0x78] sm:$0xff]  }
  0x3a   : > { %658 = vrot.lane.b32.xlu1 %v495_v8, %s2247_s16  ;;  %v617_v16 = vshrl.u32 %v2439_v6, 16  ;;  %v619_v17 = vshll.u32 %v2439_v6, 16  ;;  %v2446_v19 = vsel %vm2271_vm2, 0, %v368_v10  ;;  %v296_v20 = vshll.u32 %v2230_v58, 16 }
  0x3b   : > { %v626_v22 = vrot.slane %v624_v9, 1  ;;  %v629_v23 = vshrl.u32 %v2446_v19, 16  ;;  %v631_v24 = vshll.u32 %v2446_v19, 16  ;;  %v764_v25 = vrot.slane %v444_v5, 1  ;;  %v2234_v9 = vld [vmem:[%s2858_s1] sm:$0x3f]  }
  0x3c   : > { %v621_v26 = vrot.slane %v619_v17, 1  ;;  %v638_v27 = vrot.slane %v636_v12, 1  ;;  %v2453_v28 = vsel %vm2271_vm2, 0, %v291_v14  ;;  %v2457_v29 = vsel %vm2271_vm2, %v288_v7, 0  ;;  %2204 = vmatprep.subr.msk.bf16.mxu1 %vm916_vm5, %v2234_v9  ;;  %2203 = vmatprep.subr.msk.bf16.mxu0 %vm916_vm5, %v2234_v9 }
  0x3d   : > { %776 = vrot.lane.b32.xlu0 %v729_v63, %s2246_s15  ;;  %v633_v31 = vrot.slane %v631_v24, 1  ;;  %v763_v32 = vrot.slane %v2439_v6, 1  ;;  %v497_v33 = vshrl.u32 %v2453_v28, 16  ;;  %v499_v34 = vshll.u32 %v2453_v28, 16 }
  0x3e   : > { %778 = vrot.lane.b32.xlu1 %v732_v1, %s2246_s15  ;;  %v622_v35 = vor.u32 %v621_v26, %v617_v16  ;;  %v504_v30 = vshll.u32 %v2457_v29, 16  ;;  %v295_v38 = vrot.slane %v293_v15, 7  ;;  %v300_v39 = vshrl.u32 %v2231_v21, 16 }
  0x3f   : > { %v634_v40 = vor.u32 %v633_v31, %v629_v23  ;;  %v501_v41 = vrot.slane %v499_v34, 1  ;;  %v766_v43 = vrot.slane %v2446_v19, 1  ;;  %v767_v46 = vrot.slane %v445_v11, 1 }
  0x40   : > { %v627_v44 = vsel %vm447_vm4, %v622_v35, %v626_v22  ;;  %v506_v45 = vrot.slane %v504_v30, 1  ;;  %v298_v47 = vor.u32 %v296_v20, %v295_v38  ;;  %v765_v51 = vsel %vm720_vm3, %v763_v32, %v764_v25 }
  0x41   : > { %680 = vrot.lane.b32.xlu0 %v627_v44, %s2247_s16  ;;  %v639_v49 = vsel %vm447_vm4, %v634_v40, %v638_v27  ;;  %v502_v52 = vor.u32 %v501_v41, %v497_v33  ;;  %v435_v53 = vsel %vm2271_vm2, %v295_v38, 0  ;;  %v733_v57 = vrot.slane %v2453_v28, 1  ;;  %v2235_v44 = vld [vmem:[%s2858_s1 + $0x8] sm:$0x3f]  }
  0x42   : > { %682 = vrot.lane.b32.xlu1 %v639_v49, %s2247_s16  ;;  %v2476_v54 = vsel %vm2271_vm2, 0, %v298_v47  ;;  %v516_v56 = vshll.u32 %v435_v53, 16  ;;  %v302_v58 = vrot.slane %v300_v39, 7  ;;  %v734_v1 = vrot.slane %v2457_v29, 1  ;;  %v2236_v49 = vld [vmem:[%s2858_s1 + $0x10] sm:$0x3f]  }
  0x43   : > { %v507_v60 = vsel %vm447_vm4, %v502_v52, %v506_v45  ;;  %v509_v63 = vshrl.u32 %v2476_v54, 16  ;;  %v511_v0 = vshll.u32 %v2476_v54, 16  ;;  %v768_v4 = vsel %vm720_vm3, %v766_v43, %v767_v46 }
  0x44   : > { %v303_v5 = vshll.u32 %v2231_v21, 16  ;;  %v2487_v7 = vsel %vm2271_vm2, %v302_v58, 0  ;;  %v307_v8 = vshrl.u32 %v2232_v48, 16  ;;  %v518_v11 = vrot.slane %v516_v56, 1 }
  0x45   : > { %800 = vrot.lane.b32.xlu0 %v765_v51, %s2246_s15  ;;  %v513_v10 = vrot.slane %v511_v0, 1  ;;  %v737_v12 = vrot.slane %v435_v53, 1  ;;  %v310_v14 = vshll.u32 %v2232_v48, 16  ;;  %v736_v15 = vrot.slane %v2476_v54, 1 }
  0x46   : > { %660 = vrot.lane.b32.xlu1 %v507_v60, %s2247_s16  ;;  %v305_v16 = vor.u32 %v303_v5, %v302_v58  ;;  %v309_v17 = vrot.slane %v307_v8, 7  ;;  %v370_v20 = vshrl.u32 %v2233_v59, 16  ;;  %v528_v22 = vshll.u32 %v2487_v7, 16 }
  0x47   : > { %v514_v21 = vor.u32 %v513_v10, %v509_v63  ;;  %v373_v23 = vshll.u32 %v2233_v59, 16  ;;  %v735_v34 = vsel %vm720_vm3, %v733_v57, %v734_v1  ;;  %v738_v35 = vsel %vm720_vm3, %v736_v15, %v737_v12 }
  0x48   : > { %v2498_v24 = vsel %vm2271_vm2, 0, %v305_v16  ;;  %v312_v25 = vor.u32 %v310_v14, %v309_v17  ;;  %v437_v26 = vsel %vm2271_vm2, %v309_v17, 0  ;;  %v372_v27 = vrot.slane %v370_v20, 7 }
  0x49   : > { %802 = vrot.lane.b32.xlu0 %v768_v4, %s2246_s15  ;;  %v519_v29 = vsel %vm447_vm4, %v514_v21, %v518_v11  ;;  %v521_v31 = vshrl.u32 %v2498_v24, 16  ;;  %v523_v32 = vshll.u32 %v2498_v24, 16  ;;  %v540_v33 = vshll.u32 %v437_v26, 16 }
  0x4a   : > { %662 = vrot.lane.b32.xlu1 %v519_v29, %s2247_s16  ;;  %v2513_v30 = vsel %vm2271_vm2, 0, %v312_v25  ;;  %v375_v38 = vor.u32 %v373_v23, %v372_v27  ;;  %v530_v40 = vrot.slane %v528_v22, 1  ;;  %v739_v45 = vrot.slane %v2498_v24, 1 }
  0x4b   : > { %v525_v39 = vrot.slane %v523_v32, 1  ;;  %v533_v41 = vshrl.u32 %v2513_v30, 16  ;;  %v535_v43 = vshll.u32 %v2513_v30, 16  ;;  %v740_v46 = vrot.slane %v2487_v7, 1 }
  0x4c   : > { %v2524_v47 = vsel %vm2271_vm2, 0, %v375_v38  ;;  %v446_v48 = vsel %vm2271_vm2, %v372_v27, 0  ;;  %v542_v53 = vrot.slane %v540_v33, 1  ;;  %v742_v57 = vrot.slane %v2513_v30, 1 }
  0x4d   : > { %780 = vrot.lane.b32.xlu0 %v735_v34, %s2246_s15  ;;  %v526_v51 = vor.u32 %v525_v39, %v521_v31  ;;  %v537_v52 = vrot.slane %v535_v43, 1  ;;  %v643_v56 = vshll.u32 %v2524_v47, 16  ;;  %v743_v58 = vrot.slane %v437_v26, 1 }
  0x4e   : > { %782 = vrot.lane.b32.xlu1 %v738_v35, %s2246_s15  ;;  %v641_v59 = vshrl.u32 %v2524_v47, 16  ;;  %v648_v2 = vshll.u32 %v446_v48, 16  ;;  %v918_v1 = vsel %vm916_vm5, %v2234_v9, 0  ;;  %v1125_v4 = vsel %vm916_vm5, %v2235_v44, 0 }
  0x4f   : > { %v531_v60 = vsel %vm447_vm4, %v526_v51, %v530_v40  ;;  %v538_v63 = vor.u32 %v537_v52, %v533_v41  ;;  %v645_v0 = vrot.slane %v643_v56, 1  ;;  %2202 = vmatpush3.bf16.msra.mxu1 %v918_v1  ;;  %2100 = vmatpush3.bf16.msra.mxu0 %v918_v1  ;;  %v1393_v5 = vsel %vm916_vm5, %v2236_v49, 0 }
  0x50   : > { %2205 = vmatprep.subr.msk.bf16.mxu1 %vm916_vm5, %v2235_v44  ;;  %v741_v8 = vsel %vm720_vm3, %v739_v45, %v740_v46  ;;  %v650_v11 = vrot.slane %v648_v2, 1  ;;  %2206 = vmatprep.subr.msk.bf16.mxu0 %vm916_vm5, %v2236_v49  ;;  %v744_v9 = vsel %vm720_vm3, %v742_v57, %v743_v58  ;;  %v769_v12 = vrot.slane %v2524_v47, 1 }
  0x51   : > { %664 = vrot.lane.b32.xlu0 %v531_v60, %s2247_s16  ;;  %v543_v7 = vsel %vm447_vm4, %v538_v63, %v542_v53  ;;  %v646_v10 = vor.u32 %v645_v0, %v641_v59  ;;  %v770_v14 = vrot.slane %v446_v48, 1 }
  0x52   : > { %666 = vrot.lane.b32.xlu1 %v543_v7, %s2247_s16 }
  0x53   : > { %v651_v15 = vsel %vm447_vm4, %v646_v10, %v650_v11  ;;  %v771_v16 = vsel %vm720_vm3, %v769_v12, %v770_v14 }
  0x55   : > { %784 = vrot.lane.b32.xlu0 %v741_v8, %s2246_s15 }
  0x56   : > { %786 = vrot.lane.b32.xlu1 %v744_v9, %s2246_s15 }
  0x59   : > { %684 = vrot.lane.b32.xlu0 %v651_v15, %s2247_s16 }
  0x5a   : > { %804 = vrot.lane.b32.xlu1 %v771_v16, %s2246_s15 }
  0x7f   : > { %v773_v17 = vpop.permute.xlu0 %772 }
  0x82   : > { %v653_v20 = vpop.permute.xlu1 %652 }
  0x83   : > { %v808_v21 = vsel %vm806_vm6, %v2277_v3, %v653_v20 }
  0x84   : > { %v2557_v22 = vsel %vm841_vm7, %v808_v21, %v773_v17 }
  0x85   : > { %2101 = vmatprep.mubr.msk.bf16.mxu0 %vm883_vm8, %v2557_v22 }
  0x8d   : > { %v793_v23 = vpop.permute.xlu0 %792  ;;  %v789_v25 = vpop.permute.xlu1 %788 }
  0x91   : > { %v795_v26 = vpop.permute.xlu0 %794  ;;  %v791_v27 = vpop.permute.xlu1 %790 }
  0x95   : > { %v669_v29 = vpop.permute.xlu0 %668  ;;  %v775_v32 = vpop.permute.xlu1 %774 }
  0x96   : > { %v824_v31 = vsel %vm806_vm6, %v2317_v42, %v669_v29 }
  0x97   : > { %v2564_v33 = vsel %vm841_vm7, %v824_v31, %v789_v25 }
  0x98   : > { %2117 = vmatprep.mubr.msk.bf16.mxu1 %vm883_vm8, %v2564_v33 }
  0x99   : > { %v671_v3 = vpop.permute.xlu0 %670  ;;  %v675_v35 = vpop.permute.xlu1 %674 }
  0x9a   : > { %v826_v34 = vsel %vm806_vm6, %v2335_v55, %v671_v3  ;;  %v830_v55 = vsel %vm806_vm6, %v2327_v50, %v675_v35 }
  0x9b   : > { %v2571_v38 = vsel %vm841_vm7, %v826_v34, %v791_v27 }
  0x9c   : > { %2118 = vmatmul.mubr.msk.bf16.vlgmr.msra.gmra.mrb[0].mxu1 %vm883_vm8, %v2571_v38 }
  0x9d   : > { %v673_v39 = vpop.permute.xlu0 %672  ;;  %2134 = vmatpush3.bf16.msra.mxu1 %v1125_v4  ;;  %v655_v40 = vpop.permute.xlu1 %654 }
  0x9e   : > { %v828_v42 = vsel %vm806_vm6, %v2312_v37, %v673_v39  ;;  %v810_v41 = vsel %vm806_vm6, %v2353_v13, %v655_v40  ;;  %v2589_v37 = vsel %vm841_vm7, %v830_v55, %v795_v26 }
  0x9f   : > { %v2580_v43 = vsel %vm841_vm7, %v828_v42, %v793_v23  ;;  %v845_v44 = vsel %vm841_vm7, %v810_v41, %v775_v32 }
  0xa0   : > { %2121 = vmatprep.mubr.msk.bf16.mxu1 %vm883_vm8, %v2580_v43  ;;  %2102 = vmatmul.mubr.msk.bf16.vlgmr.msra.gmra.mrb[0].mxu0 %vm883_vm8, %v845_v44 }
  0xa1   : > { %2168 = vmatpush3.bf16.msra.mxu0 %v1393_v5 }
  0xa3   : > { %v677_v13 = vpop.permute.xlu0 %676 }
  0xa4   : > { %2122 = vmatmul.mubr.msk.bf16.gmra.mrb[4].mxu1 %vm883_vm8, %v2589_v37  ;;  %v679_v45 = vpop.permute.xlu1 %678  ;;  %v832_v46 = vsel %vm806_vm6, %v2383_v61, %v677_v13 }
  0xa5   : > { %v834_v51 = vsel %vm806_vm6, %v2387_v62, %v679_v45 }
  0xa7   : > { %v797_v50 = vpop.permute.xlu0 %796 }
  0xa8   : > { %v2596_v48 = vsel %vm841_vm7, %v832_v46, %v797_v50  ;;  %v657_v49 = vpop.permute.xlu1 %656 }
  0xa9   : > { %2125 = vmatprep.mubr.msk.bf16.mxu1 %vm883_vm8, %v2596_v48  ;;  %v812_v61 = vsel %vm806_vm6, %v2401_v18, %v657_v49 }
  0xab   : > { %v799_v52 = vpop.permute.xlu0 %798 }
  0xac   : > { %v2603_v53 = vsel %vm841_vm7, %v834_v51, %v799_v52  ;;  %v659_v56 = vpop.permute.xlu1 %658 }
  0xad   : > { %2126 = vmatmul.mubr.msk.bf16.gmra.mrb[8].mxu1 %vm883_vm8, %v2603_v53  ;;  %v814_v58 = vsel %vm806_vm6, %v2416_v36, %v659_v56 }
  0xaf   : > { %v777_v57 = vpop.permute.xlu0 %776 }
  0xb0   : > { %v847_v59 = vsel %vm841_vm7, %v812_v61, %v777_v57  ;;  %v779_v2 = vpop.permute.xlu1 %778 }
  0xb1   : > { %v849_v62 = vsel %vm841_vm7, %v814_v58, %v779_v2  ;;  %2105 = vmatprep.mubr.msk.bf16.mxu0 %vm883_vm8, %v847_v59 }
  0xb2   : > { %2106 = vmatmul.mubr.msk.bf16.gmra.mrb[4].mxu0 %vm883_vm8, %v849_v62 }
  0xb3   : > { %v681_v60 = vpop.permute.xlu0 %680 }
  0xb4   : > { %v683_v63 = vpop.permute.xlu1 %682  ;;  %v836_v0 = vsel %vm806_vm6, %v2439_v6, %v681_v60 }
  0xb5   : > { %v838_v36 = vsel %vm806_vm6, %v2446_v19, %v683_v63 }
  0xb7   : > { %v801_v1 = vpop.permute.xlu0 %800 }
  0xb8   : > { %v871_v18 = vsel %vm841_vm7, %v836_v0, %v801_v1  ;;  %v661_v4 = vpop.permute.xlu1 %660 }
  0xb9   : > { %2129 = vmatprep.mubr.msk.bf16.mxu1 %vm883_vm8, %v871_v18  ;;  %v816_v6 = vsel %vm806_vm6, %v2453_v28, %v661_v4 }
  0xbb   : > { %v803_v5 = vpop.permute.xlu0 %802 }
  0xbc   : > { %v873_v7 = vsel %vm841_vm7, %v838_v36, %v803_v5  ;;  %v663_v8 = vpop.permute.xlu1 %662 }
  0xbd   : > { %2130 = vmatmul.mubr.msk.bf16.gmra.mrb[12].mxu1 %vm883_vm8, %v873_v7  ;;  %v818_v11 = vsel %vm806_vm6, %v2476_v54, %v663_v8 }
  0xbe   : > { %2135 = vmatprep.mubr.msk.bf16.mxu1 %vm883_vm8, %v845_v44 }
  0xbf   : > { %v781_v10 = vpop.permute.xlu0 %780 }
  0xc0   : > { %v851_v9 = vsel %vm841_vm7, %v816_v6, %v781_v10  ;;  %v783_v12 = vpop.permute.xlu1 %782 }
  0xc1   : > { %v853_v19 = vsel %vm841_vm7, %v818_v11, %v783_v12  ;;  %2109 = vmatprep.mubr.msk.bf16.mxu0 %vm883_vm8, %v851_v9 }
  0xc2   : > { %2110 = vmatmul.mubr.msk.bf16.gmra.mrb[8].mxu0 %vm883_vm8, %v853_v19 }
  0xc3   : > { %v665_v14 = vpop.permute.xlu0 %664 }
  0xc4   : > { %v667_v15 = vpop.permute.xlu1 %666  ;;  %v820_v28 = vsel %vm806_vm6, %v2498_v24, %v665_v14 }
  0xc5   : > { %2136 = vmatmul.mubr.msk.bf16.vlgmr.msra.gmra.mrb[16].mxu1 %vm883_vm8, %v847_v59  ;;  %v822_v54 = vsel %vm806_vm6, %v2513_v30, %v667_v15 }
  0xc6   : > { %2139 = vmatprep.mubr.msk.bf16.mxu1 %vm883_vm8, %v849_v62 }
  0xc7   : > { %v785_v16 = vpop.permute.xlu0 %784 }
  0xc8   : > { %v855_v17 = vsel %vm841_vm7, %v820_v28, %v785_v16  ;;  %v787_v20 = vpop.permute.xlu1 %786 }
  0xc9   : > { %v857_v21 = vsel %vm841_vm7, %v822_v54, %v787_v20  ;;  %2113 = vmatprep.mubr.msk.bf16.mxu0 %vm883_vm8, %v855_v17 }
  0xca   : > { %2114 = vmatmul.mubr.msk.bf16.gmra.mrb[12].mxu0 %vm883_vm8, %v857_v21 }
  0xcb   : > { %2169 = vmatprep.mubr.msk.bf16.mxu0 %vm883_vm8, %v847_v59  ;;  %v685_v24 = vpop.permute.xlu0 %684 }
  0xcc   : > { %v840_v30 = vsel %vm806_vm6, %v2524_v47, %v685_v24  ;;  %v805_v23 = vpop.permute.xlu1 %804 }
  0xcd   : > { %2140 = vmatmul.mubr.msk.bf16.gmra.mrb[20].mxu1 %vm883_vm8, %v851_v9  ;;  %v875_v25 = vsel %vm841_vm7, %v840_v30, %v805_v23 }
  0xce   : > { %2143 = vmatprep.mubr.msk.bf16.mxu1 %vm883_vm8, %v853_v19 }
  0xd2   : > { %2170 = vmatmul.mubr.msk.bf16.vlgmr.msra.gmra.mrb[16].mxu0 %vm883_vm8, %v849_v62 }
  0xd3   : > { %2173 = vmatprep.mubr.msk.bf16.mxu0 %vm883_vm8, %v851_v9 }
  0xd5   : > { %2144 = vmatmul.mubr.msk.bf16.gmra.mrb[24].mxu1 %vm883_vm8, %v855_v17 }
  0xd6   : > { %2147 = vmatprep.mubr.msk.bf16.mxu1 %vm883_vm8, %v857_v21 }
  0xda   : > { %2174 = vmatmul.mubr.msk.bf16.gmra.mrb[20].mxu0 %vm883_vm8, %v853_v19 }
  0xdb   : > { %2177 = vmatprep.mubr.msk.bf16.mxu0 %vm883_vm8, %v855_v17 }
  0xdd   : > { %2148 = vmatmul.mubr.msk.bf16.gmra.mrb[28].mxu1 %vm883_vm8, %v2564_v33 }
  0xde   : > { %2151 = vmatprep.mubr.msk.bf16.mxu1 %vm883_vm8, %v2571_v38 }
  0xe2   : > { %2178 = vmatmul.mubr.msk.bf16.gmra.mrb[24].mxu0 %vm883_vm8, %v857_v21 }
  0xe3   : > { %2181 = vmatprep.mubr.msk.bf16.mxu0 %vm883_vm8, %v2564_v33 }
  0xe5   : > { %2152 = vmatmul.mubr.msk.bf16.gmra.mrb[32].mxu1 %vm883_vm8, %v2580_v43 }
  0xe6   : > { %2155 = vmatprep.mubr.msk.bf16.mxu1 %vm883_vm8, %v2589_v37 }
  0xea   : > { %2182 = vmatmul.mubr.msk.bf16.gmra.mrb[28].mxu0 %vm883_vm8, %v2571_v38 }
  0xeb   : > { %2185 = vmatprep.mubr.msk.bf16.mxu0 %vm883_vm8, %v2580_v43 }
  0xed   : > { %2156 = vmatmul.mubr.msk.bf16.gmra.mrb[36].mxu1 %vm883_vm8, %v2596_v48 }
  0xee   : > { %2159 = vmatprep.mubr.msk.bf16.mxu1 %vm883_vm8, %v2603_v53 }
  0xf2   : > { %2186 = vmatmul.mubr.msk.bf16.gmra.mrb[32].mxu0 %vm883_vm8, %v2589_v37 }
  0xf3   : > { %2189 = vmatprep.mubr.msk.bf16.mxu0 %vm883_vm8, %v2596_v48 }
  0xf5   : > { %2160 = vmatmul.mubr.msk.bf16.gmra.mrb[40].mxu1 %vm883_vm8, %v871_v18 }
  0xf6   : > { %2163 = vmatprep.mubr.msk.bf16.mxu1 %vm883_vm8, %v873_v7 }
  0xfa   : > { %2190 = vmatmul.mubr.msk.bf16.gmra.mrb[36].mxu0 %vm883_vm8, %v2603_v53 }
  0xfb   : > { %2193 = vmatprep.mubr.msk.bf16.mxu0 %vm883_vm8, %v871_v18 }
  0xfd   : > { %2164 = vmatmul.mubr.msk.bf16.gmra.mrb[44].mxu1 %vm883_vm8, %v875_v25 }
 0x102   : > { %2194 = vmatmul.mubr.msk.bf16.gmra.mrb[40].mxu0 %vm883_vm8, %v873_v7 }
 0x103   : > { %2197 = vmatprep.mubr.msk.bf16.mxu0 %vm883_vm8, %v875_v25 }
 0x10a   : > { %2198 = vmatmul.mubr.msk.bf16.gmra.mrb[44].mxu0 %vm883_vm8, %v2557_v22 }
 0x16f   : > { %v2119_v26 = vpop.f32.mrb[0].mxu1 }
 0x170   : > { %1100 = vst.msk [vmem:[#allocation2 + $0x90] sm:$0xff] %vm1081_vm9, %v2119_v26  ;;  %v1018_v47 = vpop.f32.mrb[1].mxu1 }
 0x171   : > { %1098 = vst.msk [vmem:[#allocation2 + $0x80] sm:$0xff] %vm1081_vm9, %v1018_v47  ;;  %v2120_v27 = vpop.f32.mrb[2].mxu1 }
 0x172   : > { %1101 = vst.msk [vmem:[#allocation2 + $0x98] sm:$0xff] %vm1081_vm9, %v2120_v27  ;;  %v1021_v29 = vpop.f32.mrb[3].mxu1 }
 0x173   : > { %1099 = vst.msk [vmem:[#allocation2 + $0x88] sm:$0xff] %vm1081_vm9, %v1021_v29  ;;  %v2103_v31 = vpop.f32.mrb[0].mxu0 }
 0x174   : > { %1084 = vst.msk [vmem:[#allocation2 + $0x10] sm:$0xff] %vm1081_vm9, %v2103_v31  ;;  %v954_v32 = vpop.f32.mrb[1].mxu0 }
 0x175   : > { %1082 = vst.msk [vmem:[#allocation2] sm:$0xff] %vm1081_vm9, %v954_v32  ;;  %v2104_v22 = vpop.f32.mrb[2].mxu0 }
 0x176   : > { %1085 = vst.msk [vmem:[#allocation2 + $0x18] sm:$0xff] %vm1081_vm9, %v2104_v22  ;;  %v957_v33 = vpop.f32.mrb[3].mxu0 }
 0x177   : > { %v2123_v3 = vpop.f32.mrb[4].mxu1  ;;  %1083 = vst.msk [vmem:[#allocation2 + $0x8] sm:$0xff] %vm1081_vm9, %v957_v33 }
 0x178   : > { %1104 = vst.msk [vmem:[#allocation2 + $0xb0] sm:$0xff] %vm1081_vm9, %v2123_v3  ;;  %v1034_v34 = vpop.f32.mrb[5].mxu1 }
 0x179   : > { %1102 = vst.msk [vmem:[#allocation2 + $0xa0] sm:$0xff] %vm1081_vm9, %v1034_v34  ;;  %v2124_v35 = vpop.f32.mrb[6].mxu1 }
 0x17a   : > { %1105 = vst.msk [vmem:[#allocation2 + $0xb8] sm:$0xff] %vm1081_vm9, %v2124_v35  ;;  %v1037_v38 = vpop.f32.mrb[7].mxu1 }
 0x17b   : > { %1103 = vst.msk [vmem:[#allocation2 + $0xa8] sm:$0xff] %vm1081_vm9, %v1037_v38  ;;  %v1290_v56 = vld [vmem:[#allocation2 + $0x10] sm:$0xff] }
 0x17c   : > { %v1288_v58 = vld [vmem:[#allocation2] sm:$0xff] }
 0x17d   : > { %v1291_v62 = vld [vmem:[#allocation2 + $0x18] sm:$0xff] }
 0x17e   : > { %v1289_v0 = vld [vmem:[#allocation2 + $0x8] sm:$0xff] }
 0x180   : > { %v2127_v39 = vpop.f32.mrb[8].mxu1 }
 0x181   : > { %1108 = vst.msk [vmem:[#allocation2 + $0xd0] sm:$0xff] %vm1081_vm9, %v2127_v39  ;;  %v1050_v42 = vpop.f32.mrb[9].mxu1 }
 0x182   : > { %1106 = vst.msk [vmem:[#allocation2 + $0xc0] sm:$0xff] %vm1081_vm9, %v1050_v42  ;;  %v2128_v40 = vpop.f32.mrb[10].mxu1 }
 0x183   : > { %1109 = vst.msk [vmem:[#allocation2 + $0xd8] sm:$0xff] %vm1081_vm9, %v2128_v40  ;;  %v1053_v41 = vpop.f32.mrb[11].mxu1 }
 0x184   : > { %1107 = vst.msk [vmem:[#allocation2 + $0xc8] sm:$0xff] %vm1081_vm9, %v1053_v41 }
 0x185   : > { %v2107_v43 = vpop.f32.mrb[4].mxu0 }
 0x186   : > { %1088 = vst.msk [vmem:[#allocation2 + $0x30] sm:$0xff] %vm1081_vm9, %v2107_v43  ;;  %v970_v55 = vpop.f32.mrb[5].mxu0 }
 0x187   : > { %1086 = vst.msk [vmem:[#allocation2 + $0x20] sm:$0xff] %vm1081_vm9, %v970_v55  ;;  %v2108_v44 = vpop.f32.mrb[6].mxu0 }
 0x188   : > { %1089 = vst.msk [vmem:[#allocation2 + $0x38] sm:$0xff] %vm1081_vm9, %v2108_v44  ;;  %v973_v37 = vpop.f32.mrb[7].mxu0 }
 0x189   : > { %1087 = vst.msk [vmem:[#allocation2 + $0x28] sm:$0xff] %vm1081_vm9, %v973_v37 }
 0x18d   : > { %v1294_v8 = vld [vmem:[#allocation2 + $0x30] sm:$0xff] }
 0x18e   : > { %v1292_v11 = vld [vmem:[#allocation2 + $0x20] sm:$0xff] }
 0x18f   : > { %v1295_v19 = vld [vmem:[#allocation2 + $0x38] sm:$0xff] }
 0x190   : > { %v2131_v13 = vpop.f32.mrb[12].mxu1  ;;  %v1293_v28 = vld [vmem:[#allocation2 + $0x28] sm:$0xff] }
 0x191   : > { %1112 = vst.msk [vmem:[#allocation2 + $0xf0] sm:$0xff] %vm1081_vm9, %v2131_v13  ;;  %v1066_v45 = vpop.f32.mrb[13].mxu1 }
 0x192   : > { %1110 = vst.msk [vmem:[#allocation2 + $0xe0] sm:$0xff] %vm1081_vm9, %v1066_v45  ;;  %v2132_v46 = vpop.f32.mrb[14].mxu1 }
 0x193   : > { %1113 = vst.msk [vmem:[#allocation2 + $0xf8] sm:$0xff] %vm1081_vm9, %v2132_v46  ;;  %v1069_v50 = vpop.f32.mrb[15].mxu1 }
 0x194   : > { %1111 = vst.msk [vmem:[#allocation2 + $0xe8] sm:$0xff] %vm1081_vm9, %v1069_v50 }
 0x195   : > { %v2111_v48 = vpop.f32.mrb[8].mxu0 }
 0x196   : > { %1092 = vst.msk [vmem:[#allocation2 + $0x50] sm:$0xff] %vm1081_vm9, %v2111_v48  ;;  %v986_v49 = vpop.f32.mrb[9].mxu0 }
 0x197   : > { %1090 = vst.msk [vmem:[#allocation2 + $0x40] sm:$0xff] %vm1081_vm9, %v986_v49  ;;  %v2112_v51 = vpop.f32.mrb[10].mxu0 }
 0x198   : > { %1093 = vst.msk [vmem:[#allocation2 + $0x58] sm:$0xff] %vm1081_vm9, %v2112_v51  ;;  %v989_v52 = vpop.f32.mrb[11].mxu0  ;;  %v2137_v53 = vpop.f32.mrb[16].mxu1 }
 0x199   : > { %1091 = vst.msk [vmem:[#allocation2 + $0x48] sm:$0xff] %vm1081_vm9, %v989_v52  ;;  %v1322_v61 = vadd.f32 %v2137_v53, %v1290_v56  ;;  %v1161_v57 = vpop.f32.mrb[17].mxu1 }
 0x19a   : > { %v1320_v59 = vadd.f32 %v1288_v58, %v1161_v57  ;;  %v2138_v2 = vpop.f32.mrb[18].mxu1 }
 0x19b   : > { %1354 = vst.msk [vmem:[#allocation2 + $0x10] sm:$0xff] %vm1081_vm9, %v1322_v61  ;;  %v1323_v60 = vadd.f32 %v2138_v2, %v1291_v62  ;;  %v1164_v63 = vpop.f32.mrb[19].mxu1 }
 0x19c   : > { %1352 = vst.msk [vmem:[#allocation2] sm:$0xff] %vm1081_vm9, %v1320_v59  ;;  %v1321_v1 = vadd.f32 %v1289_v0, %v1164_v63 }
 0x19d   : > { %1355 = vst.msk [vmem:[#allocation2 + $0x18] sm:$0xff] %vm1081_vm9, %v1323_v60  ;;  %v2115_v18 = vpop.f32.mrb[12].mxu0  ;;  %v1298_v27 = vld [vmem:[#allocation2 + $0x50] sm:$0xff] }
 0x19e   : > { %1353 = vst.msk [vmem:[#allocation2 + $0x8] sm:$0xff] %vm1081_vm9, %v1321_v1  ;;  %1096 = vst.msk [vmem:[#allocation2 + $0x70] sm:$0xff] %vm1081_vm9, %v2115_v18  ;;  %v1002_v4 = vpop.f32.mrb[13].mxu0  ;;  %v1296_v3 = vld [vmem:[#allocation2 + $0x40] sm:$0xff] }
 0x19f   : > { %1094 = vst.msk [vmem:[#allocation2 + $0x60] sm:$0xff] %vm1081_vm9, %v1002_v4  ;;  %v2116_v36 = vpop.f32.mrb[14].mxu0  ;;  %v1299_v38 = vld [vmem:[#allocation2 + $0x58] sm:$0xff] }
 0x1a0   : > { %1097 = vst.msk [vmem:[#allocation2 + $0x78] sm:$0xff] %vm1081_vm9, %v2116_v36  ;;  %v1005_v5 = vpop.f32.mrb[15].mxu0  ;;  %v2141_v7 = vpop.f32.mrb[20].mxu1  ;;  %v1297_v40 = vld [vmem:[#allocation2 + $0x48] sm:$0xff] }
 0x1a1   : > { %1095 = vst.msk [vmem:[#allocation2 + $0x68] sm:$0xff] %vm1081_vm9, %v1005_v5  ;;  %v1326_v6 = vadd.f32 %v2141_v7, %v1294_v8  ;;  %v1177_v10 = vpop.f32.mrb[21].mxu1 }
 0x1a2   : > { %v1324_v9 = vadd.f32 %v1292_v11, %v1177_v10  ;;  %v2142_v12 = vpop.f32.mrb[22].mxu1  ;;  %v1558_v17 = vld [vmem:[#allocation2 + $0x10] sm:$0xff] }
 0x1a3   : > { %1358 = vst.msk [vmem:[#allocation2 + $0x30] sm:$0xff] %vm1081_vm9, %v1326_v6  ;;  %v1327_v14 = vadd.f32 %v2142_v12, %v1295_v19  ;;  %v1180_v15 = vpop.f32.mrb[23].mxu1  ;;  %v1556_v24 = vld [vmem:[#allocation2] sm:$0xff] }
 0x1a4   : > { %1356 = vst.msk [vmem:[#allocation2 + $0x20] sm:$0xff] %vm1081_vm9, %v1324_v9  ;;  %v1325_v16 = vadd.f32 %v1293_v28, %v1180_v15  ;;  %v1559_v25 = vld [vmem:[#allocation2 + $0x18] sm:$0xff] }
 0x1a5   : > { %1359 = vst.msk [vmem:[#allocation2 + $0x38] sm:$0xff] %vm1081_vm9, %v1327_v14  ;;  %v2171_v54 = vpop.f32.mrb[16].mxu0  ;;  %v1557_v31 = vld [vmem:[#allocation2 + $0x8] sm:$0xff]  ;;  %v1302_v56 = vld [vmem:[#allocation2 + $0x70] sm:$0xff] }
 0x1a6   : > { %1357 = vst.msk [vmem:[#allocation2 + $0x28] sm:$0xff] %vm1081_vm9, %v1325_v16  ;;  %v1590_v20 = vadd.f32 %v2171_v54, %v1558_v17  ;;  %v1429_v21 = vpop.f32.mrb[17].mxu0  ;;  %v1300_v63 = vld [vmem:[#allocation2 + $0x60] sm:$0xff] }
 0x1a7   : > { %v1588_v30 = vadd.f32 %v1556_v24, %v1429_v21  ;;  %v2172_v23 = vpop.f32.mrb[18].mxu0  ;;  %v1303_v36 = vld [vmem:[#allocation2 + $0x78] sm:$0xff] }
 0x1a8   : > { %1622 = vst.msk [vmem:[#allocation2 + $0x10] sm:$0xff] %vm1081_vm9, %v1590_v20  ;;  %v1591_v26 = vadd.f32 %v2172_v23, %v1559_v25  ;;  %v2145_v47 = vpop.f32.mrb[24].mxu1  ;;  %v1432_v29 = vpop.f32.mrb[19].mxu0  ;;  %v1301_v6 = vld [vmem:[#allocation2 + $0x68] sm:$0xff] }
 0x1a9   : > { %1620 = vst.msk [vmem:[#allocation2] sm:$0xff] %vm1081_vm9, %v1588_v30  ;;  %v1330_v32 = vadd.f32 %v2145_v47, %v1298_v27  ;;  %v1589_v22 = vadd.f32 %v1557_v31, %v1432_v29  ;;  %v1193_v33 = vpop.f32.mrb[25].mxu1  ;;  %v1306_v30 = vld [vmem:[#allocation2 + $0x90] sm:$0xff] }
 0x1aa   : > { %1623 = vst.msk [vmem:[#allocation2 + $0x18] sm:$0xff] %vm1081_vm9, %v1591_v26  ;;  %v1328_v34 = vadd.f32 %v1296_v3, %v1193_v33  ;;  %v2146_v35 = vpop.f32.mrb[26].mxu1  ;;  %v1562_v55 = vld [vmem:[#allocation2 + $0x30] sm:$0xff] }
 0x1ab   : > { %1362 = vst.msk [vmem:[#allocation2 + $0x50] sm:$0xff] %vm1081_vm9, %v1330_v32  ;;  %1621 = vst.msk [vmem:[#allocation2 + $0x8] sm:$0xff] %vm1081_vm9, %v1589_v22  ;;  %v1331_v39 = vadd.f32 %v2146_v35, %v1299_v38  ;;  %v1196_v42 = vpop.f32.mrb[27].mxu1  ;;  %v1560_v13 = vld [vmem:[#allocation2 + $0x20] sm:$0xff]  ;;  %v1307_v35 = vld [vmem:[#allocation2 + $0x98] sm:$0xff] }
 0x1ac   : > { %1360 = vst.msk [vmem:[#allocation2 + $0x40] sm:$0xff] %vm1081_vm9, %v1328_v34  ;;  %v1329_v41 = vadd.f32 %v1297_v40, %v1196_v42  ;;  %v1563_v48 = vld [vmem:[#allocation2 + $0x38] sm:$0xff]  ;;  %v1304_v32 = vld [vmem:[#allocation2 + $0x80] sm:$0xff]  ;;  %v1305_v40 = vld [vmem:[#allocation2 + $0x88] sm:$0xff] }
 0x1ad   : > { %1363 = vst.msk [vmem:[#allocation2 + $0x58] sm:$0xff] %vm1081_vm9, %v1331_v39  ;;  %v2175_v43 = vpop.f32.mrb[20].mxu0  ;;  %v1561_v57 = vld [vmem:[#allocation2 + $0x28] sm:$0xff] }
 0x1ae   : > { %1361 = vst.msk [vmem:[#allocation2 + $0x48] sm:$0xff] %vm1081_vm9, %v1329_v41  ;;  %v1594_v44 = vadd.f32 %v2175_v43, %v1562_v55  ;;  %v1445_v37 = vpop.f32.mrb[21].mxu0 }
 0x1af   : > { %v1654_v45 = vld [vmem:[#allocation2 + $0x10] sm:$0xff]  ;;  %v1592_v46 = vadd.f32 %v1560_v13, %v1445_v37  ;;  %v2176_v50 = vpop.f32.mrb[22].mxu0 }
 0x1b0   : > { %v2018_v49 = vpack.c.bf16 %v1654_v45, %v1654_v45  ;;  %v1652_v51 = vld [vmem:[#allocation2] sm:$0xff]  ;;  %1626 = vst.msk [vmem:[#allocation2 + $0x30] sm:$0xff] %vm1081_vm9, %v1594_v44  ;;  %v1595_v52 = vadd.f32 %v2176_v50, %v1563_v48  ;;  %v2149_v53 = vpop.f32.mrb[28].mxu1  ;;  %v1448_v61 = vpop.f32.mrb[23].mxu0 }
 0x1b1   : > { %v2016_v58 = vpack.c.bf16 %v1652_v51, %v1652_v51  ;;  %v1655_v59 = vld [vmem:[#allocation2 + $0x18] sm:$0xff]  ;;  %1624 = vst.msk [vmem:[#allocation2 + $0x20] sm:$0xff] %vm1081_vm9, %v1592_v46  ;;  %v1334_v2 = vadd.f32 %v2149_v53, %v1302_v56  ;;  %v1593_v62 = vadd.f32 %v1561_v57, %v1448_v61  ;;  %v1209_v60 = vpop.f32.mrb[29].mxu1  ;;  %v1310_v56 = vld [vmem:[#allocation2 + $0xb0] sm:$0xff] }
 0x1b2   : > { %1815 = vst.msk [vmem:[%s2740_s25 + $0x8] sm:$0xf] %vm1812_vm10, %v2018_v49  ;;  %v2019_v0 = vpack.c.bf16 %v1655_v59, %v1655_v59  ;;  %v1653_v1 = vld [vmem:[#allocation2 + $0x8] sm:$0xff]  ;;  %v1332_v18 = vadd.f32 %v1300_v63, %v1209_v60  ;;  %v2150_v4 = vpop.f32.mrb[30].mxu1  ;;  %v1566_v9 = vld [vmem:[#allocation2 + $0x50] sm:$0xff]  ;;  %v1308_v63 = vld [vmem:[#allocation2 + $0xa0] sm:$0xff] }
 0x1b3   : > { %1627 = vst.msk [vmem:[#allocation2 + $0x38] sm:$0xff] %vm1081_vm9, %v1595_v52  ;;  %v2017_v5 = vpack.c.bf16 %v1653_v1, %v1653_v1  ;;  %1366 = vst.msk [vmem:[#allocation2 + $0x70] sm:$0xff] %vm1081_vm9, %v1334_v2  ;;  %v1335_v7 = vadd.f32 %v2150_v4, %v1303_v36  ;;  %v1212_v8 = vpop.f32.mrb[31].mxu1  ;;  %v1564_v14 = vld [vmem:[#allocation2 + $0x40] sm:$0xff]  ;;  %v1311_v36 = vld [vmem:[#allocation2 + $0xb8] sm:$0xff] }
 0x1b4   : > { %1813 = vst.msk [vmem:[%s2740_s25] sm:$0xf] %vm1812_vm10, %v2016_v58  ;;  %1816 = vst.msk [vmem:[%s2740_s25 + $0xc] sm:$0xf] %vm1812_vm10, %v2019_v0  ;;  %v1333_v10 = vadd.f32 %v1301_v6, %v1212_v8  ;;  %v1567_v54 = vld [vmem:[#allocation2 + $0x58] sm:$0xff]  ;;  %v1309_v6 = vld [vmem:[#allocation2 + $0xa8] sm:$0xff] }
 0x1b5   : > { %1625 = vst.msk [vmem:[#allocation2 + $0x28] sm:$0xff] %vm1081_vm9, %v1593_v62  ;;  %1364 = vst.msk [vmem:[#allocation2 + $0x60] sm:$0xff] %vm1081_vm9, %v1332_v18  ;;  %v2179_v11 = vpop.f32.mrb[24].mxu0  ;;  %v1565_v25 = vld [vmem:[#allocation2 + $0x48] sm:$0xff] }
 0x1b6   : > { %1814 = vst.msk [vmem:[%s2740_s25 + $0x4] sm:$0xf] %vm1812_vm10, %v2017_v5  ;;  %v1598_v12 = vadd.f32 %v2179_v11, %v1566_v9  ;;  %v1461_v19 = vpop.f32.mrb[25].mxu0 }
 0x1b7   : > { %1367 = vst.msk [vmem:[#allocation2 + $0x78] sm:$0xff] %vm1081_vm9, %v1335_v7  ;;  %1365 = vst.msk [vmem:[#allocation2 + $0x68] sm:$0xff] %vm1081_vm9, %v1333_v10  ;;  %v1658_v15 = vld [vmem:[#allocation2 + $0x30] sm:$0xff]  ;;  %v1596_v28 = vadd.f32 %v1564_v14, %v1461_v19  ;;  %v2180_v16 = vpop.f32.mrb[26].mxu0 }
 0x1b8   : > { %v2022_v17 = vpack.c.bf16 %v1658_v15, %v1658_v15  ;;  %v1656_v20 = vld [vmem:[#allocation2 + $0x20] sm:$0xff]  ;;  %1630 = vst.msk [vmem:[#allocation2 + $0x50] sm:$0xff] %vm1081_vm9, %v1598_v12  ;;  %v1599_v21 = vadd.f32 %v2180_v16, %v1567_v54  ;;  %v2153_v24 = vpop.f32.mrb[32].mxu1  ;;  %v1464_v23 = vpop.f32.mrb[27].mxu0 }
 0x1b9   : > { %v2020_v26 = vpack.c.bf16 %v1656_v20, %v1656_v20  ;;  %1628 = vst.msk [vmem:[#allocation2 + $0x40] sm:$0xff] %vm1081_vm9, %v1596_v28  ;;  %v1338_v27 = vadd.f32 %v2153_v24, %v1306_v30  ;;  %v1597_v29 = vadd.f32 %v1565_v25, %v1464_v23  ;;  %v1225_v31 = vpop.f32.mrb[33].mxu1  ;;  %v1314_v30 = vld [vmem:[#allocation2 + $0xd0] sm:$0xff] }
 0x1ba   : > { %v1659_v47 = vld [vmem:[#allocation2 + $0x38] sm:$0xff]  ;;  %1819 = vst.msk [vmem:[%s2740_s25 + $0x18] sm:$0xf] %vm1812_vm10, %v2022_v17  ;;  %v1336_v3 = vadd.f32 %v1304_v32, %v1225_v31  ;;  %v2154_v34 = vpop.f32.mrb[34].mxu1  ;;  %v1570_v55 = vld [vmem:[#allocation2 + $0x70] sm:$0xff]  ;;  %v1312_v32 = vld [vmem:[#allocation2 + $0xc0] sm:$0xff] }
 0x1bb   : > { %v2023_v22 = vpack.c.bf16 %v1659_v47, %v1659_v47  ;;  %1631 = vst.msk [vmem:[#allocation2 + $0x58] sm:$0xff] %vm1081_vm9, %v1599_v21  ;;  %1370 = vst.msk [vmem:[#allocation2 + $0x90] sm:$0xff] %vm1081_vm9, %v1338_v27  ;;  %v1339_v39 = vadd.f32 %v2154_v34, %v1307_v35  ;;  %v1228_v42 = vpop.f32.mrb[35].mxu1  ;;  %v1315_v35 = vld [vmem:[#allocation2 + $0xd8] sm:$0xff] }
 0x1bc   : > { %v1657_v33 = vld [vmem:[#allocation2 + $0x28] sm:$0xff]  ;;  %1817 = vst.msk [vmem:[%s2740_s25 + $0x10] sm:$0xf] %vm1812_vm10, %v2020_v26  ;;  %v1337_v41 = vadd.f32 %v1305_v40, %v1228_v42  ;;  %v1568_v13 = vld [vmem:[#allocation2 + $0x60] sm:$0xff] }
 0x1bd   : > { %v2021_v38 = vpack.c.bf16 %v1657_v33, %v1657_v33  ;;  %1629 = vst.msk [vmem:[#allocation2 + $0x48] sm:$0xff] %vm1081_vm9, %v1597_v29  ;;  %1368 = vst.msk [vmem:[#allocation2 + $0x80] sm:$0xff] %vm1081_vm9, %v1336_v3  ;;  %v2183_v43 = vpop.f32.mrb[28].mxu0  ;;  %v1313_v40 = vld [vmem:[#allocation2 + $0xc8] sm:$0xff] }
 0x1be   : > { %1820 = vst.msk [vmem:[%s2740_s25 + $0x1c] sm:$0xf] %vm1812_vm10, %v2023_v22  ;;  %v1602_v44 = vadd.f32 %v2183_v43, %v1570_v55  ;;  %v1477_v37 = vpop.f32.mrb[29].mxu0  ;;  %v1571_v48 = vld [vmem:[#allocation2 + $0x78] sm:$0xff]  ;;  %v1569_v57 = vld [vmem:[#allocation2 + $0x68] sm:$0xff] }
 0x1bf   : > { %1818 = vst.msk [vmem:[%s2740_s25 + $0x14] sm:$0xf] %vm1812_vm10, %v2021_v38  ;;  %v1662_v45 = vld [vmem:[#allocation2 + $0x50] sm:$0xff]  ;;  %v1600_v46 = vadd.f32 %v1568_v13, %v1477_v37  ;;  %v2184_v50 = vpop.f32.mrb[30].mxu0 }
 0x1c0   : > { %1371 = vst.msk [vmem:[#allocation2 + $0x98] sm:$0xff] %vm1081_vm9, %v1339_v39  ;;  %1369 = vst.msk [vmem:[#allocation2 + $0x88] sm:$0xff] %vm1081_vm9, %v1337_v41  ;;  %v2026_v49 = vpack.c.bf16 %v1662_v45, %v1662_v45  ;;  %v1660_v51 = vld [vmem:[#allocation2 + $0x40] sm:$0xff]  ;;  %v1603_v52 = vadd.f32 %v2184_v50, %v1571_v48  ;;  %v2157_v53 = vpop.f32.mrb[36].mxu1  ;;  %v1480_v61 = vpop.f32.mrb[31].mxu0 }
 0x1c1   : > { %1634 = vst.msk [vmem:[#allocation2 + $0x70] sm:$0xff] %vm1081_vm9, %v1602_v44  ;;  %v2024_v58 = vpack.c.bf16 %v1660_v51, %v1660_v51  ;;  %1632 = vst.msk [vmem:[#allocation2 + $0x60] sm:$0xff] %vm1081_vm9, %v1600_v46  ;;  %v1342_v2 = vadd.f32 %v2157_v53, %v1310_v56  ;;  %v1601_v62 = vadd.f32 %v1569_v57, %v1480_v61  ;;  %v1241_v60 = vpop.f32.mrb[37].mxu1  ;;  %v1318_v56 = vld [vmem:[#allocation2 + $0xf0] sm:$0xff] }
 0x1c2   : > { %v1663_v59 = vld [vmem:[#allocation2 + $0x58] sm:$0xff]  ;;  %1823 = vst.msk [vmem:[%s2740_s25 + $0x28] sm:$0xf] %vm1812_vm10, %v2026_v49  ;;  %v1340_v18 = vadd.f32 %v1308_v63, %v1241_v60  ;;  %v2158_v4 = vpop.f32.mrb[38].mxu1  ;;  %v1574_v9 = vld [vmem:[#allocation2 + $0x90] sm:$0xff]  ;;  %v1316_v63 = vld [vmem:[#allocation2 + $0xe0] sm:$0xff] }
 0x1c3   : > { %v2027_v0 = vpack.c.bf16 %v1663_v59, %v1663_v59  ;;  %1635 = vst.msk [vmem:[#allocation2 + $0x78] sm:$0xff] %vm1081_vm9, %v1603_v52  ;;  %1374 = vst.msk [vmem:[#allocation2 + $0xb0] sm:$0xff] %vm1081_vm9, %v1342_v2  ;;  %v1343_v7 = vadd.f32 %v2158_v4, %v1311_v36  ;;  %v1244_v8 = vpop.f32.mrb[39].mxu1  ;;  %v1319_v36 = vld [vmem:[#allocation2 + $0xf8] sm:$0xff] }
 0x1c4   : > { %v1661_v1 = vld [vmem:[#allocation2 + $0x48] sm:$0xff]  ;;  %1821 = vst.msk [vmem:[%s2740_s25 + $0x20] sm:$0xf] %vm1812_vm10, %v2024_v58  ;;  %v1341_v10 = vadd.f32 %v1309_v6, %v1244_v8  ;;  %v1572_v14 = vld [vmem:[#allocation2 + $0x80] sm:$0xff] }
 0x1c5   : > { %v2025_v5 = vpack.c.bf16 %v1661_v1, %v1661_v1  ;;  %1633 = vst.msk [vmem:[#allocation2 + $0x68] sm:$0xff] %vm1081_vm9, %v1601_v62  ;;  %1372 = vst.msk [vmem:[#allocation2 + $0xa0] sm:$0xff] %vm1081_vm9, %v1340_v18  ;;  %v2187_v11 = vpop.f32.mrb[32].mxu0  ;;  %v1317_v6 = vld [vmem:[#allocation2 + $0xe8] sm:$0xff] }
 0x1c6   : > { %1824 = vst.msk [vmem:[%s2740_s25 + $0x2c] sm:$0xf] %vm1812_vm10, %v2027_v0  ;;  %v1606_v12 = vadd.f32 %v2187_v11, %v1574_v9  ;;  %v1493_v19 = vpop.f32.mrb[33].mxu0 }
 0x1c7   : > { %1822 = vst.msk [vmem:[%s2740_s25 + $0x24] sm:$0xf] %vm1812_vm10, %v2025_v5  ;;  %v1604_v28 = vadd.f32 %v1572_v14, %v1493_v19  ;;  %v2188_v16 = vpop.f32.mrb[34].mxu0  ;;  %v1575_v54 = vld [vmem:[#allocation2 + $0x98] sm:$0xff]  ;;  %v1573_v25 = vld [vmem:[#allocation2 + $0x88] sm:$0xff] }
 0x1c8   : > { %1375 = vst.msk [vmem:[#allocation2 + $0xb8] sm:$0xff] %vm1081_vm9, %v1343_v7  ;;  %1373 = vst.msk [vmem:[#allocation2 + $0xa8] sm:$0xff] %vm1081_vm9, %v1341_v10  ;;  %v1666_v15 = vld [vmem:[#allocation2 + $0x70] sm:$0xff]  ;;  %v1664_v20 = vld [vmem:[#allocation2 + $0x60] sm:$0xff]  ;;  %v1607_v21 = vadd.f32 %v2188_v16, %v1575_v54  ;;  %v2161_v24 = vpop.f32.mrb[40].mxu1  ;;  %v1496_v23 = vpop.f32.mrb[35].mxu0 }
 0x1c9   : > { %v2030_v17 = vpack.c.bf16 %v1666_v15, %v1666_v15  ;;  %1638 = vst.msk [vmem:[#allocation2 + $0x90] sm:$0xff] %vm1081_vm9, %v1606_v12  ;;  %v2028_v26 = vpack.c.bf16 %v1664_v20, %v1664_v20  ;;  %1636 = vst.msk [vmem:[#allocation2 + $0x80] sm:$0xff] %vm1081_vm9, %v1604_v28  ;;  %v1346_v27 = vadd.f32 %v2161_v24, %v1314_v30  ;;  %v1257_v31 = vpop.f32.mrb[41].mxu1 }
 0x1ca   : > { %v1667_v47 = vld [vmem:[#allocation2 + $0x78] sm:$0xff]  ;;  %v1605_v29 = vadd.f32 %v1573_v25, %v1496_v23  ;;  %1639 = vst.msk [vmem:[#allocation2 + $0x98] sm:$0xff] %vm1081_vm9, %v1607_v21  ;;  %v1344_v3 = vadd.f32 %v1312_v32, %v1257_v31  ;;  %v2162_v34 = vpop.f32.mrb[42].mxu1  ;;  %v1578_v55 = vld [vmem:[#allocation2 + $0xb0] sm:$0xff] }
 0x1cb   : > { %1827 = vst.msk [vmem:[%s2740_s25 + $0x38] sm:$0xf] %vm1812_vm10, %v2030_v17  ;;  %v2031_v22 = vpack.c.bf16 %v1667_v47, %v1667_v47  ;;  %1825 = vst.msk [vmem:[%s2740_s25 + $0x30] sm:$0xf] %vm1812_vm10, %v2028_v26  ;;  %v1347_v39 = vadd.f32 %v2162_v34, %v1315_v35  ;;  %v1260_v42 = vpop.f32.mrb[43].mxu1 }
 0x1cc   : > { %v1665_v33 = vld [vmem:[#allocation2 + $0x68] sm:$0xff]  ;;  %1378 = vst.msk [vmem:[#allocation2 + $0xd0] sm:$0xff] %vm1081_vm9, %v1346_v27  ;;  %1637 = vst.msk [vmem:[#allocation2 + $0x88] sm:$0xff] %vm1081_vm9, %v1605_v29  ;;  %v1345_v41 = vadd.f32 %v1313_v40, %v1260_v42  ;;  %v1576_v13 = vld [vmem:[#allocation2 + $0xa0] sm:$0xff] }
 0x1cd   : > { %v2029_v38 = vpack.c.bf16 %v1665_v33, %v1665_v33  ;;  %1828 = vst.msk [vmem:[%s2740_s25 + $0x3c] sm:$0xf] %vm1812_vm10, %v2031_v22  ;;  %v2191_v43 = vpop.f32.mrb[36].mxu0 }
 0x1ce   : > { %1376 = vst.msk [vmem:[#allocation2 + $0xc0] sm:$0xff] %vm1081_vm9, %v1344_v3  ;;  %1379 = vst.msk [vmem:[#allocation2 + $0xd8] sm:$0xff] %vm1081_vm9, %v1347_v39  ;;  %v1610_v44 = vadd.f32 %v2191_v43, %v1578_v55  ;;  %v1509_v37 = vpop.f32.mrb[37].mxu0 }
 0x1cf   : > { %1826 = vst.msk [vmem:[%s2740_s25 + $0x34] sm:$0xf] %vm1812_vm10, %v2029_v38  ;;  %v1608_v46 = vadd.f32 %v1576_v13, %v1509_v37  ;;  %v2192_v50 = vpop.f32.mrb[38].mxu0  ;;  %v1579_v48 = vld [vmem:[#allocation2 + $0xb8] sm:$0xff]  ;;  %v1577_v57 = vld [vmem:[#allocation2 + $0xa8] sm:$0xff] }
 0x1d0   : > { %1377 = vst.msk [vmem:[#allocation2 + $0xc8] sm:$0xff] %vm1081_vm9, %v1345_v41  ;;  %v1670_v45 = vld [vmem:[#allocation2 + $0x90] sm:$0xff]  ;;  %v1668_v51 = vld [vmem:[#allocation2 + $0x80] sm:$0xff]  ;;  %1642 = vst.msk [vmem:[#allocation2 + $0xb0] sm:$0xff] %vm1081_vm9, %v1610_v44  ;;  %v1611_v52 = vadd.f32 %v2192_v50, %v1579_v48  ;;  %v2165_v53 = vpop.f32.mrb[44].mxu1  ;;  %v1512_v61 = vpop.f32.mrb[39].mxu0 }
 0x1d1   : > { %v2034_v49 = vpack.c.bf16 %v1670_v45, %v1670_v45  ;;  %v2032_v58 = vpack.c.bf16 %v1668_v51, %v1668_v51  ;;  %v1671_v59 = vld [vmem:[#allocation2 + $0x98] sm:$0xff]  ;;  %1640 = vst.msk [vmem:[#allocation2 + $0xa0] sm:$0xff] %vm1081_vm9, %v1608_v46  ;;  %v1350_v2 = vadd.f32 %v2165_v53, %v1318_v56  ;;  %v1609_v62 = vadd.f32 %v1577_v57, %v1512_v61  ;;  %v1273_v60 = vpop.f32.mrb[45].mxu1 }
 0x1d2   : > { %v2035_v0 = vpack.c.bf16 %v1671_v59, %v1671_v59  ;;  %1643 = vst.msk [vmem:[#allocation2 + $0xb8] sm:$0xff] %vm1081_vm9, %v1611_v52  ;;  %v1348_v18 = vadd.f32 %v1316_v63, %v1273_v60  ;;  %v2166_v4 = vpop.f32.mrb[46].mxu1 }
 0x1d3   : > { %1831 = vst.msk [vmem:[%s2740_s25 + $0x48] sm:$0xf] %vm1812_vm10, %v2034_v49  ;;  %v1669_v1 = vld [vmem:[#allocation2 + $0x88] sm:$0xff]  ;;  %1829 = vst.msk [vmem:[%s2740_s25 + $0x40] sm:$0xf] %vm1812_vm10, %v2032_v58  ;;  %v1351_v7 = vadd.f32 %v2166_v4, %v1319_v36  ;;  %v1276_v8 = vpop.f32.mrb[47].mxu1 }
 0x1d4   : > { %v2033_v5 = vpack.c.bf16 %v1669_v1, %v1669_v1  ;;  %1382 = vst.msk [vmem:[#allocation2 + $0xf0] sm:$0xff] %vm1081_vm9, %v1350_v2  ;;  %1641 = vst.msk [vmem:[#allocation2 + $0xa8] sm:$0xff] %vm1081_vm9, %v1609_v62  ;;  %v1349_v10 = vadd.f32 %v1317_v6, %v1276_v8  ;;  %v1582_v9 = vld [vmem:[#allocation2 + $0xd0] sm:$0xff] }
 0x1d5   : > { %1832 = vst.msk [vmem:[%s2740_s25 + $0x4c] sm:$0xf] %vm1812_vm10, %v2035_v0  ;;  %v2195_v11 = vpop.f32.mrb[40].mxu0  ;;  %v1580_v14 = vld [vmem:[#allocation2 + $0xc0] sm:$0xff]  ;;  %v1583_v54 = vld [vmem:[#allocation2 + $0xd8] sm:$0xff] }
 0x1d6   : > { %1380 = vst.msk [vmem:[#allocation2 + $0xe0] sm:$0xff] %vm1081_vm9, %v1348_v18  ;;  %1383 = vst.msk [vmem:[#allocation2 + $0xf8] sm:$0xff] %vm1081_vm9, %v1351_v7  ;;  %v1614_v12 = vadd.f32 %v2195_v11, %v1582_v9  ;;  %v1525_v19 = vpop.f32.mrb[41].mxu0 }
 0x1d7   : > { %1830 = vst.msk [vmem:[%s2740_s25 + $0x44] sm:$0xf] %vm1812_vm10, %v2033_v5  ;;  %v1674_v15 = vld [vmem:[#allocation2 + $0xb0] sm:$0xff]  ;;  %v1612_v28 = vadd.f32 %v1580_v14, %v1525_v19  ;;  %v2196_v16 = vpop.f32.mrb[42].mxu0  ;;  %v1581_v30 = vld [vmem:[#allocation2 + $0xc8] sm:$0xff] }
 0x1d8   : > { %1381 = vst.msk [vmem:[#allocation2 + $0xe8] sm:$0xff] %vm1081_vm9, %v1349_v10  ;;  %v2038_v17 = vpack.c.bf16 %v1674_v15, %v1674_v15  ;;  %v1672_v20 = vld [vmem:[#allocation2 + $0xa0] sm:$0xff]  ;;  %1646 = vst.msk [vmem:[#allocation2 + $0xd0] sm:$0xff] %vm1081_vm9, %v1614_v12  ;;  %v1615_v21 = vadd.f32 %v2196_v16, %v1583_v54  ;;  %v1528_v24 = vpop.f32.mrb[43].mxu0 }
 0x1d9   : > { %v2036_v23 = vpack.c.bf16 %v1672_v20, %v1672_v20  ;;  %v1675_v25 = vld [vmem:[#allocation2 + $0xb8] sm:$0xff]  ;;  %1644 = vst.msk [vmem:[#allocation2 + $0xc0] sm:$0xff] %vm1081_vm9, %v1612_v28  ;;  %v1613_v26 = vadd.f32 %v1581_v30, %v1528_v24 }
 0x1da   : > { %1835 = vst.msk [vmem:[%s2740_s25 + $0x58] sm:$0xf] %vm1812_vm10, %v2038_v17  ;;  %v2039_v47 = vpack.c.bf16 %v1675_v25, %v1675_v25 }
 0x1db   : > { %v1673_v27 = vld [vmem:[#allocation2 + $0xa8] sm:$0xff]  ;;  %1647 = vst.msk [vmem:[#allocation2 + $0xd8] sm:$0xff] %vm1081_vm9, %v1615_v21  ;;  %1645 = vst.msk [vmem:[#allocation2 + $0xc8] sm:$0xff] %vm1081_vm9, %v1613_v26  ;;  %v1586_v32 = vld [vmem:[#allocation2 + $0xf0] sm:$0xff] }
 0x1dc   : > { %1833 = vst.msk [vmem:[%s2740_s25 + $0x50] sm:$0xf] %vm1812_vm10, %v2036_v23  ;;  %v2037_v29 = vpack.c.bf16 %v1673_v27, %v1673_v27  ;;  %1836 = vst.msk [vmem:[%s2740_s25 + $0x5c] sm:$0xf] %vm1812_vm10, %v2039_v47 }
 0x1dd   : > { %v2199_v31 = vpop.f32.mrb[44].mxu0  ;;  %v1584_v3 = vld [vmem:[#allocation2 + $0xe0] sm:$0xff]  ;;  %v1587_v39 = vld [vmem:[#allocation2 + $0xf8] sm:$0xff] }
 0x1de   : > { %1834 = vst.msk [vmem:[%s2740_s25 + $0x54] sm:$0xf] %vm1812_vm10, %v2037_v29  ;;  %v1618_v22 = vadd.f32 %v2199_v31, %v1586_v32  ;;  %v1541_v33 = vpop.f32.mrb[45].mxu0 }
 0x1df   : > { %v1678_v34 = vld [vmem:[#allocation2 + $0xd0] sm:$0xff]  ;;  %v1616_v35 = vadd.f32 %v1584_v3, %v1541_v33  ;;  %v2200_v38 = vpop.f32.mrb[46].mxu0  ;;  %v1585_v55 = vld [vmem:[#allocation2 + $0xe8] sm:$0xff] }
 0x1e0   : > { %v2042_v42 = vpack.c.bf16 %v1678_v34, %v1678_v34  ;;  %v1676_v40 = vld [vmem:[#allocation2 + $0xc0] sm:$0xff]  ;;  %1650 = vst.msk [vmem:[#allocation2 + $0xf0] sm:$0xff] %vm1081_vm9, %v1618_v22  ;;  %v1619_v41 = vadd.f32 %v2200_v38, %v1587_v39  ;;  %v1544_v43 = vpop.f32.mrb[47].mxu0 }
 0x1e1   : > { %v2040_v44 = vpack.c.bf16 %v1676_v40, %v1676_v40  ;;  %1648 = vst.msk [vmem:[#allocation2 + $0xe0] sm:$0xff] %vm1081_vm9, %v1616_v35  ;;  %v1617_v13 = vadd.f32 %v1585_v55, %v1544_v43 }
 0x1e2   : > { %v1679_v37 = vld [vmem:[#allocation2 + $0xd8] sm:$0xff]  ;;  %1839 = vst.msk [vmem:[%s2740_s25 + $0x68] sm:$0xf] %vm1812_vm10, %v2042_v42  ;;  %v1677_v46 = vld [vmem:[#allocation2 + $0xc8] sm:$0xff] }
 0x1e3   : > { %v2043_v45 = vpack.c.bf16 %v1679_v37, %v1679_v37  ;;  %1651 = vst.msk [vmem:[#allocation2 + $0xf8] sm:$0xff] %vm1081_vm9, %v1619_v41  ;;  %v2041_v50 = vpack.c.bf16 %v1677_v46, %v1677_v46  ;;  %1649 = vst.msk [vmem:[#allocation2 + $0xe8] sm:$0xff] %vm1081_vm9, %v1617_v13 }
 0x1e4   : > { %1837 = vst.msk [vmem:[%s2740_s25 + $0x60] sm:$0xf] %vm1812_vm10, %v2040_v44 }
 0x1e5   : > { %1840 = vst.msk [vmem:[%s2740_s25 + $0x6c] sm:$0xf] %vm1812_vm10, %v2043_v45  ;;  %1838 = vst.msk [vmem:[%s2740_s25 + $0x64] sm:$0xf] %vm1812_vm10, %v2041_v50 }
 0x1e7   : > { %v1682_v48 = vld [vmem:[#allocation2 + $0xf0] sm:$0xff] }
 0x1e8   : > { %v2046_v49 = vpack.c.bf16 %v1682_v48, %v1682_v48  ;;  %v1680_v51 = vld [vmem:[#allocation2 + $0xe0] sm:$0xff] }
 0x1e9   : > { %v2044_v52 = vpack.c.bf16 %v1680_v51, %v1680_v51 }
 0x1ea   : > { %v1683_v53 = vld [vmem:[#allocation2 + $0xf8] sm:$0xff]  ;;  %1843 = vst.msk [vmem:[%s2740_s25 + $0x78] sm:$0xf] %vm1812_vm10, %v2046_v49  ;;  %v1681_v61 = vld [vmem:[#allocation2 + $0xe8] sm:$0xff] }
 0x1eb   : > { %v2047_v56 = vpack.c.bf16 %v1683_v53, %v1683_v53  ;;  %1841 = vst.msk [vmem:[%s2740_s25 + $0x70] sm:$0xf] %vm1812_vm10, %v2044_v52  ;;  %v2045_v57 = vpack.c.bf16 %v1681_v61, %v1681_v61 }
 0x1ed   : > { %1844 = vst.msk [vmem:[%s2740_s25 + $0x7c] sm:$0xf] %vm1812_vm10, %v2047_v56  ;;  %1842 = vst.msk [vmem:[%s2740_s25 + $0x74] sm:$0xf] %vm1812_vm10, %v2045_v57 }
 0x1ee PF: > { %s12_s9 = sadd.s32 1, %s2243_s9  }
 0x1ef   : > { %p9_p4 = scmp.ge.s32.totalorder %s12_s9, 4  }
 0x1f1   :  { %11 = sbr.rel (!%p9_p4) target bundleno = 1 (0x1), region = 60 }

// kernel: resedown_forward.5
= control target key start
LH: loop header
LB: loop body
LE: loop exit
PB: predicated region body
PF: predicated region fallthrough
CT: control target
= control target key end

     0   :  { %s2725_s12 = smov 0   ;;  %s3443_s0 = inlined_call_operand.vmem [shape: bf16[2,16,16,32], index: 0, kind: input, shape index: {}]   ;;  %s3444_s1 = inlined_call_operand.vmem [shape: bf16[3,96,32], index: 1, kind: input, shape index: {}]   ;;  %s3445_s2 = inlined_call_operand.vmem [shape: bf16[2,16,16,32], index: 2, kind: output, shape index: {0}]   ;;  %s3446_s3 = inlined_call_operand.vmem [shape: f32[2,2,32], index: 3, kind: output, shape index: {1}]  }
   0x1 LB: > { %s2255_s13 = sadd.s32 4294967295, %s2700_s12   ;;  %p2259_p0 = scmp.ge.s32.totalorder %s2700_s12, 1  ;;  %s2700_s12 = sphi %s2725_s12, %s14_s12  }
   0x2   : > { %p140_p1 = scmp.lt.s32.totalorder %s2700_s12, 3 }
   0x4   : > { %p141_p2 = pnand %p2259_p0, %p140_p1 }
   0x5   : > { %vm448_vm0 = vcmask (!%p141_p2), 1040384   ;;  %vm449_vm1 = vsmask.f32 (!%p141_p2), 256  ;;  %v2702_v0 = vmov (!%p141_p2), 0   ;;  %p168_p3 = scmp.lt.s32.totalorder (!%p141_p2), %s2255_s13, 1  ;;  %v2675_v3 = vld [vmem:[%s3444_s1] sm:$0xff] (!%p141_p2)  }
   0x6   : > { %144 = sbr.rel (%p141_p2) target bundleno = 518 (0x206), region = 28  ;;  %v298_v1 = vrot.slane (!%p141_p2), %v2702_v0, 7  ;;  %vm2734_vm2 = vmand (!%p141_p2), %vm448_vm0, %vm449_vm1  ;;  %vm758_vm3 = vcmask (!%p141_p2), 1046528   ;;  %v2677_v6 = vld [vmem:[%s3444_s1 + $0x8] sm:$0xff] (!%p141_p2)   ;;  %2637 = vmatprep.subr.bf16.mxu1 (!%p141_p2), %v2675_v3  ;;  %2505 = vmatprep.subr.bf16.mxu0 (!%p141_p2), %v2675_v3  ;;  %v2678_v14 = vld [vmem:[%s3444_s1 + $0x10] sm:$0xff] (!%p141_p2)   ;;  %s2703_s24 = smov (!%p141_p2), 64  }
   0x7   : > { %2643 = vmatpush3.bf16.msra.mxu1 (!%p141_p2), %v2675_v3  ;;  %2506 = vmatpush3.bf16.msra.mxu0 (!%p141_p2), %v2675_v3  ;;  %vm485_vm4 = vsmask.f32 (!%p141_p2), 7424  ;;  %v2679_v18 = vld [vmem:[%s3444_s1 + $0x18] sm:$0xff] (!%p141_p2)   ;;  %s2704_s27 = smov (!%p141_p2), 32   ;;  %vm844_vm5 = vcmask (!%p141_p2), 261120   ;;  %vm879_vm6 = vcmask (!%p141_p2), 523264  }
   0x8   : > { %v2743_v4 = vsel (!%p141_p2), %vm2734_vm2, 0, %v298_v1  ;;  %v468_v5 = vsel (!%p141_p2), %vm2734_vm2, %v298_v1, 0  ;;  %2638 = vmatprep.subr.bf16.mxu1 (!%p141_p2), %v2677_v6  ;;  %2507 = vmatprep.subr.bf16.mxu0 (!%p141_p2), %v2677_v6  ;;  %vm962_vm7 = vcmask (!%p141_p2), 785408   ;;  %vm1962_vm8 = vcmask (!%p141_p2), 257024  }
   0x9   : > { %v487_v7 = vshrl.u32 (!%p141_p2), %v2743_v4, 16  ;;  %v489_v8 = vshll.u32 (!%p141_p2), %v2743_v4, 16  ;;  %v494_v9 = vshll.u32 (!%p141_p2), %v468_v5, 16  ;;  %v759_v10 = vrot.slane (!%p141_p2), %v2743_v4, 1 }
   0xa   : > { %v760_v11 = vrot.slane (!%p141_p2), %v468_v5, 1  ;;  %vm2167_vm9 = vcmask (!%p141_p2), 254976  }
   0xb   : > { %v491_v12 = vrot.slane (!%p141_p2), %v489_v8, 1  ;;  %v496_v13 = vrot.slane (!%p141_p2), %v494_v9, 1  ;;  %2644 = vmatpush3.bf16.msra.mxu1 (!%p141_p2), %v2677_v6  ;;  %2508 = vmatpush3.bf16.msra.mxu0 (!%p141_p2), %v2677_v6 }
   0xc   : > { %v761_v15 = vsel (!%p141_p2), %vm758_vm3, %v759_v10, %v760_v11  ;;  %2639 = vmatprep.subr.bf16.mxu1 (!%p141_p2), %v2678_v14  ;;  %2509 = vmatprep.subr.bf16.mxu0 (!%p141_p2), %v2678_v14 }
   0xd   : > { %s3450_s13 = smov (!%p168_p3, %s2255_s13), 1  ;;  %v492_v16 = vor.u32 %v491_v12, %v487_v7  ;;  %810 = vrot.lane.b32.xlu0 %v761_v15, %s2703_s24 }
   0xe   : > { %s2405_s18 = sshll.u32 %s3450_s13, 7 }
   0xf   : > { %s2765_s23 = scalar_lea.vmem %s3443_s0, %s2405_s18  ;;  %v497_v20 = vsel %vm485_vm4, %v492_v16, %v496_v13  ;;  %2645 = vmatpush3.bf16.msra.mxu1 %v2678_v14  ;;  %2510 = vmatpush3.bf16.msra.mxu0 %v2678_v14  ;;  %s3257_s7 = scalar_lea.vmem %s3445_s2, %s2405_s18 }
  0x10   : > { %v2660_v17 = vld [vmem:[%s2765_s23 + $0x48] sm:$0xff]   ;;  %v2661_v19 = vld [vmem:[%s2765_s23 + $0x38] sm:$0xff]   ;;  %690 = vrot.lane.b32.xlu1 %v497_v20, %s2704_s27  ;;  %v2662_v25 = vld [vmem:[%s2765_s23 + $0x50] sm:$0xff]   ;;  %2640 = vmatprep.subr.bf16.mxu1 %v2679_v18  ;;  %s2264_s18 = sshll.u32 %s3450_s13, 1 }
  0x11   : > { %v366_v21 = vshrl.u32 %v2660_v17, 16  ;;  %v369_v22 = vshll.u32 %v2660_v17, 16  ;;  %v352_v23 = vshrl.u32 %v2661_v19, 16  ;;  %v355_v24 = vshll.u32 %v2661_v19, 16  ;;  %v2663_v26 = vld [vmem:[%s2765_s23 + $0x40] sm:$0xff]   ;;  %2511 = vmatprep.subr.bf16.mxu0 %v2679_v18  ;;  %v2665_v15 = vld [vmem:[%s2765_s23 + $0x58] sm:$0xff]   ;;  %s181_s10 = scalar_lea.vmem %s3446_s3, %s2264_s18 }
  0x12   : > { %v2664_v28 = vld [vmem:[%s2765_s23] sm:$0xff]   ;;  %v373_v30 = vshrl.u32 %v2662_v25, 16  ;;  %v376_v31 = vshll.u32 %v2662_v25, 16  ;;  %v359_v32 = vshrl.u32 %v2663_v26, 16  ;;  %v362_v35 = vshll.u32 %v2663_v26, 16  ;;  %v2835_v25 = vld [vmem:[%s2765_s23 + $0x8] sm:$0xff]  }
  0x13   : > { %v368_v27 = vrot.slane %v366_v21, 7  ;;  %v354_v29 = vrot.slane %v352_v23, 7  ;;  %v303_v36 = vshrl.u32 %v2664_v28, 16  ;;  %2646 = vmatpush3.bf16.msra.mxu1 %v2679_v18  ;;  %2512 = vmatpush3.bf16.msra.mxu0 %v2679_v18  ;;  %v306_v0 = vshll.u32 %v2664_v28, 16  ;;  %v2666_v16 = vld [vmem:[%s2765_s23 + $0x60] sm:$0xff]  }
  0x14   : > { %v375_v40 = vrot.slane %v373_v30, 7  ;;  %v361_v43 = vrot.slane %v359_v32, 7 }
  0x15   : > { %v371_v33 = vor.u32 %v369_v22, %v368_v27  ;;  %v2780_v34 = vsel %vm2734_vm2, %v368_v27, 0  ;;  %v357_v38 = vor.u32 %v355_v24, %v354_v29  ;;  %v476_v39 = vsel %vm2734_vm2, %v354_v29, 0 }
  0x16   : > { %v790_v37 = vrot.slane %v2780_v34, 1  ;;  %v784_v42 = vrot.slane %v476_v39, 1  ;;  %v590_v44 = vshll.u32 %v476_v39, 16  ;;  %v378_v47 = vor.u32 %v376_v31, %v375_v40  ;;  %v2846_v39 = vld [vmem:[%s2765_s23 + $0x10] sm:$0xff]  }
  0x17   : > { %v2787_v41 = vsel %vm2734_vm2, 0, %v371_v33  ;;  %v2792_v46 = vsel %vm2734_vm2, 0, %v357_v38  ;;  %v479_v48 = vsel %vm2734_vm2, %v375_v40, 0  ;;  %v364_v51 = vor.u32 %v362_v35, %v361_v43 }
  0x18   : > { %v789_v45 = vrot.slane %v2787_v41, 1  ;;  %v783_v49 = vrot.slane %v2792_v46, 1  ;;  %v793_v50 = vrot.slane %v479_v48, 1  ;;  %v477_v52 = vsel %vm2734_vm2, %v361_v43, 0 }
  0x19   : > { %v2802_v54 = vsel %vm2734_vm2, 0, %v378_v47  ;;  %v787_v55 = vrot.slane %v477_v52, 1  ;;  %v583_v56 = vshrl.u32 %v2792_v46, 16  ;;  %v2810_v59 = vsel %vm2734_vm2, 0, %v364_v51 }
  0x1a   : > { %v791_v53 = vsel %vm758_vm3, %v789_v45, %v790_v37  ;;  %v785_v57 = vsel %vm758_vm3, %v783_v49, %v784_v42  ;;  %v792_v58 = vrot.slane %v2802_v54, 1  ;;  %v585_v60 = vshll.u32 %v2792_v46, 16 }
  0x1b   : > { %830 = vrot.lane.b32.xlu0 %v791_v53, %s2703_s24  ;;  %826 = vrot.lane.b32.xlu1 %v785_v57, %s2703_s24  ;;  %v786_v61 = vrot.slane %v2810_v59, 1  ;;  %v592_v62 = vrot.slane %v590_v44, 1  ;;  %v305_v63 = vrot.slane %v303_v36, 7  ;;  %v595_v5 = vshrl.u32 %v2810_v59, 16  ;;  %v2680_v53 = vld [vmem:[%s3444_s1 + $0x20] sm:$0xff]  }
  0x1c   : > { %v794_v1 = vsel %vm758_vm3, %v792_v58, %v793_v50  ;;  %v587_v3 = vrot.slane %v585_v60, 1  ;;  %v597_v6 = vshll.u32 %v2810_v59, 16  ;;  %v602_v10 = vshll.u32 %v477_v52, 16  ;;  %v2681_v60 = vld [vmem:[%s3444_s1 + $0x28] sm:$0xff]   ;;  %2641 = vmatprep.subr.bf16.mxu1 %v2680_v53  ;;  %2513 = vmatprep.subr.bf16.mxu0 %v2680_v53 }
  0x1d   : > { %v788_v7 = vsel %vm758_vm3, %v786_v61, %v787_v55  ;;  %v308_v8 = vor.u32 %v306_v0, %v305_v63  ;;  %v469_v9 = vsel %vm2734_vm2, %v305_v63, 0  ;;  %v619_v14 = vshrl.u32 %v2802_v54, 16  ;;  %2647 = vmatpush3.bf16.msra.mxu1 %v2680_v53  ;;  %2514 = vmatpush3.bf16.msra.mxu0 %v2680_v53 }
  0x1e   : > { %v588_v11 = vor.u32 %v587_v3, %v583_v56  ;;  %v763_v12 = vrot.slane %v469_v9, 1  ;;  %v599_v13 = vrot.slane %v597_v6, 1  ;;  %v604_v18 = vrot.slane %v602_v10, 1  ;;  %v2872_v6 = vld [vmem:[%s3444_s1 + $0x30] sm:$0xff]   ;;  %2642 = vmatprep.subr.bf16.mxu1 %v2681_v60  ;;  %2515 = vmatprep.subr.bf16.mxu0 %v2681_v60 }
  0x1f   : > { %832 = vrot.lane.b32.xlu0 %v794_v1, %s2703_s24  ;;  %828 = vrot.lane.b32.xlu1 %v788_v7, %s2703_s24  ;;  %v2828_v17 = vsel %vm2734_vm2, 0, %v308_v8  ;;  %v621_v19 = vshll.u32 %v2802_v54, 16  ;;  %v626_v20 = vshll.u32 %v479_v48, 16  ;;  %v607_v24 = vshrl.u32 %v2787_v41, 16 }
  0x20   : > { %v593_v21 = vsel %vm485_vm4, %v588_v11, %v592_v62  ;;  %v762_v22 = vrot.slane %v2828_v17, 1  ;;  %v600_v23 = vor.u32 %v599_v13, %v595_v5  ;;  %v609_v28 = vshll.u32 %v2787_v41, 16 }
  0x21   : > { %v623_v26 = vrot.slane %v621_v19, 1  ;;  %v628_v27 = vrot.slane %v626_v20, 1  ;;  %v614_v29 = vshll.u32 %v2780_v34, 16  ;;  %v499_v32 = vshrl.u32 %v2828_v17, 16  ;;  %2648 = vmatpush3.bf16.msra.mxu1 %v2681_v60  ;;  %2516 = vmatpush3.bf16.msra.mxu0 %v2681_v60 }
  0x22   : > { %v764_v30 = vsel %vm758_vm3, %v762_v22, %v763_v12  ;;  %v605_v31 = vsel %vm485_vm4, %v600_v23, %v604_v18  ;;  %v501_v33 = vshll.u32 %v2828_v17, 16  ;;  %v611_v36 = vrot.slane %v609_v28, 1  ;;  %v2669_v28 = vld [vmem:[%s2765_s23 + $0x68] sm:$0xff]   ;;  %2549 = vmatprep.subr.bf16.mxu1 %v2872_v6 }
  0x23   : > { %706 = vrot.lane.b32.xlu0 %v593_v21, %s2704_s27  ;;  %812 = vrot.lane.b32.xlu1 %v764_v30, %s2703_s24  ;;  %v624_v35 = vor.u32 %v623_v26, %v619_v14  ;;  %v616_v37 = vrot.slane %v614_v29, 1  ;;  %v506_v38 = vshll.u32 %v469_v9, 16  ;;  %v380_v34 = vshrl.u32 %v2665_v15, 16 }
  0x24   : > { %v503_v40 = vrot.slane %v501_v33, 1  ;;  %v383_v42 = vshll.u32 %v2665_v15, 16  ;;  %v387_v43 = vshrl.u32 %v2666_v16, 16  ;;  %v612_v45 = vor.u32 %v611_v36, %v607_v24 }
  0x25   : > { %v629_v44 = vsel %vm485_vm4, %v624_v35, %v628_v27  ;;  %v508_v47 = vrot.slane %v506_v38, 1  ;;  %v390_v48 = vshll.u32 %v2666_v16, 16  ;;  %v382_v50 = vrot.slane %v380_v34, 7 }
  0x26   : > { %v504_v49 = vor.u32 %v503_v40, %v499_v32  ;;  %v389_v51 = vrot.slane %v387_v43, 7  ;;  %v310_v52 = vshrl.u32 %v2835_v25, 16  ;;  %v617_v55 = vsel %vm485_vm4, %v612_v45, %v616_v37  ;;  %v2670_v37 = vld [vmem:[%s2765_s23 + $0x70] sm:$0xff]  }
  0x27   : > { %708 = vrot.lane.b32.xlu0 %v605_v31, %s2704_s27  ;;  %712 = vrot.lane.b32.xlu1 %v629_v44, %s2704_s27  ;;  %v313_v56 = vshll.u32 %v2835_v25, 16  ;;  %v317_v57 = vshrl.u32 %v2846_v39, 16  ;;  %v320_v58 = vshll.u32 %v2846_v39, 16  ;;  %v385_v62 = vor.u32 %v383_v42, %v382_v50  ;;  %v2671_v42 = vld [vmem:[%s2765_s23 + $0x18] sm:$0xff]  }
  0x28   : > { %v509_v61 = vsel %vm485_vm4, %v504_v49, %v508_v47  ;;  %v480_v63 = vsel %vm2734_vm2, %v382_v50, 0  ;;  %v392_v0 = vor.u32 %v390_v48, %v389_v51  ;;  %v2867_v3 = vsel %vm2734_vm2, %v389_v51, 0  ;;  %v2918_v48 = vld [vmem:[%s3444_s1 + $0x60] sm:$0xff]  }
  0x29   : > { %v638_v1 = vshll.u32 %v480_v63, 16  ;;  %v312_v5 = vrot.slane %v310_v52, 7  ;;  %v2877_v7 = vsel %vm2734_vm2, 0, %v385_v62  ;;  %v650_v9 = vshll.u32 %v2867_v3, 16  ;;  %2593 = vmatprep.subr.bf16.mxu0 %v2918_v48 }
  0x2a   : > { %v2881_v8 = vsel %vm2734_vm2, 0, %v392_v0  ;;  %v796_v10 = vrot.slane %v480_v63, 1  ;;  %v631_v11 = vshrl.u32 %v2877_v7, 16  ;;  %v633_v12 = vshll.u32 %v2877_v7, 16 }
  0x2b   : > { %710 = vrot.lane.b32.xlu0 %v617_v55, %s2704_s27  ;;  %692 = vrot.lane.b32.xlu1 %v509_v61, %s2704_s27  ;;  %v640_v13 = vrot.slane %v638_v1, 1  ;;  %v799_v14 = vrot.slane %v2867_v3, 1  ;;  %v643_v15 = vshrl.u32 %v2881_v8, 16  ;;  %v645_v16 = vshll.u32 %v2881_v8, 16  ;;  %v2672_v3 = vld [vmem:[%s2765_s23 + $0x20] sm:$0xff]  }
  0x2c   : > { %v795_v18 = vrot.slane %v2877_v7, 1  ;;  %v315_v19 = vor.u32 %v313_v56, %v312_v5  ;;  %v635_v20 = vrot.slane %v633_v12, 1  ;;  %v652_v21 = vrot.slane %v650_v9, 1 }
  0x2d   : > { %v470_v22 = vsel %vm2734_vm2, %v312_v5, 0  ;;  %v319_v23 = vrot.slane %v317_v57, 7  ;;  %v647_v24 = vrot.slane %v645_v16, 1  ;;  %v798_v27 = vrot.slane %v2881_v8, 1 }
  0x2e   : > { %v2895_v25 = vsel %vm2734_vm2, 0, %v315_v19  ;;  %v518_v26 = vshll.u32 %v470_v22, 16  ;;  %v636_v29 = vor.u32 %v635_v20, %v631_v11  ;;  %v797_v33 = vsel %vm758_vm3, %v795_v18, %v796_v10 }
  0x2f   : > { %v511_v30 = vshrl.u32 %v2895_v25, 16  ;;  %v513_v31 = vshll.u32 %v2895_v25, 16  ;;  %v648_v32 = vor.u32 %v647_v24, %v643_v15  ;;  %v322_v35 = vor.u32 %v320_v58, %v319_v23 }
  0x30   : > { %v471_v36 = vsel %vm2734_vm2, %v319_v23, 0  ;;  %v641_v38 = vsel %vm485_vm4, %v636_v29, %v640_v13  ;;  %v520_v40 = vrot.slane %v518_v26, 1  ;;  %v765_v45 = vrot.slane %v2895_v25, 1  ;;  %v2673_v26 = vld [vmem:[%s2765_s23 + $0x28] sm:$0xff]  }
  0x31   : > { %v515_v39 = vrot.slane %v513_v31, 1  ;;  %v530_v34 = vshll.u32 %v471_v36, 16  ;;  %714 = vrot.lane.b32.xlu0 %v641_v38, %s2704_s27  ;;  %v653_v43 = vsel %vm485_vm4, %v648_v32, %v652_v21  ;;  %v2912_v44 = vsel %vm2734_vm2, 0, %v322_v35 }
  0x32   : > { %v766_v47 = vrot.slane %v470_v22, 1  ;;  %716 = vrot.lane.b32.xlu1 %v653_v43, %s2704_s27  ;;  %v523_v50 = vshrl.u32 %v2912_v44, 16  ;;  %v525_v51 = vshll.u32 %v2912_v44, 16  ;;  %v769_v52 = vrot.slane %v471_v36, 1 }
  0x33   : > { %v516_v49 = vor.u32 %v515_v39, %v511_v30  ;;  %v532_v53 = vrot.slane %v530_v34, 1  ;;  %v768_v55 = vrot.slane %v2912_v44, 1  ;;  %v394_v56 = vshrl.u32 %v2669_v28, 16 }
  0x34   : > { %v397_v57 = vshll.u32 %v2669_v28, 16  ;;  %v527_v60 = vrot.slane %v525_v51, 1  ;;  %v401_v61 = vshrl.u32 %v2670_v37, 16  ;;  %v404_v62 = vshll.u32 %v2670_v37, 16 }
  0x35   : > { %v521_v58 = vsel %vm485_vm4, %v516_v49, %v520_v40  ;;  %834 = vrot.lane.b32.xlu0 %v797_v33, %s2703_s24  ;;  %v396_v63 = vrot.slane %v394_v56, 7  ;;  %v324_v0 = vshrl.u32 %v2671_v42, 16  ;;  %v327_v1 = vshll.u32 %v2671_v42, 16 }
  0x36   : > { %694 = vrot.lane.b32.xlu1 %v521_v58, %s2704_s27  ;;  %v800_v5 = vsel %vm758_vm3, %v798_v27, %v799_v14  ;;  %v528_v9 = vor.u32 %v527_v60, %v523_v50  ;;  %v767_v10 = vsel %vm758_vm3, %v765_v45, %v766_v47  ;;  %v403_v11 = vrot.slane %v401_v61, 7  ;;  %v2674_v60 = vld [vmem:[%s2765_s23 + $0x30] sm:$0xff]  }
  0x37   : > { %v770_v12 = vsel %vm758_vm3, %v768_v55, %v769_v52  ;;  %v399_v13 = vor.u32 %v397_v57, %v396_v63  ;;  %v482_v15 = vsel %vm2734_vm2, %v396_v63, 0  ;;  %v326_v16 = vrot.slane %v324_v0, 7 }
  0x38   : > { %v533_v18 = vsel %vm485_vm4, %v528_v9, %v532_v53  ;;  %v662_v19 = vshll.u32 %v482_v15, 16  ;;  %v406_v20 = vor.u32 %v404_v62, %v403_v11  ;;  %v483_v21 = vsel %vm2734_vm2, %v403_v11, 0 }
  0x39   : > { %836 = vrot.lane.b32.xlu0 %v800_v5, %s2703_s24  ;;  %v2940_v14 = vsel %vm2734_vm2, 0, %v399_v13  ;;  %v674_v22 = vshll.u32 %v483_v21, 16  ;;  %v329_v23 = vor.u32 %v327_v1, %v326_v16  ;;  %v331_v24 = vshrl.u32 %v2672_v3, 16 }
  0x3a   : > { %696 = vrot.lane.b32.xlu1 %v533_v18, %s2704_s27  ;;  %v655_v27 = vshrl.u32 %v2940_v14, 16  ;;  %v657_v28 = vshll.u32 %v2940_v14, 16  ;;  %v2948_v29 = vsel %vm2734_vm2, 0, %v406_v20  ;;  %v334_v30 = vshll.u32 %v2672_v3, 16 }
  0x3b   : > { %v664_v31 = vrot.slane %v662_v19, 1  ;;  %v667_v32 = vshrl.u32 %v2948_v29, 16  ;;  %v669_v33 = vshll.u32 %v2948_v29, 16  ;;  %v802_v35 = vrot.slane %v482_v15, 1 }
  0x3c   : > { %v659_v36 = vrot.slane %v657_v28, 1  ;;  %v676_v37 = vrot.slane %v674_v22, 1  ;;  %v2954_v38 = vsel %vm2734_vm2, 0, %v329_v23  ;;  %v2958_v39 = vsel %vm2734_vm2, %v326_v16, 0 }
  0x3d   : > { %814 = vrot.lane.b32.xlu0 %v767_v10, %s2703_s24  ;;  %v671_v40 = vrot.slane %v669_v33, 1  ;;  %v801_v34 = vrot.slane %v2940_v14, 1  ;;  %v535_v42 = vshrl.u32 %v2954_v38, 16  ;;  %v537_v43 = vshll.u32 %v2954_v38, 16  ;;  %v2676_v10 = vld [vmem:[%s2765_s23 + $0x78] sm:$0xff]  }
  0x3e   : > { %816 = vrot.lane.b32.xlu1 %v770_v12, %s2703_s24  ;;  %v660_v45 = vor.u32 %v659_v36, %v655_v27  ;;  %v542_v47 = vshll.u32 %v2958_v39, 16  ;;  %v333_v49 = vrot.slane %v331_v24, 7  ;;  %v338_v50 = vshrl.u32 %v2673_v26, 16 }
  0x3f   : > { %v672_v51 = vor.u32 %v671_v40, %v667_v32  ;;  %v539_v52 = vrot.slane %v537_v43, 1  ;;  %v804_v53 = vrot.slane %v2948_v29, 1  ;;  %v805_v57 = vrot.slane %v483_v21, 1 }
  0x40   : > { %v665_v55 = vsel %vm485_vm4, %v660_v45, %v664_v31  ;;  %v544_v56 = vrot.slane %v542_v47, 1  ;;  %v336_v58 = vor.u32 %v334_v30, %v333_v49  ;;  %v803_v62 = vsel %vm758_vm3, %v801_v34, %v802_v35 }
  0x41   : > { %718 = vrot.lane.b32.xlu0 %v665_v55, %s2704_s27  ;;  %v677_v61 = vsel %vm485_vm4, %v672_v51, %v676_v37  ;;  %v540_v63 = vor.u32 %v539_v52, %v535_v42  ;;  %v473_v0 = vsel %vm2734_vm2, %v333_v49, 0  ;;  %v771_v5 = vrot.slane %v2954_v38, 1 }
  0x42   : > { %720 = vrot.lane.b32.xlu1 %v677_v61, %s2704_s27  ;;  %v2977_v1 = vsel %vm2734_vm2, 0, %v336_v58  ;;  %v554_v3 = vshll.u32 %v473_v0, 16  ;;  %v340_v9 = vrot.slane %v338_v50, 7  ;;  %v772_v15 = vrot.slane %v2958_v39, 1 }
  0x43   : > { %v545_v11 = vsel %vm485_vm4, %v540_v63, %v544_v56  ;;  %v547_v12 = vshrl.u32 %v2977_v1, 16  ;;  %v549_v13 = vshll.u32 %v2977_v1, 16  ;;  %v806_v16 = vsel %vm758_vm3, %v804_v53, %v805_v57 }
  0x44   : > { %v341_v18 = vshll.u32 %v2673_v26, 16  ;;  %v474_v19 = vsel %vm2734_vm2, %v340_v9, 0  ;;  %v345_v20 = vshrl.u32 %v2674_v60, 16  ;;  %v556_v22 = vrot.slane %v554_v3, 1 }
  0x45   : > { %838 = vrot.lane.b32.xlu0 %v803_v62, %s2703_s24  ;;  %v551_v21 = vrot.slane %v549_v13, 1  ;;  %v775_v23 = vrot.slane %v473_v0, 1  ;;  %v348_v24 = vshll.u32 %v2674_v60, 16  ;;  %v774_v27 = vrot.slane %v2977_v1, 1 }
  0x46   : > { %698 = vrot.lane.b32.xlu1 %v545_v11, %s2704_s27  ;;  %v343_v28 = vor.u32 %v341_v18, %v340_v9  ;;  %v347_v30 = vrot.slane %v345_v20, 7  ;;  %v408_v31 = vshrl.u32 %v2676_v10, 16  ;;  %v566_v33 = vshll.u32 %v474_v19, 16 }
  0x47   : > { %v552_v32 = vor.u32 %v551_v21, %v547_v12  ;;  %v411_v26 = vshll.u32 %v2676_v10, 16  ;;  %v773_v45 = vsel %vm758_vm3, %v771_v5, %v772_v15  ;;  %v776_v47 = vsel %vm758_vm3, %v774_v27, %v775_v23 }
  0x48   : > { %v2993_v35 = vsel %vm2734_vm2, 0, %v343_v28  ;;  %v350_v36 = vor.u32 %v348_v24, %v347_v30  ;;  %v475_v37 = vsel %vm2734_vm2, %v347_v30, 0  ;;  %v410_v39 = vrot.slane %v408_v31, 7 }
  0x49   : > { %840 = vrot.lane.b32.xlu0 %v806_v16, %s2703_s24  ;;  %v557_v40 = vsel %vm485_vm4, %v552_v32, %v556_v22  ;;  %v559_v34 = vshrl.u32 %v2993_v35, 16  ;;  %v561_v42 = vshll.u32 %v2993_v35, 16  ;;  %v578_v43 = vshll.u32 %v475_v37, 16 }
  0x4a   : > { %700 = vrot.lane.b32.xlu1 %v557_v40, %s2704_s27  ;;  %v3006_v49 = vsel %vm2734_vm2, 0, %v350_v36  ;;  %v413_v50 = vor.u32 %v411_v26, %v410_v39  ;;  %v568_v52 = vrot.slane %v566_v33, 1  ;;  %v778_v56 = vrot.slane %v474_v19, 1 }
  0x4b   : > { %v563_v51 = vrot.slane %v561_v42, 1  ;;  %v571_v53 = vshrl.u32 %v3006_v49, 16  ;;  %v573_v55 = vshll.u32 %v3006_v49, 16  ;;  %v484_v58 = vsel %vm2734_vm2, %v410_v39, 0 }
  0x4c   : > { %v3012_v57 = vsel %vm2734_vm2, 0, %v413_v50  ;;  %v580_v62 = vrot.slane %v578_v43, 1  ;;  %v777_v0 = vrot.slane %v2993_v35, 1  ;;  %v781_v3 = vrot.slane %v475_v37, 1  ;;  %v2683_v43 = vld [vmem:[%s3444_s1 + $0x38] sm:$0xff]  }
  0x4d   : > { %818 = vrot.lane.b32.xlu0 %v773_v45, %s2703_s24  ;;  %v564_v60 = vor.u32 %v563_v51, %v559_v34  ;;  %v575_v61 = vrot.slane %v573_v55, 1  ;;  %v681_v63 = vshll.u32 %v3012_v57, 16  ;;  %v679_v5 = vshrl.u32 %v3012_v57, 16 }
  0x4e   : > { %820 = vrot.lane.b32.xlu1 %v776_v47, %s2703_s24  ;;  %v686_v9 = vshll.u32 %v484_v58, 16  ;;  %v780_v2 = vrot.slane %v3006_v49, 1  ;;  %v779_v15 = vsel %vm758_vm3, %v777_v0, %v778_v56  ;;  %v807_v20 = vrot.slane %v3012_v57, 1 }
  0x4f   : > { %v569_v10 = vsel %vm485_vm4, %v564_v60, %v568_v52  ;;  %v576_v11 = vor.u32 %v575_v61, %v571_v53  ;;  %v683_v12 = vrot.slane %v681_v63, 1  ;;  %v808_v21 = vrot.slane %v484_v58, 1  ;;  %v2687_v53 = vld [vmem:[%s3444_s1 + $0x68] sm:$0xff]   ;;  %v2691_v60 = vld [vmem:[%s3444_s1 + $0x78] sm:$0xff]  }
  0x50   : > { %v688_v18 = vrot.slane %v686_v9, 1  ;;  %v782_v19 = vsel %vm758_vm3, %v780_v2, %v781_v3  ;;  %v2690_v3 = vld [vmem:[%s3444_s1 + $0x58] sm:$0xff]   ;;  %v2693_v2 = vld [vmem:[%s3444_s1 + $0x88] sm:$0xff]  }
  0x51   : > { %702 = vrot.lane.b32.xlu0 %v569_v10, %s2704_s27  ;;  %v581_v13 = vsel %vm485_vm4, %v576_v11, %v580_v62  ;;  %v684_v16 = vor.u32 %v683_v12, %v679_v5  ;;  %v809_v23 = vsel %vm758_vm3, %v807_v20, %v808_v21 }
  0x52   : > { %704 = vrot.lane.b32.xlu1 %v581_v13, %s2704_s27 }
  0x53   : > { %v689_v22 = vsel %vm485_vm4, %v684_v16, %v688_v18 }
  0x55   : > { %822 = vrot.lane.b32.xlu0 %v779_v15, %s2703_s24 }
  0x56   : > { %824 = vrot.lane.b32.xlu1 %v782_v19, %s2703_s24 }
  0x59   : > { %722 = vrot.lane.b32.xlu0 %v689_v22, %s2704_s27 }
  0x5a   : > { %842 = vrot.lane.b32.xlu1 %v809_v23, %s2703_s24 }
  0x7f   : > { %v811_v24 = vpop.permute.xlu0 %810 }
  0x82   : > { %v691_v27 = vpop.permute.xlu1 %690 }
  0x83   : > { %v846_v28 = vsel %vm844_vm5, %v2743_v4, %v691_v27 }
  0x84   : > { %v3038_v30 = vsel %vm879_vm6, %v846_v28, %v811_v24 }
  0x85   : > { %2517 = vmatprep.mubr.msk.bf16.mxu0 %vm962_vm7, %v3038_v30 }
  0x8d   : > { %v831_v31 = vpop.permute.xlu0 %830  ;;  %v827_v32 = vpop.permute.xlu1 %826 }
  0x91   : > { %v833_v33 = vpop.permute.xlu0 %832  ;;  %v829_v26 = vpop.permute.xlu1 %828 }
  0x95   : > { %v707_v36 = vpop.permute.xlu0 %706  ;;  %v813_v39 = vpop.permute.xlu1 %812 }
  0x96   : > { %v862_v37 = vsel %vm844_vm5, %v2792_v46, %v707_v36 }
  0x97   : > { %v3045_v40 = vsel %vm879_vm6, %v862_v37, %v827_v32 }
  0x98   : > { %2533 = vmatprep.mubr.msk.bf16.mxu1 %vm962_vm7, %v3045_v40 }
  0x99   : > { %v709_v4 = vpop.permute.xlu0 %708  ;;  %v713_v42 = vpop.permute.xlu1 %712 }
  0x9a   : > { %v864_v34 = vsel %vm844_vm5, %v2810_v59, %v709_v4  ;;  %v2685_v59 = vld [vmem:[%s3444_s1 + $0x40] sm:$0xff]  }
  0x9b   : > { %v3055_v45 = vsel %vm879_vm6, %v864_v34, %v829_v26 }
  0x9c   : > { %2534 = vmatmul.mubr.msk.bf16.vlgmr.msra.gmra.mrb[0].mxu1 %vm962_vm7, %v3055_v45 }
  0x9d   : > { %v711_v46 = vpop.permute.xlu0 %710  ;;  %2550 = vmatpush3.bf16.msra.mxu1 %v2872_v6  ;;  %v693_v50 = vpop.permute.xlu1 %692  ;;  %v868_v6 = vsel %vm844_vm5, %v2802_v54, %v713_v42  ;;  %v2688_v54 = vld [vmem:[%s3444_s1 + $0x70] sm:$0xff]  }
  0x9e   : > { %v866_v47 = vsel %vm844_vm5, %v2787_v41, %v711_v46  ;;  %2551 = vmatprep.subr.bf16.mxu1 %v2683_v43  ;;  %v848_v51 = vsel %vm844_vm5, %v2828_v17, %v693_v50  ;;  %v2686_v17 = vld [vmem:[%s3444_s1 + $0x48] sm:$0xff]   ;;  %v3087_v55 = vsel %vm879_vm6, %v868_v6, %v833_v33 }
  0x9f   : > { %v3068_v52 = vsel %vm879_vm6, %v866_v47, %v831_v31  ;;  %v3076_v41 = vsel %vm879_vm6, %v848_v51, %v813_v39 }
  0xa0   : > { %2537 = vmatprep.mubr.msk.bf16.mxu1 %vm962_vm7, %v3068_v52  ;;  %2518 = vmatmul.mubr.msk.bf16.vlgmr.msra.gmra.mrb[0].mxu0 %vm962_vm7, %v3076_v41 }
  0xa1   : > { %2552 = vmatpush3.bf16.msra.mxu1 %v2683_v43  ;;  %2594 = vmatpush3.bf16.msra.mxu0 %v2918_v48  ;;  %v2689_v48 = vld [vmem:[%s3444_s1 + $0x50] sm:$0xff]  }
  0xa2   : > { %2553 = vmatprep.subr.bf16.mxu1 %v2685_v59  ;;  %2595 = vmatprep.subr.bf16.mxu0 %v2687_v53 }
  0xa3   : > { %v715_v56 = vpop.permute.xlu0 %714 }
  0xa4   : > { %2538 = vmatmul.mubr.msk.bf16.gmra.mrb[4].mxu1 %vm962_vm7, %v3087_v55  ;;  %v717_v58 = vpop.permute.xlu1 %716  ;;  %v870_v61 = vsel %vm844_vm5, %v2877_v7, %v715_v56  ;;  %v2692_v7 = vld [vmem:[%s3444_s1 + $0x80] sm:$0xff]  }
  0xa5   : > { %2554 = vmatpush3.bf16.msra.mxu1 %v2685_v59  ;;  %2596 = vmatpush3.bf16.msra.mxu0 %v2687_v53  ;;  %v872_v5 = vsel %vm844_vm5, %v2881_v8, %v717_v58 }
  0xa6   : > { %2555 = vmatprep.subr.bf16.mxu1 %v2686_v17  ;;  %2597 = vmatprep.subr.bf16.mxu0 %v2688_v54 }
  0xa7   : > { %v835_v62 = vpop.permute.xlu0 %834 }
  0xa8   : > { %v3103_v63 = vsel %vm879_vm6, %v870_v61, %v835_v62  ;;  %v695_v0 = vpop.permute.xlu1 %694 }
  0xa9   : > { %2556 = vmatpush3.bf16.msra.mxu1 %v2686_v17  ;;  %2598 = vmatpush3.bf16.msra.mxu0 %v2688_v54  ;;  %v850_v12 = vsel %vm844_vm5, %v2895_v25, %v695_v0 }
  0xaa   : > { %2557 = vmatprep.subr.bf16.mxu1 %v2689_v48  ;;  %2541 = vmatprep.mubr.msk.bf16.mxu1 %vm962_vm7, %v3103_v63 }
  0xab   : > { %2599 = vmatprep.subr.bf16.mxu0 %v2691_v60  ;;  %v837_v9 = vpop.permute.xlu0 %836 }
  0xac   : > { %v3116_v10 = vsel %vm879_vm6, %v872_v5, %v837_v9  ;;  %v697_v11 = vpop.permute.xlu1 %696 }
  0xad   : > { %2558 = vmatpush3.bf16.msra.mxu1 %v2689_v48  ;;  %2600 = vmatpush3.bf16.msra.mxu0 %v2691_v60  ;;  %v852_v13 = vsel %vm844_vm5, %v2912_v44, %v697_v11 }
  0xae   : > { %2559 = vmatprep.subr.bf16.mxu1 %v2690_v3  ;;  %2542 = vmatmul.mubr.msk.bf16.gmra.mrb[8].mxu1 %vm962_vm7, %v3116_v10 }
  0xaf   : > { %2601 = vmatprep.subr.bf16.mxu0 %v2692_v7  ;;  %v815_v8 = vpop.permute.xlu0 %814 }
  0xb0   : > { %v885_v15 = vsel %vm879_vm6, %v850_v12, %v815_v8  ;;  %v817_v16 = vpop.permute.xlu1 %816 }
  0xb1   : > { %2560 = vmatpush3.bf16.msra.mxu1 %v2690_v3  ;;  %2602 = vmatpush3.bf16.msra.mxu0 %v2692_v7  ;;  %v887_v18 = vsel %vm879_vm6, %v852_v13, %v817_v16 }
  0xb2   : > { %2521 = vmatprep.mubr.msk.bf16.mxu0 %vm962_vm7, %v885_v15  ;;  %2603 = vmatprep.subr.bf16.mxu0 %v2693_v2 }
  0xb3   : > { %2522 = vmatmul.mubr.msk.bf16.gmra.mrb[4].mxu0 %vm962_vm7, %v887_v18  ;;  %v719_v19 = vpop.permute.xlu0 %718 }
  0xb4   : > { %v721_v20 = vpop.permute.xlu1 %720  ;;  %v874_v25 = vsel %vm844_vm5, %v2940_v14, %v719_v19 }
  0xb5   : > { %2604 = vmatpush3.bf16.msra.mxu0 %v2693_v2  ;;  %v876_v23 = vsel %vm844_vm5, %v2948_v29, %v721_v20 }
  0xb7   : > { %v839_v21 = vpop.permute.xlu0 %838 }
  0xb8   : > { %v909_v44 = vsel %vm879_vm6, %v874_v25, %v839_v21  ;;  %v699_v22 = vpop.permute.xlu1 %698 }
  0xb9   : > { %2545 = vmatprep.mubr.msk.bf16.mxu1 %vm962_vm7, %v909_v44  ;;  %v854_v14 = vsel %vm844_vm5, %v2954_v38, %v699_v22 }
  0xbb   : > { %v841_v24 = vpop.permute.xlu0 %840 }
  0xbc   : > { %v911_v27 = vsel %vm879_vm6, %v876_v23, %v841_v24  ;;  %v701_v28 = vpop.permute.xlu1 %700 }
  0xbd   : > { %2546 = vmatmul.mubr.msk.bf16.gmra.mrb[12].mxu1 %vm962_vm7, %v911_v27  ;;  %v856_v32 = vsel %vm844_vm5, %v2977_v1, %v701_v28 }
  0xbe   : > { %2561 = vmatprep.mubr.msk.bf16.mxu1 %vm962_vm7, %v3076_v41 }
  0xbf   : > { %v819_v31 = vpop.permute.xlu0 %818 }
  0xc0   : > { %v889_v33 = vsel %vm879_vm6, %v854_v14, %v819_v31  ;;  %v821_v26 = vpop.permute.xlu1 %820 }
  0xc1   : > { %v891_v29 = vsel %vm879_vm6, %v856_v32, %v821_v26  ;;  %2525 = vmatprep.mubr.msk.bf16.mxu0 %vm962_vm7, %v889_v33 }
  0xc2   : > { %2526 = vmatmul.mubr.msk.bf16.gmra.mrb[8].mxu0 %vm962_vm7, %v891_v29 }
  0xc3   : > { %v703_v36 = vpop.permute.xlu0 %702 }
  0xc4   : > { %v705_v37 = vpop.permute.xlu1 %704  ;;  %v858_v38 = vsel %vm844_vm5, %v2993_v35, %v703_v36 }
  0xc5   : > { %2562 = vmatmul.mubr.msk.bf16.vlgmr.msra.gmra.mrb[16].mxu1 %vm962_vm7, %v885_v15  ;;  %v860_v1 = vsel %vm844_vm5, %v3006_v49, %v705_v37 }
  0xc6   : > { %2565 = vmatprep.mubr.msk.bf16.mxu1 %vm962_vm7, %v887_v18 }
  0xc7   : > { %v823_v39 = vpop.permute.xlu0 %822 }
  0xc8   : > { %v893_v4 = vsel %vm879_vm6, %v858_v38, %v823_v39  ;;  %v825_v34 = vpop.permute.xlu1 %824 }
  0xc9   : > { %v895_v42 = vsel %vm879_vm6, %v860_v1, %v825_v34  ;;  %2529 = vmatprep.mubr.msk.bf16.mxu0 %vm962_vm7, %v893_v4 }
  0xca   : > { %2530 = vmatmul.mubr.msk.bf16.gmra.mrb[12].mxu0 %vm962_vm7, %v895_v42 }
  0xcb   : > { %2605 = vmatprep.mubr.msk.bf16.mxu0 %vm962_vm7, %v885_v15  ;;  %v723_v35 = vpop.permute.xlu0 %722 }
  0xcc   : > { %v878_v49 = vsel %vm844_vm5, %v3012_v57, %v723_v35 }
  0xcd   : > { %2566 = vmatmul.mubr.msk.bf16.gmra.mrb[20].mxu1 %vm962_vm7, %v889_v33 }
  0xce   : > { %2569 = vmatprep.mubr.msk.bf16.mxu1 %vm962_vm7, %v891_v29 }
  0xd2   : > { %2606 = vmatmul.mubr.msk.bf16.vlgmr.msra.gmra.mrb[16].mxu0 %vm962_vm7, %v887_v18 }
  0xd3   : > { %2609 = vmatprep.mubr.msk.bf16.mxu0 %vm962_vm7, %v889_v33 }
  0xd5   : > { %2570 = vmatmul.mubr.msk.bf16.gmra.mrb[24].mxu1 %vm962_vm7, %v893_v4 }
  0xd6   : > { %2573 = vmatprep.mubr.msk.bf16.mxu1 %vm962_vm7, %v895_v42 }
  0xda   : > { %2610 = vmatmul.mubr.msk.bf16.gmra.mrb[20].mxu0 %vm962_vm7, %v891_v29 }
  0xdb   : > { %2613 = vmatprep.mubr.msk.bf16.mxu0 %vm962_vm7, %v893_v4 }
  0xdd   : > { %2574 = vmatmul.mubr.msk.bf16.gmra.mrb[28].mxu1 %vm962_vm7, %v3045_v40 }
  0xde   : > { %2577 = vmatprep.mubr.msk.bf16.mxu1 %vm962_vm7, %v3055_v45 }
  0xe2   : > { %2614 = vmatmul.mubr.msk.bf16.gmra.mrb[24].mxu0 %vm962_vm7, %v895_v42 }
  0xe3   : > { %2617 = vmatprep.mubr.msk.bf16.mxu0 %vm962_vm7, %v3045_v40  ;;  %v843_v40 = vpop.permute.xlu1 %842 }
  0xe4   : > { %v913_v43 = vsel %vm879_vm6, %v878_v49, %v843_v40 }
  0xe5   : > { %2578 = vmatmul.mubr.msk.bf16.gmra.mrb[32].mxu1 %vm962_vm7, %v3068_v52 }
  0xe6   : > { %2581 = vmatprep.mubr.msk.bf16.mxu1 %vm962_vm7, %v3087_v55 }
  0xea   : > { %2618 = vmatmul.mubr.msk.bf16.gmra.mrb[28].mxu0 %vm962_vm7, %v3055_v45 }
  0xeb   : > { %2621 = vmatprep.mubr.msk.bf16.mxu0 %vm962_vm7, %v3068_v52 }
  0xed   : > { %2582 = vmatmul.mubr.msk.bf16.gmra.mrb[36].mxu1 %vm962_vm7, %v3103_v63 }
  0xee   : > { %2585 = vmatprep.mubr.msk.bf16.mxu1 %vm962_vm7, %v3116_v10 }
  0xf2   : > { %2622 = vmatmul.mubr.msk.bf16.gmra.mrb[32].mxu0 %vm962_vm7, %v3087_v55 }
  0xf3   : > { %2625 = vmatprep.mubr.msk.bf16.mxu0 %vm962_vm7, %v3103_v63 }
  0xf5   : > { %2586 = vmatmul.mubr.msk.bf16.gmra.mrb[40].mxu1 %vm962_vm7, %v909_v44 }
  0xf6   : > { %2589 = vmatprep.mubr.msk.bf16.mxu1 %vm962_vm7, %v911_v27 }
  0xfa   : > { %2626 = vmatmul.mubr.msk.bf16.gmra.mrb[36].mxu0 %vm962_vm7, %v3116_v10 }
  0xfb   : > { %2629 = vmatprep.mubr.msk.bf16.mxu0 %vm962_vm7, %v909_v44 }
  0xfd   : > { %2590 = vmatmul.mubr.msk.bf16.gmra.mrb[44].mxu1 %vm962_vm7, %v913_v43 }
 0x102   : > { %2630 = vmatmul.mubr.msk.bf16.gmra.mrb[40].mxu0 %vm962_vm7, %v911_v27 }
 0x103   : > { %2633 = vmatprep.mubr.msk.bf16.mxu0 %vm962_vm7, %v913_v43 }
 0x10a   : > { %2634 = vmatmul.mubr.msk.bf16.gmra.mrb[44].mxu0 %vm962_vm7, %v3038_v30 }
 0x16f   : > { %v2535_v45 = vpop.f32.mrb[0].mxu1 }
 0x170   : > { %1174 = vst.msk [vmem:[#allocation2 + $0x90] sm:$0xff] %vm844_vm5, %v2535_v45  ;;  %v1093_v57 = vpop.f32.mrb[1].mxu1 }
 0x171   : > { %1172 = vst.msk [vmem:[#allocation2 + $0x80] sm:$0xff] %vm844_vm5, %v1093_v57  ;;  %v2536_v46 = vpop.f32.mrb[2].mxu1 }
 0x172   : > { %1175 = vst.msk [vmem:[#allocation2 + $0x98] sm:$0xff] %vm844_vm5, %v2536_v46  ;;  %v1096_v47 = vpop.f32.mrb[3].mxu1 }
 0x173   : > { %1173 = vst.msk [vmem:[#allocation2 + $0x88] sm:$0xff] %vm844_vm5, %v1096_v47  ;;  %v2519_v50 = vpop.f32.mrb[0].mxu0 }
 0x174   : > { %1158 = vst.msk [vmem:[#allocation2 + $0x10] sm:$0xff] %vm844_vm5, %v2519_v50  ;;  %v1029_v59 = vpop.f32.mrb[1].mxu0 }
 0x175   : > { %1156 = vst.msk [vmem:[#allocation2] sm:$0xff] %vm844_vm5, %v1029_v59  ;;  %v2520_v51 = vpop.f32.mrb[2].mxu0 }
 0x176   : > { %1159 = vst.msk [vmem:[#allocation2 + $0x18] sm:$0xff] %vm844_vm5, %v2520_v51  ;;  %v1032_v30 = vpop.f32.mrb[3].mxu0 }
 0x177   : > { %v2539_v52 = vpop.f32.mrb[4].mxu1  ;;  %1157 = vst.msk [vmem:[#allocation2 + $0x8] sm:$0xff] %vm844_vm5, %v1032_v30 }
 0x178   : > { %1178 = vst.msk [vmem:[#allocation2 + $0xb0] sm:$0xff] %vm844_vm5, %v2539_v52  ;;  %v1109_v53 = vpop.f32.mrb[5].mxu1 }
 0x179   : > { %1176 = vst.msk [vmem:[#allocation2 + $0xa0] sm:$0xff] %vm844_vm5, %v1109_v53  ;;  %v2540_v6 = vpop.f32.mrb[6].mxu1 }
 0x17a   : > { %1179 = vst.msk [vmem:[#allocation2 + $0xb8] sm:$0xff] %vm844_vm5, %v2540_v6  ;;  %v1112_v41 = vpop.f32.mrb[7].mxu1 }
 0x17b   : > { %1177 = vst.msk [vmem:[#allocation2 + $0xa8] sm:$0xff] %vm844_vm5, %v1112_v41  ;;  %v1402_v2 = vld [vmem:[#allocation2 + $0x10] sm:$0xff] }
 0x17c   : > { %v1400_v13 = vld [vmem:[#allocation2] sm:$0xff] }
 0x17d   : > { %v1403_v18 = vld [vmem:[#allocation2 + $0x18] sm:$0xff] }
 0x17e   : > { %v1401_v25 = vld [vmem:[#allocation2 + $0x8] sm:$0xff] }
 0x181   : > { %v2543_v17 = vpop.f32.mrb[8].mxu1 }
 0x182   : > { %1182 = vst.msk [vmem:[#allocation2 + $0xd0] sm:$0xff] %vm844_vm5, %v2543_v17  ;;  %v1125_v55 = vpop.f32.mrb[9].mxu1 }
 0x183   : > { %1180 = vst.msk [vmem:[#allocation2 + $0xc0] sm:$0xff] %vm844_vm5, %v1125_v55  ;;  %v2544_v54 = vpop.f32.mrb[10].mxu1 }
 0x184   : > { %1183 = vst.msk [vmem:[#allocation2 + $0xd8] sm:$0xff] %vm844_vm5, %v2544_v54  ;;  %v1128_v56 = vpop.f32.mrb[11].mxu1 }
 0x185   : > { %1181 = vst.msk [vmem:[#allocation2 + $0xc8] sm:$0xff] %vm844_vm5, %v1128_v56 }
 0x186   : > { %v2523_v58 = vpop.f32.mrb[4].mxu0 }
 0x187   : > { %1162 = vst.msk [vmem:[#allocation2 + $0x30] sm:$0xff] %vm844_vm5, %v2523_v58  ;;  %v1045_v48 = vpop.f32.mrb[5].mxu0 }
 0x188   : > { %1160 = vst.msk [vmem:[#allocation2 + $0x20] sm:$0xff] %vm844_vm5, %v1045_v48  ;;  %v2524_v60 = vpop.f32.mrb[6].mxu0 }
 0x189   : > { %1163 = vst.msk [vmem:[#allocation2 + $0x38] sm:$0xff] %vm844_vm5, %v2524_v60  ;;  %v1048_v61 = vpop.f32.mrb[7].mxu0 }
 0x18a   : > { %1161 = vst.msk [vmem:[#allocation2 + $0x28] sm:$0xff] %vm844_vm5, %v1048_v61 }
 0x18e   : > { %v1406_v28 = vld [vmem:[#allocation2 + $0x30] sm:$0xff] }
 0x18f   : > { %v1404_v32 = vld [vmem:[#allocation2 + $0x20] sm:$0xff] }
 0x190   : > { %v2547_v62 = vpop.f32.mrb[12].mxu1  ;;  %v1407_v29 = vld [vmem:[#allocation2 + $0x38] sm:$0xff] }
 0x191   : > { %1186 = vst.msk [vmem:[#allocation2 + $0xf0] sm:$0xff] %vm844_vm5, %v2547_v62  ;;  %v1141_v63 = vpop.f32.mrb[13].mxu1  ;;  %v1405_v38 = vld [vmem:[#allocation2 + $0x28] sm:$0xff] }
 0x192   : > { %1184 = vst.msk [vmem:[#allocation2 + $0xe0] sm:$0xff] %vm844_vm5, %v1141_v63  ;;  %v2548_v0 = vpop.f32.mrb[14].mxu1 }
 0x193   : > { %1187 = vst.msk [vmem:[#allocation2 + $0xf8] sm:$0xff] %vm844_vm5, %v2548_v0  ;;  %v1144_v3 = vpop.f32.mrb[15].mxu1 }
 0x194   : > { %1185 = vst.msk [vmem:[#allocation2 + $0xe8] sm:$0xff] %vm844_vm5, %v1144_v3 }
 0x195   : > { %v2527_v7 = vpop.f32.mrb[8].mxu0 }
 0x196   : > { %1166 = vst.msk [vmem:[#allocation2 + $0x50] sm:$0xff] %vm844_vm5, %v2527_v7  ;;  %v1061_v5 = vpop.f32.mrb[9].mxu0 }
 0x197   : > { %1164 = vst.msk [vmem:[#allocation2 + $0x40] sm:$0xff] %vm844_vm5, %v1061_v5  ;;  %v2528_v9 = vpop.f32.mrb[10].mxu0 }
 0x198   : > { %1167 = vst.msk [vmem:[#allocation2 + $0x58] sm:$0xff] %vm844_vm5, %v2528_v9  ;;  %v1064_v10 = vpop.f32.mrb[11].mxu0  ;;  %v2563_v11 = vpop.f32.mrb[16].mxu1 }
 0x199   : > { %1165 = vst.msk [vmem:[#allocation2 + $0x48] sm:$0xff] %vm844_vm5, %v1064_v10  ;;  %v1434_v12 = vadd.f32 %v2563_v11, %v1402_v2  ;;  %v1273_v8 = vpop.f32.mrb[17].mxu1 }
 0x19a   : > { %v1432_v15 = vadd.f32 %v1400_v13, %v1273_v8  ;;  %v2564_v16 = vpop.f32.mrb[18].mxu1 }
 0x19b   : > { %1466 = vst.msk [vmem:[#allocation2 + $0x10] sm:$0xff] %vm844_vm5, %v1434_v12  ;;  %v1435_v19 = vadd.f32 %v2564_v16, %v1403_v18  ;;  %v1276_v20 = vpop.f32.mrb[19].mxu1 }
 0x19c   : > { %1464 = vst.msk [vmem:[#allocation2] sm:$0xff] %vm844_vm5, %v1432_v15  ;;  %v1433_v21 = vadd.f32 %v1401_v25, %v1276_v20 }
 0x19d   : > { %1467 = vst.msk [vmem:[#allocation2 + $0x18] sm:$0xff] %vm844_vm5, %v1435_v19  ;;  %v2531_v44 = vpop.f32.mrb[12].mxu0  ;;  %v1410_v46 = vld [vmem:[#allocation2 + $0x50] sm:$0xff] }
 0x19e   : > { %1465 = vst.msk [vmem:[#allocation2 + $0x8] sm:$0xff] %vm844_vm5, %v1433_v21  ;;  %1170 = vst.msk [vmem:[#allocation2 + $0x70] sm:$0xff] %vm844_vm5, %v2531_v44  ;;  %v1077_v22 = vpop.f32.mrb[13].mxu0  ;;  %v1408_v52 = vld [vmem:[#allocation2 + $0x40] sm:$0xff] }
 0x19f   : > { %1168 = vst.msk [vmem:[#allocation2 + $0x60] sm:$0xff] %vm844_vm5, %v1077_v22  ;;  %v2532_v23 = vpop.f32.mrb[14].mxu0  ;;  %v1411_v41 = vld [vmem:[#allocation2 + $0x58] sm:$0xff] }
 0x1a0   : > { %1171 = vst.msk [vmem:[#allocation2 + $0x78] sm:$0xff] %vm844_vm5, %v2532_v23  ;;  %v1080_v24 = vpop.f32.mrb[15].mxu0  ;;  %v2567_v27 = vpop.f32.mrb[20].mxu1  ;;  %v1409_v54 = vld [vmem:[#allocation2 + $0x48] sm:$0xff] }
 0x1a1   : > { %1169 = vst.msk [vmem:[#allocation2 + $0x68] sm:$0xff] %vm844_vm5, %v1080_v24  ;;  %v1438_v14 = vadd.f32 %v2567_v27, %v1406_v28  ;;  %v1289_v31 = vpop.f32.mrb[21].mxu1 }
 0x1a2   : > { %v1436_v33 = vadd.f32 %v1404_v32, %v1289_v31  ;;  %v2568_v26 = vpop.f32.mrb[22].mxu1  ;;  %v1708_v4 = vld [vmem:[#allocation2 + $0x10] sm:$0xff] }
 0x1a3   : > { %1470 = vst.msk [vmem:[#allocation2 + $0x30] sm:$0xff] %vm844_vm5, %v1438_v14  ;;  %v1439_v36 = vadd.f32 %v2568_v26, %v1407_v29  ;;  %v1292_v37 = vpop.f32.mrb[23].mxu1  ;;  %v1706_v35 = vld [vmem:[#allocation2] sm:$0xff] }
 0x1a4   : > { %1468 = vst.msk [vmem:[#allocation2 + $0x20] sm:$0xff] %vm844_vm5, %v1436_v33  ;;  %v1437_v39 = vadd.f32 %v1405_v38, %v1292_v37  ;;  %v1709_v43 = vld [vmem:[#allocation2 + $0x18] sm:$0xff] }
 0x1a5   : > { %1471 = vst.msk [vmem:[#allocation2 + $0x38] sm:$0xff] %vm844_vm5, %v1439_v36  ;;  %v2607_v1 = vpop.f32.mrb[16].mxu0  ;;  %v1707_v50 = vld [vmem:[#allocation2 + $0x8] sm:$0xff]  ;;  %v1414_v2 = vld [vmem:[#allocation2 + $0x70] sm:$0xff] }
 0x1a6   : > { %1469 = vst.msk [vmem:[#allocation2 + $0x28] sm:$0xff] %vm844_vm5, %v1437_v39  ;;  %v1740_v34 = vadd.f32 %v2607_v1, %v1708_v4  ;;  %v1579_v42 = vpop.f32.mrb[17].mxu0  ;;  %v1412_v14 = vld [vmem:[#allocation2 + $0x60] sm:$0xff] }
 0x1a7   : > { %v1738_v49 = vadd.f32 %v1706_v35, %v1579_v42  ;;  %v2608_v40 = vpop.f32.mrb[18].mxu0  ;;  %v1415_v36 = vld [vmem:[#allocation2 + $0x78] sm:$0xff] }
 0x1a8   : > { %1772 = vst.msk [vmem:[#allocation2 + $0x10] sm:$0xff] %vm844_vm5, %v1740_v34  ;;  %v1741_v45 = vadd.f32 %v2608_v40, %v1709_v43  ;;  %v2571_v57 = vpop.f32.mrb[24].mxu1  ;;  %v1582_v47 = vpop.f32.mrb[19].mxu0  ;;  %v1413_v37 = vld [vmem:[#allocation2 + $0x68] sm:$0xff] }
 0x1a9   : > { %1770 = vst.msk [vmem:[#allocation2] sm:$0xff] %vm844_vm5, %v1738_v49  ;;  %v1442_v59 = vadd.f32 %v2571_v57, %v1410_v46  ;;  %v1739_v51 = vadd.f32 %v1707_v50, %v1582_v47  ;;  %v1305_v30 = vpop.f32.mrb[25].mxu1 }
 0x1aa   : > { %1773 = vst.msk [vmem:[#allocation2 + $0x18] sm:$0xff] %vm844_vm5, %v1741_v45  ;;  %v1440_v53 = vadd.f32 %v1408_v52, %v1305_v30  ;;  %v2572_v6 = vpop.f32.mrb[26].mxu1  ;;  %v1712_v48 = vld [vmem:[#allocation2 + $0x30] sm:$0xff] }
 0x1ab   : > { %1474 = vst.msk [vmem:[#allocation2 + $0x50] sm:$0xff] %vm844_vm5, %v1442_v59  ;;  %1771 = vst.msk [vmem:[#allocation2 + $0x8] sm:$0xff] %vm844_vm5, %v1739_v51  ;;  %v1443_v17 = vadd.f32 %v2572_v6, %v1411_v41  ;;  %v1308_v55 = vpop.f32.mrb[27].mxu1  ;;  %v1710_v62 = vld [vmem:[#allocation2 + $0x20] sm:$0xff] }
 0x1ac   : > { %1472 = vst.msk [vmem:[#allocation2 + $0x40] sm:$0xff] %vm844_vm5, %v1440_v53  ;;  %v1441_v56 = vadd.f32 %v1409_v54, %v1308_v55  ;;  %v1713_v7 = vld [vmem:[#allocation2 + $0x38] sm:$0xff] }
 0x1ad   : > { %1475 = vst.msk [vmem:[#allocation2 + $0x58] sm:$0xff] %vm844_vm5, %v1443_v17  ;;  %v2611_v58 = vpop.f32.mrb[20].mxu0  ;;  %v1711_v28 = vld [vmem:[#allocation2 + $0x28] sm:$0xff] }
 0x1ae   : > { %1473 = vst.msk [vmem:[#allocation2 + $0x48] sm:$0xff] %vm844_vm5, %v1441_v56  ;;  %v1744_v60 = vadd.f32 %v2611_v58, %v1712_v48  ;;  %v1595_v61 = vpop.f32.mrb[21].mxu0 }
 0x1af   : > { %v1804_v63 = vld [vmem:[#allocation2 + $0x10] sm:$0xff]  ;;  %v1742_v0 = vadd.f32 %v1710_v62, %v1595_v61  ;;  %v2612_v3 = vpop.f32.mrb[22].mxu0 }
 0x1b0   : > { %v2409_v5 = vpack.c.bf16 %v1804_v63, %v1804_v63  ;;  %v1802_v9 = vld [vmem:[#allocation2] sm:$0xff]  ;;  %1776 = vst.msk [vmem:[#allocation2 + $0x30] sm:$0xff] %vm844_vm5, %v1744_v60  ;;  %v1745_v10 = vadd.f32 %v2612_v3, %v1713_v7  ;;  %v2575_v11 = vpop.f32.mrb[28].mxu1  ;;  %v1598_v12 = vpop.f32.mrb[23].mxu0  ;;  %v1998_v19 = vsel %vm844_vm5, %v1804_v63, 0.0  ;;  %v2066_v20 = vmul.f32 %v1804_v63, %v1804_v63 }
 0x1b1   : > { %v2407_v8 = vpack.c.bf16 %v1802_v9, %v1802_v9  ;;  %v2064_v13 = vmul.f32 %v1802_v9, %v1802_v9  ;;  %v1805_v15 = vld [vmem:[#allocation2 + $0x18] sm:$0xff]  ;;  %1774 = vst.msk [vmem:[#allocation2 + $0x20] sm:$0xff] %vm844_vm5, %v1742_v0  ;;  %v1446_v16 = vadd.f32 %v2575_v11, %v1414_v2  ;;  %v1321_v18 = vpop.f32.mrb[29].mxu1  ;;  %v1995_v22 = vsel %vm844_vm5, %v1802_v9, 0.0 }
 0x1b2   : > { %1965 = vst.msk [vmem:[%s3257_s7 + $0x8] sm:$0xf] %vm1962_vm8, %v2409_v5  ;;  %v2410_v25 = vpack.c.bf16 %v1805_v15, %v1805_v15  ;;  %v1803_v21 = vld [vmem:[#allocation2 + $0x8] sm:$0xff]  ;;  %v2576_v44 = vpop.f32.mrb[30].mxu1  ;;  %v2067_v32 = vmul.f32 %v1805_v15, %v1805_v15  ;;  %v1743_v26 = vadd.f32 %v1711_v28, %v1598_v12  ;;  %v1444_v29 = vadd.f32 %v1412_v14, %v1321_v18  ;;  %v1716_v42 = vld [vmem:[#allocation2 + $0x50] sm:$0xff] }
 0x1b3   : > { %1777 = vst.msk [vmem:[#allocation2 + $0x38] sm:$0xff] %vm844_vm5, %v1745_v10  ;;  %v2408_v23 = vpack.c.bf16 %v1803_v21, %v1803_v21  ;;  %v1996_v24 = vsel %vm844_vm5, %v1803_v21, 0.0  ;;  %v2065_v27 = vmul.f32 %v1803_v21, %v1803_v21  ;;  %1478 = vst.msk [vmem:[#allocation2 + $0x70] sm:$0xff] %vm844_vm5, %v1446_v16  ;;  %v1324_v31 = vpop.f32.mrb[31].mxu1  ;;  %v2096_v38 = vsel %vm844_vm5, %v2064_v13, 0.0  ;;  %v1714_v45 = vld [vmem:[#allocation2 + $0x40] sm:$0xff] }
 0x1b4   : > { %1963 = vst.msk [vmem:[%s3257_s7] sm:$0xf] %vm1962_vm8, %v2407_v8  ;;  %1966 = vst.msk [vmem:[%s3257_s7 + $0xc] sm:$0xf] %vm1962_vm8, %v2410_v25  ;;  %v1997_v33 = vadd.f32 %v1996_v24, %v1995_v22  ;;  %v1447_v1 = vadd.f32 %v2576_v44, %v1415_v36  ;;  %v1445_v4 = vadd.f32 %v1413_v37, %v1324_v31  ;;  %v2099_v57 = vsel %vm844_vm5, %v2066_v20, 0.0  ;;  %v1717_v62 = vld [vmem:[#allocation2 + $0x58] sm:$0xff] }
 0x1b5   : > { %1964 = vst.msk [vmem:[%s3257_s7 + $0x4] sm:$0xf] %vm1962_vm8, %v2408_v23  ;;  %v2097_v39 = vsel %vm844_vm5, %v2065_v27, 0.0  ;;  %v2615_v34 = vpop.f32.mrb[24].mxu0  ;;  %v2000_v59 = vsel %vm844_vm5, %v1805_v15, 0.0  ;;  %v2101_v51 = vsel %vm844_vm5, %v2067_v32, 0.0 }
 0x1b6   : > { %v1999_v35 = vadd.f32 %v1998_v19, %v1997_v33  ;;  %v2098_v49 = vadd.f32 %v2097_v39, %v2096_v38  ;;  %1775 = vst.msk [vmem:[#allocation2 + $0x28] sm:$0xff] %vm844_vm5, %v1743_v26  ;;  %1476 = vst.msk [vmem:[#allocation2 + $0x60] sm:$0xff] %vm844_vm5, %v1444_v29  ;;  %v1748_v40 = vadd.f32 %v2615_v34, %v1716_v42  ;;  %v1611_v43 = vpop.f32.mrb[25].mxu0  ;;  %v1418_v5 = vld [vmem:[#allocation2 + $0x90] sm:$0xff]  ;;  %v1715_v9 = vld [vmem:[#allocation2 + $0x48] sm:$0xff] }
 0x1b7   : > { %v1808_v46 = vld [vmem:[#allocation2 + $0x30] sm:$0xff]  ;;  %1479 = vst.msk [vmem:[#allocation2 + $0x78] sm:$0xff] %vm844_vm5, %v1447_v1  ;;  %1477 = vst.msk [vmem:[#allocation2 + $0x68] sm:$0xff] %vm844_vm5, %v1445_v4  ;;  %v1746_v47 = vadd.f32 %v1714_v45, %v1611_v43  ;;  %v2616_v50 = vpop.f32.mrb[26].mxu0  ;;  %v1416_v10 = vld [vmem:[#allocation2 + $0x80] sm:$0xff] }
 0x1b8   : > { %v2100_v30 = vadd.f32 %v2099_v57, %v2098_v49  ;;  %v2413_v52 = vpack.c.bf16 %v1808_v46, %v1808_v46  ;;  %v1806_v53 = vld [vmem:[#allocation2 + $0x20] sm:$0xff]  ;;  %1780 = vst.msk [vmem:[#allocation2 + $0x50] sm:$0xff] %vm844_vm5, %v1748_v40  ;;  %v2579_v6 = vpop.f32.mrb[32].mxu1  ;;  %v1614_v41 = vpop.f32.mrb[27].mxu0  ;;  %v2001_v55 = vadd.f32 %v2000_v59, %v1999_v35  ;;  %v1749_v7 = vadd.f32 %v2616_v50, %v1717_v62  ;;  %v1419_v15 = vld [vmem:[#allocation2 + $0x98] sm:$0xff]  ;;  %v1417_v16 = vld [vmem:[#allocation2 + $0x88] sm:$0xff] }
 0x1b9   : > { %v2411_v17 = vpack.c.bf16 %v1806_v53, %v1806_v53  ;;  %v2002_v54 = vsel %vm844_vm5, %v1806_v53, 0.0  ;;  %v2068_v56 = vmul.f32 %v1806_v53, %v1806_v53  ;;  %1778 = vst.msk [vmem:[#allocation2 + $0x40] sm:$0xff] %vm844_vm5, %v1746_v47  ;;  %v1337_v48 = vpop.f32.mrb[33].mxu1  ;;  %v2070_v2 = vmul.f32 %v1808_v46, %v1808_v46  ;;  %v1422_v57 = vld [vmem:[#allocation2 + $0xb0] sm:$0xff] }
 0x1ba   : > { %v1809_v58 = vld [vmem:[#allocation2 + $0x38] sm:$0xff]  ;;  %1969 = vst.msk [vmem:[%s3257_s7 + $0x18] sm:$0xf] %vm1962_vm8, %v2413_v52  ;;  %v2102_v60 = vadd.f32 %v2101_v51, %v2100_v30  ;;  %v2580_v63 = vpop.f32.mrb[34].mxu1  ;;  %v2003_v0 = vadd.f32 %v2002_v54, %v2001_v55  ;;  %v1450_v12 = vadd.f32 %v2579_v6, %v1418_v5  ;;  %v1747_v8 = vadd.f32 %v1715_v9, %v1614_v41  ;;  %v1720_v22 = vld [vmem:[#allocation2 + $0x70] sm:$0xff]  ;;  %v1420_v52 = vld [vmem:[#allocation2 + $0xa0] sm:$0xff] }
 0x1bb   : > { %v2414_v61 = vpack.c.bf16 %v1809_v58, %v1809_v58  ;;  %1967 = vst.msk [vmem:[%s3257_s7 + $0x10] sm:$0xf] %vm1962_vm8, %v2411_v17  ;;  %v2103_v3 = vsel %vm844_vm5, %v2068_v56, 0.0  ;;  %v1340_v11 = vpop.f32.mrb[35].mxu1  ;;  %v1448_v13 = vadd.f32 %v1416_v10, %v1337_v48  ;;  %v2071_v19 = vmul.f32 %v1809_v58, %v1809_v58  ;;  %v1423_v54 = vld [vmem:[#allocation2 + $0xb8] sm:$0xff] }
 0x1bc   : > { %v2104_v18 = vadd.f32 %v2103_v3, %v2102_v60  ;;  %1781 = vst.msk [vmem:[#allocation2 + $0x58] sm:$0xff] %vm844_vm5, %v1749_v7  ;;  %v1451_v25 = vadd.f32 %v2580_v63, %v1419_v15  ;;  %v1449_v21 = vadd.f32 %v1417_v16, %v1340_v11  ;;  %1482 = vst.msk [vmem:[#allocation2 + $0x90] sm:$0xff] %vm844_vm5, %v1450_v12  ;;  %v2006_v32 = vsel %vm844_vm5, %v1808_v46, 0.0 }
 0x1bd   : > { %1970 = vst.msk [vmem:[%s3257_s7 + $0x1c] sm:$0xf] %vm1962_vm8, %v2414_v61  ;;  %v1807_v20 = vld [vmem:[#allocation2 + $0x28] sm:$0xff]  ;;  %v2619_v44 = vpop.f32.mrb[28].mxu0  ;;  %v1718_v31 = vld [vmem:[#allocation2 + $0x60] sm:$0xff]  ;;  %v2107_v37 = vsel %vm844_vm5, %v2070_v2, 0.0 }
 0x1be   : > { %v2412_v23 = vpack.c.bf16 %v1807_v20, %v1807_v20  ;;  %v2004_v24 = vsel %vm844_vm5, %v1807_v20, 0.0  ;;  %v2069_v27 = vmul.f32 %v1807_v20, %v1807_v20  ;;  %1779 = vst.msk [vmem:[#allocation2 + $0x48] sm:$0xff] %vm844_vm5, %v1747_v8  ;;  %1480 = vst.msk [vmem:[#allocation2 + $0x80] sm:$0xff] %vm844_vm5, %v1448_v13  ;;  %v1752_v28 = vadd.f32 %v2619_v44, %v1720_v22  ;;  %v1627_v14 = vpop.f32.mrb[29].mxu0  ;;  %v1721_v45 = vld [vmem:[#allocation2 + $0x78] sm:$0xff]  ;;  %v1719_v30 = vld [vmem:[#allocation2 + $0x68] sm:$0xff] }
 0x1bf   : > { %v2005_v33 = vadd.f32 %v2004_v24, %v2003_v0  ;;  %v1812_v26 = vld [vmem:[#allocation2 + $0x50] sm:$0xff]  ;;  %1483 = vst.msk [vmem:[#allocation2 + $0x98] sm:$0xff] %vm844_vm5, %v1451_v25  ;;  %1481 = vst.msk [vmem:[#allocation2 + $0x88] sm:$0xff] %vm844_vm5, %v1449_v21  ;;  %v1750_v29 = vadd.f32 %v1718_v31, %v1627_v14  ;;  %v2620_v36 = vpop.f32.mrb[30].mxu0  ;;  %v2008_v38 = vsel %vm844_vm5, %v1809_v58, 0.0  ;;  %v2109_v35 = vsel %vm844_vm5, %v2071_v19, 0.0 }
 0x1c0   : > { %1968 = vst.msk [vmem:[%s3257_s7 + $0x14] sm:$0xf] %vm1962_vm8, %v2412_v23  ;;  %v2105_v39 = vsel %vm844_vm5, %v2069_v27, 0.0  ;;  %v2417_v1 = vpack.c.bf16 %v1812_v26, %v1812_v26  ;;  %v1810_v4 = vld [vmem:[#allocation2 + $0x40] sm:$0xff]  ;;  %v2583_v34 = vpop.f32.mrb[36].mxu1  ;;  %v1630_v42 = vpop.f32.mrb[31].mxu0  ;;  %v1753_v59 = vadd.f32 %v2620_v36, %v1721_v45  ;;  %v2074_v48 = vmul.f32 %v1812_v26, %v1812_v26 }
 0x1c1   : > { %1784 = vst.msk [vmem:[#allocation2 + $0x70] sm:$0xff] %vm844_vm5, %v1752_v28  ;;  %v2007_v49 = vadd.f32 %v2006_v32, %v2005_v33  ;;  %v2106_v40 = vadd.f32 %v2105_v39, %v2104_v18  ;;  %v2415_v43 = vpack.c.bf16 %v1810_v4, %v1810_v4  ;;  %1782 = vst.msk [vmem:[#allocation2 + $0x60] sm:$0xff] %vm844_vm5, %v1750_v29  ;;  %v1353_v46 = vpop.f32.mrb[37].mxu1  ;;  %v2010_v47 = vsel %vm844_vm5, %v1810_v4, 0.0  ;;  %v1421_v58 = vld [vmem:[#allocation2 + $0xa8] sm:$0xff]  ;;  %v1426_v36 = vld [vmem:[#allocation2 + $0xd0] sm:$0xff] }
 0x1c2   : > { %1973 = vst.msk [vmem:[%s3257_s7 + $0x28] sm:$0xf] %vm1962_vm8, %v2417_v1  ;;  %v2072_v50 = vmul.f32 %v1810_v4, %v1810_v4  ;;  %v1454_v51 = vadd.f32 %v2583_v34, %v1422_v57  ;;  %v2584_v53 = vpop.f32.mrb[38].mxu1  ;;  %v1751_v17 = vadd.f32 %v1719_v30, %v1630_v42  ;;  %v1452_v55 = vadd.f32 %v1420_v52, %v1353_v46 }
 0x1c3   : > { %v2108_v6 = vadd.f32 %v2107_v37, %v2106_v40  ;;  %1971 = vst.msk [vmem:[%s3257_s7 + $0x20] sm:$0xf] %vm1962_vm8, %v2415_v43  ;;  %v2009_v41 = vadd.f32 %v2008_v38, %v2007_v49  ;;  %v1356_v56 = vpop.f32.mrb[39].mxu1  ;;  %v1813_v61 = vld [vmem:[#allocation2 + $0x58] sm:$0xff]  ;;  %v1455_v62 = vadd.f32 %v2584_v53, %v1423_v54  ;;  %v2014_v10 = vsel %vm844_vm5, %v1812_v26, 0.0  ;;  %v1724_v8 = vld [vmem:[#allocation2 + $0x90] sm:$0xff] }
 0x1c4   : > { %v2111_v60 = vsel %vm844_vm5, %v2072_v50, 0.0  ;;  %1785 = vst.msk [vmem:[#allocation2 + $0x78] sm:$0xff] %vm844_vm5, %v1753_v59  ;;  %1486 = vst.msk [vmem:[#allocation2 + $0xb0] sm:$0xff] %vm844_vm5, %v1454_v51  ;;  %v1453_v63 = vadd.f32 %v1421_v58, %v1356_v56  ;;  %v2418_v7 = vpack.c.bf16 %v1813_v61, %v1813_v61  ;;  %v2115_v44 = vsel %vm844_vm5, %v2074_v48, 0.0  ;;  %v1425_v48 = vld [vmem:[#allocation2 + $0xc8] sm:$0xff] }
 0x1c5   : > { %v2011_v0 = vadd.f32 %v2010_v47, %v2009_v41  ;;  %v2110_v3 = vadd.f32 %v2109_v35, %v2108_v6  ;;  %v1811_v5 = vld [vmem:[#allocation2 + $0x48] sm:$0xff]  ;;  %1783 = vst.msk [vmem:[#allocation2 + $0x68] sm:$0xff] %vm844_vm5, %v1751_v17  ;;  %1484 = vst.msk [vmem:[#allocation2 + $0xa0] sm:$0xff] %vm844_vm5, %v1452_v55  ;;  %v2623_v9 = vpop.f32.mrb[32].mxu0  ;;  %v1722_v15 = vld [vmem:[#allocation2 + $0x80] sm:$0xff]  ;;  %v2075_v22 = vmul.f32 %v1813_v61, %v1813_v61  ;;  %v2016_v31 = vsel %vm844_vm5, %v1813_v61, 0.0 }
 0x1c6   : > { %v2416_v11 = vpack.c.bf16 %v1811_v5, %v1811_v5  ;;  %v2012_v2 = vsel %vm844_vm5, %v1811_v5, 0.0  ;;  %v2073_v12 = vmul.f32 %v1811_v5, %v1811_v5  ;;  %1487 = vst.msk [vmem:[#allocation2 + $0xb8] sm:$0xff] %vm844_vm5, %v1455_v62  ;;  %1485 = vst.msk [vmem:[#allocation2 + $0xa8] sm:$0xff] %vm844_vm5, %v1453_v63  ;;  %v1643_v13 = vpop.f32.mrb[33].mxu0  ;;  %v1756_v20 = vadd.f32 %v2623_v9, %v1724_v8  ;;  %v1725_v29 = vld [vmem:[#allocation2 + $0x98] sm:$0xff]  ;;  %v1723_v34 = vld [vmem:[#allocation2 + $0x88] sm:$0xff] }
 0x1c7   : > { %v2112_v16 = vadd.f32 %v2111_v60, %v2110_v3  ;;  %1974 = vst.msk [vmem:[%s3257_s7 + $0x2c] sm:$0xf] %vm1962_vm8, %v2418_v7  ;;  %v2013_v18 = vadd.f32 %v2012_v2, %v2011_v0  ;;  %v1754_v25 = vadd.f32 %v1722_v15, %v1643_v13  ;;  %v2624_v21 = vpop.f32.mrb[34].mxu0  ;;  %v2117_v57 = vsel %vm844_vm5, %v2075_v22, 0.0  ;;  %v1424_v6 = vld [vmem:[#allocation2 + $0xc0] sm:$0xff]  ;;  %v1427_v41 = vld [vmem:[#allocation2 + $0xd8] sm:$0xff] }
 0x1c8   : > { %v1816_v19 = vld [vmem:[#allocation2 + $0x70] sm:$0xff]  ;;  %1972 = vst.msk [vmem:[%s3257_s7 + $0x24] sm:$0xf] %vm1962_vm8, %v2416_v11  ;;  %v2113_v23 = vsel %vm844_vm5, %v2073_v12, 0.0  ;;  %v1814_v27 = vld [vmem:[#allocation2 + $0x60] sm:$0xff]  ;;  %v2587_v28 = vpop.f32.mrb[40].mxu1  ;;  %v1757_v1 = vadd.f32 %v2624_v21, %v1725_v29 }
 0x1c9   : > { %v2421_v24 = vpack.c.bf16 %v1816_v19, %v1816_v19  ;;  %v1646_v14 = vpop.f32.mrb[35].mxu0  ;;  %v2015_v32 = vadd.f32 %v2014_v10, %v2013_v18  ;;  %v2114_v33 = vadd.f32 %v2113_v23, %v2112_v16  ;;  %v2419_v26 = vpack.c.bf16 %v1814_v27, %v1814_v27  ;;  %1788 = vst.msk [vmem:[#allocation2 + $0x90] sm:$0xff] %vm844_vm5, %v1756_v20  ;;  %v1369_v37 = vpop.f32.mrb[41].mxu1 }
 0x1ca   : > { %1786 = vst.msk [vmem:[#allocation2 + $0x80] sm:$0xff] %vm844_vm5, %v1754_v25  ;;  %v2018_v38 = vsel %vm844_vm5, %v1814_v27, 0.0  ;;  %v2076_v39 = vmul.f32 %v1814_v27, %v1814_v27  ;;  %v1458_v4 = vadd.f32 %v2587_v28, %v1426_v36  ;;  %v2588_v42 = vpop.f32.mrb[42].mxu1  ;;  %v1755_v43 = vadd.f32 %v1723_v34, %v1646_v14  ;;  %1789 = vst.msk [vmem:[#allocation2 + $0x98] sm:$0xff] %vm844_vm5, %v1757_v1  ;;  %v1430_v27 = vld [vmem:[#allocation2 + $0xf0] sm:$0xff] }
 0x1cb   : > { %1977 = vst.msk [vmem:[%s3257_s7 + $0x38] sm:$0xf] %vm1962_vm8, %v2421_v24  ;;  %v2116_v35 = vadd.f32 %v2115_v44, %v2114_v33  ;;  %1975 = vst.msk [vmem:[%s3257_s7 + $0x30] sm:$0xf] %vm1962_vm8, %v2419_v26  ;;  %v2017_v49 = vadd.f32 %v2016_v31, %v2015_v32  ;;  %v1817_v40 = vld [vmem:[#allocation2 + $0x78] sm:$0xff]  ;;  %v1372_v45 = vpop.f32.mrb[43].mxu1  ;;  %v2078_v46 = vmul.f32 %v1816_v19, %v1816_v19 }
 0x1cc   : > { %v2119_v47 = vsel %vm844_vm5, %v2076_v39, 0.0  ;;  %v2422_v50 = vpack.c.bf16 %v1817_v40, %v1817_v40  ;;  %v1815_v59 = vld [vmem:[#allocation2 + $0x68] sm:$0xff]  ;;  %1490 = vst.msk [vmem:[#allocation2 + $0xd0] sm:$0xff] %vm844_vm5, %v1458_v4  ;;  %1787 = vst.msk [vmem:[#allocation2 + $0x88] sm:$0xff] %vm844_vm5, %v1755_v43  ;;  %v2022_v55 = vsel %vm844_vm5, %v1816_v19, 0.0  ;;  %v1456_v56 = vadd.f32 %v1424_v6, %v1369_v37  ;;  %v1728_v60 = vld [vmem:[#allocation2 + $0xb0] sm:$0xff] }
 0x1cd   : > { %v2019_v51 = vadd.f32 %v2018_v38, %v2017_v49  ;;  %v2118_v30 = vadd.f32 %v2117_v57, %v2116_v35  ;;  %v2420_v52 = vpack.c.bf16 %v1815_v59, %v1815_v59  ;;  %v2020_v53 = vsel %vm844_vm5, %v1815_v59, 0.0  ;;  %v2627_v17 = vpop.f32.mrb[36].mxu0  ;;  %v1726_v7 = vld [vmem:[#allocation2 + $0xa0] sm:$0xff]  ;;  %v1729_v9 = vld [vmem:[#allocation2 + $0xb8] sm:$0xff]  ;;  %v1727_v28 = vld [vmem:[#allocation2 + $0xa8] sm:$0xff] }
 0x1ce   : > { %1978 = vst.msk [vmem:[%s3257_s7 + $0x3c] sm:$0xf] %vm1962_vm8, %v2422_v50  ;;  %v2077_v54 = vmul.f32 %v1815_v59, %v1815_v59  ;;  %v1459_v58 = vadd.f32 %v2588_v42, %v1427_v41  ;;  %v1659_v61 = vpop.f32.mrb[37].mxu0  ;;  %v1457_v0 = vadd.f32 %v1425_v48, %v1372_v45  ;;  %v1760_v3 = vadd.f32 %v2627_v17, %v1728_v60  ;;  %v1431_v43 = vld [vmem:[#allocation2 + $0xf8] sm:$0xff]  ;;  %v1429_v59 = vld [vmem:[#allocation2 + $0xe8] sm:$0xff] }
 0x1cf   : > { %v2120_v62 = vadd.f32 %v2119_v47, %v2118_v30  ;;  %1976 = vst.msk [vmem:[%s3257_s7 + $0x34] sm:$0xf] %vm1962_vm8, %v2420_v52  ;;  %v2021_v63 = vadd.f32 %v2020_v53, %v2019_v51  ;;  %v2628_v5 = vpop.f32.mrb[38].mxu0  ;;  %v2079_v10 = vmul.f32 %v1817_v40, %v1817_v40  ;;  %v1758_v8 = vadd.f32 %v1726_v7, %v1659_v61 }
 0x1d0   : > { %v2121_v11 = vsel %vm844_vm5, %v2077_v54, 0.0  ;;  %v1820_v2 = vld [vmem:[#allocation2 + $0x90] sm:$0xff]  ;;  %1488 = vst.msk [vmem:[#allocation2 + $0xc0] sm:$0xff] %vm844_vm5, %v1456_v56  ;;  %1491 = vst.msk [vmem:[#allocation2 + $0xd8] sm:$0xff] %vm844_vm5, %v1459_v58  ;;  %v1761_v13 = vadd.f32 %v2628_v5, %v1729_v9  ;;  %v2591_v15 = vpop.f32.mrb[44].mxu1  ;;  %v1662_v16 = vpop.f32.mrb[39].mxu0 }
 0x1d1   : > { %v1818_v12 = vld [vmem:[#allocation2 + $0x80] sm:$0xff]  ;;  %v2123_v18 = vsel %vm844_vm5, %v2078_v46, 0.0  ;;  %v2023_v19 = vadd.f32 %v2022_v55, %v2021_v63  ;;  %v2122_v20 = vadd.f32 %v2121_v11, %v2120_v62  ;;  %v2425_v25 = vpack.c.bf16 %v1820_v2, %v1820_v2  ;;  %1489 = vst.msk [vmem:[#allocation2 + $0xc8] sm:$0xff] %vm844_vm5, %v1457_v0  ;;  %1792 = vst.msk [vmem:[#allocation2 + $0xb0] sm:$0xff] %vm844_vm5, %v1760_v3  ;;  %v1385_v21 = vpop.f32.mrb[45].mxu1  ;;  %v1821_v33 = vld [vmem:[#allocation2 + $0x98] sm:$0xff] }
 0x1d2   : > { %v2024_v44 = vsel %vm844_vm5, %v1817_v40, 0.0  ;;  %v2423_v22 = vpack.c.bf16 %v1818_v12, %v1818_v12  ;;  %v2026_v23 = vsel %vm844_vm5, %v1818_v12, 0.0  ;;  %v2080_v24 = vmul.f32 %v1818_v12, %v1818_v12  ;;  %1790 = vst.msk [vmem:[#allocation2 + $0xa0] sm:$0xff] %vm844_vm5, %v1758_v8  ;;  %1793 = vst.msk [vmem:[#allocation2 + $0xb8] sm:$0xff] %vm844_vm5, %v1761_v13  ;;  %v2592_v14 = vpop.f32.mrb[46].mxu1  ;;  %v1428_v40 = vld [vmem:[#allocation2 + $0xe0] sm:$0xff] }
 0x1d3   : > { %v2124_v31 = vadd.f32 %v2123_v18, %v2122_v20  ;;  %1981 = vst.msk [vmem:[%s3257_s7 + $0x48] sm:$0xf] %vm1962_vm8, %v2425_v25  ;;  %v2025_v32 = vadd.f32 %v2024_v44, %v2023_v19  ;;  %v1462_v26 = vadd.f32 %v2591_v15, %v1430_v27  ;;  %v1759_v29 = vadd.f32 %v1727_v28, %v1662_v16  ;;  %v1388_v36 = vpop.f32.mrb[47].mxu1  ;;  %v1819_v4 = vld [vmem:[#allocation2 + $0x88] sm:$0xff]  ;;  %v1732_v41 = vld [vmem:[#allocation2 + $0xd0] sm:$0xff] }
 0x1d4   : > { %v2125_v37 = vsel %vm844_vm5, %v2079_v10, 0.0  ;;  %v2030_v38 = vsel %vm844_vm5, %v1820_v2, 0.0  ;;  %1979 = vst.msk [vmem:[%s3257_s7 + $0x40] sm:$0xf] %vm1962_vm8, %v2423_v22  ;;  %v2127_v39 = vsel %vm844_vm5, %v2080_v24, 0.0  ;;  %v2426_v1 = vpack.c.bf16 %v1821_v33, %v1821_v33 }
 0x1d5   : > { %v2082_v34 = vmul.f32 %v1820_v2, %v1820_v2  ;;  %v2027_v42 = vadd.f32 %v2026_v23, %v2025_v32  ;;  %v2126_v35 = vadd.f32 %v2125_v37, %v2124_v31  ;;  %v2424_v49 = vpack.c.bf16 %v1819_v4, %v1819_v4  ;;  %1494 = vst.msk [vmem:[#allocation2 + $0xf0] sm:$0xff] %vm844_vm5, %v1462_v26  ;;  %v2631_v45 = vpop.f32.mrb[40].mxu0 }
 0x1d6   : > { %1791 = vst.msk [vmem:[#allocation2 + $0xa8] sm:$0xff] %vm844_vm5, %v1759_v29  ;;  %v2028_v57 = vsel %vm844_vm5, %v1819_v4, 0.0  ;;  %v2081_v46 = vmul.f32 %v1819_v4, %v1819_v4  ;;  %v1460_v47 = vadd.f32 %v1428_v40, %v1385_v21  ;;  %v1463_v50 = vadd.f32 %v2592_v14, %v1431_v43  ;;  %v1675_v51 = vpop.f32.mrb[41].mxu0 }
 0x1d7   : > { %1982 = vst.msk [vmem:[%s3257_s7 + $0x4c] sm:$0xf] %vm1962_vm8, %v2426_v1  ;;  %v2128_v30 = vadd.f32 %v2127_v39, %v2126_v35  ;;  %v2083_v52 = vmul.f32 %v1821_v33, %v1821_v33  ;;  %1980 = vst.msk [vmem:[%s3257_s7 + $0x44] sm:$0xf] %vm1962_vm8, %v2424_v49  ;;  %v2029_v53 = vadd.f32 %v2028_v57, %v2027_v42  ;;  %v1730_v17 = vld [vmem:[#allocation2 + $0xc0] sm:$0xff]  ;;  %v2632_v55 = vpop.f32.mrb[42].mxu0 }
 0x1d8   : > { %v1461_v6 = vadd.f32 %v1429_v59, %v1388_v36  ;;  %v1733_v54 = vld [vmem:[#allocation2 + $0xd8] sm:$0xff]  ;;  %v2129_v56 = vsel %vm844_vm5, %v2081_v46, 0.0  ;;  %v1824_v58 = vld [vmem:[#allocation2 + $0xb0] sm:$0xff]  ;;  %1492 = vst.msk [vmem:[#allocation2 + $0xe0] sm:$0xff] %vm844_vm5, %v1460_v47  ;;  %1495 = vst.msk [vmem:[#allocation2 + $0xf8] sm:$0xff] %vm844_vm5, %v1463_v50  ;;  %v1764_v48 = vadd.f32 %v2631_v45, %v1732_v41  ;;  %v1762_v60 = vadd.f32 %v1730_v17, %v1675_v51  ;;  %v1678_v62 = vpop.f32.mrb[43].mxu0 }
 0x1d9   : > { %v1765_v61 = vadd.f32 %v2632_v55, %v1733_v54  ;;  %v2131_v63 = vsel %vm844_vm5, %v2082_v34, 0.0  ;;  %v2031_v0 = vadd.f32 %v2030_v38, %v2029_v53  ;;  %v2130_v3 = vadd.f32 %v2129_v56, %v2128_v30  ;;  %v1822_v5 = vld [vmem:[#allocation2 + $0xa0] sm:$0xff]  ;;  %v1825_v9 = vld [vmem:[#allocation2 + $0xb8] sm:$0xff]  ;;  %v1731_v16 = vld [vmem:[#allocation2 + $0xc8] sm:$0xff] }
 0x1da   : > { %v2429_v7 = vpack.c.bf16 %v1824_v58, %v1824_v58  ;;  %1493 = vst.msk [vmem:[#allocation2 + $0xe8] sm:$0xff] %vm844_vm5, %v1461_v6  ;;  %v2032_v10 = vsel %vm844_vm5, %v1821_v33, 0.0  ;;  %v2427_v11 = vpack.c.bf16 %v1822_v5, %v1822_v5  ;;  %v2034_v2 = vsel %vm844_vm5, %v1822_v5, 0.0  ;;  %1796 = vst.msk [vmem:[#allocation2 + $0xd0] sm:$0xff] %vm844_vm5, %v1764_v48 }
 0x1db   : > { %v2084_v12 = vmul.f32 %v1822_v5, %v1822_v5  ;;  %1794 = vst.msk [vmem:[#allocation2 + $0xc0] sm:$0xff] %vm844_vm5, %v1762_v60  ;;  %1797 = vst.msk [vmem:[#allocation2 + $0xd8] sm:$0xff] %vm844_vm5, %v1765_v61  ;;  %v2132_v8 = vadd.f32 %v2131_v63, %v2130_v3  ;;  %v2033_v13 = vadd.f32 %v2032_v10, %v2031_v0  ;;  %v2133_v18 = vsel %vm844_vm5, %v2083_v52, 0.0 }
 0x1dc   : > { %1985 = vst.msk [vmem:[%s3257_s7 + $0x58] sm:$0xf] %vm1962_vm8, %v2429_v7  ;;  %v2430_v15 = vpack.c.bf16 %v1825_v9, %v1825_v9  ;;  %1983 = vst.msk [vmem:[%s3257_s7 + $0x50] sm:$0xf] %vm1962_vm8, %v2427_v11  ;;  %v1763_v25 = vadd.f32 %v1731_v16, %v1678_v62  ;;  %v1736_v27 = vld [vmem:[#allocation2 + $0xf0] sm:$0xff]  ;;  %v2086_v28 = vmul.f32 %v1824_v58, %v1824_v58  ;;  %v2038_v33 = vsel %vm844_vm5, %v1824_v58, 0.0 }
 0x1dd   : > { %v2135_v19 = vsel %vm844_vm5, %v2084_v12, 0.0  ;;  %v1823_v20 = vld [vmem:[#allocation2 + $0xa8] sm:$0xff]  ;;  %v2035_v21 = vadd.f32 %v2034_v2, %v2033_v13  ;;  %v2134_v44 = vadd.f32 %v2133_v18, %v2132_v8  ;;  %v2635_v24 = vpop.f32.mrb[44].mxu0  ;;  %v2087_v39 = vmul.f32 %v1825_v9, %v1825_v9 }
 0x1de   : > { %1986 = vst.msk [vmem:[%s3257_s7 + $0x5c] sm:$0xf] %vm1962_vm8, %v2430_v15  ;;  %v2428_v22 = vpack.c.bf16 %v1823_v20, %v1823_v20  ;;  %v2036_v23 = vsel %vm844_vm5, %v1823_v20, 0.0  ;;  %v2085_v14 = vmul.f32 %v1823_v20, %v1823_v20  ;;  %v1768_v31 = vadd.f32 %v2635_v24, %v1736_v27  ;;  %v1691_v32 = vpop.f32.mrb[45].mxu0 }
 0x1df   : > { %1795 = vst.msk [vmem:[#allocation2 + $0xc8] sm:$0xff] %vm844_vm5, %v1763_v25  ;;  %v2136_v26 = vadd.f32 %v2135_v19, %v2134_v44  ;;  %v2037_v29 = vadd.f32 %v2036_v23, %v2035_v21  ;;  %v1734_v36 = vld [vmem:[#allocation2 + $0xe0] sm:$0xff]  ;;  %v2636_v37 = vpop.f32.mrb[46].mxu0  ;;  %v1737_v38 = vld [vmem:[#allocation2 + $0xf8] sm:$0xff]  ;;  %v2139_v47 = vsel %vm844_vm5, %v2086_v28, 0.0  ;;  %v2040_v50 = vsel %vm844_vm5, %v1825_v9, 0.0 }
 0x1e0   : > { %1984 = vst.msk [vmem:[%s3257_s7 + $0x54] sm:$0xf] %vm1962_vm8, %v2428_v22  ;;  %v2137_v1 = vsel %vm844_vm5, %v2085_v14, 0.0  ;;  %v1766_v4 = vadd.f32 %v1734_v36, %v1691_v32  ;;  %v1769_v34 = vadd.f32 %v2636_v37, %v1737_v38  ;;  %v1694_v42 = vpop.f32.mrb[47].mxu0  ;;  %v2141_v41 = vsel %vm844_vm5, %v2087_v39, 0.0 }
 0x1e1   : > { %1800 = vst.msk [vmem:[#allocation2 + $0xf0] sm:$0xff] %vm844_vm5, %v1768_v31  ;;  %v1735_v35 = vld [vmem:[#allocation2 + $0xe8] sm:$0xff]  ;;  %v2039_v49 = vadd.f32 %v2038_v33, %v2037_v29  ;;  %v2138_v40 = vadd.f32 %v2137_v1, %v2136_v26  ;;  %v1828_v43 = vld [vmem:[#allocation2 + $0xd0] sm:$0xff] }
 0x1e2   : > { %v1826_v45 = vld [vmem:[#allocation2 + $0xc0] sm:$0xff]  ;;  %v1829_v57 = vld [vmem:[#allocation2 + $0xd8] sm:$0xff]  ;;  %v1767_v46 = vadd.f32 %v1735_v35, %v1694_v42  ;;  %v2433_v59 = vpack.c.bf16 %v1828_v43, %v1828_v43  ;;  %1798 = vst.msk [vmem:[#allocation2 + $0xe0] sm:$0xff] %vm844_vm5, %v1766_v4  ;;  %1801 = vst.msk [vmem:[#allocation2 + $0xf8] sm:$0xff] %vm844_vm5, %v1769_v34  ;;  %v2090_v55 = vmul.f32 %v1828_v43, %v1828_v43  ;;  %v2046_v7 = vsel %vm844_vm5, %v1828_v43, 0.0 }
 0x1e3   : > { %v2431_v51 = vpack.c.bf16 %v1826_v45, %v1826_v45  ;;  %v2140_v30 = vadd.f32 %v2139_v47, %v2138_v40  ;;  %v2041_v52 = vadd.f32 %v2040_v50, %v2039_v49  ;;  %v2042_v53 = vsel %vm844_vm5, %v1826_v45, 0.0 }
 0x1e4   : > { %v2088_v6 = vmul.f32 %v1826_v45, %v1826_v45  ;;  %1799 = vst.msk [vmem:[#allocation2 + $0xe8] sm:$0xff] %vm844_vm5, %v1767_v46  ;;  %v2434_v17 = vpack.c.bf16 %v1829_v57, %v1829_v57  ;;  %v2091_v5 = vmul.f32 %v1829_v57, %v1829_v57  ;;  %v2147_v11 = vsel %vm844_vm5, %v2090_v55, 0.0 }
 0x1e5   : > { %1989 = vst.msk [vmem:[%s3257_s7 + $0x68] sm:$0xf] %vm1962_vm8, %v2433_v59  ;;  %1987 = vst.msk [vmem:[%s3257_s7 + $0x60] sm:$0xf] %vm1962_vm8, %v2431_v51  ;;  %v2043_v54 = vadd.f32 %v2042_v53, %v2041_v52  ;;  %v2142_v56 = vadd.f32 %v2141_v41, %v2140_v30  ;;  %v2048_v15 = vsel %vm844_vm5, %v1829_v57, 0.0 }
 0x1e6   : > { %v2143_v58 = vsel %vm844_vm5, %v2088_v6, 0.0  ;;  %v1827_v48 = vld [vmem:[#allocation2 + $0xc8] sm:$0xff]  ;;  %1990 = vst.msk [vmem:[%s3257_s7 + $0x6c] sm:$0xf] %vm1962_vm8, %v2434_v17  ;;  %v2149_v22 = vsel %vm844_vm5, %v2091_v5, 0.0 }
 0x1e7   : > { %v2432_v60 = vpack.c.bf16 %v1827_v48, %v1827_v48  ;;  %v2044_v61 = vsel %vm844_vm5, %v1827_v48, 0.0  ;;  %v2089_v62 = vmul.f32 %v1827_v48, %v1827_v48  ;;  %v2144_v63 = vadd.f32 %v2143_v58, %v2142_v56 }
 0x1e8   : > { %v2045_v0 = vadd.f32 %v2044_v61, %v2043_v54  ;;  %v1832_v3 = vld [vmem:[#allocation2 + $0xf0] sm:$0xff] }
 0x1e9   : > { %1988 = vst.msk [vmem:[%s3257_s7 + $0x64] sm:$0xf] %vm1962_vm8, %v2432_v60  ;;  %v2145_v9 = vsel %vm844_vm5, %v2089_v62, 0.0  ;;  %v2437_v10 = vpack.c.bf16 %v1832_v3, %v1832_v3  ;;  %v1830_v8 = vld [vmem:[#allocation2 + $0xe0] sm:$0xff]  ;;  %v1833_v13 = vld [vmem:[#allocation2 + $0xf8] sm:$0xff]  ;;  %v2094_v32 = vmul.f32 %v1832_v3, %v1832_v3  ;;  %v2054_v36 = vsel %vm844_vm5, %v1832_v3, 0.0 }
 0x1ea   : > { %v2047_v2 = vadd.f32 %v2046_v7, %v2045_v0  ;;  %v2146_v12 = vadd.f32 %v2145_v9, %v2144_v63  ;;  %v2435_v16 = vpack.c.bf16 %v1830_v8, %v1830_v8  ;;  %v2050_v18 = vsel %vm844_vm5, %v1830_v8, 0.0 }
 0x1eb   : > { %1993 = vst.msk [vmem:[%s3257_s7 + $0x78] sm:$0xf] %vm1962_vm8, %v2437_v10  ;;  %v2092_v19 = vmul.f32 %v1830_v8, %v1830_v8  ;;  %v1831_v20 = vld [vmem:[#allocation2 + $0xe8] sm:$0xff]  ;;  %v2438_v44 = vpack.c.bf16 %v1833_v13, %v1833_v13  ;;  %v2095_v37 = vmul.f32 %v1833_v13, %v1833_v13  ;;  %v2155_v1 = vsel %vm844_vm5, %v2094_v32, 0.0 }
 0x1ec   : > { %v2148_v25 = vadd.f32 %v2147_v11, %v2146_v12  ;;  %v2049_v21 = vadd.f32 %v2048_v15, %v2047_v2  ;;  %1991 = vst.msk [vmem:[%s3257_s7 + $0x70] sm:$0xf] %vm1962_vm8, %v2435_v16  ;;  %v2436_v24 = vpack.c.bf16 %v1831_v20, %v1831_v20  ;;  %v2052_v27 = vsel %vm844_vm5, %v1831_v20, 0.0 }
 0x1ed   : > { %v2151_v23 = vsel %vm844_vm5, %v2092_v19, 0.0  ;;  %1994 = vst.msk [vmem:[%s3257_s7 + $0x7c] sm:$0xf] %vm1962_vm8, %v2438_v44  ;;  %v2093_v31 = vmul.f32 %v1831_v20, %v1831_v20  ;;  %v2056_v4 = vsel %vm844_vm5, %v1833_v13, 0.0  ;;  %v2157_v35 = vsel %vm844_vm5, %v2095_v37, 0.0 }
 0x1ee   : > { %v2051_v28 = vadd.f32 %v2050_v18, %v2049_v21  ;;  %v2150_v14 = vadd.f32 %v2149_v22, %v2148_v25  ;;  %1992 = vst.msk [vmem:[%s3257_s7 + $0x74] sm:$0xf] %vm1962_vm8, %v2436_v24 }
 0x1ef   : > { %v2153_v29 = vsel %vm844_vm5, %v2093_v31, 0.0 }
 0x1f0   : > { %v2152_v33 = vadd.f32 %v2151_v23, %v2150_v14  ;;  %v2053_v26 = vadd.f32 %v2052_v27, %v2051_v28 }
 0x1f2   : > { %v2055_v38 = vadd.f32 %v2054_v36, %v2053_v26  ;;  %v2154_v39 = vadd.f32 %v2153_v29, %v2152_v33 }
 0x1f4   : > { %v2057_v34 = vadd.f32 %v2056_v4, %v2055_v38  ;;  %v2156_v42 = vadd.f32 %v2155_v1, %v2154_v39 }
 0x1f6   : > { %v2058_v49 = vrot.slane %v2057_v34, 4  ;;  %v2158_v40 = vadd.f32 %v2157_v35, %v2156_v42 }
 0x1f8   : > { %v2059_v43 = vadd.f32 %v2058_v49, %v2057_v34  ;;  %v2159_v45 = vrot.slane %v2158_v40, 4 }
 0x1fa   : > { %v2060_v57 = vrot.slane %v2059_v43, 2  ;;  %v2160_v46 = vadd.f32 %v2159_v45, %v2158_v40 }
 0x1fc   : > { %v2061_v47 = vadd.f32 %v2060_v57, %v2059_v43  ;;  %v2161_v50 = vrot.slane %v2160_v46, 2 }
 0x1fe   : > { %v2062_v59 = vrot.slane %v2061_v47, 1  ;;  %v2162_v51 = vadd.f32 %v2161_v50, %v2160_v46 }
 0x200   : > { %v2163_v30 = vrot.slane %v2162_v51, 1  ;;  %v2063_v52 = vadd.f32 %v2062_v59, %v2061_v47 }
 0x202   : > { %v2164_v53 = vadd.f32 %v2163_v30, %v2162_v51 }
 0x204   : > { %v2166_v6 = vsel %vm448_vm0, %v2063_v52, %v2164_v53 }
 0x205   : > { %2168 = vst.msk [vmem:[%s181_s10] sm:$0x3] %vm2167_vm9, %v2166_v6 }
 0x206 PF: > { %s14_s12 = sadd.s32 1, %s2700_s12  }
 0x207   : > { %p11_p4 = scmp.ge.s32.totalorder %s14_s12, 4  }
 0x209   :  { %13 = sbr.rel (!%p11_p4) target bundleno = 1 (0x1), region = 72 }

// kernel: resedown_forward.6
= control target key start
LH: loop header
LB: loop body
LE: loop exit
PB: predicated region body
PF: predicated region fallthrough
CT: control target
= control target key end

     0   :  { %s2916_s18 = smov 0   ;;  %s3703_s0 = inlined_call_operand.vmem [shape: bf16[2,16,16,32], index: 0, kind: input, shape index: {}]   ;;  %s3704_s1 = inlined_call_operand.vmem [shape: f32[1,32], index: 1, kind: input, shape index: {}]   ;;  %s3705_s2 = inlined_call_operand.vmem [shape: f32[1,32], index: 2, kind: input, shape index: {}]   ;;  %s3706_s3 = inlined_call_operand.vmem [shape: bf16[3,96,32], index: 3, kind: input, shape index: {}]   ;;  %s3707_s4 = inlined_call_operand.vmem [shape: bf16[2,16,16,32], index: 4, kind: output, shape index: {0}]   ;;  %s3708_s5 = inlined_call_operand.vmem [shape: f32[2,2,32], index: 5, kind: output, shape index: {1}]  }
   0x1 LB: > { %s2387_s19 = sadd.s32 4294967295, %s2881_s18   ;;  %p2391_p0 = scmp.ge.s32.totalorder %s2881_s18, 1  ;;  %s2881_s18 = sphi %s2916_s18, %s16_s18  }
   0x2   : > { %p190_p1 = scmp.lt.s32.totalorder %s2881_s18, 3 }
   0x4   : > { %p191_p2 = pnand %p2391_p0, %p190_p1 }
   0x5   : > { %vm580_vm0 = vcmask (!%p191_p2), 1040384   ;;  %vm581_vm1 = vsmask.f32 (!%p191_p2), 256  ;;  %v2883_v0 = vmov (!%p191_p2), 0   ;;  %vm617_vm3 = vsmask.f32 (!%p191_p2), 7424 }
   0x6   : > { %194 = sbr.rel (%p191_p2) target bundleno = 556 (0x22c), region = 36  ;;  %v430_v1 = vrot.slane (!%p191_p2), %v2883_v0, 7  ;;  %vm2925_vm2 = vmand (!%p191_p2), %vm580_vm0, %vm581_vm1  ;;  %p222_p3 = scmp.lt.s32.totalorder (!%p191_p2), %s2387_s19, 1  ;;  %v2857_v3 = vld [vmem:[%s3706_s3] sm:$0xff] (!%p191_p2)   ;;  %vm890_vm4 = vcmask (!%p191_p2), 1046528   ;;  %v2858_v10 = vld [vmem:[%s3706_s3 + $0x8] sm:$0xff] (!%p191_p2)  }
   0x7   : > { %2702 = vmatprep.subr.bf16.mxu0 (!%p191_p2), %v2857_v3  ;;  %2834 = vmatprep.subr.bf16.mxu1 (!%p191_p2), %v2857_v3  ;;  %v2950_v14 = vld [vmem:[%s3704_s1] ss:$0 sm:$0xff] (!%p191_p2)  ;;  %s2884_s30 = smov (!%p191_p2), 64   ;;  %s2885_s8 = smov (!%p191_p2), 32   ;;  %v2859_v52 = vld [vmem:[%s3706_s3 + $0x10] sm:$0xff] (!%p191_p2)   ;;  %vm976_vm5 = vcmask (!%p191_p2), 261120  }
   0x8   : > { %v2934_v4 = vsel (!%p191_p2), %vm2925_vm2, 0, %v430_v1  ;;  %v600_v5 = vsel (!%p191_p2), %vm2925_vm2, %v430_v1, 0  ;;  %2703 = vmatpush3.bf16.msra.mxu0 (!%p191_p2), %v2857_v3  ;;  %2840 = vmatpush3.bf16.msra.mxu1 (!%p191_p2), %v2857_v3  ;;  %v2969_v26 = vld [vmem:[%s3705_s2] ss:$0 sm:$0xff] (!%p191_p2)  ;;  %vm1011_vm6 = vcmask (!%p191_p2), 523264   ;;  %vm1094_vm7 = vcmask (!%p191_p2), 785408  }
   0x9   : > { %v619_v6 = vshrl.u32 (!%p191_p2), %v2934_v4, 16  ;;  %v621_v7 = vshll.u32 (!%p191_p2), %v2934_v4, 16  ;;  %v626_v8 = vshll.u32 (!%p191_p2), %v600_v5, 16  ;;  %v891_v9 = vrot.slane (!%p191_p2), %v2934_v4, 1  ;;  %2704 = vmatprep.subr.bf16.mxu0 (!%p191_p2), %v2858_v10  ;;  %2835 = vmatprep.subr.bf16.mxu1 (!%p191_p2), %v2858_v10 }
   0xa   : > { %v892_v11 = vrot.slane (!%p191_p2), %v600_v5, 1  ;;  %vm2094_vm8 = vcmask (!%p191_p2), 257024   ;;  %vm2299_vm9 = vcmask (!%p191_p2), 254976  }
   0xb   : > { %v623_v12 = vrot.slane (!%p191_p2), %v621_v7, 1  ;;  %v628_v13 = vrot.slane (!%p191_p2), %v626_v8, 1  ;;  %v2860_v7 = vld [vmem:[%s3706_s3 + $0x18] sm:$0xff] (!%p191_p2)  }
   0xc   : > { %v893_v15 = vsel (!%p191_p2), %vm890_vm4, %v891_v9, %v892_v11  ;;  %2705 = vmatpush3.bf16.msra.mxu0 (!%p191_p2), %v2858_v10  ;;  %2841 = vmatpush3.bf16.msra.mxu1 (!%p191_p2), %v2858_v10 }
   0xd   : > { %s3712_s19 = smov (!%p222_p3, %s2387_s19), 1  ;;  %v624_v16 = vor.u32 %v623_v12, %v619_v6  ;;  %942 = vrot.lane.b32.xlu0 %v893_v15, %s2884_s30  ;;  %2706 = vmatprep.subr.bf16.mxu0 %v2859_v52 }
   0xe   : > { %s2523_s24 = sshll.u32 %s3712_s19, 7  ;;  %2836 = vmatprep.subr.bf16.mxu1 %v2859_v52 }
   0xf   : > { %s2958_s29 = scalar_lea.vmem %s3703_s0, %s2523_s24  ;;  %v629_v25 = vsel %vm617_vm3, %v624_v16, %v628_v13  ;;  %s3518_s23 = scalar_lea.vmem %s3707_s4, %s2523_s24 }
  0x10   : > { %v2629_v17 = vld [vmem:[%s2958_s29 + $0x48] sm:$0xff]   ;;  %v2627_v18 = vld [vmem:[%s2958_s29 + $0x38] sm:$0xff]   ;;  %v2630_v19 = vld [vmem:[%s2958_s29 + $0x50] sm:$0xff]   ;;  %822 = vrot.lane.b32.xlu1 %v629_v25, %s2885_s8  ;;  %2707 = vmatpush3.bf16.msra.mxu0 %v2859_v52  ;;  %s2396_s24 = sshll.u32 %s3712_s19, 1 }
  0x11   : > { %v2595_v20 = vunpack.c.l.bf16 %v2629_v17  ;;  %v2596_v21 = vunpack.c.h.bf16 %v2629_v17  ;;  %v2587_v22 = vunpack.c.l.bf16 %v2627_v18  ;;  %v2588_v23 = vunpack.c.h.bf16 %v2627_v18  ;;  %v2628_v24 = vld [vmem:[%s2958_s29 + $0x40] sm:$0xff]   ;;  %v2631_v42 = vld [vmem:[%s2958_s29 + $0x58] sm:$0xff]   ;;  %2842 = vmatpush3.bf16.msra.mxu1 %v2859_v52  ;;  %2708 = vmatprep.subr.bf16.mxu0 %v2860_v7  ;;  %s235_s27 = scalar_lea.vmem %s3708_s5, %s2396_s24 }
  0x12   : > { %v2599_v27 = vunpack.c.l.bf16 %v2630_v19  ;;  %v2600_v28 = vunpack.c.h.bf16 %v2630_v19  ;;  %v2591_v29 = vunpack.c.l.bf16 %v2628_v24  ;;  %v2592_v36 = vunpack.c.h.bf16 %v2628_v24  ;;  %v2989_v51 = vld [vmem:[%s2958_s29] sm:$0xff]   ;;  %2837 = vmatprep.subr.bf16.mxu1 %v2860_v7 }
  0x13   : > { %v326_v30 = vmul.f32 %v2595_v20, %v2950_v14  ;;  %v327_v31 = vmul.f32 %v2596_v21, %v2950_v14  ;;  %v322_v32 = vmul.f32 %v2587_v22, %v2950_v14  ;;  %v323_v33 = vmul.f32 %v2588_v23, %v2950_v14 }
  0x14   : > { %v328_v34 = vmul.f32 %v2599_v27, %v2950_v14  ;;  %v329_v35 = vmul.f32 %v2600_v28, %v2950_v14  ;;  %v324_v37 = vmul.f32 %v2591_v29, %v2950_v14  ;;  %v325_v45 = vmul.f32 %v2592_v36, %v2950_v14  ;;  %2709 = vmatpush3.bf16.msra.mxu0 %v2860_v7 }
  0x15   : > { %v365_v38 = vadd.f32 %v2969_v26, %v326_v30  ;;  %v366_v39 = vadd.f32 %v2969_v26, %v327_v31  ;;  %v361_v40 = vadd.f32 %v2969_v26, %v322_v32  ;;  %v362_v41 = vadd.f32 %v2969_v26, %v323_v33  ;;  %2843 = vmatpush3.bf16.msra.mxu1 %v2860_v7 }
  0x16   : > { %v367_v43 = vadd.f32 %v2969_v26, %v328_v34  ;;  %v368_v44 = vadd.f32 %v2969_v26, %v329_v35  ;;  %v363_v46 = vadd.f32 %v2969_v26, %v324_v37  ;;  %v364_v55 = vadd.f32 %v2969_v26, %v325_v45 }
  0x17   : > { %v397_v47 = vmax.f32 %v365_v38, 0.0  ;;  %v398_v48 = vmax.f32 %v366_v39, 0.0  ;;  %v393_v49 = vmax.f32 %v361_v40, 0.0  ;;  %v394_v50 = vmax.f32 %v362_v41, 0.0 }
  0x18   : > { %v399_v53 = vmax.f32 %v367_v43, 0.0  ;;  %v400_v54 = vmax.f32 %v368_v44, 0.0  ;;  %v395_v56 = vmax.f32 %v363_v46, 0.0  ;;  %v2603_v59 = vunpack.c.l.bf16 %v2631_v42 }
  0x19   : > { %v420_v57 = vpack.c.bf16 %v398_v48, %v397_v47  ;;  %v418_v58 = vpack.c.bf16 %v394_v50, %v393_v49  ;;  %v2604_v60 = vunpack.c.h.bf16 %v2631_v42  ;;  %v396_v62 = vmax.f32 %v364_v55, 0.0 }
  0x1a   : > { %v421_v61 = vpack.c.bf16 %v400_v54, %v399_v53  ;;  %v2559_v63 = vunpack.c.l.bf16 %v2989_v51  ;;  %v2560_v0 = vunpack.c.h.bf16 %v2989_v51  ;;  %v330_v11 = vmul.f32 %v2603_v59, %v2950_v14 }
  0x1b   : > { %v498_v1 = vshrl.u32 %v420_v57, 16  ;;  %v501_v3 = vshll.u32 %v420_v57, 16  ;;  %v484_v5 = vshrl.u32 %v418_v58, 16  ;;  %v487_v6 = vshll.u32 %v418_v58, 16 }
  0x1c   : > { %v505_v8 = vshrl.u32 %v421_v61, 16  ;;  %v508_v9 = vshll.u32 %v421_v61, 16  ;;  %v419_v10 = vpack.c.bf16 %v396_v62, %v395_v56  ;;  %v331_v15 = vmul.f32 %v2604_v60, %v2950_v14 }
  0x1d   : > { %v500_v12 = vrot.slane %v498_v1, 7  ;;  %v486_v13 = vrot.slane %v484_v5, 7  ;;  %v308_v16 = vmul.f32 %v2559_v63, %v2950_v14  ;;  %v369_v20 = vadd.f32 %v2969_v26, %v330_v11 }
  0x1e   : > { %v507_v17 = vrot.slane %v505_v8, 7  ;;  %v491_v18 = vshrl.u32 %v419_v10, 16  ;;  %v494_v19 = vshll.u32 %v419_v10, 16  ;;  %v370_v37 = vadd.f32 %v2969_v26, %v331_v15 }
  0x1f   : > { %v503_v21 = vor.u32 %v501_v3, %v500_v12  ;;  %v3006_v22 = vsel %vm2925_vm2, %v500_v12, 0  ;;  %v489_v23 = vor.u32 %v487_v6, %v486_v13  ;;  %v608_v24 = vsel %vm2925_vm2, %v486_v13, 0  ;;  %v2861_v3 = vld [vmem:[%s3706_s3 + $0x20] sm:$0xff]  }
  0x20   : > { %v922_v25 = vrot.slane %v3006_v22, 1  ;;  %v916_v27 = vrot.slane %v608_v24, 1  ;;  %v510_v28 = vor.u32 %v508_v9, %v507_v17  ;;  %v611_v29 = vsel %vm2925_vm2, %v507_v17, 0  ;;  %2710 = vmatprep.subr.bf16.mxu0 %v2861_v3  ;;  %2838 = vmatprep.subr.bf16.mxu1 %v2861_v3 }
  0x21   : > { %v3015_v30 = vsel %vm2925_vm2, 0, %v503_v21  ;;  %v3019_v31 = vsel %vm2925_vm2, 0, %v489_v23  ;;  %v925_v32 = vrot.slane %v611_v29, 1  ;;  %v493_v33 = vrot.slane %v491_v18, 7  ;;  %2711 = vmatpush3.bf16.msra.mxu0 %v2861_v3  ;;  %2844 = vmatpush3.bf16.msra.mxu1 %v2861_v3  ;;  %v2632_v23 = vld [vmem:[%s2958_s29 + $0x60] sm:$0xff]  }
  0x22   : > { %v921_v34 = vrot.slane %v3015_v30, 1  ;;  %v915_v35 = vrot.slane %v3019_v31, 1  ;;  %v3025_v36 = vsel %vm2925_vm2, 0, %v510_v28  ;;  %v401_v41 = vmax.f32 %v369_v20, 0.0 }
  0x23   : > { %v924_v38 = vrot.slane %v3025_v36, 1  ;;  %v496_v39 = vor.u32 %v494_v19, %v493_v33  ;;  %v609_v40 = vsel %vm2925_vm2, %v493_v33, 0  ;;  %v402_v45 = vmax.f32 %v370_v37, 0.0 }
  0x24   : > { %v923_v42 = vsel %vm890_vm4, %v921_v34, %v922_v25  ;;  %v917_v43 = vsel %vm890_vm4, %v915_v35, %v916_v27  ;;  %v919_v44 = vrot.slane %v609_v40, 1  ;;  %v309_v48 = vmul.f32 %v2560_v0, %v2950_v14 }
  0x25   : > { %962 = vrot.lane.b32.xlu0 %v923_v42, %s2884_s30  ;;  %958 = vrot.lane.b32.xlu1 %v917_v43, %s2884_s30  ;;  %v926_v46 = vsel %vm890_vm4, %v924_v38, %v925_v32  ;;  %v3038_v47 = vsel %vm2925_vm2, 0, %v496_v39  ;;  %v347_v49 = vadd.f32 %v2969_v26, %v308_v16  ;;  %v422_v51 = vpack.c.bf16 %v402_v45, %v401_v41 }
  0x26   : > { %v918_v50 = vrot.slane %v3038_v47, 1  ;;  %v715_v52 = vshrl.u32 %v3019_v31, 16  ;;  %v717_v53 = vshll.u32 %v3019_v31, 16  ;;  %v348_v54 = vadd.f32 %v2969_v26, %v309_v48 }
  0x27   : > { %v379_v55 = vmax.f32 %v347_v49, 0.0  ;;  %v722_v56 = vshll.u32 %v608_v24, 16  ;;  %v751_v57 = vshrl.u32 %v3025_v36, 16  ;;  %v512_v59 = vshrl.u32 %v422_v51, 16 }
  0x28   : > { %v920_v58 = vsel %vm890_vm4, %v918_v50, %v919_v44  ;;  %v515_v60 = vshll.u32 %v422_v51, 16  ;;  %v719_v61 = vrot.slane %v717_v53, 1  ;;  %v380_v62 = vmax.f32 %v348_v54, 0.0  ;;  %v2621_v53 = vld [vmem:[%s2958_s29 + $0x8] sm:$0xff]  }
  0x29   : > { %964 = vrot.lane.b32.xlu0 %v926_v46, %s2884_s30  ;;  %960 = vrot.lane.b32.xlu1 %v920_v58, %s2884_s30  ;;  %v724_v63 = vrot.slane %v722_v56, 1  ;;  %v753_v0 = vshll.u32 %v3025_v36, 16  ;;  %v758_v1 = vshll.u32 %v611_v29, 16  ;;  %v514_v5 = vrot.slane %v512_v59, 7  ;;  %v2862_v29 = vld [vmem:[%s3706_s3 + $0x28] sm:$0xff]  }
  0x2a   : > { %v720_v6 = vor.u32 %v719_v61, %v715_v52  ;;  %v727_v7 = vshrl.u32 %v3038_v47, 16  ;;  %v729_v8 = vshll.u32 %v3038_v47, 16  ;;  %v411_v9 = vpack.c.bf16 %v380_v62, %v379_v55  ;;  %2712 = vmatprep.subr.bf16.mxu0 %v2862_v29  ;;  %2839 = vmatprep.subr.bf16.mxu1 %v2862_v29  ;;  %v2622_v62 = vld [vmem:[%s2958_s29 + $0x10] sm:$0xff]  }
  0x2b   : > { %v755_v10 = vrot.slane %v753_v0, 1  ;;  %v760_v11 = vrot.slane %v758_v1, 1  ;;  %v734_v12 = vshll.u32 %v609_v40, 16  ;;  %v517_v13 = vor.u32 %v515_v60, %v514_v5  ;;  %2713 = vmatpush3.bf16.msra.mxu0 %v2862_v29  ;;  %2845 = vmatpush3.bf16.msra.mxu1 %v2862_v29 }
  0x2c   : > { %v612_v15 = vsel %vm2925_vm2, %v514_v5, 0  ;;  %v725_v16 = vsel %vm617_vm3, %v720_v6, %v724_v63  ;;  %v731_v17 = vrot.slane %v729_v8, 1  ;;  %v435_v19 = vshrl.u32 %v411_v9, 16 }
  0x2d   : > { %v928_v18 = vrot.slane %v612_v15, 1  ;;  %v438_v20 = vshll.u32 %v411_v9, 16  ;;  %v756_v21 = vor.u32 %v755_v10, %v751_v57  ;;  %v3062_v24 = vsel %vm2925_vm2, 0, %v517_v13  ;;  %v2633_v9 = vld [vmem:[%s2958_s29 + $0x68] sm:$0xff]  }
  0x2e   : > { %v732_v25 = vor.u32 %v731_v17, %v727_v7  ;;  %v736_v27 = vrot.slane %v734_v12, 1  ;;  %v739_v28 = vshrl.u32 %v3015_v30, 16  ;;  %v927_v32 = vrot.slane %v3062_v24, 1 }
  0x2f   : > { %v437_v33 = vrot.slane %v435_v19, 7  ;;  %v761_v34 = vsel %vm617_vm3, %v756_v21, %v760_v11  ;;  %v741_v35 = vshll.u32 %v3015_v30, 16  ;;  %v746_v38 = vshll.u32 %v3006_v22, 16 }
  0x30   : > { %v737_v37 = vsel %vm617_vm3, %v732_v25, %v736_v27  ;;  %v2607_v39 = vunpack.c.l.bf16 %v2632_v23  ;;  %v2608_v40 = vunpack.c.h.bf16 %v2632_v23  ;;  %v929_v41 = vsel %vm890_vm4, %v927_v32, %v928_v18  ;;  %v2634_v25 = vld [vmem:[%s2958_s29 + $0x70] sm:$0xff]  }
  0x31   : > { %v440_v42 = vor.u32 %v438_v20, %v437_v33  ;;  %v601_v43 = vsel %vm2925_vm2, %v437_v33, 0  ;;  %v743_v44 = vrot.slane %v741_v35, 1  ;;  %966 = vrot.lane.b32.xlu0 %v929_v41, %s2884_s30  ;;  %v748_v22 = vrot.slane %v746_v38, 1 }
  0x32   : > { %v895_v45 = vrot.slane %v601_v43, 1  ;;  %v638_v46 = vshll.u32 %v601_v43, 16  ;;  %v332_v48 = vmul.f32 %v2607_v39, %v2950_v14  ;;  %v333_v51 = vmul.f32 %v2608_v40, %v2950_v14  ;;  %v3112_v39 = vld [vmem:[%s3706_s3 + $0x30] sm:$0xff]  }
  0x33   : > { %v3080_v49 = vsel %vm2925_vm2, 0, %v440_v42  ;;  %v744_v50 = vor.u32 %v743_v44, %v739_v28  ;;  %v763_v52 = vshrl.u32 %v3062_v24, 16  ;;  %v765_v61 = vshll.u32 %v3062_v24, 16  ;;  %2746 = vmatprep.subr.bf16.mxu1 %v3112_v39 }
  0x34   : > { %v894_v54 = vrot.slane %v3080_v49, 1  ;;  %v631_v55 = vshrl.u32 %v3080_v49, 16  ;;  %v633_v56 = vshll.u32 %v3080_v49, 16  ;;  %v640_v57 = vrot.slane %v638_v46, 1 }
  0x35   : > { %v749_v58 = vsel %vm617_vm3, %v744_v50, %v748_v22  ;;  %v371_v59 = vadd.f32 %v2969_v26, %v332_v48  ;;  %v372_v60 = vadd.f32 %v2969_v26, %v333_v51  ;;  %838 = vrot.lane.b32.xlu0 %v725_v16, %s2885_s8  ;;  %v770_v1 = vshll.u32 %v612_v15, 16 }
  0x36   : > { %v896_v63 = vsel %vm890_vm4, %v894_v54, %v895_v45  ;;  %v635_v0 = vrot.slane %v633_v56, 1  ;;  %v2563_v3 = vunpack.c.l.bf16 %v2621_v53  ;;  %v767_v7 = vrot.slane %v765_v61, 1 }
  0x37   : > { %944 = vrot.lane.b32.xlu1 %v896_v63, %s2884_s30  ;;  %v403_v5 = vmax.f32 %v371_v59, 0.0  ;;  %v404_v6 = vmax.f32 %v372_v60, 0.0  ;;  %v2564_v8 = vunpack.c.h.bf16 %v2621_v53  ;;  %v772_v11 = vrot.slane %v770_v1, 1  ;;  %v3129_v60 = vld [vmem:[%s2958_s29 + $0x18] sm:$0xff]  }
  0x38   : > { %v636_v10 = vor.u32 %v635_v0, %v631_v55  ;;  %v310_v12 = vmul.f32 %v2563_v3, %v2950_v14  ;;  %v2567_v13 = vunpack.c.l.bf16 %v2622_v62  ;;  %v768_v18 = vor.u32 %v767_v7, %v763_v52 }
  0x39   : > { %v423_v17 = vpack.c.bf16 %v404_v6, %v403_v5  ;;  %v311_v16 = vmul.f32 %v2564_v8, %v2950_v14  ;;  %v2568_v19 = vunpack.c.h.bf16 %v2622_v62  ;;  %840 = vrot.lane.b32.xlu0 %v737_v37, %s2885_s8  ;;  %v2611_v23 = vunpack.c.l.bf16 %v2633_v9 }
  0x3a   : > { %v641_v15 = vsel %vm617_vm3, %v636_v10, %v640_v57  ;;  %v349_v20 = vadd.f32 %v2969_v26, %v310_v12  ;;  %v312_v21 = vmul.f32 %v2567_v13, %v2950_v14  ;;  %v773_v29 = vsel %vm617_vm3, %v768_v18, %v772_v11 }
  0x3b   : > { %844 = vrot.lane.b32.xlu1 %v761_v34, %s2885_s8  ;;  %v519_v27 = vshrl.u32 %v423_v17, 16  ;;  %v522_v28 = vshll.u32 %v423_v17, 16  ;;  %v350_v32 = vadd.f32 %v2969_v26, %v311_v16  ;;  %v313_v35 = vmul.f32 %v2568_v19, %v2950_v14 }
  0x3c   : > { %v381_v33 = vmax.f32 %v349_v20, 0.0  ;;  %v351_v37 = vadd.f32 %v2969_v26, %v312_v21  ;;  %v2612_v38 = vunpack.c.h.bf16 %v2633_v9  ;;  %v334_v34 = vmul.f32 %v2611_v23, %v2950_v14 }
  0x3d   : > { %v521_v40 = vrot.slane %v519_v27, 7  ;;  %v382_v41 = vmax.f32 %v350_v32, 0.0  ;;  %v2615_v42 = vunpack.c.l.bf16 %v2634_v25  ;;  %842 = vrot.lane.b32.xlu0 %v749_v58, %s2885_s8  ;;  %v352_v43 = vadd.f32 %v2969_v26, %v313_v35 }
  0x3e   : > { %v383_v44 = vmax.f32 %v351_v37, 0.0  ;;  %v335_v45 = vmul.f32 %v2612_v38, %v2950_v14  ;;  %v2616_v46 = vunpack.c.h.bf16 %v2634_v25  ;;  %v373_v51 = vadd.f32 %v2969_v26, %v334_v34 }
  0x3f   : > { %824 = vrot.lane.b32.xlu1 %v641_v15, %s2885_s8  ;;  %v524_v22 = vor.u32 %v522_v28, %v521_v40  ;;  %v613_v48 = vsel %vm2925_vm2, %v521_v40, 0  ;;  %v412_v50 = vpack.c.bf16 %v382_v41, %v381_v33  ;;  %v384_v54 = vmax.f32 %v352_v43, 0.0  ;;  %v3158_v43 = vld [vmem:[%s3706_s3 + $0x60] sm:$0xff]  }
  0x40   : > { %v782_v52 = vshll.u32 %v613_v48, 16  ;;  %v931_v53 = vrot.slane %v613_v48, 1  ;;  %v374_v55 = vadd.f32 %v2969_v26, %v335_v45  ;;  %v405_v59 = vmax.f32 %v373_v51, 0.0  ;;  %2790 = vmatprep.subr.bf16.mxu0 %v3158_v43 }
  0x41   : > { %v3126_v56 = vsel %vm2925_vm2, 0, %v524_v22  ;;  %v442_v57 = vshrl.u32 %v412_v50, 16  ;;  %v445_v58 = vshll.u32 %v412_v50, 16  ;;  %846 = vrot.lane.b32.xlu0 %v773_v29, %s2885_s8  ;;  %v413_v3 = vpack.c.bf16 %v384_v54, %v383_v44 }
  0x42   : > { %v775_v61 = vshrl.u32 %v3126_v56, 16  ;;  %v777_v62 = vshll.u32 %v3126_v56, 16  ;;  %v784_v63 = vrot.slane %v782_v52, 1  ;;  %v930_v0 = vrot.slane %v3126_v56, 1 }
  0x43   : > { %v444_v1 = vrot.slane %v442_v57, 7  ;;  %v406_v5 = vmax.f32 %v374_v55, 0.0  ;;  %v336_v6 = vmul.f32 %v2615_v42, %v2950_v14  ;;  %v337_v9 = vmul.f32 %v2616_v46, %v2950_v14 }
  0x44   : > { %v779_v7 = vrot.slane %v777_v62, 1  ;;  %v932_v8 = vsel %vm890_vm4, %v930_v0, %v931_v53  ;;  %v2571_v10 = vunpack.c.l.bf16 %v3129_v60  ;;  %v449_v13 = vshrl.u32 %v413_v3, 16 }
  0x45   : > { %v447_v11 = vor.u32 %v445_v58, %v444_v1  ;;  %v602_v12 = vsel %vm2925_vm2, %v444_v1, 0  ;;  %v452_v17 = vshll.u32 %v413_v3, 16  ;;  %968 = vrot.lane.b32.xlu0 %v932_v8, %s2884_s30  ;;  %v424_v15 = vpack.c.bf16 %v406_v5, %v405_v59  ;;  %v2624_v5 = vld [vmem:[%s2958_s29 + $0x20] sm:$0xff]  }
  0x46   : > { %v780_v18 = vor.u32 %v779_v7, %v775_v61  ;;  %v650_v16 = vshll.u32 %v602_v12, 16  ;;  %v898_v19 = vrot.slane %v602_v12, 1  ;;  %v451_v21 = vrot.slane %v449_v13, 7 }
  0x47   : > { %v3144_v20 = vsel %vm2925_vm2, 0, %v447_v11  ;;  %v375_v23 = vadd.f32 %v2969_v26, %v336_v6  ;;  %v376_v25 = vadd.f32 %v2969_v26, %v337_v9  ;;  %v526_v38 = vshrl.u32 %v424_v15, 16 }
  0x48   : > { %v785_v27 = vsel %vm617_vm3, %v780_v18, %v784_v63  ;;  %v643_v28 = vshrl.u32 %v3144_v20, 16  ;;  %v645_v29 = vshll.u32 %v3144_v20, 16  ;;  %v652_v32 = vrot.slane %v650_v16, 1  ;;  %v2625_v18 = vld [vmem:[%s2958_s29 + $0x28] sm:$0xff]  }
  0x49   : > { %848 = vrot.lane.b32.xlu1 %v785_v27, %s2885_s8  ;;  %v454_v33 = vor.u32 %v452_v17, %v451_v21  ;;  %v603_v35 = vsel %vm2925_vm2, %v451_v21, 0  ;;  %v897_v37 = vrot.slane %v3144_v20, 1  ;;  %v529_v42 = vshll.u32 %v424_v15, 16 }
  0x4a   : > { %v647_v40 = vrot.slane %v645_v29, 1  ;;  %v662_v41 = vshll.u32 %v603_v35, 16  ;;  %v901_v34 = vrot.slane %v603_v35, 1  ;;  %v528_v46 = vrot.slane %v526_v38, 7 }
  0x4b   : > { %v3162_v44 = vsel %vm2925_vm2, 0, %v454_v33  ;;  %v899_v45 = vsel %vm890_vm4, %v897_v37, %v898_v19  ;;  %v407_v22 = vmax.f32 %v375_v23, 0.0  ;;  %v408_v57 = vmax.f32 %v376_v25, 0.0 }
  0x4c   : > { %v648_v48 = vor.u32 %v647_v40, %v643_v28  ;;  %v655_v50 = vshrl.u32 %v3162_v44, 16  ;;  %v657_v51 = vshll.u32 %v3162_v44, 16  ;;  %v664_v52 = vrot.slane %v662_v41, 1  ;;  %946 = vrot.lane.b32.xlu0 %v899_v45, %s2884_s30 }
  0x4d   : > { %v900_v53 = vrot.slane %v3162_v44, 1  ;;  %v531_v54 = vor.u32 %v529_v42, %v528_v46  ;;  %v614_v55 = vsel %vm2925_vm2, %v528_v46, 0  ;;  %v425_v1 = vpack.c.bf16 %v408_v57, %v407_v22 }
  0x4e   : > { %v653_v58 = vsel %vm617_vm3, %v648_v48, %v652_v32  ;;  %v659_v59 = vrot.slane %v657_v51, 1  ;;  %v794_v61 = vshll.u32 %v614_v55, 16  ;;  %v934_v62 = vrot.slane %v614_v55, 1 }
  0x4f   : > { %826 = vrot.lane.b32.xlu1 %v653_v58, %s2885_s8  ;;  %v902_v63 = vsel %vm890_vm4, %v900_v53, %v901_v34  ;;  %v3177_v0 = vsel %vm2925_vm2, 0, %v531_v54  ;;  %v2572_v3 = vunpack.c.h.bf16 %v3129_v60  ;;  %v533_v11 = vshrl.u32 %v425_v1, 16  ;;  %v2626_v54 = vld [vmem:[%s2958_s29 + $0x30] sm:$0xff]  }
  0x50   : > { %v660_v6 = vor.u32 %v659_v59, %v655_v50  ;;  %v787_v7 = vshrl.u32 %v3177_v0, 16  ;;  %v789_v8 = vshll.u32 %v3177_v0, 16  ;;  %v796_v9 = vrot.slane %v794_v61, 1 }
  0x51   : > { %v536_v12 = vshll.u32 %v425_v1, 16  ;;  %v933_v13 = vrot.slane %v3177_v0, 1  ;;  %v314_v17 = vmul.f32 %v2571_v10, %v2950_v14  ;;  %v315_v15 = vmul.f32 %v2572_v3, %v2950_v14 }
  0x52   : > { %v665_v16 = vsel %vm617_vm3, %v660_v6, %v664_v52  ;;  %v791_v19 = vrot.slane %v789_v8, 1  ;;  %v2575_v60 = vunpack.c.l.bf16 %v2624_v5  ;;  %v535_v21 = vrot.slane %v533_v11, 7 }
  0x53   : > { %828 = vrot.lane.b32.xlu1 %v665_v16, %s2885_s8  ;;  %v935_v23 = vsel %vm890_vm4, %v933_v13, %v934_v62  ;;  %v353_v25 = vadd.f32 %v2969_v26, %v314_v17  ;;  %v2576_v27 = vunpack.c.h.bf16 %v2624_v5  ;;  %v354_v29 = vadd.f32 %v2969_v26, %v315_v15 }
  0x54   : > { %v792_v28 = vor.u32 %v791_v19, %v787_v7  ;;  %v316_v10 = vmul.f32 %v2575_v60, %v2950_v14  ;;  %v2579_v32 = vunpack.c.l.bf16 %v2625_v18  ;;  %v538_v33 = vor.u32 %v536_v12, %v535_v21 }
  0x55   : > { %v615_v35 = vsel %vm2925_vm2, %v535_v21, 0  ;;  %v385_v37 = vmax.f32 %v353_v25, 0.0  ;;  %v317_v38 = vmul.f32 %v2576_v27, %v2950_v14  ;;  %v386_v34 = vmax.f32 %v354_v29, 0.0 }
  0x56   : > { %v797_v40 = vsel %vm617_vm3, %v792_v28, %v796_v9  ;;  %v806_v41 = vshll.u32 %v615_v35, 16  ;;  %v937_v42 = vrot.slane %v615_v35, 1  ;;  %v3201_v45 = vsel %vm2925_vm2, 0, %v538_v33 }
  0x57   : > { %948 = vrot.lane.b32.xlu1 %v902_v63, %s2884_s30  ;;  %850 = vrot.lane.b32.xlu0 %v797_v40, %s2885_s8  ;;  %v355_v46 = vadd.f32 %v2969_v26, %v316_v10  ;;  %v356_v22 = vadd.f32 %v2969_v26, %v317_v38  ;;  %v2580_v48 = vunpack.c.h.bf16 %v2625_v18  ;;  %v799_v50 = vshrl.u32 %v3201_v45, 16  ;;  %v2635_v38 = vld [vmem:[%s2958_s29 + $0x78] sm:$0xff]  }
  0x58   : > { %v801_v51 = vshll.u32 %v3201_v45, 16  ;;  %v808_v52 = vrot.slane %v806_v41, 1  ;;  %v414_v53 = vpack.c.bf16 %v386_v34, %v385_v37  ;;  %v936_v55 = vrot.slane %v3201_v45, 1 }
  0x59   : > { %v387_v57 = vmax.f32 %v355_v46, 0.0  ;;  %v388_v58 = vmax.f32 %v356_v22, 0.0  ;;  %v318_v59 = vmul.f32 %v2579_v32, %v2950_v14  ;;  %v319_v1 = vmul.f32 %v2580_v48, %v2950_v14 }
  0x5a   : > { %v803_v61 = vrot.slane %v801_v51, 1  ;;  %v456_v62 = vshrl.u32 %v414_v53, 16  ;;  %v459_v63 = vshll.u32 %v414_v53, 16  ;;  %v938_v3 = vsel %vm890_vm4, %v936_v55, %v937_v42 }
  0x5b   : > { %970 = vrot.lane.b32.xlu0 %v935_v23, %s2884_s30  ;;  %v415_v5 = vpack.c.bf16 %v388_v58, %v387_v57  ;;  %v357_v6 = vadd.f32 %v2969_v26, %v318_v59  ;;  %v2583_v7 = vunpack.c.l.bf16 %v2626_v54  ;;  %v358_v11 = vadd.f32 %v2969_v26, %v319_v1 }
  0x5c   : > { %v804_v8 = vor.u32 %v803_v61, %v799_v50  ;;  %v458_v9 = vrot.slane %v456_v62, 7  ;;  %v2584_v12 = vunpack.c.h.bf16 %v2626_v54  ;;  %v2619_v54 = vunpack.c.l.bf16 %v2635_v38 }
  0x5d   : > { %v463_v13 = vshrl.u32 %v415_v5, 16  ;;  %v466_v17 = vshll.u32 %v415_v5, 16  ;;  %v389_v18 = vmax.f32 %v357_v6, 0.0  ;;  %v320_v16 = vmul.f32 %v2583_v7, %v2950_v14 }
  0x5e   : > { %v809_v19 = vsel %vm617_vm3, %v804_v8, %v808_v52  ;;  %v461_v15 = vor.u32 %v459_v63, %v458_v9  ;;  %v604_v60 = vsel %vm2925_vm2, %v458_v9, 0  ;;  %v390_v21 = vmax.f32 %v358_v11, 0.0 }
  0x5f   : > { %852 = vrot.lane.b32.xlu1 %v809_v19, %s2885_s8  ;;  %v674_v23 = vshll.u32 %v604_v60, 16  ;;  %972 = vrot.lane.b32.xlu0 %v938_v3, %s2884_s30  ;;  %v465_v25 = vrot.slane %v463_v13, 7  ;;  %v904_v28 = vrot.slane %v604_v60, 1  ;;  %v321_v10 = vmul.f32 %v2584_v12, %v2950_v14 }
  0x60   : > { %v3223_v27 = vsel %vm2925_vm2, 0, %v461_v15  ;;  %v416_v29 = vpack.c.bf16 %v390_v21, %v389_v18  ;;  %v359_v37 = vadd.f32 %v2969_v26, %v320_v16  ;;  %v2620_v63 = vunpack.c.h.bf16 %v2635_v38 }
  0x61   : > { %v667_v32 = vshrl.u32 %v3223_v27, 16  ;;  %v669_v33 = vshll.u32 %v3223_v27, 16  ;;  %v468_v35 = vor.u32 %v466_v17, %v465_v25  ;;  %v676_v40 = vrot.slane %v674_v23, 1 }
  0x62   : > { %v605_v41 = vsel %vm2925_vm2, %v465_v25, 0  ;;  %v903_v34 = vrot.slane %v3223_v27, 1  ;;  %v470_v42 = vshrl.u32 %v416_v29, 16  ;;  %v473_v50 = vshll.u32 %v416_v29, 16 }
  0x63   : > { %v671_v46 = vrot.slane %v669_v33, 1  ;;  %v3235_v22 = vsel %vm2925_vm2, 0, %v468_v35  ;;  %v686_v48 = vshll.u32 %v605_v41, 16  ;;  %v360_v58 = vadd.f32 %v2969_v26, %v321_v10 }
  0x64   : > { %v679_v51 = vshrl.u32 %v3235_v22, 16  ;;  %v681_v52 = vshll.u32 %v3235_v22, 16  ;;  %v905_v53 = vsel %vm890_vm4, %v903_v34, %v904_v28  ;;  %v472_v57 = vrot.slane %v470_v42, 7 }
  0x65   : > { %v672_v55 = vor.u32 %v671_v46, %v667_v32  ;;  %950 = vrot.lane.b32.xlu0 %v905_v53, %s2884_s30  ;;  %v688_v61 = vrot.slane %v686_v48, 1  ;;  %v391_v62 = vmax.f32 %v359_v37, 0.0  ;;  %v392_v6 = vmax.f32 %v360_v58, 0.0 }
  0x66   : > { %v683_v59 = vrot.slane %v681_v52, 1  ;;  %v475_v3 = vor.u32 %v473_v50, %v472_v57  ;;  %v606_v5 = vsel %vm2925_vm2, %v472_v57, 0  ;;  %v907_v8 = vrot.slane %v605_v41, 1 }
  0x67   : > { %v677_v1 = vsel %vm617_vm3, %v672_v55, %v676_v40  ;;  %v698_v9 = vshll.u32 %v606_v5, 16  ;;  %v338_v11 = vmul.f32 %v2619_v54, %v2950_v14  ;;  %v906_v12 = vrot.slane %v3235_v22, 1 }
  0x68   : > { %830 = vrot.lane.b32.xlu1 %v677_v1, %s2885_s8  ;;  %v684_v7 = vor.u32 %v683_v59, %v679_v51  ;;  %v3250_v13 = vsel %vm2925_vm2, 0, %v475_v3  ;;  %v417_v17 = vpack.c.bf16 %v392_v6, %v391_v62  ;;  %v339_v18 = vmul.f32 %v2620_v63, %v2950_v14 }
  0x69   : > { %v691_v19 = vshrl.u32 %v3250_v13, 16  ;;  %v693_v15 = vshll.u32 %v3250_v13, 16  ;;  %v377_v23 = vadd.f32 %v2969_v26, %v338_v11  ;;  %v700_v28 = vrot.slane %v698_v9, 1 }
  0x6a   : > { %v689_v16 = vsel %vm617_vm3, %v684_v7, %v688_v61  ;;  %v477_v60 = vshrl.u32 %v417_v17, 16  ;;  %v480_v21 = vshll.u32 %v417_v17, 16  ;;  %v378_v29 = vadd.f32 %v2969_v26, %v339_v18 }
  0x6b   : > { %v695_v25 = vrot.slane %v693_v15, 1  ;;  %v908_v10 = vsel %vm890_vm4, %v906_v12, %v907_v8  ;;  %v409_v14 = vmax.f32 %v377_v23, 0.0  ;;  %v909_v35 = vrot.slane %v3250_v13, 1 }
  0x6c   : > { %832 = vrot.lane.b32.xlu1 %v689_v16, %s2885_s8  ;;  %v479_v32 = vrot.slane %v477_v60, 7  ;;  %v910_v37 = vrot.slane %v606_v5, 1  ;;  %v410_v38 = vmax.f32 %v378_v29, 0.0 }
  0x6d   : > { %v696_v33 = vor.u32 %v695_v25, %v691_v19 }
  0x6e   : > { %v482_v40 = vor.u32 %v480_v21, %v479_v32  ;;  %v607_v41 = vsel %vm2925_vm2, %v479_v32, 0  ;;  %v426_v46 = vpack.c.bf16 %v410_v38, %v409_v14  ;;  %v911_v51 = vsel %vm890_vm4, %v909_v35, %v910_v37 }
  0x6f   : > { %v701_v34 = vsel %vm617_vm3, %v696_v33, %v700_v28  ;;  %v710_v42 = vshll.u32 %v607_v41, 16  ;;  %v913_v58 = vrot.slane %v607_v41, 1 }
  0x70   : > { %952 = vrot.lane.b32.xlu1 %v908_v10, %s2884_s30  ;;  %834 = vrot.lane.b32.xlu0 %v701_v34, %s2885_s8  ;;  %v3268_v26 = vsel %vm2925_vm2, 0, %v482_v40  ;;  %v540_v52 = vshrl.u32 %v426_v46, 16  ;;  %v543_v53 = vshll.u32 %v426_v46, 16  ;;  %v2864_v40 = vld [vmem:[%s3706_s3 + $0x38] sm:$0xff]  }
  0x71   : > { %v703_v48 = vshrl.u32 %v3268_v26, 16  ;;  %v705_v50 = vshll.u32 %v3268_v26, 16  ;;  %v712_v55 = vrot.slane %v710_v42, 1  ;;  %v912_v57 = vrot.slane %v3268_v26, 1 }
  0x72   : > { %v542_v59 = vrot.slane %v540_v52, 7  ;;  %v2867_v52 = vld [vmem:[%s3706_s3 + $0x48] sm:$0xff]  }
  0x73   : > { %v707_v54 = vrot.slane %v705_v50, 1  ;;  %v914_v5 = vsel %vm890_vm4, %v912_v57, %v913_v58  ;;  %v2868_v50 = vld [vmem:[%s3706_s3 + $0x68] sm:$0xff]  }
  0x74   : > { %954 = vrot.lane.b32.xlu0 %v911_v51, %s2884_s30  ;;  %v545_v62 = vor.u32 %v543_v53, %v542_v59  ;;  %v616_v63 = vsel %vm2925_vm2, %v542_v59, 0  ;;  %v2871_v59 = vld [vmem:[%s3706_s3 + $0x58] sm:$0xff]  }
  0x75   : > { %v708_v61 = vor.u32 %v707_v54, %v703_v48  ;;  %v818_v3 = vshll.u32 %v616_v63, 16  ;;  %v940_v11 = vrot.slane %v616_v63, 1  ;;  %v2869_v54 = vld [vmem:[%s3706_s3 + $0x70] sm:$0xff]  }
  0x76   : > { %v3282_v6 = vsel %vm2925_vm2, 0, %v545_v62  ;;  %v2873_v62 = vld [vmem:[%s3706_s3 + $0x80] sm:$0xff]  }
  0x77   : > { %v713_v1 = vsel %vm617_vm3, %v708_v61, %v712_v55  ;;  %v811_v7 = vshrl.u32 %v3282_v6, 16  ;;  %v813_v8 = vshll.u32 %v3282_v6, 16  ;;  %v939_v9 = vrot.slane %v3282_v6, 1  ;;  %v2872_v55 = vld [vmem:[%s3706_s3 + $0x78] sm:$0xff]  }
  0x78   : > { %836 = vrot.lane.b32.xlu1 %v713_v1, %s2885_s8  ;;  %v820_v17 = vrot.slane %v818_v3, 1  ;;  %v2874_v3 = vld [vmem:[%s3706_s3 + $0x88] sm:$0xff]  }
  0x79   : > { %v815_v12 = vrot.slane %v813_v8, 1  ;;  %v941_v16 = vsel %vm890_vm4, %v939_v9, %v940_v11 }
  0x7b   : > { %v816_v18 = vor.u32 %v815_v12, %v811_v7 }
  0x7c   : > { %956 = vrot.lane.b32.xlu1 %v914_v5, %s2884_s30 }
  0x7d   : > { %v821_v19 = vsel %vm617_vm3, %v816_v18, %v820_v17 }
  0x7e   : > { %854 = vrot.lane.b32.xlu0 %v821_v19, %s2885_s8 }
  0x7f   : > { %v943_v2 = vpop.permute.xlu0 %942 }
  0x80   : > { %974 = vrot.lane.b32.xlu1 %v941_v16, %s2884_s30 }
  0x82   : > { %v823_v15 = vpop.permute.xlu1 %822 }
  0x83   : > { %v978_v60 = vsel %vm976_vm5, %v2934_v4, %v823_v15 }
  0x84   : > { %v3295_v21 = vsel %vm1011_vm6, %v978_v60, %v943_v2 }
  0x85   : > { %2714 = vmatprep.mubr.msk.bf16.mxu0 %vm1094_vm7, %v3295_v21 }
  0x97   : > { %v963_v23 = vpop.permute.xlu0 %962  ;;  %v959_v25 = vpop.permute.xlu1 %958 }
  0x9b   : > { %v965_v28 = vpop.permute.xlu0 %964  ;;  %v961_v29 = vpop.permute.xlu1 %960 }
  0xa3   : > { %v967_v10 = vpop.permute.xlu0 %966 }
  0xa7   : > { %v839_v32 = vpop.permute.xlu0 %838 }
  0xa8   : > { %v994_v33 = vsel %vm976_vm5, %v3019_v31, %v839_v32 }
  0xa9   : > { %v945_v14 = vpop.permute.xlu1 %944  ;;  %v3302_v35 = vsel %vm1011_vm6, %v994_v33, %v959_v25 }
  0xaa   : > { %2730 = vmatprep.mubr.msk.bf16.mxu1 %vm1094_vm7, %v3302_v35 }
  0xab   : > { %v841_v4 = vpop.permute.xlu0 %840 }
  0xac   : > { %v996_v38 = vsel %vm976_vm5, %v3038_v47, %v841_v4  ;;  %v2866_v47 = vld [vmem:[%s3706_s3 + $0x40] sm:$0xff]  }
  0xad   : > { %v845_v37 = vpop.permute.xlu1 %844  ;;  %v3312_v41 = vsel %vm1011_vm6, %v996_v38, %v961_v29 }
  0xae   : > { %2731 = vmatmul.mubr.msk.bf16.vlgmr.msra.gmra.mrb[0].mxu1 %vm1094_vm7, %v3312_v41 }
  0xaf   : > { %v843_v31 = vpop.permute.xlu0 %842  ;;  %2747 = vmatpush3.bf16.msra.mxu1 %v3112_v39  ;;  %v1000_v39 = vsel %vm976_vm5, %v3025_v36, %v845_v37 }
  0xb0   : > { %v998_v42 = vsel %vm976_vm5, %v3015_v30, %v843_v31  ;;  %2748 = vmatprep.subr.bf16.mxu1 %v2864_v40  ;;  %v3343_v36 = vsel %vm1011_vm6, %v1000_v39, %v965_v28 }
  0xb1   : > { %v825_v34 = vpop.permute.xlu1 %824  ;;  %v3325_v48 = vsel %vm1011_vm6, %v998_v42, %v963_v23 }
  0xb2   : > { %v980_v46 = vsel %vm976_vm5, %v3080_v49, %v825_v34  ;;  %2734 = vmatprep.mubr.msk.bf16.mxu1 %vm1094_vm7, %v3325_v48 }
  0xb3   : > { %v1015_v30 = vsel %vm1011_vm6, %v980_v46, %v945_v14  ;;  %v847_v51 = vpop.permute.xlu0 %846  ;;  %2749 = vmatpush3.bf16.msra.mxu1 %v2864_v40 }
  0xb4   : > { %2715 = vmatmul.mubr.msk.bf16.vlgmr.msra.gmra.mrb[0].mxu0 %vm1094_vm7, %v1015_v30  ;;  %v1002_v49 = vsel %vm976_vm5, %v3062_v24, %v847_v51  ;;  %2750 = vmatprep.subr.bf16.mxu1 %v2866_v47  ;;  %v2870_v24 = vld [vmem:[%s3706_s3 + $0x50] sm:$0xff]  }
  0xb5   : > { %2791 = vmatpush3.bf16.msra.mxu0 %v3158_v43  ;;  %v3346_v53 = vsel %vm1011_vm6, %v1002_v49, %v967_v10 }
  0xb6   : > { %2792 = vmatprep.subr.bf16.mxu0 %v2868_v50  ;;  %2735 = vmatmul.mubr.msk.bf16.gmra.mrb[4].mxu1 %vm1094_vm7, %v3343_v36 }
  0xb7   : > { %2738 = vmatprep.mubr.msk.bf16.mxu1 %vm1094_vm7, %v3346_v53  ;;  %2751 = vmatpush3.bf16.msra.mxu1 %v2866_v47  ;;  %v969_v43 = vpop.permute.xlu0 %968 }
  0xb8   : > { %2752 = vmatprep.subr.bf16.mxu1 %v2867_v52 }
  0xb9   : > { %2793 = vmatpush3.bf16.msra.mxu0 %v2868_v50 }
  0xba   : > { %2794 = vmatprep.subr.bf16.mxu0 %v2869_v54 }
  0xbb   : > { %v849_v57 = vpop.permute.xlu1 %848  ;;  %2753 = vmatpush3.bf16.msra.mxu1 %v2867_v52 }
  0xbc   : > { %v1004_v58 = vsel %vm976_vm5, %v3126_v56, %v849_v57  ;;  %2754 = vmatprep.subr.bf16.mxu1 %v2870_v24 }
  0xbd   : > { %2795 = vmatpush3.bf16.msra.mxu0 %v2869_v54  ;;  %v3367_v61 = vsel %vm1011_vm6, %v1004_v58, %v969_v43 }
  0xbe   : > { %2796 = vmatprep.subr.bf16.mxu0 %v2872_v55  ;;  %2739 = vmatmul.mubr.msk.bf16.gmra.mrb[8].mxu1 %vm1094_vm7, %v3367_v61  ;;  %v947_v63 = vpop.permute.xlu0 %946 }
  0xbf   : > { %2755 = vmatpush3.bf16.msra.mxu1 %v2870_v24 }
  0xc0   : > { %2756 = vmatprep.subr.bf16.mxu1 %v2871_v59 }
  0xc1   : > { %v827_v56 = vpop.permute.xlu1 %826  ;;  %2797 = vmatpush3.bf16.msra.mxu0 %v2872_v55 }
  0xc2   : > { %v982_v1 = vsel %vm976_vm5, %v3144_v20, %v827_v56  ;;  %2798 = vmatprep.subr.bf16.mxu0 %v2873_v62 }
  0xc3   : > { %v1017_v5 = vsel %vm1011_vm6, %v982_v1, %v947_v63  ;;  %2757 = vmatpush3.bf16.msra.mxu1 %v2871_v59 }
  0xc4   : > { %2718 = vmatprep.mubr.msk.bf16.mxu0 %vm1094_vm7, %v1017_v5 }
  0xc5   : > { %v829_v7 = vpop.permute.xlu1 %828  ;;  %2799 = vmatpush3.bf16.msra.mxu0 %v2873_v62 }
  0xc6   : > { %2800 = vmatprep.subr.bf16.mxu0 %v2874_v3  ;;  %v984_v8 = vsel %vm976_vm5, %v3162_v44, %v829_v7 }
  0xc9   : > { %v949_v9 = vpop.permute.xlu1 %948  ;;  %v851_v11 = vpop.permute.xlu0 %850  ;;  %2801 = vmatpush3.bf16.msra.mxu0 %v2874_v3 }
  0xca   : > { %v1019_v20 = vsel %vm1011_vm6, %v984_v8, %v949_v9  ;;  %v1006_v12 = vsel %vm976_vm5, %v3177_v0, %v851_v11 }
  0xcb   : > { %2719 = vmatmul.mubr.msk.bf16.gmra.mrb[4].mxu0 %vm1094_vm7, %v1019_v20 }
  0xcd   : > { %v971_v17 = vpop.permute.xlu0 %970 }
  0xce   : > { %v1041_v18 = vsel %vm1011_vm6, %v1006_v12, %v971_v17 }
  0xcf   : > { %2742 = vmatprep.mubr.msk.bf16.mxu1 %vm1094_vm7, %v1041_v18 }
  0xd1   : > { %v853_v16 = vpop.permute.xlu1 %852  ;;  %v973_v19 = vpop.permute.xlu0 %972 }
  0xd2   : > { %v1008_v44 = vsel %vm976_vm5, %v3201_v45, %v853_v16 }
  0xd3   : > { %v1043_v2 = vsel %vm1011_vm6, %v1008_v44, %v973_v19 }
  0xd4   : > { %2743 = vmatmul.mubr.msk.bf16.gmra.mrb[12].mxu1 %vm1094_vm7, %v1043_v2 }
  0xd5   : > { %2758 = vmatprep.mubr.msk.bf16.mxu1 %vm1094_vm7, %v1015_v30 }
  0xd7   : > { %v951_v15 = vpop.permute.xlu0 %950 }
  0xda   : > { %v831_v60 = vpop.permute.xlu1 %830 }
  0xdb   : > { %v986_v0 = vsel %vm976_vm5, %v3223_v27, %v831_v60 }
  0xdc   : > { %v1021_v23 = vsel %vm1011_vm6, %v986_v0, %v951_v15  ;;  %2759 = vmatmul.mubr.msk.bf16.vlgmr.msra.gmra.mrb[16].mxu1 %vm1094_vm7, %v1017_v5 }
  0xdd   : > { %2722 = vmatprep.mubr.msk.bf16.mxu0 %vm1094_vm7, %v1021_v23  ;;  %2762 = vmatprep.mubr.msk.bf16.mxu1 %vm1094_vm7, %v1019_v20 }
  0xde   : > { %v833_v45 = vpop.permute.xlu1 %832 }
  0xdf   : > { %v988_v25 = vsel %vm976_vm5, %v3235_v22, %v833_v45 }
  0xe2   : > { %v953_v28 = vpop.permute.xlu1 %952  ;;  %v835_v10 = vpop.permute.xlu0 %834 }
  0xe3   : > { %v1023_v29 = vsel %vm1011_vm6, %v988_v25, %v953_v28  ;;  %v990_v27 = vsel %vm976_vm5, %v3250_v13, %v835_v10 }
  0xe4   : > { %2723 = vmatmul.mubr.msk.bf16.gmra.mrb[8].mxu0 %vm1094_vm7, %v1023_v29  ;;  %2763 = vmatmul.mubr.msk.bf16.gmra.mrb[20].mxu1 %vm1094_vm7, %v1021_v23 }
  0xe5   : > { %2766 = vmatprep.mubr.msk.bf16.mxu1 %vm1094_vm7, %v1023_v29 }
  0xe6   : > { %v955_v32 = vpop.permute.xlu0 %954 }
  0xe7   : > { %v1025_v14 = vsel %vm1011_vm6, %v990_v27, %v955_v32 }
  0xe8   : > { %2726 = vmatprep.mubr.msk.bf16.mxu0 %vm1094_vm7, %v1025_v14 }
  0xea   : > { %v837_v33 = vpop.permute.xlu1 %836 }
  0xeb   : > { %v992_v22 = vsel %vm976_vm5, %v3268_v26, %v837_v33 }
  0xec   : > { %2767 = vmatmul.mubr.msk.bf16.gmra.mrb[24].mxu1 %vm1094_vm7, %v1025_v14 }
  0xee   : > { %v957_v4 = vpop.permute.xlu1 %956 }
  0xef   : > { %v1027_v37 = vsel %vm1011_vm6, %v992_v22, %v957_v4 }
  0xf0   : > { %2727 = vmatmul.mubr.msk.bf16.gmra.mrb[12].mxu0 %vm1094_vm7, %v1027_v37  ;;  %2770 = vmatprep.mubr.msk.bf16.mxu1 %vm1094_vm7, %v1027_v37  ;;  %v855_v13 = vpop.permute.xlu0 %854 }
  0xf1   : > { %2802 = vmatprep.mubr.msk.bf16.mxu0 %vm1094_vm7, %v1017_v5  ;;  %v1010_v26 = vsel %vm976_vm5, %v3282_v6, %v855_v13 }
  0xf2   : > { %v975_v38 = vpop.permute.xlu1 %974 }
  0xf3   : > { %v1045_v40 = vsel %vm1011_vm6, %v1010_v26, %v975_v38 }
  0xf4   : > { %2771 = vmatmul.mubr.msk.bf16.gmra.mrb[28].mxu1 %vm1094_vm7, %v3302_v35 }
  0xf5   : > { %2774 = vmatprep.mubr.msk.bf16.mxu1 %vm1094_vm7, %v3312_v41 }
  0xf8   : > { %2803 = vmatmul.mubr.msk.bf16.vlgmr.msra.gmra.mrb[16].mxu0 %vm1094_vm7, %v1019_v20 }
  0xf9   : > { %2806 = vmatprep.mubr.msk.bf16.mxu0 %vm1094_vm7, %v1021_v23 }
  0xfc   : > { %2775 = vmatmul.mubr.msk.bf16.gmra.mrb[32].mxu1 %vm1094_vm7, %v3325_v48 }
  0xfd   : > { %2778 = vmatprep.mubr.msk.bf16.mxu1 %vm1094_vm7, %v3343_v36 }
 0x100   : > { %2807 = vmatmul.mubr.msk.bf16.gmra.mrb[20].mxu0 %vm1094_vm7, %v1023_v29 }
 0x101   : > { %2810 = vmatprep.mubr.msk.bf16.mxu0 %vm1094_vm7, %v1025_v14 }
 0x104   : > { %2779 = vmatmul.mubr.msk.bf16.gmra.mrb[36].mxu1 %vm1094_vm7, %v3346_v53 }
 0x105   : > { %2782 = vmatprep.mubr.msk.bf16.mxu1 %vm1094_vm7, %v3367_v61 }
 0x108   : > { %2811 = vmatmul.mubr.msk.bf16.gmra.mrb[24].mxu0 %vm1094_vm7, %v1027_v37 }
 0x109   : > { %2814 = vmatprep.mubr.msk.bf16.mxu0 %vm1094_vm7, %v3302_v35 }
 0x10c   : > { %2783 = vmatmul.mubr.msk.bf16.gmra.mrb[40].mxu1 %vm1094_vm7, %v1041_v18 }
 0x10d   : > { %2786 = vmatprep.mubr.msk.bf16.mxu1 %vm1094_vm7, %v1043_v2 }
 0x110   : > { %2815 = vmatmul.mubr.msk.bf16.gmra.mrb[28].mxu0 %vm1094_vm7, %v3312_v41 }
 0x111   : > { %2818 = vmatprep.mubr.msk.bf16.mxu0 %vm1094_vm7, %v3325_v48 }
 0x114   : > { %2787 = vmatmul.mubr.msk.bf16.gmra.mrb[44].mxu1 %vm1094_vm7, %v1045_v40 }
 0x118   : > { %2819 = vmatmul.mubr.msk.bf16.gmra.mrb[32].mxu0 %vm1094_vm7, %v3343_v36 }
 0x119   : > { %2822 = vmatprep.mubr.msk.bf16.mxu0 %vm1094_vm7, %v3346_v53 }
 0x120   : > { %2823 = vmatmul.mubr.msk.bf16.gmra.mrb[36].mxu0 %vm1094_vm7, %v3367_v61 }
 0x121   : > { %2826 = vmatprep.mubr.msk.bf16.mxu0 %vm1094_vm7, %v1041_v18 }
 0x128   : > { %2827 = vmatmul.mubr.msk.bf16.gmra.mrb[40].mxu0 %vm1094_vm7, %v1043_v2 }
 0x129   : > { %2830 = vmatprep.mubr.msk.bf16.mxu0 %vm1094_vm7, %v1045_v40 }
 0x130   : > { %2831 = vmatmul.mubr.msk.bf16.gmra.mrb[44].mxu0 %vm1094_vm7, %v3295_v21 }
 0x181   : > { %v2732_v6 = vpop.f32.mrb[0].mxu1 }
 0x182   : > { %1306 = vst.msk [vmem:[#allocation2 + $0x90] sm:$0xff] %vm976_vm5, %v2732_v6  ;;  %v1225_v35 = vpop.f32.mrb[1].mxu1 }
 0x183   : > { %1304 = vst.msk [vmem:[#allocation2 + $0x80] sm:$0xff] %vm976_vm5, %v1225_v35  ;;  %v2733_v41 = vpop.f32.mrb[2].mxu1 }
 0x184   : > { %1307 = vst.msk [vmem:[#allocation2 + $0x98] sm:$0xff] %vm976_vm5, %v2733_v41  ;;  %v1228_v31 = vpop.f32.mrb[3].mxu1 }
 0x185   : > { %1305 = vst.msk [vmem:[#allocation2 + $0x88] sm:$0xff] %vm976_vm5, %v1228_v31 }
 0x187   : > { %v2716_v34 = vpop.f32.mrb[0].mxu0 }
 0x188   : > { %1290 = vst.msk [vmem:[#allocation2 + $0x10] sm:$0xff] %vm976_vm5, %v2716_v34  ;;  %v1161_v42 = vpop.f32.mrb[1].mxu0 }
 0x189   : > { %1288 = vst.msk [vmem:[#allocation2] sm:$0xff] %vm976_vm5, %v1161_v42  ;;  %v2717_v47 = vpop.f32.mrb[2].mxu0  ;;  %v2736_v46 = vpop.f32.mrb[4].mxu1 }
 0x18a   : > { %1291 = vst.msk [vmem:[#allocation2 + $0x18] sm:$0xff] %vm976_vm5, %v2717_v47  ;;  %v1164_v21 = vpop.f32.mrb[3].mxu0  ;;  %1310 = vst.msk [vmem:[#allocation2 + $0xb0] sm:$0xff] %vm976_vm5, %v2736_v46  ;;  %v1241_v48 = vpop.f32.mrb[5].mxu1 }
 0x18b   : > { %1289 = vst.msk [vmem:[#allocation2 + $0x8] sm:$0xff] %vm976_vm5, %v1164_v21  ;;  %1308 = vst.msk [vmem:[#allocation2 + $0xa0] sm:$0xff] %vm976_vm5, %v1241_v48  ;;  %v2737_v50 = vpop.f32.mrb[6].mxu1 }
 0x18c   : > { %1311 = vst.msk [vmem:[#allocation2 + $0xb8] sm:$0xff] %vm976_vm5, %v2737_v50  ;;  %v1244_v39 = vpop.f32.mrb[7].mxu1 }
 0x18d   : > { %1309 = vst.msk [vmem:[#allocation2 + $0xa8] sm:$0xff] %vm976_vm5, %v1244_v39 }
 0x18f   : > { %v1534_v61 = vld [vmem:[#allocation2 + $0x10] sm:$0xff] }
 0x190   : > { %v1532_v56 = vld [vmem:[#allocation2] sm:$0xff] }
 0x191   : > { %v2740_v30 = vpop.f32.mrb[8].mxu1  ;;  %v1535_v5 = vld [vmem:[#allocation2 + $0x18] sm:$0xff] }
 0x192   : > { %1314 = vst.msk [vmem:[#allocation2 + $0xd0] sm:$0xff] %vm976_vm5, %v2740_v30  ;;  %v1257_v51 = vpop.f32.mrb[9].mxu1  ;;  %v1533_v9 = vld [vmem:[#allocation2 + $0x8] sm:$0xff] }
 0x193   : > { %1312 = vst.msk [vmem:[#allocation2 + $0xc0] sm:$0xff] %vm976_vm5, %v1257_v51  ;;  %v2741_v49 = vpop.f32.mrb[10].mxu1 }
 0x194   : > { %1315 = vst.msk [vmem:[#allocation2 + $0xd8] sm:$0xff] %vm976_vm5, %v2741_v49  ;;  %v1260_v52 = vpop.f32.mrb[11].mxu1 }
 0x195   : > { %1313 = vst.msk [vmem:[#allocation2 + $0xc8] sm:$0xff] %vm976_vm5, %v1260_v52 }
 0x19e   : > { %v2720_v36 = vpop.f32.mrb[4].mxu0 }
 0x19f   : > { %1294 = vst.msk [vmem:[#allocation2 + $0x30] sm:$0xff] %vm976_vm5, %v2720_v36  ;;  %v1177_v53 = vpop.f32.mrb[5].mxu0 }
 0x1a0   : > { %1292 = vst.msk [vmem:[#allocation2 + $0x20] sm:$0xff] %vm976_vm5, %v1177_v53  ;;  %v2721_v54 = vpop.f32.mrb[6].mxu0 }
 0x1a1   : > { %1295 = vst.msk [vmem:[#allocation2 + $0x38] sm:$0xff] %vm976_vm5, %v2721_v54  ;;  %v1180_v24 = vpop.f32.mrb[7].mxu0 }
 0x1a2   : > { %1293 = vst.msk [vmem:[#allocation2 + $0x28] sm:$0xff] %vm976_vm5, %v1180_v24 }
 0x1a6   : > { %v1538_v17 = vld [vmem:[#allocation2 + $0x30] sm:$0xff] }
 0x1a7   : > { %v2744_v43 = vpop.f32.mrb[12].mxu1  ;;  %v1536_v44 = vld [vmem:[#allocation2 + $0x20] sm:$0xff] }
 0x1a8   : > { %1318 = vst.msk [vmem:[#allocation2 + $0xf0] sm:$0xff] %vm976_vm5, %v2744_v43  ;;  %v1273_v55 = vpop.f32.mrb[13].mxu1  ;;  %v1539_v0 = vld [vmem:[#allocation2 + $0x38] sm:$0xff] }
 0x1a9   : > { %1316 = vst.msk [vmem:[#allocation2 + $0xe0] sm:$0xff] %vm976_vm5, %v1273_v55  ;;  %v2745_v57 = vpop.f32.mrb[14].mxu1  ;;  %v1537_v28 = vld [vmem:[#allocation2 + $0x28] sm:$0xff] }
 0x1aa   : > { %1319 = vst.msk [vmem:[#allocation2 + $0xf8] sm:$0xff] %vm976_vm5, %v2745_v57  ;;  %v1276_v58 = vpop.f32.mrb[15].mxu1 }
 0x1ab   : > { %1317 = vst.msk [vmem:[#allocation2 + $0xe8] sm:$0xff] %vm976_vm5, %v1276_v58 }
 0x1af   : > { %v2760_v59 = vpop.f32.mrb[16].mxu1 }
 0x1b0   : > { %v1566_v62 = vadd.f32 %v2760_v59, %v1534_v61  ;;  %v1405_v63 = vpop.f32.mrb[17].mxu1 }
 0x1b1   : > { %v1564_v1 = vadd.f32 %v1532_v56, %v1405_v63  ;;  %v2761_v3 = vpop.f32.mrb[18].mxu1  ;;  %v1550_v63 = vld [vmem:[#allocation2 + $0x90] sm:$0xff] }
 0x1b2   : > { %1598 = vst.msk [vmem:[#allocation2 + $0x10] sm:$0xff] %vm976_vm5, %v1566_v62  ;;  %v1567_v7 = vadd.f32 %v2761_v3, %v1535_v5  ;;  %v1408_v8 = vpop.f32.mrb[19].mxu1 }
 0x1b3   : > { %1596 = vst.msk [vmem:[#allocation2] sm:$0xff] %vm976_vm5, %v1564_v1  ;;  %v1565_v11 = vadd.f32 %v1533_v9, %v1408_v8 }
 0x1b4   : > { %1599 = vst.msk [vmem:[#allocation2 + $0x18] sm:$0xff] %vm976_vm5, %v1567_v7  ;;  %v1548_v7 = vld [vmem:[#allocation2 + $0x80] sm:$0xff] }
 0x1b5   : > { %1597 = vst.msk [vmem:[#allocation2 + $0x8] sm:$0xff] %vm976_vm5, %v1565_v11  ;;  %v1551_v11 = vld [vmem:[#allocation2 + $0x98] sm:$0xff] }
 0x1b7   : > { %v2724_v20 = vpop.f32.mrb[8].mxu0  ;;  %v2764_v12 = vpop.f32.mrb[20].mxu1 }
 0x1b8   : > { %1298 = vst.msk [vmem:[#allocation2 + $0x50] sm:$0xff] %vm976_vm5, %v2724_v20  ;;  %v1193_v18 = vpop.f32.mrb[9].mxu0  ;;  %v1570_v16 = vadd.f32 %v2764_v12, %v1538_v17  ;;  %v1421_v19 = vpop.f32.mrb[21].mxu1  ;;  %v1549_v17 = vld [vmem:[#allocation2 + $0x88] sm:$0xff] }
 0x1b9   : > { %1296 = vst.msk [vmem:[#allocation2 + $0x40] sm:$0xff] %vm976_vm5, %v1193_v18  ;;  %v2725_v2 = vpop.f32.mrb[10].mxu0  ;;  %v1568_v15 = vadd.f32 %v1536_v44, %v1421_v19  ;;  %v2765_v60 = vpop.f32.mrb[22].mxu1  ;;  %v1840_v48 = vld [vmem:[#allocation2 + $0x10] sm:$0xff] }
 0x1ba   : > { %1299 = vst.msk [vmem:[#allocation2 + $0x58] sm:$0xff] %vm976_vm5, %v2725_v2  ;;  %v1196_v23 = vpop.f32.mrb[11].mxu0  ;;  %1602 = vst.msk [vmem:[#allocation2 + $0x30] sm:$0xff] %vm976_vm5, %v1570_v16  ;;  %v1571_v45 = vadd.f32 %v2765_v60, %v1539_v0  ;;  %v1424_v25 = vpop.f32.mrb[23].mxu1  ;;  %v1838_v51 = vld [vmem:[#allocation2] sm:$0xff] }
 0x1bb   : > { %1297 = vst.msk [vmem:[#allocation2 + $0x48] sm:$0xff] %vm976_vm5, %v1196_v23  ;;  %1600 = vst.msk [vmem:[#allocation2 + $0x20] sm:$0xff] %vm976_vm5, %v1568_v15  ;;  %v1569_v29 = vadd.f32 %v1537_v28, %v1424_v25  ;;  %v1841_v54 = vld [vmem:[#allocation2 + $0x18] sm:$0xff] }
 0x1bc   : > { %1603 = vst.msk [vmem:[#allocation2 + $0x38] sm:$0xff] %vm976_vm5, %v1571_v45  ;;  %v1839_v58 = vld [vmem:[#allocation2 + $0x8] sm:$0xff] }
 0x1bd   : > { %1601 = vst.msk [vmem:[#allocation2 + $0x28] sm:$0xff] %vm976_vm5, %v1569_v29 }
 0x1bf   : > { %v2768_v10 = vpop.f32.mrb[24].mxu1  ;;  %v1542_v27 = vld [vmem:[#allocation2 + $0x50] sm:$0xff] }
 0x1c0   : > { %v1574_v32 = vadd.f32 %v2768_v10, %v1542_v27  ;;  %v1437_v14 = vpop.f32.mrb[25].mxu1  ;;  %v1540_v33 = vld [vmem:[#allocation2 + $0x40] sm:$0xff] }
 0x1c1   : > { %v1572_v22 = vadd.f32 %v1540_v33, %v1437_v14  ;;  %v2769_v4 = vpop.f32.mrb[26].mxu1  ;;  %v1543_v37 = vld [vmem:[#allocation2 + $0x58] sm:$0xff]  ;;  %v1844_v19 = vld [vmem:[#allocation2 + $0x30] sm:$0xff] }
 0x1c2   : > { %1606 = vst.msk [vmem:[#allocation2 + $0x50] sm:$0xff] %vm976_vm5, %v1574_v32  ;;  %v1575_v13 = vadd.f32 %v2769_v4, %v1543_v37  ;;  %v1440_v26 = vpop.f32.mrb[27].mxu1  ;;  %v1541_v38 = vld [vmem:[#allocation2 + $0x48] sm:$0xff]  ;;  %v1842_v15 = vld [vmem:[#allocation2 + $0x20] sm:$0xff] }
 0x1c3   : > { %1604 = vst.msk [vmem:[#allocation2 + $0x40] sm:$0xff] %vm976_vm5, %v1572_v22  ;;  %v1573_v40 = vadd.f32 %v1541_v38, %v1440_v26  ;;  %v2728_v6 = vpop.f32.mrb[12].mxu0  ;;  %v1845_v45 = vld [vmem:[#allocation2 + $0x38] sm:$0xff] }
 0x1c4   : > { %1607 = vst.msk [vmem:[#allocation2 + $0x58] sm:$0xff] %vm976_vm5, %v1575_v13  ;;  %1302 = vst.msk [vmem:[#allocation2 + $0x70] sm:$0xff] %vm976_vm5, %v2728_v6  ;;  %v1209_v35 = vpop.f32.mrb[13].mxu0  ;;  %v1843_v27 = vld [vmem:[#allocation2 + $0x28] sm:$0xff] }
 0x1c5   : > { %1605 = vst.msk [vmem:[#allocation2 + $0x48] sm:$0xff] %vm976_vm5, %v1573_v40  ;;  %1300 = vst.msk [vmem:[#allocation2 + $0x60] sm:$0xff] %vm976_vm5, %v1209_v35  ;;  %v2729_v41 = vpop.f32.mrb[14].mxu0 }
 0x1c6   : > { %1303 = vst.msk [vmem:[#allocation2 + $0x78] sm:$0xff] %vm976_vm5, %v2729_v41  ;;  %v1212_v31 = vpop.f32.mrb[15].mxu0 }
 0x1c7   : > { %v2772_v34 = vpop.f32.mrb[28].mxu1  ;;  %1301 = vst.msk [vmem:[#allocation2 + $0x68] sm:$0xff] %vm976_vm5, %v1212_v31 }
 0x1c8   : > { %v1453_v42 = vpop.f32.mrb[29].mxu1 }
 0x1c9   : > { %v2773_v47 = vpop.f32.mrb[30].mxu1 }
 0x1ca   : > { %v1456_v21 = vpop.f32.mrb[31].mxu1 }
 0x1cb   : > { %v2804_v46 = vpop.f32.mrb[16].mxu0  ;;  %v1546_v50 = vld [vmem:[#allocation2 + $0x70] sm:$0xff] }
 0x1cc   : > { %v1872_v39 = vadd.f32 %v2804_v46, %v1840_v48  ;;  %v1711_v30 = vpop.f32.mrb[17].mxu0  ;;  %v1578_v49 = vadd.f32 %v2772_v34, %v1546_v50  ;;  %v1544_v52 = vld [vmem:[#allocation2 + $0x60] sm:$0xff] }
 0x1cd   : > { %v1870_v36 = vadd.f32 %v1838_v51, %v1711_v30  ;;  %v2805_v53 = vpop.f32.mrb[18].mxu0  ;;  %v1576_v24 = vadd.f32 %v1544_v52, %v1453_v42  ;;  %v1547_v43 = vld [vmem:[#allocation2 + $0x78] sm:$0xff]  ;;  %v1554_v42 = vld [vmem:[#allocation2 + $0xb0] sm:$0xff]  ;;  %v1553_v51 = vld [vmem:[#allocation2 + $0xa8] sm:$0xff] }
 0x1ce   : > { %1904 = vst.msk [vmem:[#allocation2 + $0x10] sm:$0xff] %vm976_vm5, %v1872_v39  ;;  %v1873_v55 = vadd.f32 %v2805_v53, %v1841_v54  ;;  %v1714_v57 = vpop.f32.mrb[19].mxu0  ;;  %1610 = vst.msk [vmem:[#allocation2 + $0x70] sm:$0xff] %vm976_vm5, %v1578_v49  ;;  %v1579_v59 = vadd.f32 %v2773_v47, %v1547_v43  ;;  %v1545_v61 = vld [vmem:[#allocation2 + $0x68] sm:$0xff]  ;;  %v1552_v47 = vld [vmem:[#allocation2 + $0xa0] sm:$0xff] }
 0x1cf   : > { %v2776_v62 = vpop.f32.mrb[32].mxu1  ;;  %1902 = vst.msk [vmem:[#allocation2] sm:$0xff] %vm976_vm5, %v1870_v36  ;;  %v1871_v56 = vadd.f32 %v1839_v58, %v1714_v57  ;;  %1608 = vst.msk [vmem:[#allocation2 + $0x60] sm:$0xff] %vm976_vm5, %v1576_v24  ;;  %v1577_v1 = vadd.f32 %v1545_v61, %v1456_v21  ;;  %v1555_v30 = vld [vmem:[#allocation2 + $0xb8] sm:$0xff]  ;;  %v1848_v53 = vld [vmem:[#allocation2 + $0x50] sm:$0xff] }
 0x1d0   : > { %v1582_v3 = vadd.f32 %v2776_v62, %v1550_v63  ;;  %v1469_v5 = vpop.f32.mrb[33].mxu1  ;;  %1905 = vst.msk [vmem:[#allocation2 + $0x18] sm:$0xff] %vm976_vm5, %v1873_v55  ;;  %1611 = vst.msk [vmem:[#allocation2 + $0x78] sm:$0xff] %vm976_vm5, %v1579_v59  ;;  %v1846_v59 = vld [vmem:[#allocation2 + $0x40] sm:$0xff] }
 0x1d1   : > { %v1580_v8 = vadd.f32 %v1548_v7, %v1469_v5  ;;  %v2777_v9 = vpop.f32.mrb[34].mxu1  ;;  %1903 = vst.msk [vmem:[#allocation2 + $0x8] sm:$0xff] %vm976_vm5, %v1871_v56  ;;  %1609 = vst.msk [vmem:[#allocation2 + $0x68] sm:$0xff] %vm976_vm5, %v1577_v1 }
 0x1d2   : > { %1614 = vst.msk [vmem:[#allocation2 + $0x90] sm:$0xff] %vm976_vm5, %v1582_v3  ;;  %v1583_v20 = vadd.f32 %v2777_v9, %v1551_v11  ;;  %v1472_v12 = vpop.f32.mrb[35].mxu1 }
 0x1d3   : > { %1612 = vst.msk [vmem:[#allocation2 + $0x80] sm:$0xff] %vm976_vm5, %v1580_v8  ;;  %v1581_v18 = vadd.f32 %v1549_v17, %v1472_v12  ;;  %v2808_v16 = vpop.f32.mrb[20].mxu0 }
 0x1d4   : > { %1615 = vst.msk [vmem:[#allocation2 + $0x98] sm:$0xff] %vm976_vm5, %v1583_v20  ;;  %v1876_v44 = vadd.f32 %v2808_v16, %v1844_v19  ;;  %v1727_v2 = vpop.f32.mrb[21].mxu0 }
 0x1d5   : > { %1613 = vst.msk [vmem:[#allocation2 + $0x88] sm:$0xff] %vm976_vm5, %v1581_v18  ;;  %v1936_v60 = vld [vmem:[#allocation2 + $0x10] sm:$0xff]  ;;  %v1874_v0 = vadd.f32 %v1842_v15, %v1727_v2  ;;  %v2809_v23 = vpop.f32.mrb[22].mxu0 }
 0x1d6   : > { %v2527_v25 = vpack.c.bf16 %v1936_v60, %v1936_v60  ;;  %v1934_v28 = vld [vmem:[#allocation2] sm:$0xff]  ;;  %1908 = vst.msk [vmem:[#allocation2 + $0x30] sm:$0xff] %vm976_vm5, %v1876_v44  ;;  %v1877_v29 = vadd.f32 %v2809_v23, %v1845_v45  ;;  %v1730_v10 = vpop.f32.mrb[23].mxu0  ;;  %v2130_v13 = vsel %vm976_vm5, %v1936_v60, 0.0  ;;  %v2198_v26 = vmul.f32 %v1936_v60, %v1936_v60 }
 0x1d7   : > { %v2780_v32 = vpop.f32.mrb[36].mxu1  ;;  %v2525_v14 = vpack.c.bf16 %v1934_v28, %v1934_v28  ;;  %v2196_v33 = vmul.f32 %v1934_v28, %v1934_v28  ;;  %v1937_v22 = vld [vmem:[#allocation2 + $0x18] sm:$0xff]  ;;  %1906 = vst.msk [vmem:[#allocation2 + $0x20] sm:$0xff] %vm976_vm5, %v1874_v0  ;;  %v1875_v4 = vadd.f32 %v1843_v27, %v1730_v10  ;;  %v2127_v35 = vsel %vm976_vm5, %v1934_v28, 0.0 }
 0x1d8   : > { %v1485_v37 = vpop.f32.mrb[37].mxu1  ;;  %2097 = vst.msk [vmem:[%s3518_s23 + $0x8] sm:$0xf] %vm2094_vm8, %v2527_v25  ;;  %v2528_v38 = vpack.c.bf16 %v1937_v22, %v1937_v22  ;;  %v1935_v40 = vld [vmem:[#allocation2 + $0x8] sm:$0xff]  ;;  %v2199_v46 = vmul.f32 %v1937_v22, %v1937_v22  ;;  %v1586_v50 = vadd.f32 %v2780_v32, %v1554_v42  ;;  %v2231_v61 = vsel %vm976_vm5, %v2198_v26, 0.0 }
 0x1d9   : > { %1909 = vst.msk [vmem:[#allocation2 + $0x38] sm:$0xff] %vm976_vm5, %v1877_v29  ;;  %v2781_v6 = vpop.f32.mrb[38].mxu1  ;;  %v2526_v41 = vpack.c.bf16 %v1935_v40, %v1935_v40  ;;  %v2128_v31 = vsel %vm976_vm5, %v1935_v40, 0.0  ;;  %v2197_v34 = vmul.f32 %v1935_v40, %v1935_v40  ;;  %1907 = vst.msk [vmem:[#allocation2 + $0x28] sm:$0xff] %vm976_vm5, %v1875_v4  ;;  %v1584_v39 = vadd.f32 %v1552_v47, %v1485_v37  ;;  %v1849_v29 = vld [vmem:[#allocation2 + $0x58] sm:$0xff]  ;;  %v1558_v4 = vld [vmem:[#allocation2 + $0xd0] sm:$0xff] }
 0x1da   : > { %2095 = vst.msk [vmem:[%s3518_s23] sm:$0xf] %vm2094_vm8, %v2525_v14  ;;  %v1488_v21 = vpop.f32.mrb[39].mxu1  ;;  %2098 = vst.msk [vmem:[%s3518_s23 + $0xc] sm:$0xf] %vm2094_vm8, %v2528_v38  ;;  %v2129_v48 = vadd.f32 %v2128_v31, %v2127_v35  ;;  %v2228_v49 = vsel %vm976_vm5, %v2196_v33, 0.0  ;;  %v1587_v54 = vadd.f32 %v2781_v6, %v1555_v30 }
 0x1db   : > { %2096 = vst.msk [vmem:[%s3518_s23 + $0x4] sm:$0xf] %vm2094_vm8, %v2526_v41  ;;  %v2229_v52 = vsel %vm976_vm5, %v2197_v34, 0.0  ;;  %v2812_v36 = vpop.f32.mrb[24].mxu0  ;;  %v1585_v24 = vadd.f32 %v1553_v51, %v1488_v21  ;;  %v2132_v1 = vsel %vm976_vm5, %v1937_v22, 0.0  ;;  %v2233_v3 = vsel %vm976_vm5, %v2199_v46, 0.0 }
 0x1dc   : > { %v2131_v43 = vadd.f32 %v2130_v13, %v2129_v48  ;;  %v2230_v55 = vadd.f32 %v2229_v52, %v2228_v49  ;;  %v1880_v57 = vadd.f32 %v2812_v36, %v1848_v53  ;;  %v1743_v58 = vpop.f32.mrb[25].mxu0  ;;  %1618 = vst.msk [vmem:[#allocation2 + $0xb0] sm:$0xff] %vm976_vm5, %v1586_v50  ;;  %1616 = vst.msk [vmem:[#allocation2 + $0xa0] sm:$0xff] %vm976_vm5, %v1584_v39  ;;  %v1847_v22 = vld [vmem:[#allocation2 + $0x48] sm:$0xff]  ;;  %v1852_v40 = vld [vmem:[#allocation2 + $0x70] sm:$0xff] }
 0x1dd   : > { %v1940_v62 = vld [vmem:[#allocation2 + $0x30] sm:$0xff]  ;;  %v1878_v63 = vadd.f32 %v1846_v59, %v1743_v58  ;;  %v2813_v56 = vpop.f32.mrb[26].mxu0  ;;  %1619 = vst.msk [vmem:[#allocation2 + $0xb8] sm:$0xff] %vm976_vm5, %v1587_v54  ;;  %1617 = vst.msk [vmem:[#allocation2 + $0xa8] sm:$0xff] %vm976_vm5, %v1585_v24  ;;  %v1556_v35 = vld [vmem:[#allocation2 + $0xc0] sm:$0xff] }
 0x1de   : > { %v2232_v5 = vadd.f32 %v2231_v61, %v2230_v55  ;;  %v2531_v7 = vpack.c.bf16 %v1940_v62, %v1940_v62  ;;  %v1938_v8 = vld [vmem:[#allocation2 + $0x20] sm:$0xff]  ;;  %1912 = vst.msk [vmem:[#allocation2 + $0x50] sm:$0xff] %vm976_vm5, %v1880_v57  ;;  %v1746_v9 = vpop.f32.mrb[27].mxu0  ;;  %v2133_v12 = vadd.f32 %v2132_v1, %v2131_v43  ;;  %v2138_v44 = vsel %vm976_vm5, %v1940_v62, 0.0  ;;  %v1559_v41 = vld [vmem:[#allocation2 + $0xd8] sm:$0xff]  ;;  %v1557_v48 = vld [vmem:[#allocation2 + $0xc8] sm:$0xff] }
 0x1df   : > { %v2784_v11 = vpop.f32.mrb[40].mxu1  ;;  %v2529_v20 = vpack.c.bf16 %v1938_v8, %v1938_v8  ;;  %v2134_v17 = vsel %vm976_vm5, %v1938_v8, 0.0  ;;  %v2200_v18 = vmul.f32 %v1938_v8, %v1938_v8  ;;  %1910 = vst.msk [vmem:[#allocation2 + $0x40] sm:$0xff] %vm976_vm5, %v1878_v63  ;;  %v2202_v23 = vmul.f32 %v1940_v62, %v1940_v62  ;;  %v1850_v47 = vld [vmem:[#allocation2 + $0x60] sm:$0xff]  ;;  %v1853_v52 = vld [vmem:[#allocation2 + $0x78] sm:$0xff]  ;;  %v1562_v1 = vld [vmem:[#allocation2 + $0xf0] sm:$0xff] }
 0x1e0   : > { %v1941_v16 = vld [vmem:[#allocation2 + $0x38] sm:$0xff]  ;;  %v1501_v19 = vpop.f32.mrb[41].mxu1  ;;  %2101 = vst.msk [vmem:[%s3518_s23 + $0x18] sm:$0xf] %vm2094_vm8, %v2531_v7  ;;  %v2234_v2 = vadd.f32 %v2233_v3, %v2232_v5  ;;  %v1939_v60 = vld [vmem:[#allocation2 + $0x28] sm:$0xff]  ;;  %v2135_v45 = vadd.f32 %v2134_v17, %v2133_v12  ;;  %v1881_v33 = vadd.f32 %v2813_v56, %v1849_v29  ;;  %v1879_v26 = vadd.f32 %v1847_v22, %v1746_v9 }
 0x1e1   : > { %v2532_v15 = vpack.c.bf16 %v1941_v16, %v1941_v16  ;;  %v2785_v0 = vpop.f32.mrb[42].mxu1  ;;  %2099 = vst.msk [vmem:[%s3518_s23 + $0x10] sm:$0xf] %vm2094_vm8, %v2529_v20  ;;  %v2235_v25 = vsel %vm976_vm5, %v2200_v18, 0.0  ;;  %v2530_v28 = vpack.c.bf16 %v1939_v60, %v1939_v60  ;;  %v2136_v32 = vsel %vm976_vm5, %v1939_v60, 0.0  ;;  %v1851_v56 = vld [vmem:[#allocation2 + $0x68] sm:$0xff] }
 0x1e2   : > { %v1504_v10 = vpop.f32.mrb[43].mxu1  ;;  %v2236_v27 = vadd.f32 %v2235_v25, %v2234_v2  ;;  %v2201_v14 = vmul.f32 %v1939_v60, %v1939_v60  ;;  %v2203_v37 = vmul.f32 %v1941_v16, %v1941_v16  ;;  %v2137_v13 = vadd.f32 %v2136_v32, %v2135_v45  ;;  %1913 = vst.msk [vmem:[#allocation2 + $0x58] sm:$0xff] %vm976_vm5, %v1881_v33  ;;  %v1563_v12 = vld [vmem:[#allocation2 + $0xf8] sm:$0xff]  ;;  %v1856_v45 = vld [vmem:[#allocation2 + $0x90] sm:$0xff] }
 0x1e3   : > { %2102 = vst.msk [vmem:[%s3518_s23 + $0x1c] sm:$0xf] %vm2094_vm8, %v2532_v15  ;;  %2100 = vst.msk [vmem:[%s3518_s23 + $0x14] sm:$0xf] %vm2094_vm8, %v2530_v28  ;;  %v2816_v38 = vpop.f32.mrb[28].mxu0  ;;  %v1590_v6 = vadd.f32 %v2784_v11, %v1558_v4  ;;  %v1588_v21 = vadd.f32 %v1556_v35, %v1501_v19  ;;  %v1591_v46 = vadd.f32 %v2785_v0, %v1559_v41  ;;  %v2239_v53 = vsel %vm976_vm5, %v2202_v23, 0.0 }
 0x1e4   : > { %v2237_v31 = vsel %vm976_vm5, %v2201_v14, 0.0  ;;  %v1884_v34 = vadd.f32 %v2816_v38, %v1852_v40  ;;  %v1759_v42 = vpop.f32.mrb[29].mxu0  ;;  %v2139_v50 = vadd.f32 %v2138_v44, %v2137_v13  ;;  %1911 = vst.msk [vmem:[#allocation2 + $0x48] sm:$0xff] %vm976_vm5, %v1879_v26  ;;  %v1589_v36 = vadd.f32 %v1557_v48, %v1504_v10  ;;  %v1560_v11 = vld [vmem:[#allocation2 + $0xe0] sm:$0xff]  ;;  %v1561_v44 = vld [vmem:[#allocation2 + $0xe8] sm:$0xff] }
 0x1e5   : > { %v2238_v39 = vadd.f32 %v2237_v31, %v2236_v27  ;;  %v3560_v30 = vld [vmem:[#allocation2 + $0x50] sm:$0xff]  ;;  %v1882_v51 = vadd.f32 %v1850_v47, %v1759_v42  ;;  %v2817_v49 = vpop.f32.mrb[30].mxu0  ;;  %1622 = vst.msk [vmem:[#allocation2 + $0xd0] sm:$0xff] %vm976_vm5, %v1590_v6  ;;  %v2140_v54 = vsel %vm976_vm5, %v1941_v16, 0.0  ;;  %1620 = vst.msk [vmem:[#allocation2 + $0xc0] sm:$0xff] %vm976_vm5, %v1588_v21  ;;  %v2241_v5 = vsel %vm976_vm5, %v2203_v37, 0.0 }
 0x1e6   : > { %v2535_v24 = vpack.c.bf16 %v3560_v30, %v3560_v30  ;;  %v1942_v43 = vld [vmem:[#allocation2 + $0x40] sm:$0xff]  ;;  %1916 = vst.msk [vmem:[#allocation2 + $0x70] sm:$0xff] %vm976_vm5, %v1884_v34  ;;  %v1885_v55 = vadd.f32 %v2817_v49, %v1853_v52  ;;  %v1762_v57 = vpop.f32.mrb[31].mxu0  ;;  %1623 = vst.msk [vmem:[#allocation2 + $0xd8] sm:$0xff] %vm976_vm5, %v1591_v46  ;;  %v2141_v62 = vadd.f32 %v2140_v54, %v2139_v50  ;;  %v2146_v31 = vsel %vm976_vm5, %v3560_v30, 0.0 }
 0x1e7   : > { %v2788_v58 = vpop.f32.mrb[44].mxu1  ;;  %v2240_v59 = vadd.f32 %v2239_v53, %v2238_v39  ;;  %v2533_v61 = vpack.c.bf16 %v1942_v43, %v1942_v43  ;;  %v2142_v63 = vsel %vm976_vm5, %v1942_v43, 0.0  ;;  %1914 = vst.msk [vmem:[#allocation2 + $0x60] sm:$0xff] %vm976_vm5, %v1882_v51  ;;  %1621 = vst.msk [vmem:[#allocation2 + $0xc8] sm:$0xff] %vm976_vm5, %v1589_v36  ;;  %v2204_v7 = vmul.f32 %v1942_v43, %v1942_v43  ;;  %v1854_v14 = vld [vmem:[#allocation2 + $0x80] sm:$0xff]  ;;  %v1857_v39 = vld [vmem:[#allocation2 + $0x98] sm:$0xff] }
 0x1e8   : > { %v1517_v3 = vpop.f32.mrb[45].mxu1  ;;  %2105 = vst.msk [vmem:[%s3518_s23 + $0x28] sm:$0xf] %vm2094_vm8, %v2535_v24  ;;  %v1883_v8 = vadd.f32 %v1851_v56, %v1762_v57  ;;  %v1594_v9 = vadd.f32 %v2788_v58, %v1562_v1  ;;  %v2143_v2 = vadd.f32 %v2142_v63, %v2141_v62  ;;  %v2206_v25 = vmul.f32 %v3560_v30, %v3560_v30  ;;  %v1860_v63 = vld [vmem:[#allocation2 + $0xb0] sm:$0xff] }
 0x1e9   : > { %1917 = vst.msk [vmem:[#allocation2 + $0x78] sm:$0xff] %vm976_vm5, %v1885_v55  ;;  %v2789_v20 = vpop.f32.mrb[46].mxu1  ;;  %v2242_v17 = vadd.f32 %v2241_v5, %v2240_v59  ;;  %v1592_v18 = vadd.f32 %v1560_v11, %v1517_v3  ;;  %v2243_v15 = vsel %vm976_vm5, %v2204_v7, 0.0  ;;  %v1945_v0 = vld [vmem:[#allocation2 + $0x58] sm:$0xff]  ;;  %v1855_v55 = vld [vmem:[#allocation2 + $0x88] sm:$0xff]  ;;  %v1858_v7 = vld [vmem:[#allocation2 + $0xa0] sm:$0xff] }
 0x1ea   : > { %2103 = vst.msk [vmem:[%s3518_s23 + $0x20] sm:$0xf] %vm2094_vm8, %v2533_v61  ;;  %v1595_v16 = vadd.f32 %v2789_v20, %v1563_v12  ;;  %v1520_v19 = vpop.f32.mrb[47].mxu1  ;;  %v2536_v29 = vpack.c.bf16 %v1945_v0, %v1945_v0  ;;  %v2207_v38 = vmul.f32 %v1945_v0, %v1945_v0  ;;  %v2247_v51 = vsel %vm976_vm5, %v2206_v25, 0.0 }
 0x1eb   : > { %1915 = vst.msk [vmem:[#allocation2 + $0x68] sm:$0xff] %vm976_vm5, %v1883_v8  ;;  %1626 = vst.msk [vmem:[#allocation2 + $0xf0] sm:$0xff] %vm976_vm5, %v1594_v9  ;;  %v1593_v60 = vadd.f32 %v1561_v44, %v1520_v19  ;;  %v2820_v23 = vpop.f32.mrb[32].mxu0  ;;  %v2244_v28 = vadd.f32 %v2243_v15, %v2242_v17  ;;  %v1943_v10 = vld [vmem:[#allocation2 + $0x48] sm:$0xff]  ;;  %v2148_v30 = vsel %vm976_vm5, %v1945_v0, 0.0 }
 0x1ec   : > { %1624 = vst.msk [vmem:[#allocation2 + $0xe0] sm:$0xff] %vm976_vm5, %v1592_v18  ;;  %1627 = vst.msk [vmem:[#allocation2 + $0xf8] sm:$0xff] %vm976_vm5, %v1595_v16  ;;  %v1888_v27 = vadd.f32 %v2820_v23, %v1856_v45  ;;  %v1775_v32 = vpop.f32.mrb[33].mxu0  ;;  %v2534_v33 = vpack.c.bf16 %v1943_v10, %v1943_v10  ;;  %v2144_v22 = vsel %vm976_vm5, %v1943_v10, 0.0  ;;  %v2205_v4 = vmul.f32 %v1943_v10, %v1943_v10  ;;  %v1861_v23 = vld [vmem:[#allocation2 + $0xb8] sm:$0xff]  ;;  %v1859_v45 = vld [vmem:[#allocation2 + $0xa8] sm:$0xff] }
 0x1ed   : > { %1625 = vst.msk [vmem:[#allocation2 + $0xe8] sm:$0xff] %vm976_vm5, %v1593_v60  ;;  %v1948_v37 = vld [vmem:[#allocation2 + $0x70] sm:$0xff]  ;;  %v1886_v13 = vadd.f32 %v1854_v14, %v1775_v32  ;;  %v2821_v26 = vpop.f32.mrb[34].mxu0  ;;  %v2145_v40 = vadd.f32 %v2144_v22, %v2143_v2  ;;  %v2249_v53 = vsel %vm976_vm5, %v2207_v38, 0.0 }
 0x1ee   : > { %2106 = vst.msk [vmem:[%s3518_s23 + $0x2c] sm:$0xf] %vm2094_vm8, %v2536_v29  ;;  %v2539_v6 = vpack.c.bf16 %v1948_v37, %v1948_v37  ;;  %v1946_v35 = vld [vmem:[#allocation2 + $0x60] sm:$0xff]  ;;  %v1778_v41 = vpop.f32.mrb[35].mxu0  ;;  %2104 = vst.msk [vmem:[%s3518_s23 + $0x24] sm:$0xf] %vm2094_vm8, %v2534_v33  ;;  %v1889_v36 = vadd.f32 %v2821_v26, %v1857_v39  ;;  %v2210_v8 = vmul.f32 %v1948_v37, %v1948_v37 }
 0x1ef   : > { %1920 = vst.msk [vmem:[#allocation2 + $0x90] sm:$0xff] %vm976_vm5, %v1888_v27  ;;  %v2245_v34 = vsel %vm976_vm5, %v2205_v4, 0.0  ;;  %v2537_v42 = vpack.c.bf16 %v1946_v35, %v1946_v35  ;;  %1918 = vst.msk [vmem:[#allocation2 + $0x80] sm:$0xff] %vm976_vm5, %v1886_v13  ;;  %v2147_v21 = vadd.f32 %v2146_v31, %v2145_v40  ;;  %v2208_v48 = vmul.f32 %v1946_v35, %v1946_v35 }
 0x1f0   : > { %v1949_v47 = vld [vmem:[#allocation2 + $0x78] sm:$0xff]  ;;  %v2246_v46 = vadd.f32 %v2245_v34, %v2244_v28  ;;  %2109 = vst.msk [vmem:[%s3518_s23 + $0x38] sm:$0xf] %vm2094_vm8, %v2539_v6  ;;  %v2150_v49 = vsel %vm976_vm5, %v1946_v35, 0.0  ;;  %v1887_v61 = vadd.f32 %v1855_v55, %v1778_v41  ;;  %v2154_v2 = vsel %vm976_vm5, %v1948_v37, 0.0  ;;  %v1864_v6 = vld [vmem:[#allocation2 + $0xd0] sm:$0xff] }
 0x1f1   : > { %v2540_v50 = vpack.c.bf16 %v1949_v47, %v1949_v47  ;;  %2107 = vst.msk [vmem:[%s3518_s23 + $0x30] sm:$0xf] %vm2094_vm8, %v2537_v42  ;;  %v2149_v24 = vadd.f32 %v2148_v30, %v2147_v21  ;;  %v2251_v57 = vsel %vm976_vm5, %v2208_v48, 0.0  ;;  %v2211_v15 = vmul.f32 %v1949_v47, %v1949_v47  ;;  %v1862_v55 = vld [vmem:[#allocation2 + $0xc0] sm:$0xff] }
 0x1f2   : > { %v1947_v52 = vld [vmem:[#allocation2 + $0x68] sm:$0xff]  ;;  %v2248_v54 = vadd.f32 %v2247_v51, %v2246_v46  ;;  %1921 = vst.msk [vmem:[#allocation2 + $0x98] sm:$0xff] %vm976_vm5, %v1889_v36  ;;  %1919 = vst.msk [vmem:[#allocation2 + $0x88] sm:$0xff] %vm976_vm5, %v1887_v61  ;;  %v2255_v27 = vsel %vm976_vm5, %v2210_v8, 0.0  ;;  %v2156_v32 = vsel %vm976_vm5, %v1949_v47, 0.0 }
 0x1f3   : > { %2110 = vst.msk [vmem:[%s3518_s23 + $0x3c] sm:$0xf] %vm2094_vm8, %v2540_v50  ;;  %v2538_v43 = vpack.c.bf16 %v1947_v52, %v1947_v52  ;;  %v2152_v58 = vsel %vm976_vm5, %v1947_v52, 0.0  ;;  %v2209_v59 = vmul.f32 %v1947_v52, %v1947_v52  ;;  %v2824_v62 = vpop.f32.mrb[36].mxu0  ;;  %v2151_v56 = vadd.f32 %v2150_v49, %v2149_v24 }
 0x1f4   : > { %v2250_v1 = vadd.f32 %v2249_v53, %v2248_v54  ;;  %v1892_v3 = vadd.f32 %v2824_v62, %v1860_v63  ;;  %v1791_v5 = vpop.f32.mrb[37].mxu0  ;;  %v2257_v37 = vsel %vm976_vm5, %v2211_v15, 0.0  ;;  %v1865_v62 = vld [vmem:[#allocation2 + $0xd8] sm:$0xff]  ;;  %v1863_v63 = vld [vmem:[#allocation2 + $0xc8] sm:$0xff] }
 0x1f5   : > { %2108 = vst.msk [vmem:[%s3518_s23 + $0x34] sm:$0xf] %vm2094_vm8, %v2538_v43  ;;  %v2253_v9 = vsel %vm976_vm5, %v2209_v59, 0.0  ;;  %v1890_v20 = vadd.f32 %v1858_v7, %v1791_v5  ;;  %v2825_v12 = vpop.f32.mrb[38].mxu0  ;;  %v2153_v18 = vadd.f32 %v2152_v58, %v2151_v56 }
 0x1f6   : > { %v1952_v11 = vld [vmem:[#allocation2 + $0x90] sm:$0xff]  ;;  %v2252_v17 = vadd.f32 %v2251_v57, %v2250_v1  ;;  %v1950_v19 = vld [vmem:[#allocation2 + $0x80] sm:$0xff]  ;;  %1924 = vst.msk [vmem:[#allocation2 + $0xb0] sm:$0xff] %vm976_vm5, %v1892_v3  ;;  %v1794_v44 = vpop.f32.mrb[39].mxu0  ;;  %v1893_v29 = vadd.f32 %v2825_v12, %v1861_v23 }
 0x1f7   : > { %v2543_v16 = vpack.c.bf16 %v1952_v11, %v1952_v11  ;;  %v2541_v60 = vpack.c.bf16 %v1950_v19, %v1950_v19  ;;  %v2212_v0 = vmul.f32 %v1950_v19, %v1950_v19  ;;  %1922 = vst.msk [vmem:[#allocation2 + $0xa0] sm:$0xff] %vm976_vm5, %v1890_v20  ;;  %v2155_v25 = vadd.f32 %v2154_v2, %v2153_v18 }
 0x1f8   : > { %v2254_v28 = vadd.f32 %v2253_v9, %v2252_v17  ;;  %v1891_v10 = vadd.f32 %v1859_v45, %v1794_v44  ;;  %v2158_v14 = vsel %vm976_vm5, %v1950_v19, 0.0  ;;  %1925 = vst.msk [vmem:[#allocation2 + $0xb8] sm:$0xff] %vm976_vm5, %v1893_v29  ;;  %v2214_v13 = vmul.f32 %v1952_v11, %v1952_v11  ;;  %v1868_v44 = vld [vmem:[#allocation2 + $0xf0] sm:$0xff]  ;;  %v1866_v45 = vld [vmem:[#allocation2 + $0xe0] sm:$0xff] }
 0x1f9   : > { %2113 = vst.msk [vmem:[%s3518_s23 + $0x48] sm:$0xf] %vm2094_vm8, %v2543_v16  ;;  %2111 = vst.msk [vmem:[%s3518_s23 + $0x40] sm:$0xf] %vm2094_vm8, %v2541_v60  ;;  %v2157_v22 = vadd.f32 %v2156_v32, %v2155_v25  ;;  %v1953_v4 = vld [vmem:[#allocation2 + $0x98] sm:$0xff]  ;;  %v2259_v26 = vsel %vm976_vm5, %v2212_v0, 0.0 }
 0x1fa   : > { %v2256_v33 = vadd.f32 %v2255_v27, %v2254_v28  ;;  %1923 = vst.msk [vmem:[#allocation2 + $0xa8] sm:$0xff] %vm976_vm5, %v1891_v10  ;;  %v2544_v38 = vpack.c.bf16 %v1953_v4, %v1953_v4  ;;  %v1951_v31 = vld [vmem:[#allocation2 + $0x88] sm:$0xff]  ;;  %v2162_v39 = vsel %vm976_vm5, %v1952_v11, 0.0  ;;  %v2263_v53 = vsel %vm976_vm5, %v2214_v13, 0.0 }
 0x1fb   : > { %v2828_v40 = vpop.f32.mrb[40].mxu0  ;;  %v2159_v35 = vadd.f32 %v2158_v14, %v2157_v22  ;;  %v2542_v47 = vpack.c.bf16 %v1951_v31, %v1951_v31  ;;  %v2160_v21 = vsel %vm976_vm5, %v1951_v31, 0.0  ;;  %v2213_v46 = vmul.f32 %v1951_v31, %v1951_v31  ;;  %v1869_v22 = vld [vmem:[#allocation2 + $0xf8] sm:$0xff] }
 0x1fc   : > { %v2258_v41 = vadd.f32 %v2257_v37, %v2256_v33  ;;  %v1896_v34 = vadd.f32 %v2828_v40, %v1864_v6  ;;  %v1807_v42 = vpop.f32.mrb[41].mxu0  ;;  %2114 = vst.msk [vmem:[%s3518_s23 + $0x4c] sm:$0xf] %vm2094_vm8, %v2544_v38  ;;  %v2215_v54 = vmul.f32 %v1953_v4, %v1953_v4  ;;  %v2164_v56 = vsel %vm976_vm5, %v1953_v4, 0.0  ;;  %v1867_v37 = vld [vmem:[#allocation2 + $0xe8] sm:$0xff] }
 0x1fd   : > { %v1956_v48 = vld [vmem:[#allocation2 + $0xb0] sm:$0xff]  ;;  %v2829_v50 = vpop.f32.mrb[42].mxu0  ;;  %v2161_v30 = vadd.f32 %v2160_v21, %v2159_v35  ;;  %2112 = vst.msk [vmem:[%s3518_s23 + $0x44] sm:$0xf] %vm2094_vm8, %v2542_v47  ;;  %v2261_v24 = vsel %vm976_vm5, %v2213_v46, 0.0  ;;  %v1894_v61 = vadd.f32 %v1862_v55, %v1807_v42 }
 0x1fe   : > { %v2260_v51 = vadd.f32 %v2259_v26, %v2258_v41  ;;  %v2547_v49 = vpack.c.bf16 %v1956_v48, %v1956_v48  ;;  %v1954_v52 = vld [vmem:[#allocation2 + $0xa0] sm:$0xff]  ;;  %1928 = vst.msk [vmem:[#allocation2 + $0xd0] sm:$0xff] %vm976_vm5, %v1896_v34  ;;  %v1810_v36 = vpop.f32.mrb[43].mxu0  ;;  %v1897_v7 = vadd.f32 %v2829_v50, %v1865_v62  ;;  %v2265_v12 = vsel %vm976_vm5, %v2215_v54, 0.0 }
 0x1ff   : > { %v2545_v43 = vpack.c.bf16 %v1954_v52, %v1954_v52  ;;  %v2163_v57 = vadd.f32 %v2162_v39, %v2161_v30  ;;  %v2216_v59 = vmul.f32 %v1954_v52, %v1954_v52  ;;  %v2166_v1 = vsel %vm976_vm5, %v1954_v52, 0.0  ;;  %v1957_v3 = vld [vmem:[#allocation2 + $0xb8] sm:$0xff]  ;;  %1926 = vst.msk [vmem:[#allocation2 + $0xc0] sm:$0xff] %vm976_vm5, %v1894_v61 }
 0x200   : > { %v2262_v58 = vadd.f32 %v2261_v24, %v2260_v51  ;;  %2117 = vst.msk [vmem:[%s3518_s23 + $0x58] sm:$0xf] %vm2094_vm8, %v2547_v49  ;;  %v1895_v8 = vadd.f32 %v1863_v63, %v1810_v36  ;;  %v2548_v20 = vpack.c.bf16 %v1957_v3, %v1957_v3  ;;  %v2218_v25 = vmul.f32 %v1956_v48, %v1956_v48 }
 0x201   : > { %2115 = vst.msk [vmem:[%s3518_s23 + $0x50] sm:$0xf] %vm2094_vm8, %v2545_v43  ;;  %v1955_v5 = vld [vmem:[#allocation2 + $0xa8] sm:$0xff]  ;;  %v2165_v11 = vadd.f32 %v2164_v56, %v2163_v57  ;;  %v2267_v17 = vsel %vm976_vm5, %v2216_v59, 0.0  ;;  %v2170_v13 = vsel %vm976_vm5, %v1956_v48, 0.0  ;;  %v2219_v26 = vmul.f32 %v1957_v3, %v1957_v3 }
 0x202   : > { %v2264_v9 = vadd.f32 %v2263_v53, %v2262_v58  ;;  %v2546_v18 = vpack.c.bf16 %v1955_v5, %v1955_v5  ;;  %v2168_v16 = vsel %vm976_vm5, %v1955_v5, 0.0  ;;  %1929 = vst.msk [vmem:[#allocation2 + $0xd8] sm:$0xff] %vm976_vm5, %v1897_v7  ;;  %1927 = vst.msk [vmem:[#allocation2 + $0xc8] sm:$0xff] %vm976_vm5, %v1895_v8  ;;  %v2217_v60 = vmul.f32 %v1955_v5, %v1955_v5 }
 0x203   : > { %v2832_v19 = vpop.f32.mrb[44].mxu0  ;;  %v2167_v2 = vadd.f32 %v2166_v1, %v2165_v11  ;;  %2118 = vst.msk [vmem:[%s3518_s23 + $0x5c] sm:$0xf] %vm2094_vm8, %v2548_v20  ;;  %v2271_v41 = vsel %vm976_vm5, %v2218_v25, 0.0  ;;  %v2172_v31 = vsel %vm976_vm5, %v1957_v3, 0.0  ;;  %v2273_v39 = vsel %vm976_vm5, %v2219_v26, 0.0 }
 0x204   : > { %v2266_v15 = vadd.f32 %v2265_v12, %v2264_v9  ;;  %v1900_v0 = vadd.f32 %v2832_v19, %v1868_v44  ;;  %v1823_v23 = vpop.f32.mrb[45].mxu0  ;;  %2116 = vst.msk [vmem:[%s3518_s23 + $0x54] sm:$0xf] %vm2094_vm8, %v2546_v18  ;;  %v2269_v14 = vsel %vm976_vm5, %v2217_v60, 0.0 }
 0x205   : > { %v1960_v28 = vld [vmem:[#allocation2 + $0xd0] sm:$0xff]  ;;  %v1898_v29 = vadd.f32 %v1866_v45, %v1823_v23  ;;  %v2833_v10 = vpop.f32.mrb[46].mxu0  ;;  %v2169_v32 = vadd.f32 %v2168_v16, %v2167_v2 }
 0x206   : > { %v2268_v27 = vadd.f32 %v2267_v17, %v2266_v15  ;;  %v2551_v33 = vpack.c.bf16 %v1960_v28, %v1960_v28  ;;  %1932 = vst.msk [vmem:[#allocation2 + $0xf0] sm:$0xff] %vm976_vm5, %v1900_v0  ;;  %v1826_v4 = vpop.f32.mrb[47].mxu0  ;;  %v1901_v38 = vadd.f32 %v2833_v10, %v1869_v22  ;;  %v1958_v34 = vld [vmem:[#allocation2 + $0xc0] sm:$0xff]  ;;  %v2222_v54 = vmul.f32 %v1960_v28, %v1960_v28 }
 0x207   : > { %1930 = vst.msk [vmem:[#allocation2 + $0xe0] sm:$0xff] %vm976_vm5, %v1898_v29  ;;  %v1899_v40 = vadd.f32 %v1867_v37, %v1826_v4  ;;  %v2171_v6 = vadd.f32 %v2170_v13, %v2169_v32  ;;  %v2549_v47 = vpack.c.bf16 %v1958_v34, %v1958_v34  ;;  %v2174_v46 = vsel %vm976_vm5, %v1958_v34, 0.0 }
 0x208   : > { %v2270_v35 = vadd.f32 %v2269_v14, %v2268_v27  ;;  %2121 = vst.msk [vmem:[%s3518_s23 + $0x68] sm:$0xf] %vm2094_vm8, %v2551_v33  ;;  %v2220_v51 = vmul.f32 %v1958_v34, %v1958_v34  ;;  %v2178_v62 = vsel %vm976_vm5, %v1960_v28, 0.0  ;;  %v2279_v11 = vsel %vm976_vm5, %v2222_v54, 0.0 }
 0x209   : > { %1933 = vst.msk [vmem:[#allocation2 + $0xf8] sm:$0xff] %vm976_vm5, %v1901_v38  ;;  %1931 = vst.msk [vmem:[#allocation2 + $0xe8] sm:$0xff] %vm976_vm5, %v1899_v40  ;;  %v2173_v21 = vadd.f32 %v2172_v31, %v2171_v6  ;;  %v1961_v48 = vld [vmem:[#allocation2 + $0xd8] sm:$0xff]  ;;  %v1959_v50 = vld [vmem:[#allocation2 + $0xc8] sm:$0xff] }
 0x20a   : > { %v2272_v42 = vadd.f32 %v2271_v41, %v2270_v35  ;;  %v2552_v30 = vpack.c.bf16 %v1961_v48, %v1961_v48  ;;  %2119 = vst.msk [vmem:[%s3518_s23 + $0x60] sm:$0xf] %vm2094_vm8, %v2549_v47  ;;  %v2550_v36 = vpack.c.bf16 %v1959_v50, %v1959_v50  ;;  %v2176_v53 = vsel %vm976_vm5, %v1959_v50, 0.0 }
 0x20b   : > { %v2175_v49 = vadd.f32 %v2174_v46, %v2173_v21  ;;  %v2275_v24 = vsel %vm976_vm5, %v2220_v51, 0.0  ;;  %v2221_v43 = vmul.f32 %v1959_v50, %v1959_v50  ;;  %v2223_v63 = vmul.f32 %v1961_v48, %v1961_v48 }
 0x20c   : > { %v2274_v52 = vadd.f32 %v2273_v39, %v2272_v42  ;;  %2122 = vst.msk [vmem:[%s3518_s23 + $0x6c] sm:$0xf] %vm2094_vm8, %v2552_v30  ;;  %2120 = vst.msk [vmem:[%s3518_s23 + $0x64] sm:$0xf] %vm2094_vm8, %v2550_v36  ;;  %v2180_v20 = vsel %vm976_vm5, %v1961_v48, 0.0 }
 0x20d   : > { %v1964_v55 = vld [vmem:[#allocation2 + $0xf0] sm:$0xff]  ;;  %v2177_v58 = vadd.f32 %v2176_v53, %v2175_v49  ;;  %v2277_v56 = vsel %vm976_vm5, %v2221_v43, 0.0  ;;  %v2281_v44 = vsel %vm976_vm5, %v2223_v63, 0.0 }
 0x20e   : > { %v2276_v57 = vadd.f32 %v2275_v24, %v2274_v52  ;;  %v2555_v59 = vpack.c.bf16 %v1964_v55, %v1964_v55  ;;  %v1962_v61 = vld [vmem:[#allocation2 + $0xe0] sm:$0xff]  ;;  %v2226_v45 = vmul.f32 %v1964_v55, %v1964_v55  ;;  %v2186_v10 = vsel %vm976_vm5, %v1964_v55, 0.0 }
 0x20f   : > { %v2553_v1 = vpack.c.bf16 %v1962_v61, %v1962_v61  ;;  %v2179_v3 = vadd.f32 %v2178_v62, %v2177_v58  ;;  %v2224_v7 = vmul.f32 %v1962_v61, %v1962_v61  ;;  %v2182_v12 = vsel %vm976_vm5, %v1962_v61, 0.0 }
 0x210   : > { %v2278_v5 = vadd.f32 %v2277_v56, %v2276_v57  ;;  %2125 = vst.msk [vmem:[%s3518_s23 + $0x78] sm:$0xf] %vm2094_vm8, %v2555_v59  ;;  %v1965_v8 = vld [vmem:[#allocation2 + $0xf8] sm:$0xff]  ;;  %v1963_v9 = vld [vmem:[#allocation2 + $0xe8] sm:$0xff]  ;;  %v2287_v33 = vsel %vm976_vm5, %v2226_v45, 0.0 }
 0x211   : > { %2123 = vst.msk [vmem:[%s3518_s23 + $0x70] sm:$0xf] %vm2094_vm8, %v2553_v1  ;;  %v2556_v17 = vpack.c.bf16 %v1965_v8, %v1965_v8  ;;  %v2181_v16 = vadd.f32 %v2180_v20, %v2179_v3  ;;  %v2554_v19 = vpack.c.bf16 %v1963_v9, %v1963_v9  ;;  %v2283_v2 = vsel %vm976_vm5, %v2224_v7, 0.0 }
 0x212   : > { %v2280_v18 = vadd.f32 %v2279_v11, %v2278_v5  ;;  %v2184_v15 = vsel %vm976_vm5, %v1963_v9, 0.0  ;;  %v2225_v60 = vmul.f32 %v1963_v9, %v1963_v9  ;;  %v2227_v27 = vmul.f32 %v1965_v8, %v1965_v8 }
 0x213   : > { %2126 = vst.msk [vmem:[%s3518_s23 + $0x7c] sm:$0xf] %vm2094_vm8, %v2556_v17  ;;  %v2183_v0 = vadd.f32 %v2182_v12, %v2181_v16  ;;  %2124 = vst.msk [vmem:[%s3518_s23 + $0x74] sm:$0xf] %vm2094_vm8, %v2554_v19  ;;  %v2188_v22 = vsel %vm976_vm5, %v1965_v8, 0.0 }
 0x214   : > { %v2282_v23 = vadd.f32 %v2281_v44, %v2280_v18  ;;  %v2285_v25 = vsel %vm976_vm5, %v2225_v60, 0.0  ;;  %v2289_v13 = vsel %vm976_vm5, %v2227_v27, 0.0 }
 0x215   : > { %v2185_v29 = vadd.f32 %v2184_v15, %v2183_v0 }
 0x216   : > { %v2284_v28 = vadd.f32 %v2283_v2, %v2282_v23 }
 0x217   : > { %v2187_v32 = vadd.f32 %v2186_v10, %v2185_v29 }
 0x218   : > { %v2286_v14 = vadd.f32 %v2285_v25, %v2284_v28 }
 0x219   : > { %v2189_v4 = vadd.f32 %v2188_v22, %v2187_v32 }
 0x21a   : > { %v2288_v37 = vadd.f32 %v2287_v33, %v2286_v14 }
 0x21b   : > { %v2190_v26 = vrot.slane %v2189_v4, 4 }
 0x21c   : > { %v2290_v38 = vadd.f32 %v2289_v13, %v2288_v37 }
 0x21d   : > { %v2191_v40 = vadd.f32 %v2190_v26, %v2189_v4 }
 0x21e   : > { %v2291_v6 = vrot.slane %v2290_v38, 4 }
 0x21f   : > { %v2192_v35 = vrot.slane %v2191_v40, 2 }
 0x220   : > { %v2292_v41 = vadd.f32 %v2291_v6, %v2290_v38 }
 0x221   : > { %v2193_v31 = vadd.f32 %v2192_v35, %v2191_v40 }
 0x222   : > { %v2293_v34 = vrot.slane %v2292_v41, 2 }
 0x223   : > { %v2194_v42 = vrot.slane %v2193_v31, 1 }
 0x224   : > { %v2294_v47 = vadd.f32 %v2293_v34, %v2292_v41 }
 0x225   : > { %v2195_v46 = vadd.f32 %v2194_v42, %v2193_v31 }
 0x226   : > { %v2295_v21 = vrot.slane %v2294_v47, 1 }
 0x228   : > { %v2296_v48 = vadd.f32 %v2295_v21, %v2294_v47 }
 0x22a   : > { %v2298_v50 = vsel %vm580_vm0, %v2195_v46, %v2296_v48 }
 0x22b   : > { %2300 = vst.msk [vmem:[%s235_s27] sm:$0x3] %vm2299_vm9, %v2298_v50 }
 0x22c PF: > { %s16_s18 = sadd.s32 1, %s2881_s18  }
 0x22d   : > { %p13_p4 = scmp.ge.s32.totalorder %s16_s18, 4  }
 0x22f   :  { %15 = sbr.rel (!%p13_p4) target bundleno = 1 (0x1), region = 80 }

</bundles_post_ra>
